<compile_context>
chip_gen: v5e
topology: v5e:2x2
jax: 0.10.0
libtpu: 0.0.40
codegen_flags: <defaults>
</compile_context>

<pallas_src>
import jax
import jax.numpy as jnp
from jax import lax
from jax.experimental import pallas as pl
from jax.experimental.pallas import tpu as pltpu


# ----------------------------------------------------------------------------
# Kernel
# ----------------------------------------------------------------------------
def _basic_block_kernel(x_ref, w1_ref, w2_ref, sb_ref, out_ref, pad_ref):
    """Fused BasicBlock for a block of Nb images, lane-dense (H, W*C) layout.

    x_ref  : (Nb, H, WC)   bf16 input slabs (also the identity branch)
    w*_ref : (3*WC, WC)    bf16 K-concatenated banded conv weights
                           (rows [0:WC]=up tap, [WC:2WC]=center, [2WC:3WC]=down)
    sb_ref : (4, WC)       f32 packed folded-BN scale/bias rows: s1, b1, s2, b2
    out_ref: (Nb, H, WC)   bf16 output slabs
    pad_ref: (Nb, H+2, WC) bf16 scratch supplying per-image zero halo rows
    """
    Nb, H, WC = x_ref.shape
    M = Nb * H
    f32, bf16 = jnp.float32, jnp.bfloat16

    # Zero only the 2*Nb halo rows; the interior is fully overwritten per conv.
    zrow = jnp.zeros((Nb, 1, WC), bf16)
    pad_ref[:, 0:1, :] = zrow
    pad_ref[:, H + 1:H + 2, :] = zrow

    def conv3x3(act, w_ref):
        """3x3 'same' conv as ONE MXU matmul: the dx taps and W-direction zero
        padding live in the banded weights; the dy taps are sublane-offset views
        of the zero-haloed scratch, concatenated along K."""
        pad_ref[:, 1:H + 1, :] = act.reshape(Nb, H, WC)
        up = pad_ref[:, 0:H, :].reshape(M, WC)         # row h holds input row h-1
        dn = pad_ref[:, 2:H + 2, :].reshape(M, WC)     # row h holds input row h+1
        lhs = jnp.concatenate([up, act, dn], axis=1)   # (M, 3*WC) bf16
        return jnp.dot(lhs, w_ref[...], preferred_element_type=f32)

    s1, b1 = sb_ref[0:1, :], sb_ref[1:2, :]
    s2, b2 = sb_ref[2:3, :], sb_ref[3:4, :]

    x = x_ref[...].reshape(M, WC)                      # bf16 (M, WC)

    out1 = conv3x3(x, w1_ref)                                    # conv1 (f32 acc)
    out1 = jnp.maximum(out1 * s1 + b1, 0.0)                      # bn1 + relu
    out2 = conv3x3(out1.astype(bf16), w2_ref)                    # conv2 (f32 acc)
    out2 = out2 * s2 + b2 + x.astype(f32)                        # bn2 + identity
    out_ref[...] = (jnp.maximum(out2, 0.0)                       # relu
                    .reshape(Nb, H, WC).astype(out_ref.dtype))


# ----------------------------------------------------------------------------
# One-time parameter preprocessing (call at model init, NOT per forward)
# ----------------------------------------------------------------------------
def _banded_weights(w_hwio, width):
    """(3, 3, Cin, Cout) HWIO -> (3*W*Cin, W*Cout) K-concatenated banded matrix.

    bw[dy*W*Cin + wi*Cin + ci, wo*Cout + co] = w[dy, wi - wo + 1, ci, co] when
    |wi - wo| <= 1 and 0 otherwise, i.e. the three dx taps and the W-direction
    zero padding of a stride-1 'same' conv are folded into one matmul; the three
    dy taps are stacked along K so the whole conv is a single MXU matmul.
    """
    _, _, cin, cout = w_hwio.shape
    wi = jnp.arange(width)[:, None]
    wo = jnp.arange(width)[None, :]
    dx = wi - wo + 1                                      # (W, W)
    valid = (dx >= 0) & (dx <= 2)
    blocks = w_hwio[:, jnp.clip(dx, 0, 2)]                # (3, W, W, Cin, Cout)
    blocks = blocks * valid[None, :, :, None, None]
    banded = blocks.transpose(0, 1, 3, 2, 4).reshape(3, width * cin, width * cout)
    return banded.reshape(3 * width * cin, width * cout)


def prepare_basic_block_params(params, width, eps=1e-5):
    """Expand conv weights to banded bf16 matrices and fold eval-mode BN into a
    packed (4, W*C) scale/bias tensor.  Run once; pass the result to every
    basic_block_forward call."""
    w1, w2 = params["w1"], params["w2"]
    cin, cout = w1.shape[2], w1.shape[3]
    assert cin == cout, "stride=1 / downsample=None requires inplanes == planes"

    bw1 = _banded_weights(w1, width).astype(jnp.bfloat16)
    bw2 = _banded_weights(w2, width).astype(jnp.bfloat16)

    s1 = params["gamma1"] / jnp.sqrt(params["var1"] + eps)
    b1 = params["beta1"] - params["mean1"] * s1
    s2 = params["gamma2"] / jnp.sqrt(params["var2"] + eps)
    b2 = params["beta2"] - params["mean2"] * s2
    # Tile per-channel scale/bias across W so they broadcast over the (M, W*C)
    # lane-dense layout; pack into one operand (one DMA descriptor per step).
    sb = jnp.stack([jnp.tile(s1, width), jnp.tile(b1, width),
                    jnp.tile(s2, width), jnp.tile(b2, width)]).astype(jnp.float32)
    return {"bw1": bw1, "bw2": bw2, "sb": sb}


# ----------------------------------------------------------------------------
# Forward wrapper
# ----------------------------------------------------------------------------
def _pick_batch_block(n, h):
    """Images per grid step: aim for >=128 matmul rows (MXU fill/drain), but
    keep >=2 grid steps when possible so both v7x TensorCores get work."""
    target = max(1, -(-128 // h))                 # ceil(128 / H)
    nb = min(n, target)
    while n % nb:
        nb -= 1
    if nb == n and n > 1:                         # leave >=2 grid steps
        nb = n // 2
        while n % nb:
            nb -= 1
    return max(nb, 1)


def basic_block_forward(x_nchw, prepared, *, batch_block=None):
    """BasicBlock forward. Input/Output in NCHW (PyTorch convention)."""
    N, C, H, W = x_nchw.shape
    WC = W * C
    bw1, bw2, sb = prepared["bw1"], prepared["bw2"], prepared["sb"]
    assert bw1.shape == (3 * WC, WC) and bw2.shape == (3 * WC, WC)
    assert sb.shape == (4, WC)

    # NCHW -> lane-dense bf16 slabs (N, H, W*C); activations stay bf16 in HBM.
    x2d = (jnp.transpose(x_nchw, (0, 2, 3, 1))
           .reshape(N, H, WC)
           .astype(jnp.bfloat16))

    Nb = batch_block if batch_block is not None else _pick_batch_block(N, H)
    assert N % Nb == 0

    # True conv FLOPs (the dense banded matmul does ~5.3x more MXU work).
    flops = N * 2 * 2 * 9 * C * C * H * W
    bytes_accessed = (2 * N * H * WC * 2          # activations in + out (bf16)
                      + 2 * 3 * WC * WC * 2       # banded weights (bf16)
                      + 4 * WC * 4)               # packed scales/biases (f32)

    out = pl.pallas_call(
        _basic_block_kernel,
        out_shape=jax.ShapeDtypeStruct((N, H, WC), jnp.bfloat16),
        grid_spec=pltpu.PrefetchScalarGridSpec(
            num_scalar_prefetch=0,
            grid=(N // Nb,),
            in_specs=[
                pl.BlockSpec((Nb, H, WC), lambda n: (n, 0, 0)),
                # Constant index maps: the weights / scales are DMA'd once and
                # stay resident across all grid steps.
                pl.BlockSpec((3 * WC, WC), lambda n: (0, 0)),
                pl.BlockSpec((3 * WC, WC), lambda n: (0, 0)),
                pl.BlockSpec((4, WC), lambda n: (0, 0)),
            ],
            out_specs=pl.BlockSpec((Nb, H, WC), lambda n: (n, 0, 0)),
            scratch_shapes=[pltpu.VMEM((Nb, H + 2, WC), jnp.bfloat16)],
        ),
        compiler_params=pltpu.CompilerParams(
            dimension_semantics=("parallel",),
            vmem_limit_bytes=32 * 1024 * 1024,
        ),
        cost_estimate=pl.CostEstimate(
            flops=flops, transcendentals=0, bytes_accessed=bytes_accessed),
    )(x2d, bw1, bw2, sb)

    out = out.astype(x_nchw.dtype).reshape(N, H, W, C)
    return jnp.transpose(out, (0, 3, 1, 2))       # -> NCHW


# ----------------------------------------------------------------------------
# Pure-JAX reference + test harness
# ----------------------------------------------------------------------------
def basic_block_reference(x_nchw, params, eps=1e-5):
    """Pure-JAX reference (lax convs, f32) for correctness checking."""
    x = jnp.transpose(x_nchw, (0, 2, 3, 1))
    dn = lax.conv_dimension_numbers(x.shape, params["w1"].shape,
                                    ("NHWC", "HWIO", "NHWC"))
    out = lax.conv_general_dilated(x, params["w1"], (1, 1),
                                   ((1, 1), (1, 1)), dimension_numbers=dn)
    out = ((out - params["mean1"]) / jnp.sqrt(params["var1"] + eps)
           * params["gamma1"] + params["beta1"])
    out = jnp.maximum(out, 0.0)
    out = lax.conv_general_dilated(out, params["w2"], (1, 1),
                                   ((1, 1), (1, 1)), dimension_numbers=dn)
    out = ((out - params["mean2"]) / jnp.sqrt(params["var2"] + eps)
           * params["gamma2"] + params["beta2"])
    out = jnp.maximum(out + x, 0.0)
    return jnp.transpose(out, (0, 3, 1, 2))


def make_params(key, inplanes, planes):
    ks = jax.random.split(key, 10)
    fan1 = 3 * 3 * inplanes
    fan2 = 3 * 3 * planes
    return {
        # conv weights in HWIO
        "w1": jax.random.normal(ks[0], (3, 3, inplanes, planes),
                                jnp.float32) * (2.0 / fan1) ** 0.5,
        "w2": jax.random.normal(ks[1], (3, 3, planes, planes),
                                jnp.float32) * (2.0 / fan2) ** 0.5,
        # bn1
        "gamma1": 0.5 + jax.random.uniform(ks[2], (planes,), jnp.float32),
        "beta1": 0.1 * jax.random.normal(ks[3], (planes,), jnp.float32),
        "mean1": 0.1 * jax.random.normal(ks[4], (planes,), jnp.float32),
        "var1": 0.5 + jax.random.uniform(ks[5], (planes,), jnp.float32),
        # bn2
        "gamma2": 0.5 + jax.random.uniform(ks[6], (planes,), jnp.float32),
        "beta2": 0.1 * jax.random.normal(ks[7], (planes,), jnp.float32),
        "mean2": 0.1 * jax.random.normal(ks[8], (planes,), jnp.float32),
        "var2": 0.5 + jax.random.uniform(ks[9], (planes,), jnp.float32),
    }


if __name__ == "__main__":
    key = jax.random.PRNGKey(0)
    kx, kp = jax.random.split(key)

    N, C, H, W = 8, 32, 16, 16            # inplanes == planes == 32
    x = jax.random.normal(kx, (N, C, H, W), jnp.float32)   # NCHW, like PyTorch
    params = make_params(kp, C, C)

    # One-time preprocessing (model init) — NOT on the per-call path.
    prepared = prepare_basic_block_params(params, W)
    prepared = jax.tree_util.tree_map(jax.block_until_ready, prepared)

    fwd = jax.jit(basic_block_forward)
    out = jax.block_until_ready(fwd(x, prepared))
    ref = jax.block_until_ready(basic_block_reference(x, params))

    assert out.shape == (N, C, H, W)
    # bf16 activations + bf16 MXU operands (f32 accumulation) -> loose tolerance.
    assert jnp.allclose(out, ref, atol=0.15, rtol=0.05), (
        f"max abs err = {float(jnp.max(jnp.abs(out - ref)))}")
    print("KERNEL_OK")
</pallas_src>

<mosaic_0001>
module attributes {stable_mosaic.version = 11 : i64} {
  func.func @_basic_block_kernel(%arg0: i32, %arg1: memref<4x16x512xbf16, #tpu.memory_space<vmem>>, %arg2: memref<1536x512xbf16, #tpu.memory_space<vmem>>, %arg3: memref<1536x512xbf16, #tpu.memory_space<vmem>>, %arg4: memref<4x512xf32, #tpu.memory_space<vmem>>, %arg5: memref<4x16x512xbf16, #tpu.memory_space<vmem>>, %arg6: memref<4x18x512xbf16, #tpu.memory_space<vmem>>) attributes {dimension_semantics = [#tpu.dimension_semantics<parallel>], iteration_bounds = array<i64: 2>, scalar_prefetch = 0 : i64, scratch_operands = 1 : i64, tpu.core_type = #tpu.core_type<tc>, window_params = [{transform_indices = @transform_0, window_bounds = array<i64: 4, 16, 512>}, {pipeline_mode = #tpu.pipeline_mode<synchronous>, transform_indices = @transform_1, window_bounds = array<i64: 1536, 512>}, {pipeline_mode = #tpu.pipeline_mode<synchronous>, transform_indices = @transform_2, window_bounds = array<i64: 1536, 512>}, {pipeline_mode = #tpu.pipeline_mode<synchronous>, transform_indices = @transform_3, window_bounds = array<i64: 4, 512>}, {transform_indices = @transform_4, window_bounds = array<i64: 4, 16, 512>}]} {
    %cst = arith.constant 0.000000e+00 : bf16
    %0 = vector.broadcast %cst : bf16 to vector<4x1x512xbf16>
    %c0 = arith.constant 0 : index
    %c0_0 = arith.constant 0 : index
    %c0_1 = arith.constant 0 : index
    %1 = vector.load %arg6[%c0, %c0_0, %c0_1] : memref<4x18x512xbf16, #tpu.memory_space<vmem>>, vector<4x1x512xbf16>
    tpu.vector_store %arg6[%c0, %c0_0, %c0_1], %0 {strides = array<i32>} : memref<4x18x512xbf16, #tpu.memory_space<vmem>>, vector<4x1x512xbf16>,
    %c0_2 = arith.constant 0 : index
    %c17 = arith.constant 17 : index
    %c0_3 = arith.constant 0 : index
    %2 = vector.load %arg6[%c0_2, %c17, %c0_3] : memref<4x18x512xbf16, #tpu.memory_space<vmem>>, vector<4x1x512xbf16>
    tpu.vector_store %arg6[%c0_2, %c17, %c0_3], %0 {strides = array<i32>} : memref<4x18x512xbf16, #tpu.memory_space<vmem>>, vector<4x1x512xbf16>,
    %c0_4 = arith.constant 0 : index
    %c0_5 = arith.constant 0 : index
    %3 = vector.load %arg4[%c0_4, %c0_5] : memref<4x512xf32, #tpu.memory_space<vmem>>, vector<1x512xf32>
    %c1 = arith.constant 1 : index
    %c0_6 = arith.constant 0 : index
    %4 = vector.load %arg4[%c1, %c0_6] : memref<4x512xf32, #tpu.memory_space<vmem>>, vector<1x512xf32>
    %c2 = arith.constant 2 : index
    %c0_7 = arith.constant 0 : index
    %5 = vector.load %arg4[%c2, %c0_7] : memref<4x512xf32, #tpu.memory_space<vmem>>, vector<1x512xf32>
    %c3 = arith.constant 3 : index
    %c0_8 = arith.constant 0 : index
    %6 = vector.load %arg4[%c3, %c0_8] : memref<4x512xf32, #tpu.memory_space<vmem>>, vector<1x512xf32>
    %c0_9 = arith.constant 0 : index
    %c0_10 = arith.constant 0 : index
    %c0_11 = arith.constant 0 : index
    %7 = vector.load %arg1[%c0_9, %c0_10, %c0_11] : memref<4x16x512xbf16, #tpu.memory_space<vmem>>, vector<4x16x512xbf16>
    %8 = vector.shape_cast %7 : vector<4x16x512xbf16> to vector<64x512xbf16>
    %9 = vector.shape_cast %8 : vector<64x512xbf16> to vector<4x16x512xbf16>
    %c0_12 = arith.constant 0 : index
    %c1_13 = arith.constant 1 : index
    %c0_14 = arith.constant 0 : index
    %10 = vector.load %arg6[%c0_12, %c1_13, %c0_14] : memref<4x18x512xbf16, #tpu.memory_space<vmem>>, vector<4x16x512xbf16>
    tpu.vector_store %arg6[%c0_12, %c1_13, %c0_14], %9 {strides = array<i32>} : memref<4x18x512xbf16, #tpu.memory_space<vmem>>, vector<4x16x512xbf16>,
    %c0_15 = arith.constant 0 : index
    %c0_16 = arith.constant 0 : index
    %c0_17 = arith.constant 0 : index
    %11 = vector.load %arg6[%c0_15, %c0_16, %c0_17] : memref<4x18x512xbf16, #tpu.memory_space<vmem>>, vector<4x16x512xbf16>
    %12 = vector.shape_cast %11 : vector<4x16x512xbf16> to vector<64x512xbf16>
    %c0_18 = arith.constant 0 : index
    %c2_19 = arith.constant 2 : index
    %c0_20 = arith.constant 0 : index
    %13 = vector.load %arg6[%c0_18, %c2_19, %c0_20] : memref<4x18x512xbf16, #tpu.memory_space<vmem>>, vector<4x16x512xbf16>
    %14 = vector.shape_cast %13 : vector<4x16x512xbf16> to vector<64x512xbf16>
    %15 = tpu.concatenate %12, %8, %14 in 1 : vector<64x512xbf16>, vector<64x512xbf16>, vector<64x512xbf16> -> vector<64x1536xbf16>
    %c0_21 = arith.constant 0 : index
    %c0_22 = arith.constant 0 : index
    %16 = vector.load %arg2[%c0_21, %c0_22] : memref<1536x512xbf16, #tpu.memory_space<vmem>>, vector<1536x512xbf16>
    %cst_23 = arith.constant dense<0.000000e+00> : vector<64x512xf32>
    %17 = tpu.matmul %15, %16, %cst_23 {dimension_numbers = #tpu.dot_dimension_numbers<[1], [0], [0], [1], [0, 0, 1, 1], [], []>} : vector<64x1536xbf16>, vector<1536x512xbf16>, vector<64x512xf32> -> vector<64x512xf32>
    %18 = vector.broadcast %3 : vector<1x512xf32> to vector<64x512xf32>
    %19 = arith.mulf %17, %18 : vector<64x512xf32>
    %20 = vector.broadcast %4 : vector<1x512xf32> to vector<64x512xf32>
    %21 = arith.addf %19, %20 : vector<64x512xf32>
    %cst_24 = arith.constant 0.000000e+00 : f32
    %22 = vector.broadcast %cst_24 : f32 to vector<64x512xf32>
    %23 = arith.maximumf %21, %22 : vector<64x512xf32>
    %24 = arith.truncf %23 : vector<64x512xf32> to vector<64x512xbf16>
    %25 = vector.shape_cast %24 : vector<64x512xbf16> to vector<4x16x512xbf16>
    %c0_25 = arith.constant 0 : index
    %c1_26 = arith.constant 1 : index
    %c0_27 = arith.constant 0 : index
    %26 = vector.load %arg6[%c0_25, %c1_26, %c0_27] : memref<4x18x512xbf16, #tpu.memory_space<vmem>>, vector<4x16x512xbf16>
    tpu.vector_store %arg6[%c0_25, %c1_26, %c0_27], %25 {strides = array<i32>} : memref<4x18x512xbf16, #tpu.memory_space<vmem>>, vector<4x16x512xbf16>,
    %c0_28 = arith.constant 0 : index
    %c0_29 = arith.constant 0 : index
    %c0_30 = arith.constant 0 : index
    %27 = vector.load %arg6[%c0_28, %c0_29, %c0_30] : memref<4x18x512xbf16, #tpu.memory_space<vmem>>, vector<4x16x512xbf16>
    %28 = vector.shape_cast %27 : vector<4x16x512xbf16> to vector<64x512xbf16>
    %c0_31 = arith.constant 0 : index
    %c2_32 = arith.constant 2 : index
    %c0_33 = arith.constant 0 : index
    %29 = vector.load %arg6[%c0_31, %c2_32, %c0_33] : memref<4x18x512xbf16, #tpu.memory_space<vmem>>, vector<4x16x512xbf16>
    %30 = vector.shape_cast %29 : vector<4x16x512xbf16> to vector<64x512xbf16>
    %31 = tpu.concatenate %28, %24, %30 in 1 : vector<64x512xbf16>, vector<64x512xbf16>, vector<64x512xbf16> -> vector<64x1536xbf16>
    %c0_34 = arith.constant 0 : index
    %c0_35 = arith.constant 0 : index
    %32 = vector.load %arg3[%c0_34, %c0_35] : memref<1536x512xbf16, #tpu.memory_space<vmem>>, vector<1536x512xbf16>
    %cst_36 = arith.constant dense<0.000000e+00> : vector<64x512xf32>
    %33 = tpu.matmul %31, %32, %cst_36 {dimension_numbers = #tpu.dot_dimension_numbers<[1], [0], [0], [1], [0, 0, 1, 1], [], []>} : vector<64x1536xbf16>, vector<1536x512xbf16>, vector<64x512xf32> -> vector<64x512xf32>
    %34 = vector.broadcast %5 : vector<1x512xf32> to vector<64x512xf32>
    %35 = arith.mulf %33, %34 : vector<64x512xf32>
    %36 = vector.broadcast %6 : vector<1x512xf32> to vector<64x512xf32>
    %37 = arith.addf %35, %36 : vector<64x512xf32>
    %38 = arith.extf %8 : vector<64x512xbf16> to vector<64x512xf32>
    %39 = arith.addf %37, %38 : vector<64x512xf32>
    %cst_37 = arith.constant 0.000000e+00 : f32
    %40 = vector.broadcast %cst_37 : f32 to vector<64x512xf32>
    %41 = arith.maximumf %39, %40 : vector<64x512xf32>
    %42 = vector.shape_cast %41 : vector<64x512xf32> to vector<4x16x512xf32>
    %43 = arith.truncf %42 : vector<4x16x512xf32> to vector<4x16x512xbf16>
    %c0_38 = arith.constant 0 : index
    %c0_39 = arith.constant 0 : index
    %c0_40 = arith.constant 0 : index
    %44 = vector.load %arg5[%c0_38, %c0_39, %c0_40] : memref<4x16x512xbf16, #tpu.memory_space<vmem>>, vector<4x16x512xbf16>
    tpu.vector_store %arg5[%c0_38, %c0_39, %c0_40], %43 {strides = array<i32>} : memref<4x16x512xbf16, #tpu.memory_space<vmem>>, vector<4x16x512xbf16>,
    return
  }
  func.func @transform_0(%arg0: i32) -> (i32, i32, i32) {
    %c0_i32 = arith.constant 0 : i32
    %c0_i32_0 = arith.constant 0 : i32
    %c0_i32_1 = arith.constant 0 : i32
    return %arg0, %c0_i32, %c0_i32_0 : i32, i32, i32
  }
  func.func @transform_1(%arg0: i32) -> (i32, i32) {
    %c0_i32 = arith.constant 0 : i32
    %c0_i32_0 = arith.constant 0 : i32
    %c0_i32_1 = arith.constant 0 : i32
    return %c0_i32, %c0_i32_0 : i32, i32
  }
  func.func @transform_2(%arg0: i32) -> (i32, i32) {
    %c0_i32 = arith.constant 0 : i32
    %c0_i32_0 = arith.constant 0 : i32
    %c0_i32_1 = arith.constant 0 : i32
    return %c0_i32, %c0_i32_0 : i32, i32
  }
  func.func @transform_3(%arg0: i32) -> (i32, i32) {
    %c0_i32 = arith.constant 0 : i32
    %c0_i32_0 = arith.constant 0 : i32
    %c0_i32_1 = arith.constant 0 : i32
    return %c0_i32, %c0_i32_0 : i32, i32
  }
  func.func @transform_4(%arg0: i32) -> (i32, i32, i32) {
    %c0_i32 = arith.constant 0 : i32
    %c0_i32_0 = arith.constant 0 : i32
    %c0_i32_1 = arith.constant 0 : i32
    return %arg0, %c0_i32, %c0_i32_0 : i32, i32, i32
  }
}

</mosaic_0001>

<bundles_post_ra>
// kernel: basic_block_forward.1
= control target key start
LH: loop header
LB: loop body
LE: loop exit
PB: predicated region body
PF: predicated region fallthrough
CT: control target
= control target key end

     0   :  { %9 = vsyncpa [#allocation4], 0  ;;  %s13434_s15 = smov 0   ;;  %s18227_s0 = inlined_call_operand.vmem [shape: bf16[8,16,512], index: 0, kind: input, shape index: {}]   ;;  %s18228_s1 = inlined_call_operand.vmem [shape: bf16[1536,512], index: 1, kind: input, shape index: {}]   ;;  %s18229_s2 = inlined_call_operand.hbm [shape: bf16[1536,512], index: 2, kind: input, shape index: {}]   ;;  %s18230_s3 = inlined_call_operand.vmem [shape: f32[4,512], index: 3, kind: input, shape index: {}]   ;;  %s18231_s4 = inlined_call_operand.vmem [shape: bf16[8,16,512], index: 4, kind: output, shape index: {}]  }
   0x1 LB: > { %s149_s18 = sshll.u32 %s18229_s2, 4  ;;  %s9207_s19 = sadd.s32 4294967295, %s13404_s15   ;;  %s13404_s15 = sphi %s13434_s15, %s15_s15   ;;  %s150_s18 = int_to_ptr.hbm [resolvable:$true] %s149_s18 }
   0x2   : > { %p9209_p0 = scmp.ge.s32.totalorder %s13404_s15, 1  ;;  %p135_p1 = scmp.lt.s32.totalorder %s13404_s15, 3 }
   0x3   : > { %p13331_p2 = scmp.eq.s32.totalorder %s9207_s19, 0  ;;  %s13406_s20 = smov [#allocation3]  }
   0x4   : > { %p136_p3 = pnand %p9209_p0, %p135_p1  ;;  %s151_s21 = sshll.u32 %s13406_s20, 4  ;;  %s152_s21 = int_to_ptr.vmem [resolvable:$true] %s151_s21 }
   0x5   : > { %s13407_s22 = smov 256   ;;  %s13408_s23 = smov 16  }
   0x6   : > { %p13327_p4 = pneg %p136_p3  ;;  %180 = sbr.rel (%p136_p3) target bundleno = 1844 (0x734), region = 36 }
   0x8   : > { %p13328_p5 = pnand %p13331_p2, %p13327_p4 }
   0xa   : > { %13330 = dma.hbm_to_vmem [thread:$0]  (!%p13328_p5), %s150_s18, 49152, %s152_s21, [#allocation4], %s13407_s22, %s13407_s22, %s13408_s23  }
   0xb   : > { %13399 = dma.done.wait (%p13331_p2), [#allocation4], 49152  }
   0xc   : > { %13401 = vsyncadd (%p13331_p2), [#allocation4], 4294918144  ;;  %s13445_s24 = sshll.u32 %s9207_s19, 2  ;;  %vm224_vm0 = vcmask 1040384   ;;  %vm225_vm1 = vsmask.f32 256 }
   0xd   : > { %p210_p6 = scmp.lt.s32.totalorder %s13445_s24, 7  ;;  %v9473_v0 = vld [vmem:[%s18228_s1 + $0xe0] sm:$0xf]  ;;  %v12569_v1 = vld [vmem:[%s18228_s1 + $0xec] sm:$0xf0]  ;;  %vm227_vm2 = vcmask 1044484   ;;  %vm13546_vm4 = vmand %vm224_vm0, %vm225_vm1 }
   0xe   : > { %v9601_v2 = vld [vmem:[%s18228_s1 + $0x1e0] sm:$0xf]  ;;  %vm228_vm3 = vsmask.f32 4352  ;;  %v9474_v3 = vor.u32 %v12569_v1, %v9473_v0  ;;  %v12601_v4 = vld [vmem:[%s18228_s1 + $0x1ec] sm:$0xf0] }
   0xf   : > { %v9729_v5 = vld [vmem:[%s18228_s1 + $0x2e0] sm:$0xf]  ;;  %v12633_v6 = vld [vmem:[%s18228_s1 + $0x2ec] sm:$0xf0]  ;;  %v9602_v7 = vor.u32 %v12601_v4, %v9601_v2  ;;  %s18691_s24 = smov (!%p210_p6, %s13445_s24), 7  ;;  %vm13557_vm5 = vmand %vm227_vm2, %vm228_vm3  ;;  %v18385_v59 = vmov 0 }
  0x10   : > { %v9730_v8 = vor.u32 %v12633_v6, %v9729_v5  ;;  %v9857_v9 = vld [vmem:[%s18228_s1 + $0x3e0] sm:$0xf]  ;;  %v12665_v10 = vld [vmem:[%s18228_s1 + $0x3ec] sm:$0xf0]  ;;  %3165 = vmatpush.bf16.msra.mxu0 %v9474_v3  ;;  %vm255_vm6 = vsmask.f32 7938  ;;  %vm13590_vm7 = vmor %vm13557_vm5, %vm13546_vm4 }
  0x11   : > { %v9457_v11 = vld [vmem:[%s18228_s1 + $0xc0] sm:$0xf]  ;;  %v9858_v12 = vor.u32 %v12665_v10, %v9857_v9  ;;  %v12565_v13 = vld [vmem:[%s18228_s1 + $0xcc] sm:$0xf0]  ;;  %3194 = vmatpush.bf16.msra.mxu1 %v9602_v7  ;;  %s12505_s7 = sshll.u32 %s18691_s24, 5  ;;  %v18386_v59 = vsel %vm13590_vm7, 4294967295, %v18385_v59 }
  0x12   : > { %v9585_v14 = vld [vmem:[%s18228_s1 + $0x1c0] sm:$0xf]  ;;  %v12597_v15 = vld [vmem:[%s18228_s1 + $0x1cc] sm:$0xf0]  ;;  %3223 = vmatpush.bf16.msra.mxu2 %v9730_v8  ;;  %v9458_v16 = vor.u32 %v12565_v13, %v9457_v11  ;;  %18387 = vst [vmem:[#allocation6_spill] sm:$0xff] %v18386_v59  ;;  %vm469_vm10 = vcmask 1043456   ;;  %s13626_s30 = scalar_lea.vmem %s18227_s0, %s12505_s7  ;;  %s17743_s5 = scalar_lea.vmem %s18231_s4, %s12505_s7 }
  0x13   : > { %v9586_v17 = vor.u32 %v12597_v15, %v9585_v14  ;;  %v9713_v18 = vld [vmem:[%s18228_s1 + $0x2c0] sm:$0xf]  ;;  %v12629_v19 = vld [vmem:[%s18228_s1 + $0x2cc] sm:$0xf0]  ;;  %3252 = vmatpush.bf16.msra.mxu3 %v9858_v12  ;;  %vm257_vm8 = vsmask.f32 7954  ;;  %vm13695_vm12 = vmand %vm469_vm10, %vm255_vm6 }
  0x14   : > { %v9841_v20 = vld [vmem:[%s18228_s1 + $0x3c0] sm:$0xf]  ;;  %v9714_v21 = vor.u32 %v12629_v19, %v9713_v18  ;;  %v12661_v22 = vld [vmem:[%s18228_s1 + $0x3cc] sm:$0xf0]  ;;  %3166 = vmatpush.bf16.msra.mxu0 %v9458_v16  ;;  %vm307_vm9 = vsmask.f32 4368  ;;  %vm258_vm3 = vmand %vm227_vm2, %vm257_vm8 }
  0x15   : > { %v9441_v23 = vld [vmem:[%s18228_s1 + $0xa0] sm:$0xf]  ;;  %v12561_v24 = vld [vmem:[%s18228_s1 + $0xac] sm:$0xf0]  ;;  %v9842_v25 = vor.u32 %v12661_v22, %v9841_v20  ;;  %3195 = vmatpush.bf16.msra.mxu1 %v9586_v17  ;;  %vm471_vm11 = vcmask 1047556   ;;  %v294_v44 = vld [vmem:[%s13626_s30 + $0x18] sm:$0xff] }
  0x16   : > { %v9569_v26 = vld [vmem:[%s18228_s1 + $0x1a0] sm:$0xf]  ;;  %v12593_v27 = vld [vmem:[%s18228_s1 + $0x1ac] sm:$0xf0]  ;;  %v9442_v29 = vor.u32 %v12561_v24, %v9441_v23  ;;  %3224 = vmatpush.bf16.msra.mxu2 %v9714_v21  ;;  %vm13714_vm13 = vmand %vm471_vm11, %vm257_vm8  ;;  %vm587_vm2 = vcmask 1046532  }
  0x17   : > { %v9697_v28 = vld [vmem:[%s18228_s1 + $0x2a0] sm:$0xf]  ;;  %v12625_v30 = vld [vmem:[%s18228_s1 + $0x2ac] sm:$0xf0]  ;;  %v9570_v33 = vor.u32 %v12593_v27, %v9569_v26  ;;  %3253 = vmatpush.bf16.msra.mxu3 %v9842_v25  ;;  %vm13728_vm14 = vmor %vm225_vm1, %vm307_vm9 }
  0x18   : > { %v9825_v31 = vld [vmem:[%s18228_s1 + $0x3a0] sm:$0xf]  ;;  %v12657_v32 = vld [vmem:[%s18228_s1 + $0x3ac] sm:$0xf0]  ;;  %v9698_v34 = vor.u32 %v12625_v30, %v9697_v28  ;;  %3167 = vmatpush.bf16.msra.mxu0 %v9442_v29  ;;  %v234_v28 = vld [vmem:[#allocation2 + $0x8] sm:$0x11] }
  0x19   : > { %v9425_v35 = vld [vmem:[%s18228_s1 + $0x80] sm:$0xf]  ;;  %v12557_v36 = vld [vmem:[%s18228_s1 + $0x8c] sm:$0xf0]  ;;  %v9826_v38 = vor.u32 %v12657_v32, %v9825_v31  ;;  %3196 = vmatpush.bf16.msra.mxu1 %v9570_v33  ;;  %vm13745_vm15 = vmor %vm13714_vm13, %vm13695_vm12 }
  0x1a   : > { %v9553_v37 = vld [vmem:[%s18228_s1 + $0x180] sm:$0xf]  ;;  %v12589_v39 = vld [vmem:[%s18228_s1 + $0x18c] sm:$0xf0]  ;;  %v9426_v45 = vor.u32 %v12557_v36, %v9425_v35  ;;  %3225 = vmatpush.bf16.msra.mxu2 %v9698_v34  ;;  %vm256_vm1 = vmand %vm224_vm0, %vm255_vm6  ;;  %vm586_vm0 = vcmask 1042432  }
  0x1b   : > { %v9681_v40 = vld [vmem:[%s18228_s1 + $0x280] sm:$0xf]  ;;  %v12621_v41 = vld [vmem:[%s18228_s1 + $0x28c] sm:$0xf0]  ;;  %v9554_v47 = vor.u32 %v12589_v39, %v9553_v37  ;;  %3254 = vmatpush.bf16.msra.mxu3 %v9826_v38  ;;  %v235_v37 = vsel %vm13590_vm7, 0, %v234_v28  ;;  %v292_v38 = vld [vmem:[%s13626_s30 + $0x8] sm:$0xff] }
  0x1c   : > { %v9809_v42 = vld [vmem:[%s18228_s1 + $0x380] sm:$0xf]  ;;  %v12653_v43 = vld [vmem:[%s18228_s1 + $0x38c] sm:$0xf0]  ;;  %v9682_v48 = vor.u32 %v12621_v41, %v9681_v40  ;;  %3168 = vmatpush.bf16.msra.mxu0 %v9426_v45  ;;  %236 = vst [vmem:[#allocation2 + $0x8] sm:$0x11] %v235_v37  ;;  %vm14249_vm4 = vmor %vm258_vm3, %vm256_vm1 }
  0x1d   : > { %v9409_v49 = vld [vmem:[%s18228_s1 + $0x60] sm:$0xf]  ;;  %v12553_v50 = vld [vmem:[%s18228_s1 + $0x6c] sm:$0xf0]  ;;  %v9810_v52 = vor.u32 %v12653_v43, %v9809_v42  ;;  %3197 = vmatpush.bf16.msra.mxu1 %v9554_v47  ;;  %v317_v45 = vshrl.u32 %v292_v38, 16  ;;  %v320_v46 = vshll.u32 %v292_v38, 16  ;;  %vm14431_vm5 = vmor %vm586_vm0, %vm587_vm2 }
  0x1e   : > { %v9537_v51 = vld [vmem:[%s18228_s1 + $0x160] sm:$0xf]  ;;  %v12585_v53 = vld [vmem:[%s18228_s1 + $0x16c] sm:$0xf0]  ;;  %v9410_v58 = vor.u32 %v12553_v50, %v9409_v49  ;;  %3226 = vmatpush.bf16.msra.mxu2 %v9682_v48  ;;  %v334_v49 = vshrl.u32 %v294_v44, 16  ;;  %v337_v50 = vshll.u32 %v294_v44, 16 }
  0x1f   : > { %v9665_v54 = vld [vmem:[%s18228_s1 + $0x260] sm:$0xf]  ;;  %v12617_v55 = vld [vmem:[%s18228_s1 + $0x26c] sm:$0xf0]  ;;  %v9538_v60 = vor.u32 %v12585_v53, %v9537_v51  ;;  %3255 = vmatpush.bf16.msra.mxu3 %v9810_v52  ;;  %v18392_v52 = vmov 0 }
  0x20   : > { %v9793_v56 = vld [vmem:[%s18228_s1 + $0x360] sm:$0xf]  ;;  %v12649_v57 = vld [vmem:[%s18228_s1 + $0x36c] sm:$0xf0]  ;;  %v9666_v61 = vor.u32 %v12617_v55, %v9665_v54  ;;  %3169 = vmatpush.bf16.msra.mxu0 %v9410_v58  ;;  %v18393_v52 = vsel %vm13728_vm14, 4294967295, %v18392_v52  ;;  %v319_v54 = vrot.slane %v317_v45, 7 }
  0x21   : > { %v9393_v62 = vld [vmem:[%s18228_s1 + $0x40] sm:$0xf]  ;;  %v12549_v63 = vld [vmem:[%s18228_s1 + $0x4c] sm:$0xf0]  ;;  %v9794_v1 = vor.u32 %v12649_v57, %v9793_v56  ;;  %3198 = vmatpush.bf16.msra.mxu1 %v9538_v60  ;;  %18394 = vst [vmem:[#allocation7_spill] sm:$0xff] %v18393_v52  ;;  %v298_v45 = vld [vmem:[%s13626_s30 + $0x38] sm:$0xff] }
  0x22   : > { %v9521_v0 = vld [vmem:[%s18228_s1 + $0x140] sm:$0xf]  ;;  %v12581_v2 = vld [vmem:[%s18228_s1 + $0x14c] sm:$0xf0]  ;;  %v9394_v8 = vor.u32 %v12549_v63, %v9393_v62  ;;  %3227 = vmatpush.bf16.msra.mxu2 %v9666_v61  ;;  %v18395_v61 = vmov 0  ;;  %v13749_v62 = vrot.slane %v334_v49, 7 }
  0x23   : > { %v9649_v3 = vld [vmem:[%s18228_s1 + $0x240] sm:$0xf]  ;;  %v12613_v4 = vld [vmem:[%s18228_s1 + $0x24c] sm:$0xf0]  ;;  %v9522_v12 = vor.u32 %v12581_v2, %v9521_v0  ;;  %3256 = vmatpush.bf16.msra.mxu3 %v9794_v1  ;;  %v18396_v61 = vsel %vm13745_vm15, 4294967295, %v18395_v61 }
  0x24   : > { %v9777_v5 = vld [vmem:[%s18228_s1 + $0x340] sm:$0xf]  ;;  %v12645_v6 = vld [vmem:[%s18228_s1 + $0x34c] sm:$0xf0]  ;;  %v9650_v13 = vor.u32 %v12613_v4, %v9649_v3  ;;  %3170 = vmatpush.bf16.msra.mxu0 %v9394_v8  ;;  %18397 = vst [vmem:[#allocation8_spill] sm:$0xff] %v18396_v61  ;;  %v322_v3 = vor.u32 %v320_v46, %v319_v54  ;;  %v332_v4 = vrot.slane %v319_v54, 4 }
  0x25   : > { %v9377_v7 = vld [vmem:[%s18228_s1 + $0x20] sm:$0xf]  ;;  %v12545_v9 = vld [vmem:[%s18228_s1 + $0x2c] sm:$0xf0]  ;;  %v9778_v17 = vor.u32 %v12645_v6, %v9777_v5  ;;  %3199 = vmatpush.bf16.msra.mxu1 %v9522_v12 }
  0x26   : > { %v13634_v10 = vld [vmem:[%s18228_s1 + $0x120] sm:$0xf]  ;;  %v13639_v11 = vld [vmem:[%s18228_s1 + $0x12c] sm:$0xf0]  ;;  %v9378_v21 = vor.u32 %v12545_v9, %v9377_v7  ;;  %3228 = vmatpush.bf16.msra.mxu2 %v9650_v13 }
  0x27   : > { %v9633_v14 = vld [vmem:[%s18228_s1 + $0x220] sm:$0xf]  ;;  %v12609_v15 = vld [vmem:[%s18228_s1 + $0x22c] sm:$0xf0]  ;;  %v9506_v29 = vor.u32 %v13639_v11, %v13634_v10  ;;  %3257 = vmatpush.bf16.msra.mxu3 %v9778_v17  ;;  %v339_v10 = vor.u32 %v337_v50, %v13749_v62  ;;  %v368_v50 = vshrl.u32 %v298_v45, 16 }
  0x28   : > { %v13650_v16 = vld [vmem:[%s18228_s1 + $0x320] sm:$0xf]  ;;  %v13655_v18 = vld [vmem:[%s18228_s1 + $0x32c] sm:$0xf0]  ;;  %v9634_v39 = vor.u32 %v12609_v15, %v9633_v14  ;;  %3171 = vmatpush.bf16.msra.mxu0 %v9378_v21 }
  0x29   : > { %v231_v19 = vld [vmem:[#allocation2] sm:$0x11]  ;;  %v13666_v23 = vld [vmem:[%s18228_s1 + $0xc] sm:$0xf0]  ;;  %v9762_v47 = vor.u32 %v13655_v18, %v13650_v16  ;;  %3200 = vmatpush.bf16.msra.mxu1 %v9506_v29 }
  0x2a   : > { %v291_v20 = vld [vmem:[%s13626_s30] sm:$0xff]  ;;  %v232_v24 = vsel %vm13590_vm7, 0, %v231_v19  ;;  %v293_v25 = vld [vmem:[%s13626_s30 + $0x10] sm:$0xff]  ;;  %3229 = vmatpush.bf16.msra.mxu2 %v9634_v39 }
  0x2b   : > { %v13661_v22 = vld [vmem:[%s18228_s1] sm:$0xf]  ;;  %v310_v26 = vshrl.u32 %v291_v20, 16  ;;  %v313_v27 = vshll.u32 %v291_v20, 16  ;;  %v13681_v31 = vld [vmem:[%s18228_s1 + $0x10c] sm:$0xf0]  ;;  %3258 = vmatpush.bf16.msra.mxu3 %v9762_v47 }
  0x2c   : > { %v13676_v30 = vld [vmem:[%s18228_s1 + $0x100] sm:$0xf]  ;;  %v13691_v33 = vld [vmem:[%s18228_s1 + $0x20c] sm:$0xf0]  ;;  %233 = vst [vmem:[#allocation2] sm:$0x11] %v232_v24  ;;  %v9362_v57 = vor.u32 %v13666_v23, %v13661_v22  ;;  %v340_v22 = vsel %vm13728_vm14, %v332_v4, %v339_v10 }
  0x2d   : > { %v13686_v32 = vld [vmem:[%s18228_s1 + $0x200] sm:$0xf]  ;;  %v325_v34 = vshrl.u32 %v293_v25, 16  ;;  %v328_v35 = vshll.u32 %v293_v25, 16  ;;  %v13710_v41 = vld [vmem:[%s18228_s1 + $0x30c] sm:$0xf0]  ;;  %v9490_v1 = vor.u32 %v13681_v31, %v13676_v30 }
  0x2e   : > { %v13705_v40 = vld [vmem:[%s18228_s1 + $0x300] sm:$0xf]  ;;  %v312_v42 = vrot.slane %v310_v26, 7  ;;  %v12761_v55 = vld [vmem:[%s18228_s1 + $0x6ec] sm:$0xf0]  ;;  %v9618_v2 = vor.u32 %v13691_v33, %v13686_v32  ;;  %v296_v20 = vld [vmem:[%s13626_s30 + $0x28] sm:$0xff]  ;;  %3172 = vmatpush.bf16.msra.mxu0 %v9362_v57 }
  0x2f   : > { %v13721_v48 = vrot.slane %v325_v34, 7  ;;  %v10241_v51 = vld [vmem:[%s18228_s1 + $0x6e0] sm:$0xf]  ;;  %v12697_v63 = vld [vmem:[%s18228_s1 + $0x4ec] sm:$0xf0]  ;;  %v9746_v8 = vor.u32 %v13710_v41, %v13705_v40  ;;  %v477_v23 = vld [vmem:[#allocation2 + $0x8] sm:$0xff]  ;;  %3201 = vmatpush.bf16.msra.mxu1 %v9490_v1 }
  0x30   : > { %v323_v53 = vrot.slane %v312_v42, 4  ;;  %v9985_v56 = vld [vmem:[%s18228_s1 + $0x4e0] sm:$0xf]  ;;  %v315_v58 = vor.u32 %v313_v27, %v312_v42  ;;  %v12793_v5 = vld [vmem:[%s18228_s1 + $0x7ec] sm:$0xf0]  ;;  %v10242_v11 = vor.u32 %v12761_v55, %v10241_v51  ;;  %3230 = vmatpush.bf16.msra.mxu2 %v9618_v2  ;;  %v478_v28 = vsel %vm13745_vm15, %v322_v3, %v477_v23  ;;  %481 = vst [vmem:[#allocation2 + $0x18] sm:$0xff] %v340_v22 }
  0x31   : > { %v330_v60 = vor.u32 %v328_v35, %v13721_v48  ;;  %v10369_v0 = vld [vmem:[%s18228_s1 + $0x7e0] sm:$0xf]  ;;  %v12729_v12 = vld [vmem:[%s18228_s1 + $0x5ec] sm:$0xf0]  ;;  %v9986_v16 = vor.u32 %v12697_v63, %v9985_v56  ;;  %3259 = vmatpush.bf16.msra.mxu3 %v9746_v8  ;;  %479 = vst [vmem:[#allocation2 + $0x8] sm:$0xff] %v478_v28  ;;  %v351_v46 = vshrl.u32 %v296_v20, 16 }
  0x32   : > { %v10113_v6 = vld [vmem:[%s18228_s1 + $0x5e0] sm:$0xf]  ;;  %v297_v14 = vld [vmem:[%s13626_s30 + $0x30] sm:$0xff]  ;;  %v10370_v17 = vor.u32 %v12793_v5, %v10369_v0  ;;  %v240_v41 = vld [vmem:[#allocation2 + $0x38] sm:$0x11]  ;;  %v354_v49 = vshll.u32 %v296_v20, 16 }
  0x33   : > { %v13768_v7 = vld [vmem:[%s13626_s30 + $0x20] sm:$0xff]  ;;  %v331_v9 = vsel %vm13728_vm14, %v323_v53, %v330_v60  ;;  %v12757_v18 = vld [vmem:[%s18228_s1 + $0x6cc] sm:$0xf0]  ;;  %v10114_v24 = vor.u32 %v12729_v12, %v10113_v6  ;;  %3281 = vmatpush.bf16.msrb.mxu0 %v9986_v16  ;;  %v359_v39 = vshrl.u32 %v297_v14, 16  ;;  %v362_v40 = vshll.u32 %v297_v14, 16 }
  0x34   : > { %v10225_v13 = vld [vmem:[%s18228_s1 + $0x6c0] sm:$0xf]  ;;  %480 = vst [vmem:[#allocation2 + $0x10] sm:$0xff] %v331_v9  ;;  %v12693_v25 = vld [vmem:[%s18228_s1 + $0x4cc] sm:$0xf0]  ;;  %v344_v27 = vshrl.u32 %v13768_v7, 16  ;;  %3339 = vmatpush.bf16.msrb.mxu2 %v10242_v11 }
  0x35   : > { %v474_v15 = vld [vmem:[#allocation2] sm:$0xff]  ;;  %v12789_v29 = vld [vmem:[%s18228_s1 + $0x7cc] sm:$0xf0]  ;;  %v347_v31 = vshll.u32 %v13768_v7, 16  ;;  %v10226_v32 = vor.u32 %v12757_v18, %v10225_v13  ;;  %3368 = vmatpush.bf16.msrb.mxu3 %v10370_v17  ;;  %3310 = vmatpush.bf16.msrb.mxu1 %v10114_v24  ;;  %v241_v44 = vsel %vm13590_vm7, 0, %v240_v41  ;;  %v13817_v47 = vrot.slane %v359_v39, 7 }
  0x36   : > { %v9969_v19 = vld [vmem:[%s18228_s1 + $0x4c0] sm:$0xf]  ;;  %v475_v21 = vsel %vm13745_vm15, %v315_v58, %v474_v15  ;;  %v12725_v34 = vld [vmem:[%s18228_s1 + $0x5cc] sm:$0xf0]  ;;  %v346_v36 = vrot.slane %v344_v27, 7  ;;  %v371_v51 = vshll.u32 %v298_v45, 16 }
  0x37   : > { %v10353_v26 = vld [vmem:[%s18228_s1 + $0x7c0] sm:$0xf]  ;;  %476 = vst [vmem:[#allocation2] sm:$0xff] %v475_v21  ;;  %v9970_v33 = vor.u32 %v12693_v25, %v9969_v19  ;;  %v237_v35 = vld [vmem:[#allocation2 + $0x30] sm:$0x11]  ;;  %v353_v55 = vrot.slane %v351_v46, 7  ;;  %v364_v56 = vor.u32 %v362_v40, %v13817_v47 }
  0x38   : > { %v10097_v30 = vld [vmem:[%s18228_s1 + $0x5c0] sm:$0xf]  ;;  %v10354_v37 = vor.u32 %v12789_v29, %v10353_v26  ;;  %v238_v38 = vsel %vm13590_vm7, 0, %v237_v35  ;;  %v357_v43 = vrot.slane %v346_v36, 4  ;;  %242 = vst [vmem:[#allocation2 + $0x38] sm:$0x11] %v241_v44  ;;  %3340 = vmatpush.bf16.msrb.mxu2 %v10226_v32  ;;  %v349_v1 = vor.u32 %v347_v31, %v346_v36 }
  0x39   : > { %v10098_v42 = vor.u32 %v12725_v34, %v10097_v30  ;;  %239 = vst [vmem:[#allocation2 + $0x30] sm:$0x11] %v238_v38  ;;  %3282 = vmatpush.bf16.msrb.mxu0 %v9970_v33  ;;  %v13820_v57 = vrot.slane %v368_v50, 7  ;;  %v10209_v58 = vld [vmem:[%s18228_s1 + $0x6a0] sm:$0xf]  ;;  %v356_v2 = vor.u32 %v354_v49, %v353_v55  ;;  %v366_v3 = vrot.slane %v353_v55, 4 }
  0x3a   : > { %3369 = vmatpush.bf16.msrb.mxu3 %v10354_v37  ;;  %v12753_v60 = vld [vmem:[%s18228_s1 + $0x6ac] sm:$0xf0]  ;;  %v13829_v5 = vld [vmem:[%s13626_s30 + $0x40] sm:$0xff]  ;;  %v9241_v8 = vld [vmem:[#allocation2 + $0x8] sm:$0xf]  ;;  %v365_v10 = vsel %vm13728_vm14, %v357_v43, %v364_v56 }
  0x3b   : > { %v12525_v53 = vld [vmem:[#allocation2 + $0xc] sm:$0xf0]  ;;  %v9235_v54 = vld [vmem:[#allocation2 + $0x10] sm:$0xf0]  ;;  %3311 = vmatpush.bf16.msrb.mxu1 %v10098_v42  ;;  %v10210_v4 = vor.u32 %v12753_v60, %v10209_v58  ;;  %v12524_v9 = vld [vmem:[#allocation2 + $0xc] sm:$0xf]  ;;  %v373_v11 = vor.u32 %v371_v51, %v13820_v57 }
  0x3c   : > { %v9953_v12 = vld [vmem:[%s18228_s1 + $0x4a0] sm:$0xf]  ;;  %v12526_v13 = vld [vmem:[#allocation2 + $0x14] sm:$0xf0]  ;;  %v9243_v14 = vld [vmem:[#allocation2 + $0x18] sm:$0xf0] }
  0x3d   : > { %494 = vst [vmem:[#allocation2 + $0x40] sm:$0xff] %v365_v10  ;;  %3341 = vmatpush.bf16.msrb.mxu2 %v10210_v4  ;;  %v13843_v15 = vor.u32 %v12526_v13, %v9241_v8  ;;  %v13845_v16 = vor.u32 %v12524_v9, %v9243_v14  ;;  %v374_v18 = vsel %vm13728_vm14, %v366_v3, %v373_v11  ;;  %v12689_v19 = vld [vmem:[%s18228_s1 + $0x4ac] sm:$0xf0]  ;;  %v10337_v20 = vld [vmem:[%s18228_s1 + $0x7a0] sm:$0xf]  ;;  %v378_v21 = vshrl.u32 %v13829_v5, 16 }
  0x3e   : > { %v9233_v63 = vld [vmem:[#allocation2] sm:$0xf]  ;;  %v12523_v0 = vld [vmem:[#allocation2 + $0x4] sm:$0xf]  ;;  %495 = vst [vmem:[#allocation2 + $0x48] sm:$0xff] %v374_v18  ;;  %v9954_v24 = vor.u32 %v12689_v19, %v9953_v12  ;;  %v301_v31 = vld [vmem:[%s13626_s30 + $0x50] sm:$0xff] }
  0x3f   : > { %v13831_v6 = vor.u32 %v12525_v53, %v9233_v63  ;;  %v13833_v7 = vor.u32 %v12523_v0, %v9235_v54  ;;  %18400 = vst [vmem:[#allocation11_spill] sm:$0xff] %v13843_v15  ;;  %v491_v23 = vld [vmem:[#allocation2 + $0x38] sm:$0xff]  ;;  %v12785_v25 = vld [vmem:[%s18228_s1 + $0x7ac] sm:$0xf0]  ;;  %v10081_v26 = vld [vmem:[%s18228_s1 + $0x5a0] sm:$0xf]  ;;  %3231 = vmatmul.bf16.vlgmr.msra.gmra.mxu2 %v13843_v15  ;;  %3260 = vmatmul.bf16.vlgmr.msra.gmra.mxu3 %v13845_v16 }
  0x40   : > { %18401 = vst [vmem:[#allocation12_spill] sm:$0xff] %v13845_v16  ;;  %v488_v17 = vld [vmem:[#allocation2 + $0x30] sm:$0xff]  ;;  %v492_v27 = vsel %vm13745_vm15, %v356_v2, %v491_v23  ;;  %v10338_v28 = vor.u32 %v12785_v25, %v10337_v20  ;;  %v10193_v30 = vld [vmem:[%s18228_s1 + $0x680] sm:$0xf]  ;;  %v380_v32 = vrot.slane %v378_v21, 7  ;;  %3283 = vmatpush.bf16.msrb.mxu0 %v9954_v24  ;;  %v381_v36 = vshll.u32 %v13829_v5, 16 }
  0x41   : > { %18398 = vst [vmem:[#allocation9_spill] sm:$0xff] %v13831_v6  ;;  %3173 = vmatmul.bf16.vlgmr.msra.gmra.mxu0 %v13831_v6  ;;  %3202 = vmatmul.bf16.vlgmr.msra.gmra.mxu1 %v13833_v7  ;;  %v489_v22 = vsel %vm13745_vm15, %v349_v1, %v488_v17  ;;  %v12721_v29 = vld [vmem:[%s18228_s1 + $0x5ac] sm:$0xf0]  ;;  %v9937_v35 = vld [vmem:[%s18228_s1 + $0x480] sm:$0xf]  ;;  %v393_v54 = vshrl.u32 %v301_v31, 16 }
  0x42   : > { %18399 = vst [vmem:[#allocation10_spill] sm:$0xff] %v13833_v7  ;;  %v10082_v33 = vor.u32 %v12721_v29, %v10081_v26  ;;  %v12749_v34 = vld [vmem:[%s18228_s1 + $0x68c] sm:$0xf0]  ;;  %3370 = vmatpush.bf16.msrb.mxu3 %v10338_v28  ;;  %v10321_v39 = vld [vmem:[%s18228_s1 + $0x780] sm:$0xf]  ;;  %v391_v53 = vrot.slane %v380_v32, 4  ;;  %v383_v11 = vor.u32 %v381_v36, %v380_v32 }
  0x43   : > { %490 = vst [vmem:[#allocation2 + $0x30] sm:$0xff] %v489_v22  ;;  %v10194_v37 = vor.u32 %v12749_v34, %v10193_v30  ;;  %v12685_v38 = vld [vmem:[%s18228_s1 + $0x48c] sm:$0xf0]  ;;  %v10065_v43 = vld [vmem:[%s18228_s1 + $0x580] sm:$0xf]  ;;  %v396_v55 = vshll.u32 %v301_v31, 16 }
  0x44   : > { %493 = vst [vmem:[#allocation2 + $0x38] sm:$0xff] %v492_v27  ;;  %v12781_v40 = vld [vmem:[%s18228_s1 + $0x78c] sm:$0xf0]  ;;  %3312 = vmatpush.bf16.msrb.mxu1 %v10082_v33  ;;  %v9938_v41 = vor.u32 %v12685_v38, %v9937_v35  ;;  %v243_v45 = vld [vmem:[#allocation2 + $0x60] sm:$0x11]  ;;  %v300_v0 = vld [vmem:[%s13626_s30 + $0x48] sm:$0xff] }
  0x45   : > { %v10322_v42 = vor.u32 %v12781_v40, %v10321_v39  ;;  %v12717_v44 = vld [vmem:[%s18228_s1 + $0x58c] sm:$0xf0]  ;;  %v12529_v46 = vld [vmem:[#allocation2 + $0x3c] sm:$0xf0]  ;;  %v9251_v49 = vld [vmem:[#allocation2 + $0x40] sm:$0xf0]  ;;  %3342 = vmatpush.bf16.msrb.mxu2 %v10194_v37 }
  0x46   : > { %v10066_v50 = vor.u32 %v12717_v44, %v10065_v43  ;;  %v244_v51 = vsel %vm13590_vm7, 0, %v243_v45  ;;  %3284 = vmatpush.bf16.msrb.mxu0 %v9938_v41  ;;  %v246_v56 = vld [vmem:[#allocation2 + $0x68] sm:$0x11]  ;;  %v13902_v3 = vrot.slane %v393_v54, 7  ;;  %v302_v4 = vld [vmem:[%s13626_s30 + $0x58] sm:$0xff]  ;;  %v385_v17 = vshrl.u32 %v300_v0, 16 }
  0x47   : > { %245 = vst [vmem:[#allocation2 + $0x60] sm:$0x11] %v244_v51  ;;  %v12530_v58 = vld [vmem:[#allocation2 + $0x44] sm:$0xf0]  ;;  %v9259_v60 = vld [vmem:[#allocation2 + $0x48] sm:$0xf0]  ;;  %3371 = vmatpush.bf16.msrb.mxu3 %v10322_v42 }
  0x48   : > { %v247_v63 = vsel %vm13590_vm7, 0, %v246_v56  ;;  %3313 = vmatpush.bf16.msrb.mxu1 %v10066_v50  ;;  %v398_v12 = vor.u32 %v396_v55, %v13902_v3  ;;  %v10177_v13 = vld [vmem:[%s18228_s1 + $0x660] sm:$0xf]  ;;  %v12745_v14 = vld [vmem:[%s18228_s1 + $0x66c] sm:$0xf0]  ;;  %v388_v18 = vshll.u32 %v300_v0, 16 }
  0x49   : > { %248 = vst [vmem:[#allocation2 + $0x68] sm:$0x11] %v247_v63  ;;  %v402_v19 = vshrl.u32 %v302_v4, 16  ;;  %v405_v20 = vshll.u32 %v302_v4, 16  ;;  %v9921_v21 = vld [vmem:[%s18228_s1 + $0x460] sm:$0xf]  ;;  %v10178_v26 = vor.u32 %v12745_v14, %v10177_v13 }
  0x4a   : > { %v9249_v1 = vld [vmem:[#allocation2 + $0x30] sm:$0xf]  ;;  %v12527_v2 = vld [vmem:[#allocation2 + $0x34] sm:$0xf]  ;;  %v13920_v22 = vld [vmem:[%s13626_s30 + $0x60] sm:$0xff]  ;;  %v399_v25 = vsel %vm13728_vm14, %v391_v53, %v398_v12  ;;  %v387_v31 = vrot.slane %v385_v17, 7 }
  0x4b   : > { %v9257_v5 = vld [vmem:[#allocation2 + $0x38] sm:$0xf]  ;;  %v12528_v8 = vld [vmem:[#allocation2 + $0x3c] sm:$0xf]  ;;  %v13905_v9 = vor.u32 %v12529_v46, %v9249_v1  ;;  %v13907_v10 = vor.u32 %v12527_v2, %v9251_v49  ;;  %v12681_v27 = vld [vmem:[%s18228_s1 + $0x46c] sm:$0xf0]  ;;  %3343 = vmatpush.bf16.msrb.mxu2 %v10178_v26 }
  0x4c   : > { %v13922_v23 = vor.u32 %v12530_v58, %v9257_v5  ;;  %v13924_v24 = vor.u32 %v12528_v8, %v9259_v60  ;;  %v10305_v28 = vld [vmem:[%s18228_s1 + $0x760] sm:$0xf]  ;;  %v12777_v29 = vld [vmem:[%s18228_s1 + $0x76c] sm:$0xf0]  ;;  %508 = vst [vmem:[#allocation2 + $0x70] sm:$0xff] %v399_v25  ;;  %v13937_v32 = vrot.slane %v402_v19, 7  ;;  %v9922_v33 = vor.u32 %v12681_v27, %v9921_v21 }
  0x4d   : > { %18402 = vst [vmem:[#allocation13_spill] sm:$0xff] %v13905_v9  ;;  %v10306_v34 = vor.u32 %v12777_v29, %v10305_v28  ;;  %v10049_v35 = vld [vmem:[%s18228_s1 + $0x560] sm:$0xf]  ;;  %v12713_v37 = vld [vmem:[%s18228_s1 + $0x56c] sm:$0xf0]  ;;  %v390_v40 = vor.u32 %v388_v18, %v387_v31  ;;  %v400_v41 = vrot.slane %v387_v31, 4 }
  0x4e   : > { %18403 = vst [vmem:[#allocation14_spill] sm:$0xff] %v13907_v10  ;;  %v502_v30 = vld [vmem:[#allocation2 + $0x60] sm:$0xff]  ;;  %v12741_v39 = vld [vmem:[%s18228_s1 + $0x64c] sm:$0xf0]  ;;  %v407_v42 = vor.u32 %v405_v20, %v13937_v32  ;;  %3285 = vmatpush.bf16.msrb.mxu0 %v9922_v33  ;;  %v10050_v46 = vor.u32 %v12713_v37, %v10049_v35  ;;  %v412_v53 = vshrl.u32 %v13920_v22, 16  ;;  %v415_v5 = vshll.u32 %v13920_v22, 16 }
  0x4f   : > { %18404 = vst [vmem:[#allocation15_spill] sm:$0xff] %v13922_v23  ;;  %v503_v36 = vsel %vm13745_vm15, %v383_v11, %v502_v30  ;;  %v10161_v38 = vld [vmem:[%s18228_s1 + $0x640] sm:$0xf]  ;;  %v305_v44 = vld [vmem:[%s13626_s30 + $0x70] sm:$0xff]  ;;  %3372 = vmatpush.bf16.msrb.mxu3 %v10306_v34  ;;  %3236 = vmatmul.bf16.gmra.mxu2 %v13922_v23  ;;  %v304_v8 = vld [vmem:[%s13626_s30 + $0x68] sm:$0xff] }
  0x50   : > { %18405 = vst [vmem:[#allocation16_spill] sm:$0xff] %v13924_v24  ;;  %v9905_v43 = vld [vmem:[%s18228_s1 + $0x440] sm:$0xf]  ;;  %v505_v45 = vld [vmem:[#allocation2 + $0x68] sm:$0xff]  ;;  %v10162_v49 = vor.u32 %v12741_v39, %v10161_v38  ;;  %v12677_v50 = vld [vmem:[%s18228_s1 + $0x44c] sm:$0xf0]  ;;  %3265 = vmatmul.bf16.gmra.mxu3 %v13924_v24  ;;  %v408_v54 = vsel %vm13728_vm14, %v400_v41, %v407_v42  ;;  %3314 = vmatpush.bf16.msrb.mxu1 %v10050_v46 }
  0x51   : > { %3178 = vmatmul.bf16.gmra.mxu0 %v13905_v9  ;;  %3207 = vmatmul.bf16.gmra.mxu1 %v13907_v10  ;;  %504 = vst [vmem:[#allocation2 + $0x60] sm:$0xff] %v503_v36  ;;  %v10289_v51 = vld [vmem:[%s18228_s1 + $0x740] sm:$0xf]  ;;  %v506_v55 = vsel %vm13745_vm15, %v390_v40, %v505_v45  ;;  %v9906_v56 = vor.u32 %v12677_v50, %v9905_v43  ;;  %v12773_v58 = vld [vmem:[%s18228_s1 + $0x74c] sm:$0xf0]  ;;  %v414_v4 = vrot.slane %v412_v53, 7 }
  0x52   : > { %v10033_v60 = vld [vmem:[%s18228_s1 + $0x540] sm:$0xf]  ;;  %v12709_v63 = vld [vmem:[%s18228_s1 + $0x54c] sm:$0xf0]  ;;  %507 = vst [vmem:[#allocation2 + $0x68] sm:$0xff] %v506_v55  ;;  %3344 = vmatpush.bf16.msrb.mxu2 %v10162_v49  ;;  %v10290_v0 = vor.u32 %v12773_v58, %v10289_v51  ;;  %v427_v12 = vshrl.u32 %v305_v44, 16 }
  0x53   : > { %v10034_v1 = vor.u32 %v12709_v63, %v10033_v60  ;;  %v249_v2 = vld [vmem:[#allocation2 + $0x90] sm:$0x11]  ;;  %509 = vst [vmem:[#allocation2 + $0x78] sm:$0xff] %v408_v54  ;;  %v430_v13 = vshll.u32 %v305_v44, 16  ;;  %v252_v14 = vld [vmem:[#allocation2 + $0x98] sm:$0x11]  ;;  %3286 = vmatpush.bf16.msrb.mxu0 %v9906_v56  ;;  %v417_v28 = vor.u32 %v415_v5, %v414_v4 }
  0x54   : > { %v250_v11 = vsel %vm13590_vm7, 0, %v249_v2  ;;  %3373 = vmatpush.bf16.msrb.mxu3 %v10290_v0  ;;  %v425_v17 = vrot.slane %v414_v4, 4  ;;  %v13986_v18 = vrot.slane %v427_v12, 7  ;;  %v253_v19 = vsel %vm13590_vm7, 0, %v252_v14  ;;  %v306_v20 = vld [vmem:[%s13626_s30 + $0x78] sm:$0xff] }
  0x55   : > { %251 = vst [vmem:[#allocation2 + $0x90] sm:$0x11] %v250_v11  ;;  %v419_v21 = vshrl.u32 %v304_v8, 16  ;;  %v12533_v25 = vld [vmem:[#allocation2 + $0x6c] sm:$0xf0]  ;;  %3315 = vmatpush.bf16.msrb.mxu1 %v10034_v1  ;;  %v422_v34 = vshll.u32 %v304_v8, 16 }
  0x56   : > { %v9267_v26 = vld [vmem:[#allocation2 + $0x70] sm:$0xf0]  ;;  %254 = vst [vmem:[#allocation2 + $0x98] sm:$0x11] %v253_v19  ;;  %v432_v29 = vor.u32 %v430_v13, %v13986_v18  ;;  %v10145_v30 = vld [vmem:[%s18228_s1 + $0x620] sm:$0xf] }
  0x57   : > { %v12737_v31 = vld [vmem:[%s18228_s1 + $0x62c] sm:$0xf0]  ;;  %v421_v33 = vrot.slane %v419_v21, 7  ;;  %v436_v35 = vshrl.u32 %v306_v20, 16  ;;  %v439_v36 = vshll.u32 %v306_v20, 16 }
  0x58   : > { %v9265_v22 = vld [vmem:[#allocation2 + $0x60] sm:$0xf]  ;;  %v12531_v27 = vld [vmem:[#allocation2 + $0x64] sm:$0xf]  ;;  %v433_v40 = vsel %vm13728_vm14, %v425_v17, %v432_v29  ;;  %v10146_v41 = vor.u32 %v12737_v31, %v10145_v30  ;;  %v12673_v42 = vld [vmem:[%s18228_s1 + $0x42c] sm:$0xf0] }
  0x59   : > { %v9889_v37 = vld [vmem:[%s18228_s1 + $0x420] sm:$0xf]  ;;  %v9273_v38 = vld [vmem:[#allocation2 + $0x68] sm:$0xf]  ;;  %v12532_v39 = vld [vmem:[#allocation2 + $0x6c] sm:$0xf]  ;;  %v424_v45 = vor.u32 %v422_v34, %v421_v33  ;;  %v14006_v50 = vor.u32 %v12533_v25, %v9265_v22  ;;  %v14008_v51 = vor.u32 %v12531_v27, %v9267_v26 }
  0x5a   : > { %v12534_v43 = vld [vmem:[#allocation2 + $0x74] sm:$0xf0]  ;;  %v9275_v44 = vld [vmem:[#allocation2 + $0x78] sm:$0xf0]  ;;  %522 = vst [vmem:[#allocation2 + $0xa0] sm:$0xff] %v433_v40  ;;  %v434_v46 = vrot.slane %v421_v33, 4  ;;  %v9890_v49 = vor.u32 %v12673_v42, %v9889_v37  ;;  %3345 = vmatpush.bf16.msrb.mxu2 %v10146_v41 }
  0x5b   : > { %18406 = vst [vmem:[#allocation17_spill] sm:$0xff] %v14006_v50  ;;  %v14010_v54 = vrot.slane %v436_v35, 7  ;;  %v10273_v55 = vld [vmem:[%s18228_s1 + $0x720] sm:$0xf]  ;;  %v12769_v56 = vld [vmem:[%s18228_s1 + $0x72c] sm:$0xf0]  ;;  %v14029_v2 = vor.u32 %v12534_v43, %v9273_v38  ;;  %v14031_v4 = vor.u32 %v12532_v39, %v9275_v44 }
  0x5c   : > { %18407 = vst [vmem:[#allocation18_spill] sm:$0xff] %v14008_v51  ;;  %v516_v53 = vld [vmem:[#allocation2 + $0x90] sm:$0xff]  ;;  %3287 = vmatpush.bf16.msrb.mxu0 %v9890_v49  ;;  %v10274_v60 = vor.u32 %v12769_v56, %v10273_v55  ;;  %v10017_v63 = vld [vmem:[%s18228_s1 + $0x520] sm:$0xf] }
  0x5d   : > { %v517_v58 = vsel %vm13745_vm15, %v417_v28, %v516_v53  ;;  %v12705_v0 = vld [vmem:[%s18228_s1 + $0x52c] sm:$0xf0]  ;;  %v10129_v1 = vld [vmem:[%s18228_s1 + $0x600] sm:$0xf]  ;;  %18408 = vst [vmem:[#allocation19_spill] sm:$0xff] %v14029_v2  ;;  %v441_v5 = vor.u32 %v439_v36, %v14010_v54  ;;  %v519_v8 = vld [vmem:[#allocation2 + $0x98] sm:$0xff] }
  0x5e   : > { %18409 = vst [vmem:[#allocation20_spill] sm:$0xff] %v14031_v4  ;;  %v10018_v11 = vor.u32 %v12705_v0, %v10017_v63  ;;  %v12733_v12 = vld [vmem:[%s18228_s1 + $0x60c] sm:$0xf0]  ;;  %v520_v13 = vsel %vm13745_vm15, %v424_v45, %v519_v8  ;;  %3374 = vmatpush.bf16.msrb.mxu3 %v10274_v60  ;;  %v9873_v17 = vld [vmem:[%s18228_s1 + $0x400] sm:$0xf] }
  0x5f   : > { %518 = vst [vmem:[#allocation2 + $0x90] sm:$0xff] %v517_v58  ;;  %v10130_v14 = vor.u32 %v12733_v12, %v10129_v1  ;;  %v12669_v19 = vld [vmem:[%s18228_s1 + $0x40c] sm:$0xf0]  ;;  %v10257_v20 = vld [vmem:[%s18228_s1 + $0x700] sm:$0xf]  ;;  %v442_v21 = vsel %vm13728_vm14, %v434_v46, %v441_v5  ;;  %3241 = vmatmul.bf16.gmra.mxu2 %v14029_v2 }
  0x60   : > { %521 = vst [vmem:[#allocation2 + $0x98] sm:$0xff] %v520_v13  ;;  %v9874_v22 = vor.u32 %v12669_v19, %v9873_v17  ;;  %v12765_v25 = vld [vmem:[%s18228_s1 + $0x70c] sm:$0xf0]  ;;  %v10001_v26 = vld [vmem:[%s18228_s1 + $0x500] sm:$0xf]  ;;  %3316 = vmatpush.bf16.msrb.mxu1 %v10018_v11  ;;  %3270 = vmatmul.bf16.gmra.mxu3 %v14031_v4 }
  0x61   : > { %3183 = vmatmul.bf16.gmra.mxu0 %v14006_v50  ;;  %3212 = vmatmul.bf16.gmra.mxu1 %v14008_v51  ;;  %523 = vst [vmem:[#allocation2 + $0xa8] sm:$0xff] %v442_v21  ;;  %v10258_v27 = vor.u32 %v12765_v25, %v10257_v20  ;;  %v12701_v28 = vld [vmem:[%s18228_s1 + $0x50c] sm:$0xf0]  ;;  %v10753_v30 = vld [vmem:[%s18228_s1 + $0xae0] sm:$0xf] }
  0x62   : > { %3346 = vmatpush.bf16.msrb.mxu2 %v10130_v14  ;;  %v10002_v29 = vor.u32 %v12701_v28, %v10001_v26  ;;  %3288 = vmatpush.bf16.msrb.mxu0 %v9874_v22  ;;  %v12889_v31 = vld [vmem:[%s18228_s1 + $0xaec] sm:$0xf0]  ;;  %v10497_v33 = vld [vmem:[%s18228_s1 + $0x8e0] sm:$0xf]  ;;  %v9283_v36 = vld [vmem:[#allocation2 + $0xa0] sm:$0xf0] }
  0x63   : > { %3375 = vmatpush.bf16.msrb.mxu3 %v10258_v27  ;;  %v12825_v34 = vld [vmem:[%s18228_s1 + $0x8ec] sm:$0xf0]  ;;  %v12537_v35 = vld [vmem:[#allocation2 + $0x9c] sm:$0xf0]  ;;  %v10754_v37 = vor.u32 %v12889_v31, %v10753_v30 }
  0x64   : > { %3317 = vmatpush.bf16.msrb.mxu1 %v10002_v29  ;;  %v10498_v38 = vor.u32 %v12825_v34, %v10497_v33  ;;  %v10881_v39 = vld [vmem:[%s18228_s1 + $0xbe0] sm:$0xf]  ;;  %v12921_v42 = vld [vmem:[%s18228_s1 + $0xbec] sm:$0xf0] }
  0x65   : > { %v10882_v49 = vor.u32 %v12921_v42, %v10881_v39  ;;  %v10625_v53 = vld [vmem:[%s18228_s1 + $0x9e0] sm:$0xf]  ;;  %v12857_v55 = vld [vmem:[%s18228_s1 + $0x9ec] sm:$0xf0] }
  0x66   : > { %v9281_v40 = vld [vmem:[#allocation2 + $0x90] sm:$0xf]  ;;  %v12535_v41 = vld [vmem:[#allocation2 + $0x94] sm:$0xf]  ;;  %3455 = vmatpush.bf16.msra.mxu2 %v10754_v37  ;;  %3397 = vmatpush.bf16.msra.mxu0 %v10498_v38  ;;  %v10737_v56 = vld [vmem:[%s18228_s1 + $0xac0] sm:$0xf]  ;;  %v10626_v58 = vor.u32 %v12857_v55, %v10625_v53 }
  0x67   : > { %v9289_v43 = vld [vmem:[#allocation2 + $0x98] sm:$0xf]  ;;  %v12536_v45 = vld [vmem:[#allocation2 + $0x9c] sm:$0xf]  ;;  %v12885_v60 = vld [vmem:[%s18228_s1 + $0xacc] sm:$0xf0]  ;;  %3484 = vmatpush.bf16.msra.mxu3 %v10882_v49  ;;  %v14108_v13 = vor.u32 %v12537_v35, %v9281_v40  ;;  %v14110_v14 = vor.u32 %v12535_v41, %v9283_v36 }
  0x68   : > { %v12538_v44 = vld [vmem:[#allocation2 + $0xa4] sm:$0xf0]  ;;  %v9291_v46 = vld [vmem:[#allocation2 + $0xa8] sm:$0xf0]  ;;  %v10481_v63 = vld [vmem:[%s18228_s1 + $0x8c0] sm:$0xf]  ;;  %v10738_v1 = vor.u32 %v12885_v60, %v10737_v56  ;;  %3426 = vmatpush.bf16.msra.mxu1 %v10626_v58 }
  0x69   : > { %v12821_v0 = vld [vmem:[%s18228_s1 + $0x8cc] sm:$0xf0]  ;;  %v10865_v8 = vld [vmem:[%s18228_s1 + $0xbc0] sm:$0xf]  ;;  %18410 = vst [vmem:[#allocation21_spill] sm:$0xff] %v14108_v13  ;;  %v14115_v21 = vor.u32 %v12538_v44, %v9289_v43  ;;  %v14117_v22 = vor.u32 %v12536_v45, %v9291_v46 }
  0x6a   : > { %v10482_v5 = vor.u32 %v12821_v0, %v10481_v63  ;;  %v12917_v11 = vld [vmem:[%s18228_s1 + $0xbcc] sm:$0xf0]  ;;  %v10609_v12 = vld [vmem:[%s18228_s1 + $0x9c0] sm:$0xf]  ;;  %18411 = vst [vmem:[#allocation22_spill] sm:$0xff] %v14110_v14  ;;  %3456 = vmatpush.bf16.msra.mxu2 %v10738_v1 }
  0x6b   : > { %v10866_v17 = vor.u32 %v12917_v11, %v10865_v8  ;;  %v12853_v19 = vld [vmem:[%s18228_s1 + $0x9cc] sm:$0xf0]  ;;  %18412 = vst [vmem:[#allocation23_spill] sm:$0xff] %v14115_v21  ;;  %v10721_v25 = vld [vmem:[%s18228_s1 + $0xaa0] sm:$0xf] }
  0x6c   : > { %3398 = vmatpush.bf16.msra.mxu0 %v10482_v5  ;;  %v10610_v20 = vor.u32 %v12853_v19, %v10609_v12  ;;  %18413 = vst [vmem:[#allocation24_spill] sm:$0xff] %v14117_v22  ;;  %v12881_v26 = vld [vmem:[%s18228_s1 + $0xaac] sm:$0xf0]  ;;  %v10465_v27 = vld [vmem:[%s18228_s1 + $0x8a0] sm:$0xf] }
  0x6d   : > { %3485 = vmatpush.bf16.msra.mxu3 %v10866_v17  ;;  %v10722_v28 = vor.u32 %v12881_v26, %v10721_v25  ;;  %v12817_v29 = vld [vmem:[%s18228_s1 + $0x8ac] sm:$0xf0]  ;;  %v10849_v30 = vld [vmem:[%s18228_s1 + $0xba0] sm:$0xf]  ;;  %v12507_v60 = vld [vmem:[%s13626_s30 + $0x4] sm:$0xf] }
  0x6e   : > { %3427 = vmatpush.bf16.msra.mxu1 %v10610_v20  ;;  %v12913_v31 = vld [vmem:[%s18228_s1 + $0xbac] sm:$0xf0]  ;;  %v10466_v33 = vor.u32 %v12817_v29, %v10465_v27  ;;  %v10593_v35 = vld [vmem:[%s18228_s1 + $0x9a0] sm:$0xf]  ;;  %v9299_v63 = vld [vmem:[%s13626_s30 + $0x10] sm:$0xf0] }
  0x6f   : > { %3246 = vmatmul.bf16.gmra.mxu2 %v14115_v21  ;;  %v10850_v34 = vor.u32 %v12913_v31, %v10849_v30  ;;  %v12849_v36 = vld [vmem:[%s18228_s1 + $0x9ac] sm:$0xf0]  ;;  %v10705_v37 = vld [vmem:[%s18228_s1 + $0xa80] sm:$0xf]  ;;  %v9305_v0 = vld [vmem:[%s13626_s30 + $0x8] sm:$0xf]  ;;  %v14181_v12 = vor.u32 %v12507_v60, %v9299_v63 }
  0x70   : > { %3275 = vmatmul.bf16.gmra.mxu3 %v14117_v22  ;;  %3457 = vmatpush.bf16.msra.mxu2 %v10722_v28  ;;  %v10594_v38 = vor.u32 %v12849_v36, %v10593_v35  ;;  %v12877_v39 = vld [vmem:[%s18228_s1 + $0xa8c] sm:$0xf0]  ;;  %v10449_v40 = vld [vmem:[%s18228_s1 + $0x880] sm:$0xf]  ;;  %v12510_v1 = vld [vmem:[%s13626_s30 + $0x14] sm:$0xf0] }
  0x71   : > { %3188 = vmatmul.bf16.gmra.mxu0 %v14108_v13  ;;  %3217 = vmatmul.bf16.gmra.mxu1 %v14110_v14  ;;  %v12813_v41 = vld [vmem:[%s18228_s1 + $0x88c] sm:$0xf0]  ;;  %v10706_v42 = vor.u32 %v12877_v39, %v10705_v37  ;;  %v10833_v44 = vld [vmem:[%s18228_s1 + $0xb80] sm:$0xf]  ;;  %v12508_v5 = vld [vmem:[%s13626_s30 + $0xc] sm:$0xf]  ;;  %v14183_v17 = vor.u32 %v12510_v1, %v9305_v0 }
  0x72   : > { %3399 = vmatpush.bf16.msra.mxu0 %v10466_v33  ;;  %3486 = vmatpush.bf16.msra.mxu3 %v10850_v34  ;;  %v10450_v43 = vor.u32 %v12813_v41, %v10449_v40  ;;  %v12909_v45 = vld [vmem:[%s18228_s1 + $0xb8c] sm:$0xf0]  ;;  %v10577_v46 = vld [vmem:[%s18228_s1 + $0x980] sm:$0xf]  ;;  %v9307_v8 = vld [vmem:[%s13626_s30 + $0x18] sm:$0xf0] }
  0x73   : > { %3428 = vmatpush.bf16.msra.mxu1 %v10594_v38  ;;  %v10834_v49 = vor.u32 %v12909_v45, %v10833_v44  ;;  %v12845_v53 = vld [vmem:[%s18228_s1 + $0x98c] sm:$0xf0]  ;;  %v9297_v55 = vld [vmem:[%s13626_s30] sm:$0xf]  ;;  %18414 = vst [vmem:[#allocation25_spill] sm:$0xff] %v14181_v12  ;;  %v14185_v19 = vor.u32 %v12508_v5, %v9307_v8 }
  0x74   : > { %v10578_v56 = vor.u32 %v12845_v53, %v10577_v46  ;;  %v12509_v58 = vld [vmem:[%s13626_s30 + $0xc] sm:$0xf0]  ;;  %3458 = vmatpush.bf16.msra.mxu2 %v10706_v42  ;;  %18415 = vst [vmem:[#allocation26_spill] sm:$0xff] %v14183_v17  ;;  %v10689_v20 = vld [vmem:[%s18228_s1 + $0xa60] sm:$0xf] }
  0x75   : > { %v14179_v11 = vor.u32 %v12509_v58, %v9297_v55  ;;  %18416 = vst [vmem:[#allocation27_spill] sm:$0xff] %v14185_v19  ;;  %v12873_v25 = vld [vmem:[%s18228_s1 + $0xa6c] sm:$0xf0]  ;;  %v10433_v26 = vld [vmem:[%s18228_s1 + $0x860] sm:$0xf] }
  0x76   : > { %3400 = vmatpush.bf16.msra.mxu0 %v10450_v43  ;;  %3487 = vmatpush.bf16.msra.mxu3 %v10834_v49  ;;  %v10690_v27 = vor.u32 %v12873_v25, %v10689_v20  ;;  %v12809_v28 = vld [vmem:[%s18228_s1 + $0x86c] sm:$0xf0]  ;;  %v10817_v29 = vld [vmem:[%s18228_s1 + $0xb60] sm:$0xf]  ;;  %v263_v60 = vld [vmem:[#allocation2 + $0x28] sm:$0x11] }
  0x77   : > { %3429 = vmatpush.bf16.msra.mxu1 %v10578_v56  ;;  %v12905_v30 = vld [vmem:[%s18228_s1 + $0xb6c] sm:$0xf0]  ;;  %v10434_v31 = vor.u32 %v12809_v28, %v10433_v26  ;;  %v10561_v34 = vld [vmem:[%s18228_s1 + $0x960] sm:$0xf]  ;;  %v12511_v63 = vld [vmem:[%s13626_s30 + $0x24] sm:$0xf] }
  0x78   : > { %v10818_v33 = vor.u32 %v12905_v30, %v10817_v29  ;;  %v12841_v35 = vld [vmem:[%s18228_s1 + $0x96c] sm:$0xf0]  ;;  %v10673_v36 = vld [vmem:[%s18228_s1 + $0xa40] sm:$0xf]  ;;  %3459 = vmatpush.bf16.msra.mxu2 %v10690_v27  ;;  %v9315_v0 = vld [vmem:[%s13626_s30 + $0x30] sm:$0xf0] }
  0x79   : > { %v10562_v37 = vor.u32 %v12841_v35, %v10561_v34  ;;  %v12869_v38 = vld [vmem:[%s18228_s1 + $0xa4c] sm:$0xf0]  ;;  %v10417_v39 = vld [vmem:[%s18228_s1 + $0x840] sm:$0xf]  ;;  %v9321_v1 = vld [vmem:[%s13626_s30 + $0x28] sm:$0xf]  ;;  %v14261_v29 = vor.u32 %v12511_v63, %v9315_v0 }
  0x7a   : > { %v12805_v40 = vld [vmem:[%s18228_s1 + $0x84c] sm:$0xf0]  ;;  %3401 = vmatpush.bf16.msra.mxu0 %v10434_v31  ;;  %3488 = vmatpush.bf16.msra.mxu3 %v10818_v33  ;;  %v10674_v41 = vor.u32 %v12869_v38, %v10673_v36  ;;  %v10801_v43 = vld [vmem:[%s18228_s1 + $0xb40] sm:$0xf]  ;;  %v12514_v5 = vld [vmem:[%s13626_s30 + $0x34] sm:$0xf0] }
  0x7b   : > { %v10418_v42 = vor.u32 %v12805_v40, %v10417_v39  ;;  %v12901_v44 = vld [vmem:[%s18228_s1 + $0xb4c] sm:$0xf0]  ;;  %v10545_v45 = vld [vmem:[%s18228_s1 + $0x940] sm:$0xf]  ;;  %3430 = vmatpush.bf16.msra.mxu1 %v10562_v37  ;;  %v12512_v20 = vld [vmem:[%s13626_s30 + $0x2c] sm:$0xf]  ;;  %v14263_v30 = vor.u32 %v12514_v5, %v9321_v1 }
  0x7c   : > { %v9313_v46 = vld [vmem:[%s13626_s30 + $0x20] sm:$0xf]  ;;  %v12513_v49 = vld [vmem:[%s13626_s30 + $0x2c] sm:$0xf0]  ;;  %v10802_v53 = vor.u32 %v12901_v44, %v10801_v43  ;;  %3460 = vmatpush.bf16.msra.mxu2 %v10674_v41  ;;  %v9323_v25 = vld [vmem:[%s13626_s30 + $0x38] sm:$0xf0] }
  0x7d   : > { %v12837_v55 = vld [vmem:[%s18228_s1 + $0x94c] sm:$0xf0]  ;;  %v260_v58 = vld [vmem:[#allocation2 + $0x20] sm:$0x11]  ;;  %v264_v27 = vsel %vm14249_vm4, 0, %v263_v60  ;;  %v14259_v28 = vor.u32 %v12513_v49, %v9313_v46  ;;  %v14265_v31 = vor.u32 %v12512_v20, %v9323_v25  ;;  %v341_v33 = vrot.slane %v13721_v48, 4 }
  0x7e   : > { %v10546_v56 = vor.u32 %v12837_v55, %v10545_v45  ;;  %3402 = vmatpush.bf16.msra.mxu0 %v10418_v42  ;;  %3489 = vmatpush.bf16.msra.mxu3 %v10802_v53  ;;  %v261_v26 = vsel %vm14249_vm4, 0, %v260_v58  ;;  %265 = vst [vmem:[#allocation2 + $0x28] sm:$0x11] %v264_v27  ;;  %v342_v34 = vrot.slane %v13749_v62, 4  ;;  %v10657_v35 = vld [vmem:[%s18228_s1 + $0xa20] sm:$0xf] }
  0x7f   : > { %3347 = vmatmul.bf16.vlgmr.msrb.gmra.mxu2 %v14183_v17  ;;  %262 = vst [vmem:[#allocation2 + $0x20] sm:$0x11] %v261_v26  ;;  %v12865_v36 = vld [vmem:[%s18228_s1 + $0xa2c] sm:$0xf0]  ;;  %v10401_v37 = vld [vmem:[%s18228_s1 + $0x820] sm:$0xf] }
  0x80   : > { %3376 = vmatmul.bf16.vlgmr.msrb.gmra.mxu3 %v14185_v19  ;;  %3431 = vmatpush.bf16.msra.mxu1 %v10546_v56  ;;  %v10658_v38 = vor.u32 %v12865_v36, %v10657_v35  ;;  %v12801_v48 = vld [vmem:[%s18228_s1 + $0x82c] sm:$0xf0]  ;;  %v10785_v62 = vld [vmem:[%s18228_s1 + $0xb20] sm:$0xf]  ;;  %v12515_v27 = vld [vmem:[%s13626_s30 + $0x44] sm:$0xf] }
  0x81   : > { %3289 = vmatmul.bf16.vlgmr.msrb.gmra.mxu0 %v14179_v11  ;;  %3318 = vmatmul.bf16.vlgmr.msrb.gmra.mxu1 %v14181_v12  ;;  %v12897_v39 = vld [vmem:[%s18228_s1 + $0xb2c] sm:$0xf0]  ;;  %v10402_v40 = vor.u32 %v12801_v48, %v10401_v37  ;;  %v10529_v42 = vld [vmem:[%s18228_s1 + $0x920] sm:$0xf]  ;;  %v9331_v48 = vld [vmem:[%s13626_s30 + $0x50] sm:$0xf0] }
  0x82   : > { %v10786_v41 = vor.u32 %v12897_v39, %v10785_v62  ;;  %v12833_v43 = vld [vmem:[%s18228_s1 + $0x92c] sm:$0xf0]  ;;  %v10641_v44 = vld [vmem:[%s18228_s1 + $0xa00] sm:$0xf]  ;;  %3461 = vmatpush.bf16.msra.mxu2 %v10658_v38  ;;  %v9337_v39 = vld [vmem:[%s13626_s30 + $0x48] sm:$0xf] }
  0x83   : > { %v10530_v45 = vor.u32 %v12833_v43, %v10529_v42  ;;  %v12861_v46 = vld [vmem:[%s18228_s1 + $0xa0c] sm:$0xf0]  ;;  %v10385_v49 = vld [vmem:[%s18228_s1 + $0x800] sm:$0xf]  ;;  %3403 = vmatpush.bf16.msra.mxu0 %v10402_v40  ;;  %v12518_v40 = vld [vmem:[%s13626_s30 + $0x54] sm:$0xf0]  ;;  %v14337_v43 = vor.u32 %v12515_v27, %v9331_v48 }
  0x84   : > { %v12797_v53 = vld [vmem:[%s18228_s1 + $0x80c] sm:$0xf0]  ;;  %3490 = vmatpush.bf16.msra.mxu3 %v10786_v41  ;;  %v10642_v55 = vor.u32 %v12861_v46, %v10641_v44  ;;  %v10769_v58 = vld [vmem:[%s18228_s1 + $0xb00] sm:$0xf]  ;;  %v12516_v41 = vld [vmem:[%s13626_s30 + $0x4c] sm:$0xf] }
  0x85   : > { %v10386_v56 = vor.u32 %v12797_v53, %v10385_v49  ;;  %v12893_v60 = vld [vmem:[%s18228_s1 + $0xb0c] sm:$0xf0]  ;;  %v10513_v63 = vld [vmem:[%s18228_s1 + $0x900] sm:$0xf]  ;;  %3432 = vmatpush.bf16.msra.mxu1 %v10530_v45  ;;  %v485_v25 = vld [vmem:[#allocation2 + $0x28] sm:$0x11]  ;;  %v14341_v45 = vor.u32 %v12518_v40, %v9337_v39 }
  0x86   : > { %v9329_v0 = vld [vmem:[%s13626_s30 + $0x40] sm:$0xf]  ;;  %v10770_v1 = vor.u32 %v12893_v60, %v10769_v58  ;;  %v12829_v5 = vld [vmem:[%s18228_s1 + $0x90c] sm:$0xf0]  ;;  %v486_v37 = vsel %vm13590_vm7, %v342_v34, %v485_v25  ;;  %3462 = vmatpush.bf16.msra.mxu2 %v10642_v55  ;;  %v9339_v42 = vld [vmem:[%s13626_s30 + $0x58] sm:$0xf0] }
  0x87   : > { %v482_v20 = vld [vmem:[#allocation2 + $0x20] sm:$0x11]  ;;  %v12517_v26 = vld [vmem:[%s13626_s30 + $0x4c] sm:$0xf0]  ;;  %v10514_v35 = vor.u32 %v12829_v5, %v10513_v63  ;;  %3404 = vmatpush.bf16.msra.mxu0 %v10386_v56  ;;  %487 = vst [vmem:[#allocation2 + $0x28] sm:$0x11] %v486_v37  ;;  %v14343_v46 = vor.u32 %v12516_v41, %v9339_v42 }
  0x88   : > { %v483_v36 = vsel %vm13590_vm7, %v341_v33, %v482_v20  ;;  %v266_v38 = vld [vmem:[#allocation2 + $0x50] sm:$0x11]  ;;  %3491 = vmatpush.bf16.msra.mxu3 %v10770_v1  ;;  %v14335_v33 = vor.u32 %v12517_v26, %v9329_v0  ;;  %v269_v34 = vld [vmem:[#allocation2 + $0x58] sm:$0x11]  ;;  %v375_v49 = vrot.slane %v13817_v47, 4  ;;  %v376_v53 = vrot.slane %v13820_v57, 4 }
  0x89   : > { %484 = vst [vmem:[#allocation2 + $0x20] sm:$0x11] %v483_v36  ;;  %v267_v62 = vsel %vm14249_vm4, 0, %v266_v38  ;;  %3433 = vmatpush.bf16.msra.mxu1 %v10514_v35  ;;  %v270_v44 = vsel %vm14249_vm4, 0, %v269_v34  ;;  %v12631_v55 = vld [vmem:[%s18228_s1 + $0x2e4] sm:$0xf] }
  0x8a   : > { %268 = vst [vmem:[#allocation2 + $0x50] sm:$0x11] %v267_v62  ;;  %v9731_v56 = vld [vmem:[%s18228_s1 + $0x2f0] sm:$0xf0]  ;;  %v12567_v47 = vld [vmem:[%s18228_s1 + $0xe4] sm:$0xf] }
  0x8b   : > { %271 = vst [vmem:[#allocation2 + $0x58] sm:$0x11] %v270_v44  ;;  %v9734_v58 = vor.u32 %v12631_v55, %v9731_v56  ;;  %v9475_v57 = vld [vmem:[%s18228_s1 + $0xf0] sm:$0xf0]  ;;  %v12663_v60 = vld [vmem:[%s18228_s1 + $0x3e4] sm:$0xf] }
  0x8c   : > { %v9478_v63 = vor.u32 %v12567_v47, %v9475_v57  ;;  %v9859_v0 = vld [vmem:[%s18228_s1 + $0x3f0] sm:$0xf0]  ;;  %v9345_v27 = vld [vmem:[%s13626_s30 + $0x60] sm:$0xf]  ;;  %v12521_v35 = vld [vmem:[%s13626_s30 + $0x6c] sm:$0xf0] }
  0x8d   : > { %3571 = vmatpush.bf16.msrb.mxu2 %v9734_v58  ;;  %v9862_v5 = vor.u32 %v12663_v60, %v9859_v0  ;;  %v12519_v36 = vld [vmem:[%s13626_s30 + $0x64] sm:$0xf]  ;;  %v9347_v37 = vld [vmem:[%s13626_s30 + $0x70] sm:$0xf0]  ;;  %v9353_v40 = vld [vmem:[%s13626_s30 + $0x68] sm:$0xf] }
  0x8e   : > { %3513 = vmatpush.bf16.msrb.mxu0 %v9478_v63  ;;  %v14377_v38 = vld [vmem:[#allocation2 + $0x10] sm:$0xff]  ;;  %v12599_v48 = vld [vmem:[%s18228_s1 + $0x1e4] sm:$0xf]  ;;  %v12522_v41 = vld [vmem:[%s13626_s30 + $0x74] sm:$0xf0] }
  0x8f   : > { %3352 = vmatmul.bf16.gmra.mxu2 %v14263_v30  ;;  %3600 = vmatpush.bf16.msrb.mxu3 %v9862_v5  ;;  %v9603_v62 = vld [vmem:[%s18228_s1 + $0x1f0] sm:$0xf0]  ;;  %v12627_v39 = vld [vmem:[%s18228_s1 + $0x2c4] sm:$0xf]  ;;  %v12520_v57 = vld [vmem:[%s13626_s30 + $0x6c] sm:$0xf]  ;;  %v14410_v5 = vor.u32 %v12519_v36, %v9347_v37 }
  0x90   : > { %3381 = vmatmul.bf16.gmra.mxu3 %v14265_v31  ;;  %v9606_v42 = vor.u32 %v12599_v48, %v9603_v62  ;;  %v9715_v34 = vld [vmem:[%s18228_s1 + $0x2d0] sm:$0xf0]  ;;  %v12563_v44 = vld [vmem:[%s18228_s1 + $0xc4] sm:$0xf]  ;;  %v9355_v60 = vld [vmem:[%s13626_s30 + $0x78] sm:$0xf0] }
  0x91   : > { %3294 = vmatmul.bf16.gmra.mxu0 %v14259_v28  ;;  %3323 = vmatmul.bf16.gmra.mxu1 %v14261_v29  ;;  %v496_v1 = vld [vmem:[#allocation2 + $0x50] sm:$0x11]  ;;  %v9718_v55 = vor.u32 %v12627_v39, %v9715_v34  ;;  %v12659_v58 = vld [vmem:[%s18228_s1 + $0x3c4] sm:$0xf]  ;;  %v591_v63 = vrot.slane %v14377_v38, 5  ;;  %18420 = vst [vmem:[#allocation29_spill] sm:$0xff] %v14410_v5  ;;  %v14414_v38 = vor.u32 %v12522_v41, %v9353_v40 }
  0x92   : > { %v497_v20 = vsel %vm13590_vm7, %v375_v49, %v496_v1  ;;  %v499_v25 = vld [vmem:[#allocation2 + $0x58] sm:$0x11]  ;;  %v9459_v49 = vld [vmem:[%s18228_s1 + $0xd0] sm:$0xf0]  ;;  %3542 = vmatpush.bf16.msrb.mxu1 %v9606_v42  ;;  %v14408_v1 = vor.u32 %v12521_v35, %v9345_v27  ;;  %v275_v39 = vld [vmem:[#allocation2 + $0x88] sm:$0x11]  ;;  %v14416_v42 = vor.u32 %v12520_v57, %v9355_v60 }
  0x93   : > { %498 = vst [vmem:[#allocation2 + $0x50] sm:$0x11] %v497_v20  ;;  %v500_v26 = vsel %vm13590_vm7, %v376_v53, %v499_v25  ;;  %v533_v53 = vld [vmem:[#allocation2 + $0x18] sm:$0xff]  ;;  %v9462_v56 = vor.u32 %v12563_v44, %v9459_v49  ;;  %v9843_v47 = vld [vmem:[%s18228_s1 + $0x3d0] sm:$0xf0]  ;;  %3572 = vmatpush.bf16.msrb.mxu2 %v9718_v55  ;;  %v409_v36 = vrot.slane %v13902_v3, 4 }
  0x94   : > { %501 = vst [vmem:[#allocation2 + $0x58] sm:$0x11] %v500_v26  ;;  %v9846_v0 = vor.u32 %v12659_v58, %v9843_v47  ;;  %v546_v20 = vld [vmem:[#allocation2] sm:$0xee]  ;;  %v547_v25 = vld [vmem:[#allocation2 + $0x8] sm:$0xee] }
  0x95   : > { %18419 = vst [vmem:[#allocation28_spill] sm:$0xff] %v14408_v1  ;;  %3514 = vmatpush.bf16.msrb.mxu0 %v9462_v56  ;;  %v272_v26 = vld [vmem:[#allocation2 + $0x80] sm:$0x11]  ;;  %v595_v48 = vrot.slane %v533_v53, 5  ;;  %v549_v35 = vld [vmem:[#allocation2 + $0x28] sm:$0x11] }
  0x96   : > { %3601 = vmatpush.bf16.msrb.mxu3 %v9846_v0  ;;  %v273_v62 = vsel %vm14249_vm4, 0, %v272_v26  ;;  %18421 = vst [vmem:[#allocation30_spill] sm:$0xff] %v14414_v38  ;;  %v548_v27 = vld [vmem:[#allocation2 + $0x20] sm:$0x11]  ;;  %v9223_v37 = vrot.slane %v546_v20, 9  ;;  %v597_v34 = vrot.slane %v591_v63, 4 }
  0x97   : > { %18422 = vst [vmem:[#allocation31_spill] sm:$0xff] %v14416_v42  ;;  %v9224_v44 = vrot.slane %v547_v25, 9  ;;  %v12595_v49 = vld [vmem:[%s18228_s1 + $0x1c4] sm:$0xf]  ;;  %v9587_v40 = vld [vmem:[%s18228_s1 + $0x1d0] sm:$0xf0] }
  0x98   : > { %274 = vst [vmem:[#allocation2 + $0x80] sm:$0x11] %v273_v62  ;;  %v276_v41 = vsel %vm14249_vm4, 0, %v275_v39  ;;  %v18423_v3 = vmov 0  ;;  %v598_v53 = vrot.slane %v548_v27, 5  ;;  %v600_v55 = vrot.slane %v595_v48, 4 }
  0x99   : > { %v18424_v3 = vsel %vm14431_vm5, 4294967295, %v18423_v3  ;;  %v601_v56 = vrot.slane %v549_v35, 5  ;;  %v9590_v58 = vor.u32 %v12595_v49, %v9587_v40  ;;  %277 = vst [vmem:[#allocation2 + $0x88] sm:$0x11] %v276_v41  ;;  %v12623_v47 = vld [vmem:[%s18228_s1 + $0x2a4] sm:$0xf]  ;;  %v592_v27 = vsel %vm14431_vm5, %v9223_v37, %v591_v63 }
  0x9a   : > { %18425 = vst [vmem:[#allocation32_spill] sm:$0xff] %v18424_v3  ;;  %v9699_v57 = vld [vmem:[%s18228_s1 + $0x2b0] sm:$0xf0]  ;;  %v12559_v60 = vld [vmem:[%s18228_s1 + $0xa4] sm:$0xf]  ;;  %v599_v35 = vsel %vm14431_vm5, %v597_v34, %v598_v53  ;;  %v596_v40 = vsel %vm14431_vm5, %v9224_v44, %v595_v48  ;;  %v797_v63 = vunpack.c.l.b16 %v592_v27  ;;  %v798_v34 = vunpack.c.h.b16 %v592_v27 }
  0x9b   : > { %3543 = vmatpush.bf16.msrb.mxu1 %v9590_v58  ;;  %v9702_v0 = vor.u32 %v12623_v47, %v9699_v57  ;;  %v9443_v20 = vld [vmem:[%s18228_s1 + $0xb0] sm:$0xf0]  ;;  %v12655_v25 = vld [vmem:[%s18228_s1 + $0x3a4] sm:$0xf]  ;;  %v410_v58 = vrot.slane %v13937_v32, 4  ;;  %v602_v47 = vsel %vm14431_vm5, %v600_v55, %v601_v56  ;;  %v801_v37 = vunpack.c.l.b16 %v599_v35 }
  0x9c   : > { %v9827_v26 = vld [vmem:[%s18228_s1 + $0x3b0] sm:$0xf0]  ;;  %v9446_v62 = vor.u32 %v12559_v60, %v9443_v20  ;;  %v14466_v57 = vld [vmem:[#allocation2 + $0x40] sm:$0xff]  ;;  %v802_v53 = vunpack.c.h.b16 %v599_v35  ;;  %v799_v44 = vunpack.c.l.b16 %v596_v40  ;;  %v800_v55 = vunpack.c.h.b16 %v596_v40 }
  0x9d   : > { %v9830_v39 = vor.u32 %v12655_v25, %v9827_v26  ;;  %3573 = vmatpush.bf16.msrb.mxu2 %v9702_v0  ;;  %v12591_v48 = vld [vmem:[%s18228_s1 + $0x1a4] sm:$0xf]  ;;  %v9683_v60 = vld [vmem:[%s18228_s1 + $0x290] sm:$0xf0]  ;;  %v803_v25 = vunpack.c.l.b16 %v602_v47  ;;  %v804_v26 = vunpack.c.h.b16 %v602_v47  ;;  %v605_v47 = vrot.slane %v14466_v57, 5 }
  0x9e   : > { %3515 = vmatpush.bf16.msrb.mxu0 %v9446_v62  ;;  %v12619_v32 = vld [vmem:[%s18228_s1 + $0x284] sm:$0xf]  ;;  %v9427_v20 = vld [vmem:[%s18228_s1 + $0x90] sm:$0xf0]  ;;  %v14486_v62 = vld [vmem:[#allocation2 + $0x48] sm:$0xff]  ;;  %v14496_v52 = vpack.c.b16 %v802_v53, %v798_v34 }
  0x9f   : > { %3357 = vmatmul.bf16.gmra.mxu2 %v14341_v45  ;;  %v510_v49 = vld [vmem:[#allocation2 + $0x80] sm:$0x11]  ;;  %3602 = vmatpush.bf16.msrb.mxu3 %v9830_v39  ;;  %v9686_v39 = vor.u32 %v12619_v32, %v9683_v60  ;;  %v550_v40 = vld [vmem:[#allocation2 + $0x30] sm:$0xee]  ;;  %v551_v32 = vld [vmem:[#allocation2 + $0x38] sm:$0xee]  ;;  %v14504_v34 = vpack.c.b16 %v803_v25, %v799_v44  ;;  %v14506_v57 = vpack.c.b16 %v804_v26, %v800_v55 }
  0xa0   : > { %3386 = vmatmul.bf16.gmra.mxu3 %v14343_v46  ;;  %v511_v41 = vsel %vm13590_vm7, %v409_v36, %v510_v49  ;;  %v9571_v36 = vld [vmem:[%s18228_s1 + $0x1b0] sm:$0xf0]  ;;  %v12555_v0 = vld [vmem:[%s18228_s1 + $0x84] sm:$0xf]  ;;  %18427 = vst [vmem:[#allocation34_spill] sm:$0xff] %v14496_v52 }
  0xa1   : > { %3299 = vmatmul.bf16.gmra.mxu0 %v14335_v33  ;;  %3328 = vmatmul.bf16.gmra.mxu1 %v14337_v43  ;;  %512 = vst [vmem:[#allocation2 + $0x80] sm:$0x11] %v511_v41  ;;  %v9574_v56 = vor.u32 %v12591_v48, %v9571_v36  ;;  %v9430_v27 = vor.u32 %v12555_v0, %v9427_v20  ;;  %v12651_v35 = vld [vmem:[%s18228_s1 + $0x384] sm:$0xf]  ;;  %v9811_v49 = vld [vmem:[%s18228_s1 + $0x390] sm:$0xf0] }
  0xa2   : > { %v9814_v41 = vor.u32 %v12651_v35, %v9811_v49  ;;  %v513_v48 = vld [vmem:[#allocation2 + $0x88] sm:$0x11]  ;;  %v14494_v36 = vpack.c.b16 %v801_v37, %v797_v63  ;;  %3574 = vmatpush.bf16.msrb.mxu2 %v9686_v39  ;;  %v278_v0 = vld [vmem:[#allocation2 + $0xb0] sm:$0x11]  ;;  %18428 = vst [vmem:[#allocation35_spill] sm:$0xff] %v14504_v34  ;;  %v9225_v39 = vrot.slane %v550_v40, 9 }
  0xa3   : > { %3544 = vmatpush.bf16.msrb.mxu1 %v9574_v56  ;;  %3516 = vmatpush.bf16.msrb.mxu0 %v9430_v27  ;;  %v514_v60 = vsel %vm13590_vm7, %v410_v58, %v513_v48  ;;  %v279_v63 = vsel %vm14249_vm4, 0, %v278_v0  ;;  %18429 = vst [vmem:[#allocation36_spill] sm:$0xff] %v14506_v57  ;;  %v552_v53 = vld [vmem:[#allocation2 + $0x50] sm:$0x11]  ;;  %v553_v56 = vld [vmem:[#allocation2 + $0x58] sm:$0x11] }
  0xa4   : > { %18426 = vst [vmem:[#allocation33_spill] sm:$0xff] %v14494_v36  ;;  %3603 = vmatpush.bf16.msrb.mxu3 %v9814_v41  ;;  %v443_v58 = vrot.slane %v13986_v18, 4  ;;  %v9226_v27 = vrot.slane %v551_v32, 9  ;;  %v281_v35 = vld [vmem:[#allocation2 + $0xb8] sm:$0x11]  ;;  %v612_v18 = vrot.slane %v552_v53, 5 }
  0xa5   : > { %515 = vst [vmem:[#allocation2 + $0x88] sm:$0x11] %v514_v60  ;;  %v9555_v44 = vld [vmem:[%s18228_s1 + $0x190] sm:$0xf0]  ;;  %v282_v55 = vsel %vm14249_vm4, 0, %v281_v35  ;;  %v615_v26 = vrot.slane %v553_v56, 5 }
  0xa6   : > { %280 = vst [vmem:[#allocation2 + $0xb0] sm:$0x11] %v279_v63  ;;  %v12615_v40 = vld [vmem:[%s18228_s1 + $0x264] sm:$0xf]  ;;  %v9667_v41 = vld [vmem:[%s18228_s1 + $0x270] sm:$0xf0] }
  0xa7   : > { %283 = vst [vmem:[#allocation2 + $0xb8] sm:$0x11] %v282_v55  ;;  %v12551_v8 = vld [vmem:[%s18228_s1 + $0x64] sm:$0xf]  ;;  %v9670_v48 = vor.u32 %v12615_v40, %v9667_v41  ;;  %v9411_v32 = vld [vmem:[%s18228_s1 + $0x70] sm:$0xf0] }
  0xa8   : > { %v12647_v60 = vld [vmem:[%s18228_s1 + $0x364] sm:$0xf]  ;;  %v9795_v0 = vld [vmem:[%s18228_s1 + $0x370] sm:$0xf0]  ;;  %v9414_v63 = vor.u32 %v12551_v8, %v9411_v32 }
  0xa9   : > { %v9798_v53 = vor.u32 %v12647_v60, %v9795_v0  ;;  %3575 = vmatpush.bf16.msrb.mxu2 %v9670_v48 }
  0xaa   : > { %3517 = vmatpush.bf16.msrb.mxu0 %v9414_v63  ;;  %v12547_v63 = vld [vmem:[%s18228_s1 + $0x44] sm:$0xf] }
  0xab   : > { %3604 = vmatpush.bf16.msrb.mxu3 %v9798_v53  ;;  %v9395_v53 = vld [vmem:[%s18228_s1 + $0x50] sm:$0xf0] }
  0xaf   : > { %3362 = vmatmul.bf16.gmra.mxu2 %v14414_v38 }
  0xb0   : > { %3391 = vmatmul.bf16.gmra.mxu3 %v14416_v42  ;;  %v609_v42 = vrot.slane %v14486_v62, 5  ;;  %v611_v62 = vrot.slane %v605_v47, 4 }
  0xb1   : > { %3304 = vmatmul.bf16.gmra.mxu0 %v14408_v1  ;;  %3333 = vmatmul.bf16.gmra.mxu1 %v14410_v5 }
  0xb2   : > { %v614_v25 = vrot.slane %v609_v42, 4  ;;  %v610_v41 = vsel %vm14431_vm5, %v9226_v27, %v609_v42  ;;  %v12583_v27 = vld [vmem:[%s18228_s1 + $0x164] sm:$0xf] }
  0xbe   : > { %v3174_v20 = vpop.f32.mrf.mxu0  ;;  %v3203_v61 = vpop.f32.mrf.mxu1 }
  0xbf   : > { %v3204_v37 = vadd.f32 %v3203_v61, %v3174_v20  ;;  %v12587_v61 = vld [vmem:[%s18228_s1 + $0x184] sm:$0xf]  ;;  %3463 = vmatmul.bf16.vlgmr.msra.gmra.mxu2 %v14504_v34  ;;  %v606_v20 = vsel %vm14431_vm5, %v9225_v39, %v605_v47  ;;  %v444_v39 = vrot.slane %v14010_v54, 4  ;;  %v9539_v54 = vld [vmem:[%s18228_s1 + $0x170] sm:$0xf0] }
  0xc0   : > { %v9558_v49 = vor.u32 %v12587_v61, %v9555_v44  ;;  %3492 = vmatmul.bf16.vlgmr.msra.gmra.mxu3 %v14506_v57  ;;  %v613_v61 = vsel %vm14431_vm5, %v611_v62, %v612_v18  ;;  %v524_v44 = vld [vmem:[#allocation2 + $0xb0] sm:$0x11]  ;;  %v805_v32 = vunpack.c.l.b16 %v606_v20  ;;  %v616_v62 = vsel %vm14431_vm5, %v614_v25, %v615_v26 }
  0xc1   : > { %3405 = vmatmul.bf16.vlgmr.msra.gmra.mxu0 %v14494_v36  ;;  %3434 = vmatmul.bf16.vlgmr.msra.gmra.mxu1 %v14496_v52  ;;  %v525_v47 = vsel %vm13590_vm7, %v443_v58, %v524_v44  ;;  %v14550_v18 = vld [vmem:[#allocation2 + $0x70] sm:$0xff]  ;;  %v809_v48 = vunpack.c.l.b16 %v613_v61  ;;  %v806_v60 = vunpack.c.h.b16 %v606_v20  ;;  %v810_v42 = vunpack.c.h.b16 %v613_v61  ;;  %v12611_v58 = vld [vmem:[%s18228_s1 + $0x244] sm:$0xf]  ;;  %v14572_v61 = vld [vmem:[#allocation2 + $0x78] sm:$0xff] }
  0xc2   : > { %3545 = vmatpush.bf16.msrb.mxu1 %v9558_v49  ;;  %v3232_v56 = vpop.f32.mrf.mxu2  ;;  %v3261_v35 = vpop.f32.mrf.mxu3  ;;  %526 = vst [vmem:[#allocation2 + $0xb0] sm:$0x11] %v525_v47  ;;  %v807_v25 = vunpack.c.l.b16 %v610_v41  ;;  %v808_v26 = vunpack.c.h.b16 %v610_v41  ;;  %v9542_v0 = vor.u32 %v12583_v27, %v9539_v54  ;;  %v9651_v20 = vld [vmem:[%s18228_s1 + $0x250] sm:$0xf0]  ;;  %v527_v47 = vld [vmem:[#allocation2 + $0xb8] sm:$0x11] }
  0xc3   : > { %v3233_v55 = vadd.f32 %v3232_v56, %v3204_v37  ;;  %v811_v56 = vunpack.c.l.b16 %v616_v62  ;;  %v9654_v44 = vor.u32 %v12611_v58, %v9651_v20  ;;  %v14580_v27 = vpack.c.b16 %v809_v48, %v805_v32 }
  0xc4   : > { %v14582_v54 = vpack.c.b16 %v810_v42, %v806_v60  ;;  %v619_v57 = vrot.slane %v14550_v18, 5  ;;  %v528_v58 = vsel %vm13590_vm7, %v444_v39, %v527_v47  ;;  %v623_v34 = vrot.slane %v14572_v61, 5  ;;  %v556_v18 = vld [vmem:[#allocation2 + $0x80] sm:$0x11] }
  0xc5   : > { %v14552_v37 = vadd.f32 %v3261_v35, %v3233_v55  ;;  %v812_v35 = vunpack.c.h.b16 %v616_v62  ;;  %v9398_v55 = vor.u32 %v12547_v63, %v9395_v53  ;;  %18430 = vst [vmem:[#allocation37_spill] sm:$0xff] %v14580_v27  ;;  %v554_v62 = vld [vmem:[#allocation2 + $0x60] sm:$0xee]  ;;  %3576 = vmatpush.bf16.msrb.mxu2 %v9654_v44  ;;  %v555_v53 = vld [vmem:[#allocation2 + $0x68] sm:$0xee]  ;;  %v14588_v60 = vpack.c.b16 %v811_v56, %v807_v25 }
  0xc6   : > { %v3176_v49 = vpop.f32.mrf.mxu0  ;;  %v3205_v40 = vpop.f32.mrf.mxu1  ;;  %3546 = vmatpush.bf16.msrb.mxu1 %v9542_v0  ;;  %18431 = vst [vmem:[#allocation38_spill] sm:$0xff] %v14582_v54  ;;  %v557_v44 = vld [vmem:[#allocation2 + $0x88] sm:$0x11]  ;;  %v625_v39 = vrot.slane %v619_v57, 4  ;;  %v9228_v61 = vrot.slane %v555_v53, 9  ;;  %v628_v56 = vrot.slane %v623_v34, 4 }
  0xc7   : > { %v3206_v8 = vadd.f32 %v3205_v40, %v3176_v49  ;;  %v12643_v49 = vld [vmem:[%s18228_s1 + $0x344] sm:$0xf]  ;;  %v9779_v40 = vld [vmem:[%s18228_s1 + $0x350] sm:$0xf0]  ;;  %3518 = vmatpush.bf16.msrb.mxu0 %v9398_v55  ;;  %529 = vst [vmem:[#allocation2 + $0xb8] sm:$0x11] %v528_v58  ;;  %v14590_v42 = vpack.c.b16 %v812_v35, %v808_v26 }
  0xc8   : > { %v9782_v41 = vor.u32 %v12643_v49, %v9779_v40  ;;  %18432 = vst [vmem:[#allocation39_spill] sm:$0xff] %v14588_v60  ;;  %v9227_v49 = vrot.slane %v554_v62, 9  ;;  %v9523_v25 = vld [vmem:[%s18228_s1 + $0x150] sm:$0xf0]  ;;  %v626_v26 = vrot.slane %v556_v18, 5  ;;  %v629_v35 = vrot.slane %v557_v44, 5 }
  0xc9   : > { %18433 = vst [vmem:[#allocation40_spill] sm:$0xff] %v14590_v42  ;;  %v12607_v47 = vld [vmem:[%s18228_s1 + $0x224] sm:$0xf]  ;;  %v9635_v62 = vld [vmem:[%s18228_s1 + $0x230] sm:$0xf0]  ;;  %v624_v59 = vsel %vm14431_vm5, %v9228_v61, %v623_v34 }
  0xca   : > { %v3234_v20 = vpop.f32.mrf.mxu2  ;;  %v3263_v63 = vpop.f32.mrf.mxu3  ;;  %3605 = vmatpush.bf16.msrb.mxu3 %v9782_v41  ;;  %v12543_v58 = vld [vmem:[%s18228_s1 + $0x24] sm:$0xf]  ;;  %v9507_v34 = vld [vmem:[%s18228_s1 + $0x130] sm:$0xf0] }
  0xcb   : > { %v3235_v0 = vadd.f32 %v3234_v20, %v3206_v8  ;;  %v12579_v8 = vld [vmem:[%s18228_s1 + $0x144] sm:$0xf]  ;;  %v9638_v20 = vor.u32 %v12607_v47, %v9635_v62 }
  0xcc   : > { %v9526_v41 = vor.u32 %v12579_v8, %v9523_v25  ;;  %v12639_v53 = vld [vmem:[%s18228_s1 + $0x324] sm:$0xf]  ;;  %v627_v25 = vsel %vm14431_vm5, %v625_v39, %v626_v26 }
  0xcd   : > { %v14592_v40 = vadd.f32 %v3263_v63, %v3235_v0  ;;  %v9379_v63 = vld [vmem:[%s18228_s1 + $0x30] sm:$0xf0]  ;;  %3577 = vmatpush.bf16.msrb.mxu2 %v9638_v20  ;;  %v818_v26 = vunpack.c.h.b16 %v627_v25  ;;  %v12603_v61 = vld [vmem:[%s18228_s1 + $0x204] sm:$0xf] }
  0xce   : > { %v3179_v32 = vpop.f32.mrf.mxu0  ;;  %v3208_v48 = vpop.f32.mrf.mxu1  ;;  %3547 = vmatpush.bf16.msrb.mxu1 %v9526_v41  ;;  %v9763_v0 = vld [vmem:[%s18228_s1 + $0x330] sm:$0xf0] }
  0xcf   : > { %v3209_v55 = vadd.f32 %v3208_v48, %v3179_v32  ;;  %3468 = vmatmul.bf16.gmra.mxu2 %v14588_v60  ;;  %v620_v32 = vsel %vm14431_vm5, %v9227_v49, %v619_v57  ;;  %v9382_v48 = vor.u32 %v12543_v58, %v9379_v63  ;;  %v9766_v18 = vor.u32 %v12639_v53, %v9763_v0  ;;  %v14630_v49 = vld [vmem:[#allocation2 + $0xa0] sm:$0xff]  ;;  %v9619_v53 = vld [vmem:[%s18228_s1 + $0x210] sm:$0xf0] }
  0xd0   : > { %3497 = vmatmul.bf16.gmra.mxu3 %v14590_v42  ;;  %v813_v60 = vunpack.c.l.b16 %v620_v32  ;;  %v630_v57 = vsel %vm14431_vm5, %v628_v56, %v629_v35  ;;  %v817_v63 = vunpack.c.l.b16 %v627_v25  ;;  %v814_v39 = vunpack.c.h.b16 %v620_v32  ;;  %v12539_v0 = vld [vmem:[%s18228_s1 + $0x4] sm:$0xf]  ;;  %v9363_v32 = vld [vmem:[%s18228_s1 + $0x10] sm:$0xf0] }
  0xd1   : > { %3410 = vmatmul.bf16.gmra.mxu0 %v14580_v27  ;;  %3439 = vmatmul.bf16.gmra.mxu1 %v14582_v54  ;;  %v815_v56 = vunpack.c.l.b16 %v624_v59  ;;  %v816_v35 = vunpack.c.h.b16 %v624_v59  ;;  %v9366_v25 = vor.u32 %v12539_v0, %v9363_v32  ;;  %v12635_v59 = vld [vmem:[%s18228_s1 + $0x304] sm:$0xf] }
  0xd2   : > { %v3237_v44 = vpop.f32.mrf.mxu2  ;;  %3519 = vmatpush.bf16.msrb.mxu0 %v9382_v48  ;;  %3606 = vmatpush.bf16.msrb.mxu3 %v9766_v18  ;;  %v819_v48 = vunpack.c.l.b16 %v630_v57  ;;  %v820_v18 = vunpack.c.h.b16 %v630_v57  ;;  %v12571_v57 = vld [vmem:[%s18228_s1 + $0x104] sm:$0xf] }
  0xd3   : > { %v3266_v8 = vpop.f32.mrf.mxu3  ;;  %v3238_v41 = vadd.f32 %v3237_v44, %v3209_v55  ;;  %v12575_v55 = vld [vmem:[%s18228_s1 + $0x124] sm:$0xf]  ;;  %v545_v44 = vld [vmem:[#allocation2 + $0xa8] sm:$0xff] }
  0xd4   : > { %v9510_v20 = vor.u32 %v12575_v55, %v9507_v34  ;;  %v14660_v55 = vpack.c.b16 %v818_v26, %v814_v39  ;;  %v633_v34 = vrot.slane %v14630_v49, 5  ;;  %v637_v32 = vrot.slane %v545_v44, 5 }
  0xd5   : > { %v14632_v58 = vadd.f32 %v3266_v8, %v3238_v41  ;;  %v9622_v8 = vor.u32 %v12603_v61, %v9619_v53  ;;  %v9747_v41 = vld [vmem:[%s18228_s1 + $0x310] sm:$0xf0]  ;;  %v14669_v49 = vpack.c.b16 %v819_v48, %v815_v56 }
  0xd6   : > { %v3181_v47 = vpop.f32.mrf.mxu0  ;;  %v3210_v62 = vpop.f32.mrf.mxu1  ;;  %3548 = vmatpush.bf16.msrb.mxu1 %v9510_v20  ;;  %18435 = vst [vmem:[#allocation42_spill] sm:$0xff] %v14660_v55  ;;  %3520 = vmatpush.bf16.msrb.mxu0 %v9366_v25  ;;  %v9491_v61 = vld [vmem:[%s18228_s1 + $0x110] sm:$0xf0] }
  0xd7   : > { %v3211_v42 = vadd.f32 %v3210_v62, %v3181_v47  ;;  %v9750_v47 = vor.u32 %v12635_v59, %v9747_v41  ;;  %v14658_v62 = vpack.c.b16 %v817_v63, %v813_v60  ;;  %3578 = vmatpush.bf16.msrb.mxu2 %v9622_v8  ;;  %v558_v20 = vld [vmem:[#allocation2 + $0x90] sm:$0xee]  ;;  %v9494_v60 = vor.u32 %v12571_v57, %v9491_v61  ;;  %v560_v25 = vld [vmem:[#allocation2 + $0xb0] sm:$0x11]  ;;  %v559_v59 = vld [vmem:[#allocation2 + $0x98] sm:$0xee] }
  0xd8   : > { %18436 = vst [vmem:[#allocation43_spill] sm:$0xff] %v14669_v49  ;;  %v14671_v8 = vpack.c.b16 %v820_v18, %v816_v35  ;;  %v561_v41 = vld [vmem:[#allocation2 + $0xb8] sm:$0x11]  ;;  %v9229_v44 = vrot.slane %v558_v20, 9  ;;  %v9230_v57 = vrot.slane %v559_v59, 9  ;;  %v642_v61 = vrot.slane %v637_v32, 4 }
  0xd9   : > { %18434 = vst [vmem:[#allocation41_spill] sm:$0xff] %v14658_v62  ;;  %3607 = vmatpush.bf16.msrb.mxu3 %v9750_v47  ;;  %v639_v47 = vrot.slane %v633_v34, 4  ;;  %v643_v56 = vrot.slane %v561_v41, 5  ;;  %v12759_v35 = vld [vmem:[%s18228_s1 + $0x6e4] sm:$0xf] }
  0xda   : > { %v3239_v53 = vpop.f32.mrf.mxu2  ;;  %18437 = vst [vmem:[#allocation44_spill] sm:$0xff] %v14671_v8  ;;  %3549 = vmatpush.bf16.msrb.mxu1 %v9494_v60  ;;  %v10243_v48 = vld [vmem:[%s18228_s1 + $0x6f0] sm:$0xf0]  ;;  %v12695_v18 = vld [vmem:[%s18228_s1 + $0x4e4] sm:$0xf] }
  0xdb   : > { %v3268_v0 = vpop.f32.mrf.mxu3  ;;  %v3240_v63 = vadd.f32 %v3239_v53, %v3211_v42  ;;  %v640_v42 = vrot.slane %v560_v25, 5  ;;  %v10246_v53 = vor.u32 %v12759_v35, %v10243_v48  ;;  %v12791_v20 = vld [vmem:[%s18228_s1 + $0x7e4] sm:$0xf]  ;;  %v10371_v60 = vld [vmem:[%s18228_s1 + $0x7f0] sm:$0xf0] }
  0xdd   : > { %v14673_v27 = vadd.f32 %v3268_v0, %v3240_v63  ;;  %v9987_v0 = vld [vmem:[%s18228_s1 + $0x4f0] sm:$0xf0]  ;;  %v634_v63 = vsel %vm14431_vm5, %v9229_v44, %v633_v34  ;;  %v641_v41 = vsel %vm14431_vm5, %v639_v47, %v640_v42  ;;  %3687 = vmatpush.bf16.msra.mxu2 %v10246_v53  ;;  %v644_v34 = vsel %vm14431_vm5, %v642_v61, %v643_v56  ;;  %v12691_v61 = vld [vmem:[%s18228_s1 + $0x4c4] sm:$0xf] }
  0xde   : > { %v3184_v39 = vpop.f32.mrf.mxu0  ;;  %v3213_v26 = vpop.f32.mrf.mxu1  ;;  %v827_v56 = vunpack.c.l.b16 %v644_v34 }
  0xdf   : > { %v3214_v54 = vadd.f32 %v3213_v26, %v3184_v39  ;;  %3473 = vmatmul.bf16.gmra.mxu2 %v14669_v49  ;;  %v9990_v39 = vor.u32 %v12695_v18, %v9987_v0  ;;  %v10374_v26 = vor.u32 %v12791_v20, %v10371_v60  ;;  %v638_v49 = vsel %vm14431_vm5, %v9230_v57, %v637_v32  ;;  %v10115_v32 = vld [vmem:[%s18228_s1 + $0x5f0] sm:$0xf0] }
  0xe0   : > { %3502 = vmatmul.bf16.gmra.mxu3 %v14671_v8  ;;  %v825_v18 = vunpack.c.l.b16 %v641_v41  ;;  %v822_v0 = vunpack.c.h.b16 %v634_v63  ;;  %v826_v20 = vunpack.c.h.b16 %v641_v41  ;;  %v823_v47 = vunpack.c.l.b16 %v638_v49  ;;  %v10227_v57 = vld [vmem:[%s18228_s1 + $0x6d0] sm:$0xf0] }
  0xe1   : > { %3415 = vmatmul.bf16.gmra.mxu0 %v14658_v62  ;;  %3444 = vmatmul.bf16.gmra.mxu1 %v14660_v55  ;;  %v821_v62 = vunpack.c.l.b16 %v634_v63  ;;  %v824_v53 = vunpack.c.h.b16 %v638_v49  ;;  %v828_v60 = vunpack.c.h.b16 %v644_v34 }
  0xe2   : > { %v3242_v25 = vpop.f32.mrf.mxu2  ;;  %3629 = vmatpush.bf16.msra.mxu0 %v9990_v39  ;;  %3716 = vmatpush.bf16.msra.mxu3 %v10374_v26  ;;  %v9971_v39 = vld [vmem:[%s18228_s1 + $0x4d0] sm:$0xf0]  ;;  %v12787_v26 = vld [vmem:[%s18228_s1 + $0x7c4] sm:$0xf]  ;;  %v14733_v49 = vpack.c.b16 %v826_v20, %v822_v0 }
  0xe3   : > { %v3271_v59 = vpop.f32.mrf.mxu3  ;;  %v3243_v35 = vadd.f32 %v3242_v25, %v3214_v54  ;;  %v12727_v54 = vld [vmem:[%s18228_s1 + $0x5e4] sm:$0xf]  ;;  %v10355_v25 = vld [vmem:[%s18228_s1 + $0x7d0] sm:$0xf0]  ;;  %v14737_v3 = vpack.c.b16 %v828_v60, %v824_v53 }
  0xe4   : > { %v10118_v42 = vor.u32 %v12727_v54, %v10115_v32  ;;  %v10358_v41 = vor.u32 %v12787_v26, %v10355_v25  ;;  %18439 = vst [vmem:[#allocation46_spill] sm:$0xff] %v14733_v49  ;;  %v12751_v0 = vld [vmem:[%s18228_s1 + $0x6a4] sm:$0xf]  ;;  %v10211_v20 = vld [vmem:[%s18228_s1 + $0x6b0] sm:$0xf0] }
  0xe5   : > { %v14705_v44 = vadd.f32 %v3271_v59, %v3243_v35  ;;  %v9974_v59 = vor.u32 %v12691_v61, %v9971_v39  ;;  %v14731_v35 = vpack.c.b16 %v825_v18, %v821_v62  ;;  %18441 = vst [vmem:[#allocation48_spill] sm:$0xff] %v14737_v3  ;;  %v12723_v62 = vld [vmem:[%s18228_s1 + $0x5c4] sm:$0xf]  ;;  %v10214_v61 = vor.u32 %v12751_v0, %v10211_v20  ;;  %v10339_v60 = vld [vmem:[%s18228_s1 + $0x7b0] sm:$0xf0] }
  0xe6   : > { %v3186_v48 = vpop.f32.mrf.mxu0  ;;  %v3215_v8 = vpop.f32.mrf.mxu1  ;;  %3658 = vmatpush.bf16.msra.mxu1 %v10118_v42  ;;  %3717 = vmatpush.bf16.msra.mxu3 %v10358_v41  ;;  %v12783_v53 = vld [vmem:[%s18228_s1 + $0x7a4] sm:$0xf]  ;;  %v9939_v20 = vld [vmem:[%s18228_s1 + $0x490] sm:$0xf0] }
  0xe7   : > { %v3216_v55 = vadd.f32 %v3215_v8, %v3186_v48  ;;  %v12755_v8 = vld [vmem:[%s18228_s1 + $0x6c4] sm:$0xf]  ;;  %18438 = vst [vmem:[#allocation45_spill] sm:$0xff] %v14731_v35  ;;  %3630 = vmatpush.bf16.msra.mxu0 %v9974_v59  ;;  %v10342_v39 = vor.u32 %v12783_v53, %v10339_v60 }
  0xe8   : > { %v10230_v63 = vor.u32 %v12755_v8, %v10227_v57  ;;  %v14735_v57 = vpack.c.b16 %v827_v56, %v823_v47  ;;  %v12687_v47 = vld [vmem:[%s18228_s1 + $0x4a4] sm:$0xf]  ;;  %v9955_v56 = vld [vmem:[%s18228_s1 + $0x4b0] sm:$0xf0] }
  0xea   : > { %3688 = vmatpush.bf16.msra.mxu2 %v10230_v63  ;;  %v3244_v48 = vpop.f32.mrf.mxu2  ;;  %18440 = vst [vmem:[#allocation47_spill] sm:$0xff] %v14735_v57  ;;  %v9958_v63 = vor.u32 %v12687_v47, %v9955_v56  ;;  %3718 = vmatpush.bf16.msra.mxu3 %v10342_v39  ;;  %v12779_v47 = vld [vmem:[%s18228_s1 + $0x784] sm:$0xf] }
  0xeb   : > { %v3273_v34 = vpop.f32.mrf.mxu3  ;;  %v3245_v54 = vadd.f32 %v3244_v48, %v3216_v55  ;;  %v10099_v55 = vld [vmem:[%s18228_s1 + $0x5d0] sm:$0xf0] }
  0xec   : > { %v10102_v18 = vor.u32 %v12723_v62, %v10099_v55  ;;  %3631 = vmatpush.bf16.msra.mxu0 %v9958_v63  ;;  %v10195_v55 = vld [vmem:[%s18228_s1 + $0x690] sm:$0xf0] }
  0xed   : > { %v14739_v42 = vadd.f32 %v3273_v34, %v3245_v54 }
  0xee   : > { %v3189_v32 = vpop.f32.mrf.mxu0  ;;  %v3218_v8 = vpop.f32.mrf.mxu1  ;;  %3659 = vmatpush.bf16.msra.mxu1 %v10102_v18  ;;  %3689 = vmatpush.bf16.msra.mxu2 %v10214_v61  ;;  %v12683_v18 = vld [vmem:[%s18228_s1 + $0x484] sm:$0xf]  ;;  %v10323_v61 = vld [vmem:[%s18228_s1 + $0x790] sm:$0xf0] }
  0xef   : > { %v3219_v52 = vadd.f32 %v3218_v8, %v3189_v32  ;;  %3478 = vmatmul.bf16.gmra.mxu2 %v14735_v57  ;;  %v12719_v32 = vld [vmem:[%s18228_s1 + $0x5a4] sm:$0xf]  ;;  %v10083_v8 = vld [vmem:[%s18228_s1 + $0x5b0] sm:$0xf0]  ;;  %v9942_v56 = vor.u32 %v12683_v18, %v9939_v20  ;;  %v10326_v53 = vor.u32 %v12779_v47, %v10323_v61 }
  0xf0   : > { %3507 = vmatmul.bf16.gmra.mxu3 %v14737_v3  ;;  %v10086_v62 = vor.u32 %v12719_v32, %v10083_v8  ;;  %v10067_v32 = vld [vmem:[%s18228_s1 + $0x590] sm:$0xf0] }
  0xf1   : > { %3420 = vmatmul.bf16.gmra.mxu0 %v14731_v35  ;;  %3449 = vmatmul.bf16.gmra.mxu1 %v14733_v49  ;;  %v9923_v18 = vld [vmem:[%s18228_s1 + $0x470] sm:$0xf0] }
  0xf2   : > { %v3247_v26 = vpop.f32.mrf.mxu2  ;;  %3660 = vmatpush.bf16.msra.mxu1 %v10086_v62  ;;  %3632 = vmatpush.bf16.msra.mxu0 %v9942_v56  ;;  %v10179_v62 = vld [vmem:[%s18228_s1 + $0x670] sm:$0xf0] }
  0xf3   : > { %v3276_v25 = vpop.f32.mrf.mxu3  ;;  %v3248_v59 = vadd.f32 %v3247_v26, %v3219_v52  ;;  %v12747_v52 = vld [vmem:[%s18228_s1 + $0x684] sm:$0xf]  ;;  %3719 = vmatpush.bf16.msra.mxu3 %v10326_v53  ;;  %v10307_v20 = vld [vmem:[%s18228_s1 + $0x770] sm:$0xf0] }
  0xf4   : > { %v10198_v0 = vor.u32 %v12747_v52, %v10195_v55  ;;  %v12679_v52 = vld [vmem:[%s18228_s1 + $0x464] sm:$0xf] }
  0xf5   : > { %v14769_v54 = vadd.f32 %v3276_v25, %v3248_v59  ;;  %v9926_v47 = vor.u32 %v12679_v52, %v9923_v18  ;;  %v9907_v52 = vld [vmem:[%s18228_s1 + $0x450] sm:$0xf0] }
  0xf6   : > { %v3191_v41 = vpop.f32.mrf.mxu0  ;;  %v3220_v48 = vpop.f32.mrf.mxu1  ;;  %3690 = vmatpush.bf16.msra.mxu2 %v10198_v0  ;;  %v12775_v0 = vld [vmem:[%s18228_s1 + $0x764] sm:$0xf]  ;;  %v10291_v18 = vld [vmem:[%s18228_s1 + $0x750] sm:$0xf0] }
  0xf7   : > { %v3221_v34 = vadd.f32 %v3220_v48, %v3191_v41  ;;  %v12715_v48 = vld [vmem:[%s18228_s1 + $0x584] sm:$0xf]  ;;  %v10310_v61 = vor.u32 %v12775_v0, %v10307_v20  ;;  %3633 = vmatpush.bf16.msra.mxu0 %v9926_v47 }
  0xf9   : > { %3720 = vmatpush.bf16.msra.mxu3 %v10310_v61 }
  0xfa   : > { %v3249_v60 = vpop.f32.mrf.mxu2 }
  0xfb   : > { %v3278_v63 = vpop.f32.mrf.mxu3  ;;  %v3250_v39 = vadd.f32 %v3249_v60, %v3221_v34  ;;  %v10070_v34 = vor.u32 %v12715_v48, %v10067_v32  ;;  %v10051_v48 = vld [vmem:[%s18228_s1 + $0x570] sm:$0xf0] }
  0xfd   : > { %v14796_v41 = vadd.f32 %v3278_v63, %v3250_v39  ;;  %3661 = vmatpush.bf16.msra.mxu1 %v10070_v34 }
  0xfe   : > { %v3290_v26 = vpop.f32.mrf.mxu0  ;;  %v3319_v25 = vpop.f32.mrf.mxu1 }
  0xff   : > { %v3291_v59 = vadd.f32 %v3290_v26, %v14552_v37  ;;  %3579 = vmatmul.bf16.vlgmr.msrb.gmra.mxu2 %v13843_v15  ;;  %v12743_v37 = vld [vmem:[%s18228_s1 + $0x664] sm:$0xf] }
 0x100   : > { %3608 = vmatmul.bf16.vlgmr.msrb.gmra.mxu3 %v13845_v16  ;;  %v10182_v55 = vor.u32 %v12743_v37, %v10179_v62  ;;  %v12675_v37 = vld [vmem:[%s18228_s1 + $0x444] sm:$0xf] }
 0x101   : > { %3521 = vmatmul.bf16.vlgmr.msrb.gmra.mxu0 %v13831_v6  ;;  %3550 = vmatmul.bf16.vlgmr.msrb.gmra.mxu1 %v13833_v7  ;;  %v3320_v8 = vadd.f32 %v3319_v25, %v3291_v59  ;;  %v12711_v59 = vld [vmem:[%s18228_s1 + $0x564] sm:$0xf]  ;;  %v9910_v0 = vor.u32 %v12675_v37, %v9907_v52  ;;  %v9891_v37 = vld [vmem:[%s18228_s1 + $0x430] sm:$0xf0] }
 0x102   : > { %v3348_v56 = vpop.f32.mrf.mxu2  ;;  %3691 = vmatpush.bf16.msra.mxu2 %v10182_v55  ;;  %v10054_v34 = vor.u32 %v12711_v59, %v10051_v48  ;;  %v12771_v55 = vld [vmem:[%s18228_s1 + $0x744] sm:$0xf]  ;;  %v10035_v59 = vld [vmem:[%s18228_s1 + $0x550] sm:$0xf0] }
 0x103   : > { %v3377_v53 = vpop.f32.mrf.mxu3  ;;  %v3349_v60 = vadd.f32 %v3348_v56, %v3320_v8  ;;  %v12739_v8 = vld [vmem:[%s18228_s1 + $0x644] sm:$0xf]  ;;  %v10294_v20 = vor.u32 %v12771_v55, %v10291_v18  ;;  %3634 = vmatpush.bf16.msra.mxu0 %v9910_v0  ;;  %v10275_v52 = vld [vmem:[%s18228_s1 + $0x730] sm:$0xf0] }
 0x104   : > { %3662 = vmatpush.bf16.msra.mxu1 %v10054_v34  ;;  %v10147_v34 = vld [vmem:[%s18228_s1 + $0x630] sm:$0xf0] }
 0x105   : > { %v14827_v25 = vadd.f32 %v3377_v53, %v3349_v60  ;;  %3721 = vmatpush.bf16.msra.mxu3 %v10294_v20 }
 0x106   : > { %v3292_v63 = vpop.f32.mrf.mxu0  ;;  %v3321_v39 = vpop.f32.mrf.mxu1 }
 0x107   : > { %v3293_v26 = vadd.f32 %v3292_v63, %v14592_v40  ;;  %v10163_v40 = vld [vmem:[%s18228_s1 + $0x650] sm:$0xf0] }
 0x108   : > { %v10166_v62 = vor.u32 %v12739_v8, %v10163_v40  ;;  %v12671_v8 = vld [vmem:[%s18228_s1 + $0x424] sm:$0xf] }
 0x109   : > { %v3322_v32 = vadd.f32 %v3321_v39, %v3293_v26  ;;  %v12707_v26 = vld [vmem:[%s18228_s1 + $0x544] sm:$0xf]  ;;  %v9894_v55 = vor.u32 %v12671_v8, %v9891_v37  ;;  %v9875_v8 = vld [vmem:[%s18228_s1 + $0x410] sm:$0xf0] }
 0x10a   : > { %3692 = vmatpush.bf16.msra.mxu2 %v10166_v62  ;;  %v3350_v47 = vpop.f32.mrf.mxu2  ;;  %v12767_v62 = vld [vmem:[%s18228_s1 + $0x724] sm:$0xf]  ;;  %v10259_v37 = vld [vmem:[%s18228_s1 + $0x710] sm:$0xf0] }
 0x10b   : > { %v3379_v61 = vpop.f32.mrf.mxu3  ;;  %v3351_v56 = vadd.f32 %v3350_v47, %v3322_v32  ;;  %v10038_v32 = vor.u32 %v12707_v26, %v10035_v59  ;;  %v10278_v18 = vor.u32 %v12767_v62, %v10275_v52  ;;  %3635 = vmatpush.bf16.msra.mxu0 %v9894_v55  ;;  %v10019_v26 = vld [vmem:[%s18228_s1 + $0x530] sm:$0xf0]  ;;  %v12699_v55 = vld [vmem:[%s18228_s1 + $0x504] sm:$0xf] }
 0x10d   : > { %v14854_v39 = vadd.f32 %v3379_v61, %v3351_v56  ;;  %3663 = vmatpush.bf16.msra.mxu1 %v10038_v32  ;;  %3722 = vmatpush.bf16.msra.mxu3 %v10278_v18  ;;  %v10003_v18 = vld [vmem:[%s18228_s1 + $0x510] sm:$0xf0] }
 0x10e   : > { %v3295_v53 = vpop.f32.mrf.mxu0  ;;  %v3324_v60 = vpop.f32.mrf.mxu1 }
 0x10f   : > { %v3296_v63 = vadd.f32 %v3295_v53, %v14632_v58  ;;  %3584 = vmatmul.bf16.gmra.mxu2 %v13922_v23  ;;  %v12735_v58 = vld [vmem:[%s18228_s1 + $0x624] sm:$0xf] }
 0x110   : > { %3613 = vmatmul.bf16.gmra.mxu3 %v13924_v24  ;;  %v10150_v40 = vor.u32 %v12735_v58, %v10147_v34  ;;  %v12667_v58 = vld [vmem:[%s18228_s1 + $0x404] sm:$0xf] }
 0x111   : > { %3526 = vmatmul.bf16.gmra.mxu0 %v13905_v9  ;;  %3555 = vmatmul.bf16.gmra.mxu1 %v13907_v10  ;;  %v3325_v48 = vadd.f32 %v3324_v60, %v3296_v63  ;;  %v12703_v63 = vld [vmem:[%s18228_s1 + $0x524] sm:$0xf]  ;;  %v9878_v62 = vor.u32 %v12667_v58, %v9875_v8  ;;  %v10499_v58 = vld [vmem:[%s18228_s1 + $0x8f0] sm:$0xf0] }
 0x112   : > { %v3353_v0 = vpop.f32.mrf.mxu2  ;;  %3693 = vmatpush.bf16.msra.mxu2 %v10150_v40  ;;  %v10022_v32 = vor.u32 %v12703_v63, %v10019_v26  ;;  %v12763_v40 = vld [vmem:[%s18228_s1 + $0x704] sm:$0xf]  ;;  %v10883_v8 = vld [vmem:[%s18228_s1 + $0xbf0] sm:$0xf0] }
 0x113   : > { %v3382_v20 = vpop.f32.mrf.mxu3  ;;  %v3354_v47 = vadd.f32 %v3353_v0, %v3325_v48  ;;  %v12731_v48 = vld [vmem:[%s18228_s1 + $0x604] sm:$0xf]  ;;  %v10262_v52 = vor.u32 %v12763_v40, %v10259_v37  ;;  %3636 = vmatpush.bf16.msra.mxu0 %v9878_v62 }
 0x114   : > { %3664 = vmatpush.bf16.msra.mxu1 %v10022_v32 }
 0x115   : > { %v14885_v60 = vadd.f32 %v3382_v20, %v3354_v47  ;;  %3723 = vmatpush.bf16.msra.mxu3 %v10262_v52  ;;  %v10006_v47 = vor.u32 %v12699_v55, %v10003_v18 }
 0x116   : > { %v3297_v61 = vpop.f32.mrf.mxu0  ;;  %v3326_v56 = vpop.f32.mrf.mxu1 }
 0x117   : > { %v3298_v53 = vadd.f32 %v3297_v61, %v14673_v27  ;;  %v10131_v27 = vld [vmem:[%s18228_s1 + $0x610] sm:$0xf0] }
 0x118   : > { %v10134_v34 = vor.u32 %v12731_v48, %v10131_v27  ;;  %3665 = vmatpush.bf16.msra.mxu1 %v10006_v47  ;;  %v12823_v48 = vld [vmem:[%s18228_s1 + $0x8e4] sm:$0xf] }
 0x119   : > { %v3327_v59 = vadd.f32 %v3326_v56, %v3298_v53  ;;  %v10502_v40 = vor.u32 %v12823_v48, %v10499_v58  ;;  %v12855_v48 = vld [vmem:[%s18228_s1 + $0x9e4] sm:$0xf] }
 0x11a   : > { %3694 = vmatpush.bf16.msra.mxu2 %v10134_v34  ;;  %v3355_v0 = vpop.f32.mrf.mxu2  ;;  %v12919_v34 = vld [vmem:[%s18228_s1 + $0xbe4] sm:$0xf] }
 0x11b   : > { %v3384_v20 = vpop.f32.mrf.mxu3  ;;  %v3356_v61 = vadd.f32 %v3355_v0, %v3327_v59  ;;  %v12887_v59 = vld [vmem:[%s18228_s1 + $0xae4] sm:$0xf]  ;;  %v10886_v37 = vor.u32 %v12919_v34, %v10883_v8  ;;  %3745 = vmatpush.bf16.msrb.mxu0 %v10502_v40  ;;  %v10739_v34 = vld [vmem:[%s18228_s1 + $0xad0] sm:$0xf0] }
 0x11c   : > { %v12819_v8 = vld [vmem:[%s18228_s1 + $0x8c4] sm:$0xf]  ;;  %v10483_v40 = vld [vmem:[%s18228_s1 + $0x8d0] sm:$0xf0] }
 0x11d   : > { %v14918_v26 = vadd.f32 %v3384_v20, %v3356_v61  ;;  %3832 = vmatpush.bf16.msrb.mxu3 %v10886_v37 }
 0x11e   : > { %v3300_v56 = vpop.f32.mrf.mxu0  ;;  %v3329_v53 = vpop.f32.mrf.mxu1 }
 0x11f   : > { %v3301_v63 = vadd.f32 %v3300_v56, %v14705_v44  ;;  %3589 = vmatmul.bf16.gmra.mxu2 %v14029_v2  ;;  %v10755_v44 = vld [vmem:[%s18228_s1 + $0xaf0] sm:$0xf0] }
 0x120   : > { %3618 = vmatmul.bf16.gmra.mxu3 %v14031_v4  ;;  %v10758_v27 = vor.u32 %v12887_v59, %v10755_v44 }
 0x121   : > { %3531 = vmatmul.bf16.gmra.mxu0 %v14006_v50  ;;  %3560 = vmatmul.bf16.gmra.mxu1 %v14008_v51  ;;  %v3330_v32 = vadd.f32 %v3329_v53, %v3301_v63 }
 0x122   : > { %v3358_v62 = vpop.f32.mrf.mxu2  ;;  %3803 = vmatpush.bf16.msrb.mxu2 %v10758_v27 }
 0x123   : > { %v3387_v52 = vpop.f32.mrf.mxu3  ;;  %v3359_v55 = vadd.f32 %v3358_v62, %v3330_v32  ;;  %v10627_v32 = vld [vmem:[%s18228_s1 + $0x9f0] sm:$0xf0]  ;;  %v10486_v62 = vor.u32 %v12819_v8, %v10483_v40 }
 0x124   : > { %v10630_v58 = vor.u32 %v12855_v48, %v10627_v32  ;;  %v12879_v48 = vld [vmem:[%s18228_s1 + $0xaa4] sm:$0xf] }
 0x125   : > { %v14943_v47 = vadd.f32 %v3387_v52, %v3359_v55  ;;  %v12915_v52 = vld [vmem:[%s18228_s1 + $0xbc4] sm:$0xf]  ;;  %v10867_v55 = vld [vmem:[%s18228_s1 + $0xbd0] sm:$0xf0]  ;;  %3746 = vmatpush.bf16.msrb.mxu0 %v10486_v62 }
 0x126   : > { %v3302_v18 = vpop.f32.mrf.mxu0  ;;  %v3331_v0 = vpop.f32.mrf.mxu1  ;;  %3774 = vmatpush.bf16.msrb.mxu1 %v10630_v58  ;;  %v12815_v58 = vld [vmem:[%s18228_s1 + $0x8a4] sm:$0xf]  ;;  %v10851_v62 = vld [vmem:[%s18228_s1 + $0xbb0] sm:$0xf0] }
 0x127   : > { %v3303_v20 = vadd.f32 %v3302_v18, %v14739_v42  ;;  %v12883_v42 = vld [vmem:[%s18228_s1 + $0xac4] sm:$0xf] }
 0x129   : > { %v3332_v61 = vadd.f32 %v3331_v0, %v3303_v20  ;;  %v10870_v0 = vor.u32 %v12915_v52, %v10867_v55 }
 0x12a   : > { %v3360_v56 = vpop.f32.mrf.mxu2 }
 0x12b   : > { %v3389_v53 = vpop.f32.mrf.mxu3  ;;  %v3361_v63 = vadd.f32 %v3360_v56, %v3332_v61  ;;  %3833 = vmatpush.bf16.msrb.mxu3 %v10870_v0 }
 0x12d   : > { %v14964_v37 = vadd.f32 %v3389_v53, %v3361_v63 }
 0x12e   : > { %v3305_v59 = vpop.f32.mrf.mxu0  ;;  %v3334_v44 = vpop.f32.mrf.mxu1 }
 0x12f   : > { %v3306_v27 = vadd.f32 %v3305_v59, %v14769_v54  ;;  %v10742_v54 = vor.u32 %v12883_v42, %v10739_v34  ;;  %3594 = vmatmul.bf16.gmra.mxu2 %v14115_v21  ;;  %v12851_v59 = vld [vmem:[%s18228_s1 + $0x9c4] sm:$0xf]  ;;  %v10467_v34 = vld [vmem:[%s18228_s1 + $0x8b0] sm:$0xf0] }
 0x130   : > { %3623 = vmatmul.bf16.gmra.mxu3 %v14117_v22 }
 0x131   : > { %3536 = vmatmul.bf16.gmra.mxu0 %v14108_v13  ;;  %3565 = vmatmul.bf16.gmra.mxu1 %v14110_v14  ;;  %v3335_v18 = vadd.f32 %v3334_v44, %v3306_v27  ;;  %v10611_v44 = vld [vmem:[%s18228_s1 + $0x9d0] sm:$0xf0] }
 0x132   : > { %3804 = vmatpush.bf16.msrb.mxu2 %v10742_v54  ;;  %v3363_v20 = vpop.f32.mrf.mxu2  ;;  %v10614_v42 = vor.u32 %v12851_v59, %v10611_v44  ;;  %v10723_v27 = vld [vmem:[%s18228_s1 + $0xab0] sm:$0xf0]  ;;  %v10470_v54 = vor.u32 %v12815_v58, %v10467_v34 }
 0x133   : > { %v3392_v61 = vpop.f32.mrf.mxu3  ;;  %v3364_v56 = vadd.f32 %v3363_v20, %v3335_v18  ;;  %v10726_v40 = vor.u32 %v12879_v48, %v10723_v27  ;;  %v10595_v59 = vld [vmem:[%s18228_s1 + $0x9b0] sm:$0xf0] }
 0x134   : > { %3775 = vmatpush.bf16.msrb.mxu1 %v10614_v42  ;;  %3747 = vmatpush.bf16.msrb.mxu0 %v10470_v54  ;;  %v12811_v42 = vld [vmem:[%s18228_s1 + $0x884] sm:$0xf]  ;;  %v10451_v27 = vld [vmem:[%s18228_s1 + $0x890] sm:$0xf0] }
 0x135   : > { %v14995_v8 = vadd.f32 %v3392_v61, %v3364_v56  ;;  %v10454_v34 = vor.u32 %v12811_v42, %v10451_v27  ;;  %v10835_v54 = vld [vmem:[%s18228_s1 + $0xb90] sm:$0xf0] }
 0x136   : > { %v3307_v53 = vpop.f32.mrf.mxu0  ;;  %v3336_v63 = vpop.f32.mrf.mxu1  ;;  %3805 = vmatpush.bf16.msrb.mxu2 %v10726_v40  ;;  %v12907_v40 = vld [vmem:[%s18228_s1 + $0xb84] sm:$0xf] }
 0x137   : > { %v3308_v32 = vadd.f32 %v3307_v53, %v14796_v41  ;;  %v12911_v41 = vld [vmem:[%s18228_s1 + $0xba4] sm:$0xf] }
 0x138   : > { %v10854_v55 = vor.u32 %v12911_v41, %v10851_v62  ;;  %v12847_v53 = vld [vmem:[%s18228_s1 + $0x9a4] sm:$0xf]  ;;  %v10838_v62 = vor.u32 %v12907_v40, %v10835_v54  ;;  %3748 = vmatpush.bf16.msrb.mxu0 %v10454_v34  ;;  %v10819_v34 = vld [vmem:[%s18228_s1 + $0xb70] sm:$0xf0] }
 0x139   : > { %v3337_v52 = vadd.f32 %v3336_v63, %v3308_v32  ;;  %v12875_v63 = vld [vmem:[%s18228_s1 + $0xa84] sm:$0xf]  ;;  %v10598_v48 = vor.u32 %v12847_v53, %v10595_v59  ;;  %v10707_v32 = vld [vmem:[%s18228_s1 + $0xa90] sm:$0xf0] }
 0x13a   : > { %3834 = vmatpush.bf16.msrb.mxu3 %v10854_v55  ;;  %v3365_v18 = vpop.f32.mrf.mxu2  ;;  %v12871_v53 = vld [vmem:[%s18228_s1 + $0xa64] sm:$0xf] }
 0x13b   : > { %v3394_v0 = vpop.f32.mrf.mxu3  ;;  %v3366_v20 = vadd.f32 %v3365_v18, %v3337_v52  ;;  %3776 = vmatpush.bf16.msrb.mxu1 %v10598_v48  ;;  %v12807_v48 = vld [vmem:[%s18228_s1 + $0x864] sm:$0xf] }
 0x13d   : > { %v15022_v58 = vadd.f32 %v3394_v0, %v3366_v20 }
 0x13e   : > { %v3406_v61 = vpop.f32.mrf.mxu0  ;;  %v3435_v56 = vpop.f32.mrf.mxu1  ;;  %3835 = vmatpush.bf16.msrb.mxu3 %v10838_v62 }
 0x13f   : > { %v3407_v44 = vadd.f32 %v3406_v61, %v14827_v25  ;;  %v10710_v25 = vor.u32 %v12875_v63, %v10707_v32  ;;  %3695 = vmatmul.bf16.vlgmr.msra.gmra.mxu2 %v14183_v17  ;;  %v12843_v61 = vld [vmem:[%s18228_s1 + $0x984] sm:$0xf]  ;;  %v10435_v32 = vld [vmem:[%s18228_s1 + $0x870] sm:$0xf0] }
 0x140   : > { %3724 = vmatmul.bf16.vlgmr.msra.gmra.mxu3 %v14185_v19 }
 0x141   : > { %3637 = vmatmul.bf16.vlgmr.msra.gmra.mxu0 %v14179_v11  ;;  %3666 = vmatmul.bf16.vlgmr.msra.gmra.mxu1 %v14181_v12  ;;  %v3436_v41 = vadd.f32 %v3435_v56, %v3407_v44  ;;  %v10579_v56 = vld [vmem:[%s18228_s1 + $0x990] sm:$0xf0] }
 0x142   : > { %3806 = vmatpush.bf16.msrb.mxu2 %v10710_v25  ;;  %v3464_v52 = vpop.f32.mrf.mxu2  ;;  %v10582_v63 = vor.u32 %v12843_v61, %v10579_v56  ;;  %v10691_v44 = vld [vmem:[%s18228_s1 + $0xa70] sm:$0xf0]  ;;  %v10438_v25 = vor.u32 %v12807_v48, %v10435_v32  ;;  %v12899_v32 = vld [vmem:[%s18228_s1 + $0xb44] sm:$0xf] }
 0x143   : > { %v3493_v55 = vpop.f32.mrf.mxu3  ;;  %v3465_v18 = vadd.f32 %v3464_v52, %v3436_v41  ;;  %v10694_v27 = vor.u32 %v12871_v53, %v10691_v44  ;;  %v10563_v61 = vld [vmem:[%s18228_s1 + $0x970] sm:$0xf0]  ;;  %v12867_v53 = vld [vmem:[%s18228_s1 + $0xa44] sm:$0xf] }
 0x144   : > { %3777 = vmatpush.bf16.msrb.mxu1 %v10582_v63  ;;  %3749 = vmatpush.bf16.msrb.mxu0 %v10438_v25  ;;  %v12803_v63 = vld [vmem:[%s18228_s1 + $0x844] sm:$0xf]  ;;  %v10419_v48 = vld [vmem:[%s18228_s1 + $0x850] sm:$0xf0] }
 0x145   : > { %v15053_v42 = vadd.f32 %v3493_v55, %v3465_v18 }
 0x146   : > { %v3408_v0 = vpop.f32.mrf.mxu0  ;;  %v3437_v20 = vpop.f32.mrf.mxu1  ;;  %3807 = vmatpush.bf16.msrb.mxu2 %v10694_v27  ;;  %v10803_v27 = vld [vmem:[%s18228_s1 + $0xb50] sm:$0xf0] }
 0x147   : > { %v3409_v59 = vadd.f32 %v3408_v0, %v14854_v39  ;;  %v12903_v39 = vld [vmem:[%s18228_s1 + $0xb64] sm:$0xf] }
 0x148   : > { %v10822_v54 = vor.u32 %v12903_v39, %v10819_v34  ;;  %v12839_v0 = vld [vmem:[%s18228_s1 + $0x964] sm:$0xf]  ;;  %v10422_v39 = vor.u32 %v12803_v63, %v10419_v48  ;;  %v10806_v34 = vor.u32 %v12899_v32, %v10803_v27  ;;  %v10403_v63 = vld [vmem:[%s18228_s1 + $0x830] sm:$0xf0] }
 0x149   : > { %v3438_v40 = vadd.f32 %v3437_v20, %v3409_v59  ;;  %v10566_v56 = vor.u32 %v12839_v0, %v10563_v61  ;;  %v10675_v59 = vld [vmem:[%s18228_s1 + $0xa50] sm:$0xf0]  ;;  %v12863_v61 = vld [vmem:[%s18228_s1 + $0xa24] sm:$0xf] }
 0x14a   : > { %3836 = vmatpush.bf16.msrb.mxu3 %v10822_v54  ;;  %v3466_v41 = vpop.f32.mrf.mxu2  ;;  %3750 = vmatpush.bf16.msrb.mxu0 %v10422_v39  ;;  %v10547_v54 = vld [vmem:[%s18228_s1 + $0x950] sm:$0xf0]  ;;  %v12831_v27 = vld [vmem:[%s18228_s1 + $0x924] sm:$0xf] }
 0x14b   : > { %v3495_v62 = vpop.f32.mrf.mxu3  ;;  %v3467_v52 = vadd.f32 %v3466_v41, %v3438_v40  ;;  %3778 = vmatpush.bf16.msrb.mxu1 %v10566_v56  ;;  %v12835_v40 = vld [vmem:[%s18228_s1 + $0x944] sm:$0xf] }
 0x14d   : > { %v15077_v44 = vadd.f32 %v3495_v62, %v3467_v52  ;;  %v10550_v52 = vor.u32 %v12835_v40, %v10547_v54  ;;  %v12859_v54 = vld [vmem:[%s18228_s1 + $0xa04] sm:$0xf] }
 0x14e   : > { %v3411_v55 = vpop.f32.mrf.mxu0  ;;  %v3440_v18 = vpop.f32.mrf.mxu1  ;;  %3837 = vmatpush.bf16.msrb.mxu3 %v10806_v34 }
 0x14f   : > { %v3412_v20 = vadd.f32 %v3411_v55, %v14885_v60  ;;  %v10678_v60 = vor.u32 %v12867_v53, %v10675_v59  ;;  %3700 = vmatmul.bf16.gmra.mxu2 %v14263_v30  ;;  %3779 = vmatpush.bf16.msrb.mxu1 %v10550_v52  ;;  %v12799_v59 = vld [vmem:[%s18228_s1 + $0x824] sm:$0xf] }
 0x150   : > { %3729 = vmatmul.bf16.gmra.mxu3 %v14265_v31  ;;  %v10406_v32 = vor.u32 %v12799_v59, %v10403_v63 }
 0x151   : > { %3642 = vmatmul.bf16.gmra.mxu0 %v14259_v28  ;;  %3671 = vmatmul.bf16.gmra.mxu1 %v14261_v29  ;;  %v3441_v25 = vadd.f32 %v3440_v18, %v3412_v20  ;;  %v10659_v20 = vld [vmem:[%s18228_s1 + $0xa30] sm:$0xf0] }
 0x152   : > { %3808 = vmatpush.bf16.msrb.mxu2 %v10678_v60  ;;  %v3469_v41 = vpop.f32.mrf.mxu2  ;;  %v10662_v53 = vor.u32 %v12863_v61, %v10659_v20  ;;  %v12895_v60 = vld [vmem:[%s18228_s1 + $0xb24] sm:$0xf]  ;;  %3751 = vmatpush.bf16.msrb.mxu0 %v10406_v32  ;;  %v10771_v20 = vld [vmem:[%s18228_s1 + $0xb10] sm:$0xf0] }
 0x153   : > { %v3498_v62 = vpop.f32.mrf.mxu3  ;;  %v3470_v55 = vadd.f32 %v3469_v41, %v3441_v25  ;;  %v10531_v25 = vld [vmem:[%s18228_s1 + $0x930] sm:$0xf0]  ;;  %v12891_v61 = vld [vmem:[%s18228_s1 + $0xb04] sm:$0xf] }
 0x154   : > { %v10534_v40 = vor.u32 %v12831_v27, %v10531_v25  ;;  %v10643_v41 = vld [vmem:[%s18228_s1 + $0xa10] sm:$0xf0]  ;;  %v12827_v32 = vld [vmem:[%s18228_s1 + $0x904] sm:$0xf] }
 0x155   : > { %v15114_v48 = vadd.f32 %v3498_v62, %v3470_v55  ;;  %v12795_v62 = vld [vmem:[%s18228_s1 + $0x804] sm:$0xf] }
 0x156   : > { %v3413_v18 = vpop.f32.mrf.mxu0  ;;  %v3442_v0 = vpop.f32.mrf.mxu1  ;;  %3809 = vmatpush.bf16.msrb.mxu2 %v10662_v53  ;;  %3780 = vmatpush.bf16.msrb.mxu1 %v10534_v40 }
 0x157   : > { %v3414_v56 = vadd.f32 %v3413_v18, %v14918_v26  ;;  %v10787_v26 = vld [vmem:[%s18228_s1 + $0xb30] sm:$0xf0]  ;;  %v10646_v18 = vor.u32 %v12859_v54, %v10643_v41 }
 0x158   : > { %v10790_v34 = vor.u32 %v12895_v60, %v10787_v26  ;;  %v10774_v60 = vor.u32 %v12891_v61, %v10771_v20  ;;  %v10515_v26 = vld [vmem:[%s18228_s1 + $0x910] sm:$0xf0]  ;;  %v9481_v61 = vld [vmem:[%s18228_s1 + $0xe8] sm:$0xf]  ;;  %v12570_v20 = vld [vmem:[%s18228_s1 + $0xf4] sm:$0xf0] }
 0x159   : > { %v3443_v39 = vadd.f32 %v3442_v0, %v3414_v56  ;;  %v10387_v0 = vld [vmem:[%s18228_s1 + $0x810] sm:$0xf0]  ;;  %v10518_v25 = vor.u32 %v12827_v32, %v10515_v26 }
 0x15a   : > { %3838 = vmatpush.bf16.msrb.mxu3 %v10790_v34  ;;  %v3471_v52 = vpop.f32.mrf.mxu2  ;;  %v10390_v63 = vor.u32 %v12795_v62, %v10387_v0  ;;  %3810 = vmatpush.bf16.msrb.mxu2 %v10646_v18 }
 0x15b   : > { %v3500_v55 = vpop.f32.mrf.mxu3  ;;  %v3472_v56 = vadd.f32 %v3471_v52, %v3443_v39  ;;  %3781 = vmatpush.bf16.msrb.mxu1 %v10518_v25  ;;  %v9737_v52 = vld [vmem:[%s18228_s1 + $0x2e8] sm:$0xf] }
 0x15c   : > { %3752 = vmatpush.bf16.msrb.mxu0 %v10390_v63  ;;  %v9609_v63 = vld [vmem:[%s18228_s1 + $0x1e8] sm:$0xf] }
 0x15d   : > { %v15150_v34 = vadd.f32 %v3500_v55, %v3472_v56  ;;  %v12634_v55 = vld [vmem:[%s18228_s1 + $0x2f4] sm:$0xf0]  ;;  %v9865_v56 = vld [vmem:[%s18228_s1 + $0x3e8] sm:$0xf] }
 0x15e   : > { %v3416_v53 = vpop.f32.mrf.mxu0  ;;  %v3445_v59 = vpop.f32.mrf.mxu1  ;;  %3839 = vmatpush.bf16.msrb.mxu3 %v10774_v60  ;;  %v9738_v0 = vor.u32 %v12634_v55, %v9737_v52  ;;  %v12602_v60 = vld [vmem:[%s18228_s1 + $0x1f4] sm:$0xf0]  ;;  %v9721_v25 = vld [vmem:[%s18228_s1 + $0x2c8] sm:$0xf] }
 0x15f   : > { %v3417_v27 = vadd.f32 %v3416_v53, %v14943_v47  ;;  %3705 = vmatmul.bf16.gmra.mxu2 %v14341_v45 }
 0x160   : > { %3734 = vmatmul.bf16.gmra.mxu3 %v14343_v46  ;;  %3919 = vmatpush.bf16.msra.mxu2 %v9738_v0 }
 0x161   : > { %3647 = vmatmul.bf16.gmra.mxu0 %v14335_v33  ;;  %3676 = vmatmul.bf16.gmra.mxu1 %v14337_v43  ;;  %v3446_v39 = vadd.f32 %v3445_v59, %v3417_v27  ;;  %v9482_v59 = vor.u32 %v12570_v20, %v9481_v61  ;;  %v9610_v27 = vor.u32 %v12602_v60, %v9609_v63  ;;  %v9593_v63 = vld [vmem:[%s18228_s1 + $0x1c8] sm:$0xf]  ;;  %v12598_v60 = vld [vmem:[%s18228_s1 + $0x1d4] sm:$0xf0] }
 0x162   : > { %v3474_v40 = vpop.f32.mrf.mxu2 }
 0x163   : > { %v3503_v54 = vpop.f32.mrf.mxu3  ;;  %v3475_v41 = vadd.f32 %v3474_v40, %v3446_v39  ;;  %v12630_v39 = vld [vmem:[%s18228_s1 + $0x2d4] sm:$0xf0]  ;;  %v9465_v40 = vld [vmem:[%s18228_s1 + $0xc8] sm:$0xf]  ;;  %3861 = vmatpush.bf16.msra.mxu0 %v9482_v59  ;;  %3890 = vmatpush.bf16.msra.mxu1 %v9610_v27 }
 0x164   : > { %v9705_v27 = vld [vmem:[%s18228_s1 + $0x2a8] sm:$0xf] }
 0x165   : > { %v15172_v53 = vadd.f32 %v3503_v54, %v3475_v41  ;;  %v9722_v54 = vor.u32 %v12630_v39, %v9721_v25  ;;  %v12566_v41 = vld [vmem:[%s18228_s1 + $0xd4] sm:$0xf0]  ;;  %v9449_v39 = vld [vmem:[%s18228_s1 + $0xa8] sm:$0xf] }
 0x166   : > { %v3418_v47 = vpop.f32.mrf.mxu0  ;;  %v3447_v62 = vpop.f32.mrf.mxu1  ;;  %v9466_v52 = vor.u32 %v12566_v41, %v9465_v40  ;;  %v12626_v25 = vld [vmem:[%s18228_s1 + $0x2b4] sm:$0xf0]  ;;  %v9833_v41 = vld [vmem:[%s18228_s1 + $0x3a8] sm:$0xf] }
 0x167   : > { %v3419_v18 = vadd.f32 %v3418_v47, %v14964_v37  ;;  %v12666_v37 = vld [vmem:[%s18228_s1 + $0x3f4] sm:$0xf0]  ;;  %v9849_v47 = vld [vmem:[%s18228_s1 + $0x3c8] sm:$0xf]  ;;  %3920 = vmatpush.bf16.msra.mxu2 %v9722_v54  ;;  %v9706_v40 = vor.u32 %v12626_v25, %v9705_v27 }
 0x168   : > { %v9866_v26 = vor.u32 %v12666_v37, %v9865_v56  ;;  %3862 = vmatpush.bf16.msra.mxu0 %v9466_v52  ;;  %v12562_v54 = vld [vmem:[%s18228_s1 + $0xb4] sm:$0xf0]  ;;  %v9433_v25 = vld [vmem:[%s18228_s1 + $0x88] sm:$0xf] }
 0x169   : > { %v3448_v32 = vadd.f32 %v3447_v62, %v3419_v18  ;;  %v12662_v62 = vld [vmem:[%s18228_s1 + $0x3d4] sm:$0xf0] }
 0x16a   : > { %3948 = vmatpush.bf16.msra.mxu3 %v9866_v26  ;;  %v9850_v55 = vor.u32 %v12662_v62, %v9849_v47  ;;  %v3476_v18 = vpop.f32.mrf.mxu2  ;;  %v9594_v26 = vor.u32 %v12598_v60, %v9593_v63  ;;  %v12658_v47 = vld [vmem:[%s18228_s1 + $0x3b4] sm:$0xf0]  ;;  %v9450_v62 = vor.u32 %v12562_v54, %v9449_v39  ;;  %v9577_v63 = vld [vmem:[%s18228_s1 + $0x1a8] sm:$0xf] }
 0x16b   : > { %v3505_v0 = vpop.f32.mrf.mxu3  ;;  %v3477_v61 = vadd.f32 %v3476_v18, %v3448_v32  ;;  %v9834_v52 = vor.u32 %v12658_v47, %v9833_v41  ;;  %3921 = vmatpush.bf16.msra.mxu2 %v9706_v40  ;;  %v12594_v60 = vld [vmem:[%s18228_s1 + $0x1b4] sm:$0xf0]  ;;  %v9817_v41 = vld [vmem:[%s18228_s1 + $0x388] sm:$0xf] }
 0x16c   : > { %3891 = vmatpush.bf16.msra.mxu1 %v9594_v26  ;;  %3863 = vmatpush.bf16.msra.mxu0 %v9450_v62  ;;  %v9578_v27 = vor.u32 %v12594_v60, %v9577_v63  ;;  %v12558_v39 = vld [vmem:[%s18228_s1 + $0x94] sm:$0xf0]  ;;  %v18445_v63 = vld [vmem:[#allocation34_spill] sm:$0xff]  ;;  %v9561_v60 = vld [vmem:[%s18228_s1 + $0x188] sm:$0xf] }
 0x16d   : > { %v15202_v37 = vadd.f32 %v3505_v0, %v3477_v61  ;;  %v9434_v54 = vor.u32 %v12558_v39, %v9433_v25  ;;  %v12654_v47 = vld [vmem:[%s18228_s1 + $0x394] sm:$0xf0]  ;;  %v9673_v25 = vld [vmem:[%s18228_s1 + $0x268] sm:$0xf] }
 0x16e   : > { %v3421_v20 = vpop.f32.mrf.mxu0  ;;  %v3450_v56 = vpop.f32.mrf.mxu1  ;;  %3949 = vmatpush.bf16.msra.mxu3 %v9850_v55  ;;  %v9818_v62 = vor.u32 %v12654_v47, %v9817_v41  ;;  %v12618_v39 = vld [vmem:[%s18228_s1 + $0x274] sm:$0xf0]  ;;  %v9801_v47 = vld [vmem:[%s18228_s1 + $0x368] sm:$0xf] }
 0x16f   : > { %v3422_v59 = vadd.f32 %v3421_v20, %v14995_v8  ;;  %3710 = vmatmul.bf16.gmra.mxu2 %v14414_v38  ;;  %v18442_v8 = vld [vmem:[#allocation31_spill] sm:$0xff]  ;;  %v12554_v41 = vld [vmem:[%s18228_s1 + $0x74] sm:$0xf0] }
 0x170   : > { %3739 = vmatmul.bf16.gmra.mxu3 %v18442_v8  ;;  %3892 = vmatpush.bf16.msra.mxu1 %v9578_v27 }
 0x171   : > { %3652 = vmatmul.bf16.gmra.mxu0 %v14408_v1  ;;  %3681 = vmatmul.bf16.gmra.mxu1 %v14410_v5  ;;  %v3451_v32 = vadd.f32 %v3450_v56, %v3422_v59 }
 0x172   : > { %v3479_v55 = vpop.f32.mrf.mxu2  ;;  %3950 = vmatpush.bf16.msra.mxu3 %v9834_v52  ;;  %3864 = vmatpush.bf16.msra.mxu0 %v9434_v54  ;;  %v9674_v54 = vor.u32 %v12618_v39, %v9673_v25  ;;  %v9545_v39 = vld [vmem:[%s18228_s1 + $0x168] sm:$0xf] }
 0x173   : > { %v3508_v18 = vpop.f32.mrf.mxu3  ;;  %v3480_v0 = vadd.f32 %v3479_v55, %v3451_v32  ;;  %v9689_v32 = vld [vmem:[%s18228_s1 + $0x288] sm:$0xf] }
 0x175   : > { %v15233_v59 = vadd.f32 %v3508_v18, %v3480_v0 }
 0x176   : > { %v3423_v61 = vpop.f32.mrf.mxu0  ;;  %v3452_v20 = vpop.f32.mrf.mxu1  ;;  %3951 = vmatpush.bf16.msra.mxu3 %v9818_v62  ;;  %v12650_v62 = vld [vmem:[%s18228_s1 + $0x374] sm:$0xf0] }
 0x177   : > { %v3424_v56 = vadd.f32 %v3423_v61, %v15022_v58  ;;  %18443 = vst [vmem:[#allocation49_spill] sm:$0xff] %v15233_v59  ;;  %v12622_v58 = vld [vmem:[%s18228_s1 + $0x294] sm:$0xf0] }
 0x178   : > { %v9690_v40 = vor.u32 %v12622_v58, %v9689_v32  ;;  %v12590_v32 = vld [vmem:[%s18228_s1 + $0x194] sm:$0xf0]  ;;  %v18446_v58 = vld [vmem:[#allocation35_spill] sm:$0xff] }
 0x179   : > { %v3453_v26 = vadd.f32 %v3452_v20, %v3424_v56  ;;  %v9562_v27 = vor.u32 %v12590_v32, %v9561_v60 }
 0x17a   : > { %3922 = vmatpush.bf16.msra.mxu2 %v9690_v40  ;;  %v3481_v52 = vpop.f32.mrf.mxu2  ;;  %v9417_v40 = vld [vmem:[%s18228_s1 + $0x68] sm:$0xf] }
 0x17b   : > { %v3510_v55 = vpop.f32.mrf.mxu3  ;;  %v3482_v18 = vadd.f32 %v3481_v52, %v3453_v26  ;;  %v18447_v26 = vld [vmem:[#allocation36_spill] sm:$0xff]  ;;  %3893 = vmatpush.bf16.msra.mxu1 %v9562_v27  ;;  %v9418_v52 = vor.u32 %v12554_v41, %v9417_v40  ;;  %v12586_v40 = vld [vmem:[%s18228_s1 + $0x174] sm:$0xf0] }
 0x17c   : > { %v12614_v41 = vld [vmem:[%s18228_s1 + $0x254] sm:$0xf0] }
 0x17d   : > { %v15259_v56 = vadd.f32 %v3510_v55, %v3482_v18  ;;  %v9802_v55 = vor.u32 %v12650_v62, %v9801_v47  ;;  %3865 = vmatpush.bf16.msra.mxu0 %v9418_v52  ;;  %v9401_v47 = vld [vmem:[%s18228_s1 + $0x48] sm:$0xf]  ;;  %v12550_v62 = vld [vmem:[%s18228_s1 + $0x54] sm:$0xf0] }
 0x17e   : > { %v3522_v0 = vpop.f32.mrf.mxu0  ;;  %v3551_v61 = vpop.f32.mrf.mxu1  ;;  %3923 = vmatpush.bf16.msra.mxu2 %v9674_v54  ;;  %v9657_v54 = vld [vmem:[%s18228_s1 + $0x248] sm:$0xf] }
 0x17f   : > { %v3552_v20 = vadd.f32 %v3551_v61, %v3522_v0  ;;  %18444 = vst [vmem:[#allocation50_spill] sm:$0xff] %v15259_v56  ;;  %3811 = vmatmul.bf16.vlgmr.msrb.gmra.mxu2 %v18446_v58  ;;  %3952 = vmatpush.bf16.msra.mxu3 %v9802_v55  ;;  %v9658_v52 = vor.u32 %v12614_v41, %v9657_v54  ;;  %v9513_v58 = vld [vmem:[%s18228_s1 + $0x128] sm:$0xf] }
 0x180   : > { %3840 = vmatmul.bf16.vlgmr.msrb.gmra.mxu3 %v18447_v26  ;;  %v9402_v55 = vor.u32 %v12550_v62, %v9401_v47  ;;  %v18448_v47 = vld [vmem:[#allocation37_spill] sm:$0xff]  ;;  %v18449_v62 = vld [vmem:[#allocation38_spill] sm:$0xff] }
 0x181   : > { %3753 = vmatmul.bf16.vlgmr.msrb.gmra.mxu0 %v14494_v36  ;;  %3782 = vmatmul.bf16.vlgmr.msrb.gmra.mxu1 %v18445_v63  ;;  %v10121_v36 = vld [vmem:[%s18228_s1 + $0x5e8] sm:$0xf] }
 0x182   : > { %v3580_v18 = vpop.f32.mrf.mxu2  ;;  %3924 = vmatpush.bf16.msra.mxu2 %v9658_v52  ;;  %3866 = vmatpush.bf16.msra.mxu0 %v9402_v55  ;;  %v12582_v52 = vld [vmem:[%s18228_s1 + $0x154] sm:$0xf0] }
 0x183   : > { %v3609_v0 = vpop.f32.mrf.mxu3  ;;  %v3581_v61 = vadd.f32 %v3580_v18, %v3552_v20  ;;  %v9546_v20 = vor.u32 %v12586_v40, %v9545_v39  ;;  %v9785_v18 = vld [vmem:[%s18228_s1 + $0x348] sm:$0xf] }
 0x185   : > { %v15289_v25 = vadd.f32 %v3609_v0, %v3581_v61  ;;  %v12646_v0 = vld [vmem:[%s18228_s1 + $0x354] sm:$0xf0]  ;;  %3894 = vmatpush.bf16.msra.mxu1 %v9546_v20  ;;  %v9529_v20 = vld [vmem:[%s18228_s1 + $0x148] sm:$0xf] }
 0x186   : > { %v3524_v60 = vpop.f32.mrf.mxu0  ;;  %v3553_v32 = vpop.f32.mrf.mxu1  ;;  %v9786_v61 = vor.u32 %v12646_v0, %v9785_v18  ;;  %v9530_v55 = vor.u32 %v12582_v52, %v9529_v20  ;;  %v18450_v18 = vld [vmem:[#allocation39_spill] sm:$0xff]  ;;  %v12610_v0 = vld [vmem:[%s18228_s1 + $0x234] sm:$0xf0] }
 0x187   : > { %v3554_v27 = vadd.f32 %v3553_v32, %v3524_v60 }
 0x188   : > { %3953 = vmatpush.bf16.msra.mxu3 %v9786_v61  ;;  %v9385_v61 = vld [vmem:[%s18228_s1 + $0x28] sm:$0xf] }
 0x189   : > { %3895 = vmatpush.bf16.msra.mxu1 %v9530_v55 }
 0x18a   : > { %v3582_v60 = vpop.f32.mrf.mxu2 }
 0x18b   : > { %v3611_v32 = vpop.f32.mrf.mxu3  ;;  %v3583_v39 = vadd.f32 %v3582_v60, %v3554_v27  ;;  %v18451_v27 = vld [vmem:[#allocation40_spill] sm:$0xff] }
 0x18d   : > { %v15315_v41 = vadd.f32 %v3611_v32, %v3583_v39  ;;  %v12546_v32 = vld [vmem:[%s18228_s1 + $0x34] sm:$0xf0]  ;;  %v9769_v39 = vld [vmem:[%s18228_s1 + $0x328] sm:$0xf] }
 0x18e   : > { %v3527_v40 = vpop.f32.mrf.mxu0  ;;  %v3556_v26 = vpop.f32.mrf.mxu1  ;;  %v9386_v20 = vor.u32 %v12546_v32, %v9385_v61  ;;  %v12578_v61 = vld [vmem:[%s18228_s1 + $0x134] sm:$0xf0] }
 0x18f   : > { %v3557_v54 = vadd.f32 %v3556_v26, %v3527_v40  ;;  %3816 = vmatmul.bf16.gmra.mxu2 %v18450_v18  ;;  %v9641_v26 = vld [vmem:[%s18228_s1 + $0x228] sm:$0xf]  ;;  %v12642_v40 = vld [vmem:[%s18228_s1 + $0x334] sm:$0xf0] }
 0x190   : > { %3845 = vmatmul.bf16.gmra.mxu3 %v18451_v27  ;;  %v9642_v60 = vor.u32 %v12610_v0, %v9641_v26  ;;  %v9770_v52 = vor.u32 %v12642_v40, %v9769_v39  ;;  %3867 = vmatpush.bf16.msra.mxu0 %v9386_v20  ;;  %v9753_v40 = vld [vmem:[%s18228_s1 + $0x308] sm:$0xf] }
 0x191   : > { %3758 = vmatmul.bf16.gmra.mxu0 %v18448_v47  ;;  %3787 = vmatmul.bf16.gmra.mxu1 %v18449_v62 }
 0x192   : > { %v3585_v27 = vpop.f32.mrf.mxu2  ;;  %3925 = vmatpush.bf16.msra.mxu2 %v9642_v60  ;;  %3954 = vmatpush.bf16.msra.mxu3 %v9770_v52  ;;  %v9625_v60 = vld [vmem:[%s18228_s1 + $0x208] sm:$0xf] }
 0x193   : > { %v3614_v18 = vpop.f32.mrf.mxu3  ;;  %v3586_v62 = vadd.f32 %v3585_v27, %v3557_v54  ;;  %v9514_v54 = vor.u32 %v12578_v61, %v9513_v58  ;;  %v12606_v27 = vld [vmem:[%s18228_s1 + $0x214] sm:$0xf0]  ;;  %v9497_v52 = vld [vmem:[%s18228_s1 + $0x108] sm:$0xf] }
 0x194   : > { %v9626_v32 = vor.u32 %v12606_v27, %v9625_v60  ;;  %v12638_v58 = vld [vmem:[%s18228_s1 + $0x314] sm:$0xf0] }
 0x195   : > { %v15345_v47 = vadd.f32 %v3614_v18, %v3586_v62  ;;  %v9369_v62 = vld [vmem:[%s18228_s1 + $0x8] sm:$0xf]  ;;  %v12542_v18 = vld [vmem:[%s18228_s1 + $0x14] sm:$0xf0]  ;;  %3896 = vmatpush.bf16.msra.mxu1 %v9514_v54  ;;  %v9754_v20 = vor.u32 %v12638_v58, %v9753_v40  ;;  %v18455_v58 = vld [vmem:[#allocation44_spill] sm:$0xff] }
 0x196   : > { %v3529_v55 = vpop.f32.mrf.mxu0  ;;  %v3558_v26 = vpop.f32.mrf.mxu1  ;;  %v9370_v39 = vor.u32 %v12542_v18, %v9369_v62  ;;  %3926 = vmatpush.bf16.msra.mxu2 %v9626_v32  ;;  %v18452_v32 = vld [vmem:[#allocation41_spill] sm:$0xff]  ;;  %v18454_v40 = vld [vmem:[#allocation43_spill] sm:$0xff] }
 0x197   : > { %v3559_v0 = vadd.f32 %v3558_v26, %v3529_v55  ;;  %v12574_v55 = vld [vmem:[%s18228_s1 + $0x114] sm:$0xf0]  ;;  %3955 = vmatpush.bf16.msra.mxu3 %v9754_v20  ;;  %v10249_v20 = vld [vmem:[%s18228_s1 + $0x6e8] sm:$0xf] }
 0x198   : > { %3868 = vmatpush.bf16.msra.mxu0 %v9370_v39  ;;  %v9498_v60 = vor.u32 %v12574_v55, %v9497_v52  ;;  %v18453_v39 = vld [vmem:[#allocation42_spill] sm:$0xff]  ;;  %v9993_v52 = vld [vmem:[%s18228_s1 + $0x4e8] sm:$0xf] }
 0x19a   : > { %v3587_v26 = vpop.f32.mrf.mxu2  ;;  %3897 = vmatpush.bf16.msra.mxu1 %v9498_v60  ;;  %v12794_v60 = vld [vmem:[%s18228_s1 + $0x7f4] sm:$0xf0] }
 0x19b   : > { %v3616_v61 = vpop.f32.mrf.mxu3  ;;  %v3588_v27 = vadd.f32 %v3587_v26, %v3559_v0  ;;  %v12762_v0 = vld [vmem:[%s18228_s1 + $0x6f4] sm:$0xf0] }
 0x19c   : > { %v10250_v55 = vor.u32 %v12762_v0, %v10249_v20  ;;  %v12698_v26 = vld [vmem:[%s18228_s1 + $0x4f4] sm:$0xf0] }
 0x19d   : > { %v15377_v54 = vadd.f32 %v3616_v61, %v3588_v27  ;;  %v10377_v61 = vld [vmem:[%s18228_s1 + $0x7e8] sm:$0xf]  ;;  %v9994_v27 = vor.u32 %v12698_v26, %v9993_v52  ;;  %v12730_v52 = vld [vmem:[%s18228_s1 + $0x5f4] sm:$0xf0] }
 0x19e   : > { %v3532_v62 = vpop.f32.mrf.mxu0  ;;  %v3561_v18 = vpop.f32.mrf.mxu1  ;;  %4035 = vmatpush.bf16.msrb.mxu2 %v10250_v55  ;;  %v10122_v26 = vor.u32 %v12730_v52, %v10121_v36  ;;  %v12758_v55 = vld [vmem:[%s18228_s1 + $0x6d4] sm:$0xf0]  ;;  %v10361_v36 = vld [vmem:[%s18228_s1 + $0x7c8] sm:$0xf] }
 0x19f   : > { %v3562_v63 = vadd.f32 %v3561_v18, %v3532_v62  ;;  %3821 = vmatmul.bf16.gmra.mxu2 %v18454_v40  ;;  %v10378_v62 = vor.u32 %v12794_v60, %v10377_v61  ;;  %3977 = vmatpush.bf16.msrb.mxu0 %v9994_v27  ;;  %v12790_v61 = vld [vmem:[%s18228_s1 + $0x7d4] sm:$0xf0] }
 0x1a0   : > { %3850 = vmatmul.bf16.gmra.mxu3 %v18455_v58  ;;  %4006 = vmatpush.bf16.msrb.mxu1 %v10122_v26  ;;  %v10362_v27 = vor.u32 %v12790_v61, %v10361_v36  ;;  %v10105_v26 = vld [vmem:[%s18228_s1 + $0x5c8] sm:$0xf] }
 0x1a1   : > { %3763 = vmatmul.bf16.gmra.mxu0 %v18452_v32  ;;  %3792 = vmatmul.bf16.gmra.mxu1 %v18453_v39  ;;  %v9961_v36 = vld [vmem:[%s18228_s1 + $0x4a8] sm:$0xf] }
 0x1a2   : > { %v3590_v18 = vpop.f32.mrf.mxu2  ;;  %4064 = vmatpush.bf16.msrb.mxu3 %v10378_v62 }
 0x1a3   : > { %v3619_v58 = vpop.f32.mrf.mxu3  ;;  %v3591_v40 = vadd.f32 %v3590_v18, %v3562_v63  ;;  %v10233_v63 = vld [vmem:[%s18228_s1 + $0x6c8] sm:$0xf] }
 0x1a5   : > { %v15401_v32 = vadd.f32 %v3619_v58, %v3591_v40  ;;  %v10234_v40 = vor.u32 %v12758_v55, %v10233_v63  ;;  %v12694_v58 = vld [vmem:[%s18228_s1 + $0x4d4] sm:$0xf0] }
 0x1a6   : > { %v3534_v39 = vpop.f32.mrf.mxu0  ;;  %v3563_v20 = vpop.f32.mrf.mxu1  ;;  %4065 = vmatpush.bf16.msrb.mxu3 %v10362_v27  ;;  %v10345_v27 = vld [vmem:[%s18228_s1 + $0x7a8] sm:$0xf] }
 0x1a7   : > { %v3564_v0 = vadd.f32 %v3563_v20, %v3534_v39  ;;  %v9977_v39 = vld [vmem:[%s18228_s1 + $0x4c8] sm:$0xf]  ;;  %4036 = vmatpush.bf16.msrb.mxu2 %v10234_v40 }
 0x1a8   : > { %v9978_v60 = vor.u32 %v12694_v58, %v9977_v39  ;;  %v12726_v39 = vld [vmem:[%s18228_s1 + $0x5d4] sm:$0xf0] }
 0x1a9   : > { %v10106_v40 = vor.u32 %v12726_v39, %v10105_v26  ;;  %v12754_v58 = vld [vmem:[%s18228_s1 + $0x6b4] sm:$0xf0] }
 0x1aa   : > { %v3592_v62 = vpop.f32.mrf.mxu2  ;;  %3978 = vmatpush.bf16.msrb.mxu0 %v9978_v60  ;;  %v12690_v60 = vld [vmem:[%s18228_s1 + $0x4b4] sm:$0xf0] }
 0x1ab   : > { %v3621_v18 = vpop.f32.mrf.mxu3  ;;  %v3593_v20 = vadd.f32 %v3592_v62, %v3564_v0  ;;  %v10217_v0 = vld [vmem:[%s18228_s1 + $0x6a8] sm:$0xf]  ;;  %4007 = vmatpush.bf16.msrb.mxu1 %v10106_v40  ;;  %v12786_v62 = vld [vmem:[%s18228_s1 + $0x7b4] sm:$0xf0] }
 0x1ac   : > { %v10218_v61 = vor.u32 %v12754_v58, %v10217_v0 }
 0x1ad   : > { %v15427_v56 = vadd.f32 %v3621_v18, %v3593_v20  ;;  %v9962_v18 = vor.u32 %v12690_v60, %v9961_v36  ;;  %v10346_v20 = vor.u32 %v12786_v62, %v10345_v27  ;;  %v12722_v36 = vld [vmem:[%s18228_s1 + $0x5b4] sm:$0xf0]  ;;  %v9945_v27 = vld [vmem:[%s18228_s1 + $0x488] sm:$0xf] }
 0x1ae   : > { %v3537_v52 = vpop.f32.mrf.mxu0  ;;  %v3566_v63 = vpop.f32.mrf.mxu1  ;;  %4037 = vmatpush.bf16.msrb.mxu2 %v10218_v61  ;;  %v12750_v61 = vld [vmem:[%s18228_s1 + $0x694] sm:$0xf0] }
 0x1af   : > { %v3567_v55 = vadd.f32 %v3566_v63, %v3537_v52  ;;  %3826 = vmatmul.bf16.gmra.mxu2 %v14735_v57  ;;  %3979 = vmatpush.bf16.msrb.mxu0 %v9962_v18  ;;  %v12686_v18 = vld [vmem:[%s18228_s1 + $0x494] sm:$0xf0] }
 0x1b0   : > { %3855 = vmatmul.bf16.gmra.mxu3 %v14737_v3  ;;  %v10089_v3 = vld [vmem:[%s18228_s1 + $0x5a8] sm:$0xf] }
 0x1b1   : > { %3768 = vmatmul.bf16.gmra.mxu0 %v14731_v35  ;;  %3797 = vmatmul.bf16.gmra.mxu1 %v14733_v49  ;;  %v10090_v60 = vor.u32 %v12722_v36, %v10089_v3  ;;  %v10329_v3 = vld [vmem:[%s18228_s1 + $0x788] sm:$0xf] }
 0x1b2   : > { %v3595_v52 = vpop.f32.mrf.mxu2  ;;  %4066 = vmatpush.bf16.msrb.mxu3 %v10346_v20  ;;  %v12782_v20 = vld [vmem:[%s18228_s1 + $0x794] sm:$0xf0] }
 0x1b3   : > { %v3624_v63 = vpop.f32.mrf.mxu3  ;;  %v3596_v26 = vadd.f32 %v3595_v52, %v3567_v55  ;;  %v10201_v55 = vld [vmem:[%s18228_s1 + $0x688] sm:$0xf]  ;;  %4008 = vmatpush.bf16.msrb.mxu1 %v10090_v60  ;;  %v9946_v52 = vor.u32 %v12686_v18, %v9945_v27  ;;  %v12718_v27 = vld [vmem:[%s18228_s1 + $0x594] sm:$0xf0] }
 0x1b4   : > { %v10202_v62 = vor.u32 %v12750_v61, %v10201_v55  ;;  %v10073_v60 = vld [vmem:[%s18228_s1 + $0x588] sm:$0xf]  ;;  %v12746_v18 = vld [vmem:[%s18228_s1 + $0x674] sm:$0xf0] }
 0x1b5   : > { %v15457_v58 = vadd.f32 %v3624_v63, %v3596_v26  ;;  %v10330_v63 = vor.u32 %v12782_v20, %v10329_v3  ;;  %3980 = vmatpush.bf16.msrb.mxu0 %v9946_v52  ;;  %v9929_v3 = vld [vmem:[%s18228_s1 + $0x468] sm:$0xf]  ;;  %v12682_v52 = vld [vmem:[%s18228_s1 + $0x474] sm:$0xf0] }
 0x1b6   : > { %v3539_v39 = vpop.f32.mrf.mxu0  ;;  %v3568_v40 = vpop.f32.mrf.mxu1  ;;  %4038 = vmatpush.bf16.msrb.mxu2 %v10202_v62  ;;  %v10074_v62 = vor.u32 %v12718_v27, %v10073_v60 }
 0x1b7   : > { %v3569_v0 = vadd.f32 %v3568_v40, %v3539_v39  ;;  %4067 = vmatpush.bf16.msrb.mxu3 %v10330_v63  ;;  %v10313_v63 = vld [vmem:[%s18228_s1 + $0x768] sm:$0xf] }
 0x1b8   : > { %4009 = vmatpush.bf16.msrb.mxu1 %v10074_v62 }
 0x1ba   : > { %v3597_v26 = vpop.f32.mrf.mxu2 }
 0x1bb   : > { %v3626_v39 = vpop.f32.mrf.mxu3  ;;  %v3598_v40 = vadd.f32 %v3597_v26, %v3569_v0  ;;  %v10185_v0 = vld [vmem:[%s18228_s1 + $0x668] sm:$0xf]  ;;  %v12778_v26 = vld [vmem:[%s18228_s1 + $0x774] sm:$0xf0] }
 0x1bc   : > { %v10186_v20 = vor.u32 %v12746_v18, %v10185_v0  ;;  %v10057_v18 = vld [vmem:[%s18228_s1 + $0x568] sm:$0xf] }
 0x1bd   : > { %v15487_v61 = vadd.f32 %v3626_v39, %v3598_v40  ;;  %v9930_v39 = vor.u32 %v12682_v52, %v9929_v3  ;;  %v10314_v40 = vor.u32 %v12778_v26, %v10313_v63  ;;  %v12714_v3 = vld [vmem:[%s18228_s1 + $0x574] sm:$0xf0]  ;;  %v10169_v63 = vld [vmem:[%s18228_s1 + $0x648] sm:$0xf] }
 0x1be   : > { %v15483_v36 = vpop.f32.mrf.mxu0  ;;  %v15485_v55 = vpop.f32.mrf.mxu1  ;;  %4039 = vmatpush.bf16.msrb.mxu2 %v10186_v20  ;;  %v10058_v52 = vor.u32 %v12714_v3, %v10057_v18  ;;  %v12742_v20 = vld [vmem:[%s18228_s1 + $0x654] sm:$0xf0]  ;;  %v9913_v26 = vld [vmem:[%s18228_s1 + $0x448] sm:$0xf] }
 0x1bf   : > { %3927 = vmatmul.bf16.vlgmr.msra.gmra.mxu2 %v13843_v15  ;;  %3981 = vmatpush.bf16.msrb.mxu0 %v9930_v39  ;;  %v10170_v39 = vor.u32 %v12742_v20, %v10169_v63  ;;  %v10297_v18 = vld [vmem:[%s18228_s1 + $0x748] sm:$0xf]  ;;  %v12774_v3 = vld [vmem:[%s18228_s1 + $0x754] sm:$0xf0] }
 0x1c0   : > { %3956 = vmatmul.bf16.vlgmr.msra.gmra.mxu3 %v13845_v16  ;;  %4010 = vmatpush.bf16.msrb.mxu1 %v10058_v52  ;;  %v10298_v15 = vor.u32 %v12774_v3, %v10297_v18  ;;  %v10041_v52 = vld [vmem:[%s18228_s1 + $0x548] sm:$0xf]  ;;  %v12674_v3 = vld [vmem:[%s18228_s1 + $0x434] sm:$0xf0] }
 0x1c1   : > { %3869 = vmatmul.bf16.vlgmr.msra.gmra.mxu0 %v13831_v6  ;;  %3898 = vmatmul.bf16.vlgmr.msra.gmra.mxu1 %v13833_v7 }
 0x1c2   : > { %v15517_v60 = vpop.f32.mrf.mxu2  ;;  %4068 = vmatpush.bf16.msrb.mxu3 %v10314_v40  ;;  %v12678_v40 = vld [vmem:[%s18228_s1 + $0x454] sm:$0xf0]  ;;  %4040 = vmatpush.bf16.msrb.mxu2 %v10170_v39 }
 0x1c3   : > { %v15519_v27 = vpop.f32.mrf.mxu3  ;;  %v9914_v16 = vor.u32 %v12678_v40, %v9913_v26  ;;  %v12710_v26 = vld [vmem:[%s18228_s1 + $0x554] sm:$0xf0]  ;;  %v9897_v40 = vld [vmem:[%s18228_s1 + $0x428] sm:$0xf] }
 0x1c4   : > { %v10042_v39 = vor.u32 %v12710_v26, %v10041_v52  ;;  %v10281_v52 = vld [vmem:[%s18228_s1 + $0x728] sm:$0xf]  ;;  %v12770_v26 = vld [vmem:[%s18228_s1 + $0x734] sm:$0xf0] }
 0x1c5   : > { %3982 = vmatpush.bf16.msrb.mxu0 %v9914_v16  ;;  %v12738_v16 = vld [vmem:[%s18228_s1 + $0x634] sm:$0xf0] }
 0x1c6   : > { %v15521_v62 = vpop.f32.mrf.mxu0  ;;  %v15523_v0 = vpop.f32.mrf.mxu1  ;;  %4069 = vmatpush.bf16.msrb.mxu3 %v10298_v15  ;;  %v10153_v15 = vld [vmem:[%s18228_s1 + $0x628] sm:$0xf]  ;;  %4011 = vmatpush.bf16.msrb.mxu1 %v10042_v39 }
 0x1c7   : > { %v10154_v18 = vor.u32 %v12738_v16, %v10153_v15  ;;  %v10025_v16 = vld [vmem:[%s18228_s1 + $0x528] sm:$0xf] }
 0x1c9   : > { %4041 = vmatpush.bf16.msrb.mxu2 %v10154_v18  ;;  %v12734_v18 = vld [vmem:[%s18228_s1 + $0x614] sm:$0xf0] }
 0x1ca   : > { %v15549_v7 = vpop.f32.mrf.mxu2 }
 0x1cb   : > { %v15551_v6 = vpop.f32.mrf.mxu3 }
 0x1ce   : > { %v15553_v63 = vpop.f32.mrf.mxu0  ;;  %v15555_v20 = vpop.f32.mrf.mxu1 }
 0x1cf   : > { %3932 = vmatmul.bf16.gmra.mxu2 %v13922_v23  ;;  %v10282_v23 = vor.u32 %v12770_v26, %v10281_v52  ;;  %v10137_v52 = vld [vmem:[%s18228_s1 + $0x608] sm:$0xf]  ;;  %v12670_v26 = vld [vmem:[%s18228_s1 + $0x414] sm:$0xf0] }
 0x1d0   : > { %3961 = vmatmul.bf16.gmra.mxu3 %v13924_v24  ;;  %v9898_v24 = vor.u32 %v12674_v3, %v9897_v40  ;;  %v12706_v40 = vld [vmem:[%s18228_s1 + $0x534] sm:$0xf0] }
 0x1d1   : > { %3874 = vmatmul.bf16.gmra.mxu0 %v13905_v9  ;;  %3903 = vmatmul.bf16.gmra.mxu1 %v13907_v10  ;;  %v10026_v3 = vor.u32 %v12706_v40, %v10025_v16  ;;  %v10265_v16 = vld [vmem:[%s18228_s1 + $0x708] sm:$0xf]  ;;  %v12766_v40 = vld [vmem:[%s18228_s1 + $0x714] sm:$0xf0] }
 0x1d2   : > { %v15585_v10 = vpop.f32.mrf.mxu2  ;;  %3983 = vmatpush.bf16.msrb.mxu0 %v9898_v24  ;;  %4070 = vmatpush.bf16.msrb.mxu3 %v10282_v23  ;;  %v9881_v23 = vld [vmem:[%s18228_s1 + $0x408] sm:$0xf]  ;;  %v10138_v24 = vor.u32 %v12734_v18, %v10137_v52  ;;  %v10266_v49 = vor.u32 %v12766_v40, %v10265_v16  ;;  %v12702_v18 = vld [vmem:[%s18228_s1 + $0x514] sm:$0xf0] }
 0x1d3   : > { %v15587_v9 = vpop.f32.mrf.mxu3  ;;  %4012 = vmatpush.bf16.msrb.mxu1 %v10026_v3  ;;  %v9882_v57 = vor.u32 %v12670_v26, %v9881_v23  ;;  %v10009_v52 = vld [vmem:[%s18228_s1 + $0x508] sm:$0xf]  ;;  %v12922_v16 = vld [vmem:[%s18228_s1 + $0xbf4] sm:$0xf0] }
 0x1d4   : > { %4042 = vmatpush.bf16.msrb.mxu2 %v10138_v24  ;;  %v10010_v38 = vor.u32 %v12702_v18, %v10009_v52  ;;  %v10761_v23 = vld [vmem:[%s18228_s1 + $0xae8] sm:$0xf]  ;;  %v12826_v24 = vld [vmem:[%s18228_s1 + $0x8f4] sm:$0xf0] }
 0x1d5   : > { %v10889_v26 = vld [vmem:[%s18228_s1 + $0xbe8] sm:$0xf] }
 0x1d6   : > { %v15589_v39 = vpop.f32.mrf.mxu0  ;;  %v15591_v15 = vpop.f32.mrf.mxu1  ;;  %3984 = vmatpush.bf16.msrb.mxu0 %v9882_v57  ;;  %4071 = vmatpush.bf16.msrb.mxu3 %v10266_v49  ;;  %v12890_v49 = vld [vmem:[%s18228_s1 + $0xaf4] sm:$0xf0]  ;;  %v10890_v52 = vor.u32 %v12922_v16, %v10889_v26 }
 0x1d7   : > { %4013 = vmatpush.bf16.msrb.mxu1 %v10010_v38  ;;  %v10505_v38 = vld [vmem:[%s18228_s1 + $0x8e8] sm:$0xf]  ;;  %v10762_v57 = vor.u32 %v12890_v49, %v10761_v23 }
 0x1d8   : > { %v10506_v40 = vor.u32 %v12826_v24, %v10505_v38  ;;  %v3639_v38 = vadd.f32 %v15483_v36, %v15289_v25  ;;  %v10745_v25 = vld [vmem:[%s18228_s1 + $0xac8] sm:$0xf] }
 0x1d9   : > { %4151 = vmatpush.bf16.msra.mxu2 %v10762_v57 }
 0x1da   : > { %v15623_v35 = vpop.f32.mrf.mxu2  ;;  %4093 = vmatpush.bf16.msra.mxu0 %v10506_v40  ;;  %4180 = vmatpush.bf16.msra.mxu3 %v10890_v52  ;;  %v3668_v40 = vadd.f32 %v15485_v55, %v3639_v38  ;;  %v10633_v52 = vld [vmem:[%s18228_s1 + $0x9e8] sm:$0xf]  ;;  %v12822_v38 = vld [vmem:[%s18228_s1 + $0x8d4] sm:$0xf0] }
 0x1db   : > { %v15625_v8 = vpop.f32.mrf.mxu3  ;;  %v10489_v55 = vld [vmem:[%s18228_s1 + $0x8c8] sm:$0xf] }
 0x1dc   : > { %v3697_v36 = vadd.f32 %v15517_v60, %v3668_v40  ;;  %v3641_v60 = vadd.f32 %v15521_v62, %v15315_v41 }
 0x1de   : > { %v15627_v5 = vpop.f32.mrf.mxu0  ;;  %v15629_v3 = vpop.f32.mrf.mxu1 }
 0x1df   : > { %3937 = vmatmul.bf16.gmra.mxu2 %v14029_v2 }
 0x1e0   : > { %3966 = vmatmul.bf16.gmra.mxu3 %v14031_v4 }
 0x1e1   : > { %3879 = vmatmul.bf16.gmra.mxu0 %v14006_v50  ;;  %3908 = vmatmul.bf16.gmra.mxu1 %v14008_v51 }
 0x1e2   : > { %v15653_v18 = vpop.f32.mrf.mxu2 }
 0x1e3   : > { %v15655_v4 = vpop.f32.mrf.mxu3 }
 0x1e6   : > { %v15657_v23 = vpop.f32.mrf.mxu0  ;;  %v15659_v49 = vpop.f32.mrf.mxu1 }
 0x1ea   : > { %v15661_v2 = vpop.f32.mrf.mxu2 }
 0x1eb   : > { %v15663_v51 = vpop.f32.mrf.mxu3 }
 0x1ee   : > { %v15665_v50 = vpop.f32.mrf.mxu0  ;;  %v15667_v1 = vpop.f32.mrf.mxu1 }
 0x1ef   : > { %3942 = vmatmul.bf16.gmra.mxu2 %v14115_v21 }
 0x1f0   : > { %3971 = vmatmul.bf16.gmra.mxu3 %v14117_v22  ;;  %v12858_v22 = vld [vmem:[%s18228_s1 + $0x9f4] sm:$0xf0] }
 0x1f1   : > { %3884 = vmatmul.bf16.gmra.mxu0 %v14108_v13  ;;  %3913 = vmatmul.bf16.gmra.mxu1 %v14110_v14  ;;  %v10634_v21 = vor.u32 %v12858_v22, %v10633_v52  ;;  %v12886_v14 = vld [vmem:[%s18228_s1 + $0xad4] sm:$0xf0] }
 0x1f2   : > { %v15675_v57 = vpop.f32.mrf.mxu2  ;;  %v10746_v13 = vor.u32 %v12886_v14, %v10745_v25  ;;  %v12918_v22 = vld [vmem:[%s18228_s1 + $0xbd4] sm:$0xf0]  ;;  %v284_v14 = vld [vmem:[%s18230_s3] ss:$4 sm:$0xf]  ;;  %v3726_v25 = vadd.f32 %v15519_v27, %v3697_v36 }
 0x1f3   : > { %v15677_v24 = vpop.f32.mrf.mxu3  ;;  %4122 = vmatpush.bf16.msra.mxu1 %v10634_v21  ;;  %v15725_v21 = vperm.slane %v284_v14, 0  ;;  %v10617_v27 = vld [vmem:[%s18228_s1 + $0x9c8] sm:$0xf] }
 0x1f4   : > { %18456 = vst [vmem:[#allocation51_spill] sm:$0xff] %v15677_v24  ;;  %v10873_v24 = vld [vmem:[%s18228_s1 + $0xbc8] sm:$0xf]  ;;  %4152 = vmatpush.bf16.msra.mxu2 %v10746_v13 }
 0x1f5   : > { %v10874_v40 = vor.u32 %v12918_v22, %v10873_v24  ;;  %v9220_v13 = vld [vmem:[%s18230_s3 + $0x1] ss:$4 sm:$0xf]  ;;  %v12818_v22 = vld [vmem:[%s18228_s1 + $0x8b4] sm:$0xf0] }
 0x1f6   : > { %v15679_v26 = vpop.f32.mrf.mxu0  ;;  %v15681_v16 = vpop.f32.mrf.mxu1  ;;  %v10729_v24 = vld [vmem:[%s18228_s1 + $0xaa8] sm:$0xf] }
 0x1f7   : > { %18457 = vst [vmem:[#allocation52_spill] sm:$0xff] %v15679_v26  ;;  %4181 = vmatpush.bf16.msra.mxu3 %v10874_v40  ;;  %v3670_v26 = vadd.f32 %v15523_v0, %v3641_v60  ;;  %v12854_v0 = vld [vmem:[%s18228_s1 + $0x9d4] sm:$0xf0]  ;;  %v10473_v36 = vld [vmem:[%s18228_s1 + $0x8a8] sm:$0xf] }
 0x1f8   : > { %18458 = vst [vmem:[#allocation53_spill] sm:$0xff] %v15681_v16  ;;  %v10490_v16 = vor.u32 %v12822_v38, %v10489_v55 }
 0x1f9   : > { %v3699_v62 = vadd.f32 %v15549_v7, %v3670_v26  ;;  %v10618_v7 = vor.u32 %v12854_v0, %v10617_v27  ;;  %v12882_v26 = vld [vmem:[%s18228_s1 + $0xab4] sm:$0xf0] }
 0x1fa   : > { %v15711_v52 = vpop.f32.mrf.mxu2  ;;  %4094 = vmatpush.bf16.msra.mxu0 %v10490_v16  ;;  %v3644_v16 = vadd.f32 %v15553_v63, %v15345_v47  ;;  %v10730_v40 = vor.u32 %v12882_v26, %v10729_v24  ;;  %v10857_v47 = vld [vmem:[%s18228_s1 + $0xba8] sm:$0xf]  ;;  %v12914_v63 = vld [vmem:[%s18228_s1 + $0xbb4] sm:$0xf0]  ;;  %v15761_v24 = vperm.slane %v284_v14, 1 }
 0x1fb   : > { %v15713_v59 = vpop.f32.mrf.mxu3  ;;  %4123 = vmatpush.bf16.msra.mxu1 %v10618_v7  ;;  %v4574_v7 = vmul.f32 %v15725_v21, %v15114_v48 }
 0x1fc   : > { %4153 = vmatpush.bf16.msra.mxu2 %v10730_v40 }
 0x1fe   : > { %v3754_v55 = vpop.f32.mrf.mxu0  ;;  %v3783_v38 = vpop.f32.mrf.mxu1 }
 0x1ff   : > { %v3755_v41 = vadd.f32 %v3754_v55, %v3726_v25  ;;  %4043 = vmatmul.bf16.vlgmr.msrb.gmra.mxu2 %v14183_v17  ;;  %v10474_v25 = vor.u32 %v12818_v22, %v10473_v36  ;;  %v15756_v55 = vperm.slane %v9220_v13, 0  ;;  %v4566_v17 = vmul.f32 %v15725_v21, %v15053_v42 }
 0x200   : > { %4072 = vmatmul.bf16.vlgmr.msrb.gmra.mxu3 %v14185_v19  ;;  %v10858_v19 = vor.u32 %v12914_v63, %v10857_v47  ;;  %v4570_v22 = vmul.f32 %v15725_v21, %v15077_v44  ;;  %v15768_v42 = vperm.slane %v9220_v13, 1  ;;  %v12850_v44 = vld [vmem:[%s18228_s1 + $0x9b4] sm:$0xf0]  ;;  %v10841_v63 = vld [vmem:[%s18228_s1 + $0xb88] sm:$0xf] }
 0x201   : > { %3985 = vmatmul.bf16.vlgmr.msrb.gmra.mxu0 %v14179_v11  ;;  %4014 = vmatmul.bf16.vlgmr.msrb.gmra.mxu1 %v14181_v12  ;;  %v3784_v60 = vadd.f32 %v3783_v38, %v3755_v41  ;;  %v3728_v38 = vadd.f32 %v15551_v6, %v3699_v62  ;;  %v3673_v12 = vadd.f32 %v15555_v20, %v3644_v16  ;;  %v10601_v62 = vld [vmem:[%s18228_s1 + $0x9a8] sm:$0xf]  ;;  %v12814_v16 = vld [vmem:[%s18228_s1 + $0x894] sm:$0xf0] }
 0x202   : > { %v3812_v27 = vpop.f32.mrf.mxu2  ;;  %4095 = vmatpush.bf16.msra.mxu0 %v10474_v25  ;;  %4182 = vmatpush.bf16.msra.mxu3 %v10858_v19  ;;  %v10713_v19 = vld [vmem:[%s18228_s1 + $0xa88] sm:$0xf]  ;;  %v4607_v48 = vadd.f32 %v15756_v55, %v4566_v17  ;;  %v10602_v13 = vor.u32 %v12850_v44, %v10601_v62  ;;  %v3646_v17 = vadd.f32 %v15589_v39, %v15377_v54 }
 0x203   : > { %v3841_v0 = vpop.f32.mrf.mxu3  ;;  %v3813_v41 = vadd.f32 %v3812_v27, %v3784_v60  ;;  %v3702_v14 = vadd.f32 %v15585_v10, %v3673_v12  ;;  %v12878_v10 = vld [vmem:[%s18228_s1 + $0xa94] sm:$0xf0]  ;;  %v10457_v12 = vld [vmem:[%s18228_s1 + $0x888] sm:$0xf]  ;;  %v15792_v60 = vadd.f32 %v15756_v55, %v4570_v22 }
 0x204   : > { %v10714_v40 = vor.u32 %v12878_v10, %v10713_v19  ;;  %v10458_v25 = vor.u32 %v12814_v16, %v10457_v12  ;;  %v12910_v27 = vld [vmem:[%s18228_s1 + $0xb94] sm:$0xf0]  ;;  %4124 = vmatpush.bf16.msra.mxu1 %v10602_v13  ;;  %v4639_v62 = vmax.f32 %v4607_v48, 0.0 }
 0x205   : > { %v3842_v47 = vadd.f32 %v3841_v0, %v3813_v41  ;;  %v15803_v0 = vadd.f32 %v15756_v55, %v4574_v7  ;;  %v3731_v54 = vadd.f32 %v15587_v9, %v3702_v14  ;;  %v12846_v7 = vld [vmem:[%s18228_s1 + $0x994] sm:$0xf0]  ;;  %v3675_v9 = vadd.f32 %v15591_v15, %v3646_v17  ;;  %v10697_v15 = vld [vmem:[%s18228_s1 + $0xa68] sm:$0xf] }
 0x206   : > { %v3756_v26 = vpop.f32.mrf.mxu0  ;;  %v3785_v36 = vpop.f32.mrf.mxu1  ;;  %4154 = vmatpush.bf16.msra.mxu2 %v10714_v40  ;;  %4096 = vmatpush.bf16.msra.mxu0 %v10458_v25  ;;  %v3649_v14 = vadd.f32 %v15627_v5, %v15401_v32  ;;  %v4643_v10 = vmax.f32 %v15792_v60, 0.0  ;;  %v12874_v5 = vld [vmem:[%s18228_s1 + $0xa74] sm:$0xf0]  ;;  %v10441_v32 = vld [vmem:[%s18228_s1 + $0x868] sm:$0xf] }
 0x207   : > { %v3757_v6 = vadd.f32 %v3756_v26, %v3728_v38  ;;  %v4567_v20 = vmul.f32 %v15761_v24, %v3842_v47  ;;  %v10842_v26 = vor.u32 %v12910_v27, %v10841_v63  ;;  %v10585_v47 = vld [vmem:[%s18228_s1 + $0x988] sm:$0xf]  ;;  %v4647_v12 = vmax.f32 %v15803_v0, 0.0  ;;  %v12810_v63 = vld [vmem:[%s18228_s1 + $0x874] sm:$0xf0] }
 0x208   : > { %v3704_v48 = vadd.f32 %v15623_v35, %v3675_v9  ;;  %v10698_v35 = vor.u32 %v12874_v5, %v10697_v15  ;;  %v10825_v27 = vld [vmem:[%s18228_s1 + $0xb68] sm:$0xf] }
 0x209   : > { %v4608_v38 = vadd.f32 %v15768_v42, %v4567_v20  ;;  %v3786_v41 = vadd.f32 %v3785_v36, %v3757_v6  ;;  %4183 = vmatpush.bf16.msra.mxu3 %v10842_v26  ;;  %v10586_v20 = vor.u32 %v12846_v7, %v10585_v47  ;;  %v10442_v26 = vor.u32 %v12810_v63, %v10441_v32  ;;  %v4847_v7 = vld [vmem:[#allocation2] sm:$0xff]  ;;  %v12806_v32 = vld [vmem:[%s18228_s1 + $0x854] sm:$0xf0] }
 0x20a   : > { %v3814_v39 = vpop.f32.mrf.mxu2  ;;  %4155 = vmatpush.bf16.msra.mxu2 %v10698_v35 }
 0x20b   : > { %v3843_v22 = vpop.f32.mrf.mxu3  ;;  %v4640_v44 = vmax.f32 %v4608_v38, 0.0  ;;  %v3815_v19 = vadd.f32 %v3814_v39, %v3786_v41  ;;  %4125 = vmatpush.bf16.msra.mxu1 %v10586_v20  ;;  %v3678_v38 = vadd.f32 %v15629_v3, %v3649_v14  ;;  %v10569_v39 = vld [vmem:[%s18228_s1 + $0x968] sm:$0xf]  ;;  %4097 = vmatpush.bf16.msra.mxu0 %v10442_v26 }
 0x20c   : > { %v10681_v14 = vld [vmem:[%s18228_s1 + $0xa48] sm:$0xf] }
 0x20d   : > { %v15818_v16 = vpack.c.bf16 %v4640_v44, %v4639_v62  ;;  %v3844_v40 = vadd.f32 %v3843_v22, %v3815_v19  ;;  %v12842_v22 = vld [vmem:[%s18228_s1 + $0x974] sm:$0xf0]  ;;  %v15858_v19 = vmul.f32 %v15725_v21, %v15150_v34  ;;  %v10425_v34 = vld [vmem:[%s18228_s1 + $0x848] sm:$0xf] }
 0x20e   : > { %v3759_v36 = vpop.f32.mrf.mxu0  ;;  %v3788_v6 = vpop.f32.mrf.mxu1  ;;  %v10570_v44 = vor.u32 %v12842_v22, %v10569_v39  ;;  %v10426_v63 = vor.u32 %v12806_v32, %v10425_v34  ;;  %v10537_v34 = vld [vmem:[%s18228_s1 + $0x928] sm:$0xf]  ;;  %v4855_v32 = vld [vmem:[#allocation2 + $0x20] sm:$0x11] }
 0x20f   : > { %v3760_v13 = vadd.f32 %v3759_v36, %v3731_v54  ;;  %v4688_v60 = vshrl.u32 %v15818_v16, 16  ;;  %v4691_v17 = vshll.u32 %v15818_v16, 16  ;;  %v4571_v25 = vmul.f32 %v15761_v24, %v3844_v40  ;;  %4048 = vmatmul.bf16.gmra.mxu2 %v14263_v30  ;;  %v12906_v54 = vld [vmem:[%s18228_s1 + $0xb74] sm:$0xf0] }
 0x210   : > { %4077 = vmatmul.bf16.gmra.mxu3 %v14265_v31  ;;  %v10826_v3 = vor.u32 %v12906_v54, %v10825_v27  ;;  %v3733_v36 = vadd.f32 %v15625_v8, %v3704_v48  ;;  %v15873_v8 = vmul.f32 %v15725_v21, %v15172_v53  ;;  %4126 = vmatpush.bf16.msra.mxu1 %v10570_v44  ;;  %v10809_v53 = vld [vmem:[%s18228_s1 + $0xb48] sm:$0xf]  ;;  %v12838_v54 = vld [vmem:[%s18228_s1 + $0x954] sm:$0xf0] }
 0x211   : > { %3990 = vmatmul.bf16.gmra.mxu0 %v14259_v28  ;;  %4019 = vmatmul.bf16.gmra.mxu1 %v14261_v29  ;;  %v3789_v41 = vadd.f32 %v3788_v6, %v3760_v13  ;;  %v15853_v47 = vrot.slane %v4688_v60, 7  ;;  %v4612_v62 = vadd.f32 %v15768_v42, %v4571_v25  ;;  %v3707_v6 = vadd.f32 %v15653_v18, %v3678_v38  ;;  %v12870_v13 = vld [vmem:[%s18228_s1 + $0xa54] sm:$0xf0]  ;;  %v10553_v27 = vld [vmem:[%s18228_s1 + $0x948] sm:$0xf] }
 0x212   : > { %v3817_v20 = vpop.f32.mrf.mxu2  ;;  %4184 = vmatpush.bf16.msra.mxu3 %v10826_v3  ;;  %v3651_v60 = vadd.f32 %v15657_v23, %v15427_v56  ;;  %v10682_v35 = vor.u32 %v12870_v13, %v10681_v14  ;;  %4098 = vmatpush.bf16.msra.mxu0 %v10426_v63  ;;  %v10554_v22 = vor.u32 %v12838_v54, %v10553_v27  ;;  %v5104_v3 = vunpack.c.h.b16 %v15818_v16  ;;  %v10649_v27 = vld [vmem:[%s18228_s1 + $0xa08] sm:$0xf] }
 0x213   : > { %v3846_v9 = vpop.f32.mrf.mxu3  ;;  %v4693_v18 = vor.u32 %v4691_v17, %v15853_v47  ;;  %v4644_v40 = vmax.f32 %v4612_v62, 0.0  ;;  %v3818_v48 = vadd.f32 %v3817_v20, %v3789_v41  ;;  %v12902_v17 = vld [vmem:[%s18228_s1 + $0xb54] sm:$0xf0]  ;;  %v3736_v39 = vadd.f32 %v15655_v4, %v3707_v6  ;;  %v10665_v62 = vld [vmem:[%s18228_s1 + $0xa28] sm:$0xf] }
 0x214   : > { %v10810_v23 = vor.u32 %v12902_v17, %v10809_v53  ;;  %4156 = vmatpush.bf16.msra.mxu2 %v10682_v35  ;;  %v4701_v44 = vrot.slane %v15853_v47, 4  ;;  %v10409_v20 = vld [vmem:[%s18228_s1 + $0x828] sm:$0xf]  ;;  %4127 = vmatpush.bf16.msra.mxu1 %v10554_v22  ;;  %v12898_v47 = vld [vmem:[%s18228_s1 + $0xb34] sm:$0xf0] }
 0x215   : > { %v4848_v41 = vsel %vm13745_vm15, %v4693_v18, %v4847_v7  ;;  %v4673_v26 = vpack.c.bf16 %v4644_v40, %v4643_v10  ;;  %v3847_v56 = vadd.f32 %v3846_v9, %v3818_v48  ;;  %v12866_v10 = vld [vmem:[%s18228_s1 + $0xa34] sm:$0xf0]  ;;  %v5103_v7 = vunpack.c.l.b16 %v15818_v16  ;;  %v10793_v16 = vld [vmem:[%s18228_s1 + $0xb28] sm:$0xf] }
 0x216   : > { %v3761_v15 = vpop.f32.mrf.mxu0  ;;  %v3790_v5 = vpop.f32.mrf.mxu1  ;;  %4849 = vst [vmem:[#allocation2] sm:$0xff] %v4848_v41  ;;  %4185 = vmatpush.bf16.msra.mxu3 %v10810_v23  ;;  %v10666_v6 = vor.u32 %v12866_v10, %v10665_v62  ;;  %v12802_v9 = vld [vmem:[%s18228_s1 + $0x834] sm:$0xf0] }
 0x217   : > { %v3762_v25 = vadd.f32 %v3761_v15, %v3733_v36  ;;  %v4703_v36 = vshrl.u32 %v4673_v26, 16  ;;  %v4575_v4 = vmul.f32 %v15761_v24, %v3847_v56  ;;  %v10410_v13 = vor.u32 %v12802_v9, %v10409_v20  ;;  %v12834_v35 = vld [vmem:[%s18228_s1 + $0x934] sm:$0xf0]  ;;  %v10777_v20 = vld [vmem:[%s18228_s1 + $0xb08] sm:$0xf] }
 0x218   : > { %v5107_v18 = vunpack.c.l.b16 %v4673_v26  ;;  %v5108_v40 = vunpack.c.h.b16 %v4673_v26  ;;  %v4706_v15 = vshll.u32 %v4673_v26, 16  ;;  %4157 = vmatpush.bf16.msra.mxu2 %v10666_v6  ;;  %v10538_v17 = vor.u32 %v12834_v35, %v10537_v34  ;;  %v12862_v41 = vld [vmem:[%s18228_s1 + $0xa14] sm:$0xf0]  ;;  %v10393_v26 = vld [vmem:[%s18228_s1 + $0x808] sm:$0xf] }
 0x219   : > { %v3791_v14 = vadd.f32 %v3790_v5, %v3762_v25  ;;  %v4705_v48 = vrot.slane %v4703_v36, 7  ;;  %v4616_v5 = vadd.f32 %v15768_v42, %v4575_v4  ;;  %v10794_v25 = vor.u32 %v12898_v47, %v10793_v16  ;;  %4099 = vmatpush.bf16.msra.mxu0 %v10410_v13  ;;  %v12798_v6 = vld [vmem:[%s18228_s1 + $0x814] sm:$0xf0]  ;;  %v10521_v16 = vld [vmem:[%s18228_s1 + $0x908] sm:$0xf] }
 0x21a   : > { %v3819_v63 = vpop.f32.mrf.mxu2  ;;  %v15934_v56 = vpack.c.b16 %v5107_v18, %v5103_v7  ;;  %v15936_v23 = vpack.c.b16 %v5108_v40, %v5104_v3  ;;  %v3680_v7 = vadd.f32 %v15659_v49, %v3651_v60  ;;  %4128 = vmatpush.bf16.msra.mxu1 %v10538_v17  ;;  %v10650_v3 = vor.u32 %v12862_v41, %v10649_v27  ;;  %v12830_v47 = vld [vmem:[%s18228_s1 + $0x914] sm:$0xf0]  ;;  %v4861_v27 = vld [vmem:[#allocation2 + $0x30] sm:$0xff]  ;;  %v12345_v34 = vld [vmem:[#allocation3 + $0xac0] sm:$0xf] }
 0x21b   : > { %v3848_v53 = vpop.f32.mrf.mxu3  ;;  %v4708_v54 = vor.u32 %v4706_v15, %v4705_v48  ;;  %v4719_v22 = vrot.slane %v4705_v48, 4  ;;  %v4648_v62 = vmax.f32 %v4616_v5, 0.0  ;;  %v3820_v10 = vadd.f32 %v3819_v63, %v3791_v14  ;;  %4186 = vmatpush.bf16.msra.mxu3 %v10794_v25  ;;  %v12894_v14 = vld [vmem:[%s18228_s1 + $0xb14] sm:$0xf0] }
 0x21c   : > { %18460 = vst [vmem:[#allocation8_spill] sm:$0xff] %v15934_v56  ;;  %v10394_v13 = vor.u32 %v12798_v6, %v10393_v26  ;;  %v3709_v48 = vadd.f32 %v15661_v2, %v3680_v7  ;;  %4158 = vmatpush.bf16.msra.mxu2 %v10650_v3  ;;  %v10778_v15 = vor.u32 %v12894_v14, %v10777_v20 }
 0x21d   : > { %18461 = vst [vmem:[#allocation54_spill] sm:$0xff] %v15936_v23  ;;  %v4709_v18 = vsel %vm13728_vm14, %v4701_v44, %v4708_v54  ;;  %v4856_v60 = vsel %vm13590_vm7, %v4719_v22, %v4855_v32  ;;  %v3849_v40 = vadd.f32 %v3848_v53, %v3820_v10  ;;  %v10522_v5 = vor.u32 %v12830_v47, %v10521_v16 }
 0x21e   : > { %v3764_v36 = vpop.f32.mrf.mxu0  ;;  %v3793_v4 = vpop.f32.mrf.mxu1  ;;  %4853 = vst [vmem:[#allocation2 + $0x10] sm:$0xff] %v4709_v18  ;;  %v4619_v44 = vadd.f32 %v15756_v55, %v15858_v19  ;;  %v3654_v2 = vadd.f32 %v15665_v50, %v15457_v58  ;;  %4100 = vmatpush.bf16.msra.mxu0 %v10394_v13  ;;  %v4623_v63 = vadd.f32 %v15756_v55, %v15873_v8 }
 0x21f   : > { %v3765_v9 = vadd.f32 %v3764_v36, %v3736_v39  ;;  %v15960_v39 = vpack.c.bf16 %v4648_v62, %v4647_v12  ;;  %4857 = vst [vmem:[#allocation2 + $0x20] sm:$0x11] %v4856_v60  ;;  %v4579_v0 = vmul.f32 %v15761_v24, %v3849_v40  ;;  %4053 = vmatmul.bf16.gmra.mxu2 %v14341_v45 }
 0x220   : > { %4082 = vmatmul.bf16.gmra.mxu3 %v14343_v46  ;;  %4129 = vmatpush.bf16.msra.mxu1 %v10522_v5  ;;  %v4586_v53 = vmul.f32 %v15725_v21, %v15202_v37  ;;  %v3738_v17 = vadd.f32 %v15663_v51, %v3709_v48  ;;  %v4651_v58 = vmax.f32 %v4619_v44, 0.0  ;;  %v3683_v36 = vadd.f32 %v15667_v1, %v3654_v2  ;;  %v18464_v1 = vld [vmem:[#allocation52_spill] sm:$0xff] }
 0x221   : > { %3995 = vmatmul.bf16.gmra.mxu0 %v14335_v33  ;;  %4024 = vmatmul.bf16.gmra.mxu1 %v14337_v43  ;;  %v4722_v32 = vshrl.u32 %v15960_v39, 16  ;;  %v4725_v25 = vshll.u32 %v15960_v39, 16  ;;  %v4620_v35 = vadd.f32 %v15768_v42, %v4579_v0  ;;  %v3794_v19 = vadd.f32 %v3793_v4, %v3765_v9 }
 0x222   : > { %4187 = vmatpush.bf16.msra.mxu3 %v10778_v15  ;;  %v3822_v41 = vpop.f32.mrf.mxu2  ;;  %v4655_v37 = vmax.f32 %v4623_v63, 0.0  ;;  %v15984_v51 = vadd.f32 %v15756_v55, %v4586_v53  ;;  %v3712_v7 = vadd.f32 %v15675_v57, %v3683_v36  ;;  %v5111_v13 = vunpack.c.l.b16 %v15960_v39  ;;  %v18466_v57 = vld [vmem:[#allocation49_spill] sm:$0xff] }
 0x223   : > { %v4724_v12 = vrot.slane %v4722_v32, 7  ;;  %v3851_v50 = vpop.f32.mrf.mxu3  ;;  %v4652_v54 = vmax.f32 %v4620_v35, 0.0  ;;  %v3823_v22 = vadd.f32 %v3822_v41, %v3794_v19  ;;  %v3656_v16 = vadd.f32 %v18464_v1, %v15487_v61  ;;  %v18467_v32 = vld [vmem:[#allocation51_spill] sm:$0xff]  ;;  %v9483_v1 = vld [vmem:[%s18228_s1 + $0xf8] sm:$0xf0] }
 0x224   : > { %v5112_v18 = vunpack.c.h.b16 %v15960_v39  ;;  %v4590_v44 = vmul.f32 %v15725_v21, %v18466_v57  ;;  %v3741_v0 = vadd.f32 %v18467_v32, %v3712_v7  ;;  %v4659_v36 = vmax.f32 %v15984_v51, 0.0 }
 0x225   : > { %v4727_v26 = vor.u32 %v4725_v25, %v4724_v12  ;;  %v4677_v6 = vpack.c.bf16 %v4652_v54, %v4651_v58  ;;  %v3852_v20 = vadd.f32 %v3851_v50, %v3823_v22  ;;  %v4735_v2 = vrot.slane %v4724_v12, 4  ;;  %v4869_v25 = vld [vmem:[#allocation2 + $0x50] sm:$0x11]  ;;  %v18469_v50 = vld [vmem:[#allocation53_spill] sm:$0xff] }
 0x226   : > { %v3766_v62 = vpop.f32.mrf.mxu0  ;;  %v3795_v10 = vpop.f32.mrf.mxu1  ;;  %v3685_v58 = vadd.f32 %v18469_v50, %v3656_v16 }
 0x227   : > { %v3767_v4 = vadd.f32 %v3766_v62, %v3738_v17  ;;  %v4862_v8 = vsel %vm13745_vm15, %v4727_v26, %v4861_v27  ;;  %v4737_v9 = vshrl.u32 %v4677_v6, 16  ;;  %v4583_v3 = vmul.f32 %v15761_v24, %v3852_v20 }
 0x228   : > { %4863 = vst [vmem:[#allocation2 + $0x30] sm:$0xff] %v4862_v8  ;;  %v5115_v14 = vunpack.c.l.b16 %v4677_v6  ;;  %v5116_v60 = vunpack.c.h.b16 %v4677_v6  ;;  %v4740_v48 = vshll.u32 %v4677_v6, 16  ;;  %v18471_v8 = vld [vmem:[#allocation29_spill] sm:$0xff]  ;;  %v16012_v6 = vadd.f32 %v15756_v55, %v4590_v44 }
 0x229   : > { %v3796_v47 = vadd.f32 %v3795_v10, %v3767_v4  ;;  %v4739_v40 = vrot.slane %v4737_v9, 7  ;;  %v4624_v15 = vadd.f32 %v15768_v42, %v4583_v3  ;;  %v18470_v10 = vld [vmem:[#allocation28_spill] sm:$0xff]  ;;  %v3714_v4 = vadd.f32 %v15711_v52, %v3685_v58  ;;  %v18472_v9 = vld [vmem:[#allocation30_spill] sm:$0xff]  ;;  %v18473_v3 = vld [vmem:[#allocation31_spill] sm:$0xff] }
 0x22a   : > { %v15993_v5 = vpack.c.b16 %v5115_v14, %v5111_v13  ;;  %v3824_v35 = vpop.f32.mrf.mxu2  ;;  %v15998_v61 = vpack.c.b16 %v5116_v60, %v5112_v18  ;;  %v12632_v52 = vld [vmem:[%s18228_s1 + $0x2ec] sm:$0xf]  ;;  %v9739_v13 = vld [vmem:[%s18228_s1 + $0x2f8] sm:$0xf0] }
 0x22b   : > { %v3853_v19 = vpop.f32.mrf.mxu3  ;;  %v4742_v63 = vor.u32 %v4740_v48, %v4739_v40  ;;  %v4753_v39 = vrot.slane %v4739_v40, 4  ;;  %v4656_v53 = vmax.f32 %v4624_v15, 0.0  ;;  %v3825_v17 = vadd.f32 %v3824_v35, %v3796_v47  ;;  %v12568_v14 = vld [vmem:[%s18228_s1 + $0xec] sm:$0xf]  ;;  %v4875_v47 = vld [vmem:[#allocation2 + $0x60] sm:$0xff] }
 0x22c   : > { %18465 = vst [vmem:[#allocation7_spill] sm:$0xff] %v15993_v5  ;;  %v9742_v60 = vor.u32 %v12632_v52, %v9739_v13  ;;  %v9486_v40 = vor.u32 %v12568_v14, %v9483_v1  ;;  %v12664_v48 = vld [vmem:[%s18228_s1 + $0x3ec] sm:$0xf]  ;;  %v9867_v15 = vld [vmem:[%s18228_s1 + $0x3f8] sm:$0xf0]  ;;  %v3743_v57 = vadd.f32 %v15713_v59, %v3714_v4 }
 0x22d   : > { %18468 = vst [vmem:[#allocation6_spill] sm:$0xff] %v15998_v61  ;;  %v4743_v54 = vsel %vm13728_vm14, %v4735_v2, %v4742_v63  ;;  %v4870_v12 = vsel %vm13590_vm7, %v4753_v39, %v4869_v25  ;;  %v16005_v22 = vpack.c.bf16 %v4656_v53, %v4655_v37  ;;  %v3854_v62 = vadd.f32 %v3853_v19, %v3825_v17  ;;  %v12600_v2 = vld [vmem:[%s18228_s1 + $0x1ec] sm:$0xf]  ;;  %v9611_v25 = vld [vmem:[%s18228_s1 + $0x1f8] sm:$0xf0] }
 0x22e   : > { %v3769_v27 = vpop.f32.mrf.mxu0  ;;  %v3798_v41 = vpop.f32.mrf.mxu1  ;;  %4867 = vst [vmem:[#allocation2 + $0x40] sm:$0xff] %v4743_v54  ;;  %v12628_v35 = vld [vmem:[%s18228_s1 + $0x2cc] sm:$0xf]  ;;  %v4663_v19 = vmax.f32 %v16012_v6, 0.0  ;;  %4267 = vmatpush.bf16.msrb.mxu2 %v9742_v60  ;;  %4209 = vmatpush.bf16.msrb.mxu0 %v9486_v40  ;;  %v9614_v58 = vor.u32 %v12600_v2, %v9611_v25  ;;  %v9467_v54 = vld [vmem:[%s18228_s1 + $0xd8] sm:$0xf0] }
 0x22f   : > { %v3770_v26 = vadd.f32 %v3769_v27, %v3741_v0  ;;  %4871 = vst [vmem:[#allocation2 + $0x50] sm:$0x11] %v4870_v12  ;;  %v4756_v20 = vshrl.u32 %v16005_v22, 16  ;;  %v4759_v7 = vshll.u32 %v16005_v22, 16  ;;  %v4587_v37 = vmul.f32 %v15761_v24, %v3854_v62  ;;  %4058 = vmatmul.bf16.gmra.mxu2 %v18472_v9  ;;  %v9723_v27 = vld [vmem:[%s18228_s1 + $0x2d8] sm:$0xf0] }
 0x230   : > { %4087 = vmatmul.bf16.gmra.mxu3 %v18473_v3  ;;  %v9870_v0 = vor.u32 %v12664_v48, %v9867_v15  ;;  %v12660_v12 = vld [vmem:[%s18228_s1 + $0x3cc] sm:$0xf]  ;;  %v9851_v62 = vld [vmem:[%s18228_s1 + $0x3d8] sm:$0xf0]  ;;  %4238 = vmatpush.bf16.msrb.mxu1 %v9614_v58  ;;  %v5120_v60 = vunpack.c.h.b16 %v16005_v22  ;;  %v18474_v58 = vld [vmem:[#allocation50_spill] sm:$0xff] }
 0x231   : > { %4000 = vmatmul.bf16.gmra.mxu0 %v18470_v10  ;;  %4029 = vmatmul.bf16.gmra.mxu1 %v18471_v8  ;;  %v3799_v51 = vadd.f32 %v3798_v41, %v3770_v26  ;;  %v16031_v16 = vrot.slane %v4756_v20, 7  ;;  %v4628_v18 = vadd.f32 %v15768_v42, %v4587_v37  ;;  %v12564_v41 = vld [vmem:[%s18228_s1 + $0xcc] sm:$0xf]  ;;  %v9726_v26 = vor.u32 %v12628_v35, %v9723_v27  ;;  %v9579_v35 = vld [vmem:[%s18228_s1 + $0x1b8] sm:$0xf0] }
 0x232   : > { %v3827_v44 = vpop.f32.mrf.mxu2  ;;  %4296 = vmatpush.bf16.msrb.mxu3 %v9870_v0  ;;  %v9470_v37 = vor.u32 %v12564_v41, %v9467_v54  ;;  %v12596_v52 = vld [vmem:[%s18228_s1 + $0x1cc] sm:$0xf]  ;;  %v9854_v14 = vor.u32 %v12660_v12, %v9851_v62  ;;  %v4883_v0 = vld [vmem:[#allocation2 + $0x80] sm:$0x11] }
 0x233   : > { %v3856_v32 = vpop.f32.mrf.mxu3  ;;  %v4761_v63 = vor.u32 %v4759_v7, %v16031_v16  ;;  %v4660_v59 = vmax.f32 %v4628_v18, 0.0  ;;  %v3828_v39 = vadd.f32 %v3827_v44, %v3799_v51  ;;  %v9595_v51 = vld [vmem:[%s18228_s1 + $0x1d8] sm:$0xf0]  ;;  %v12624_v13 = vld [vmem:[%s18228_s1 + $0x2ac] sm:$0xf]  ;;  %v5119_v18 = vunpack.c.l.b16 %v16005_v22  ;;  %4268 = vmatpush.bf16.msrb.mxu2 %v9726_v26 }
 0x234   : > { %v9598_v1 = vor.u32 %v12596_v52, %v9595_v51  ;;  %v4769_v40 = vrot.slane %v16031_v16, 4  ;;  %4210 = vmatpush.bf16.msrb.mxu0 %v9470_v37  ;;  %v9451_v44 = vld [vmem:[%s18228_s1 + $0xb8] sm:$0xf0]  ;;  %v12592_v25 = vld [vmem:[%s18228_s1 + $0x1ac] sm:$0xf]  ;;  %v4594_v26 = vmul.f32 %v15725_v21, %v18474_v58 }
 0x235   : > { %v4876_v4 = vsel %vm13745_vm15, %v4761_v63, %v4875_v47  ;;  %v4681_v20 = vpack.c.bf16 %v4660_v59, %v4659_v36  ;;  %v3857_v7 = vadd.f32 %v3856_v32, %v3828_v39  ;;  %v9707_v36 = vld [vmem:[%s18228_s1 + $0x2b8] sm:$0xf0]  ;;  %v12560_v47 = vld [vmem:[%s18228_s1 + $0xac] sm:$0xf]  ;;  %v9582_v62 = vor.u32 %v12592_v25, %v9579_v35 }
 0x236   : > { %v3771_v53 = vpop.f32.mrf.mxu0  ;;  %v3800_v17 = vpop.f32.mrf.mxu1  ;;  %4877 = vst [vmem:[#allocation2 + $0x60] sm:$0xff] %v4876_v4  ;;  %v12656_v32 = vld [vmem:[%s18228_s1 + $0x3ac] sm:$0xf]  ;;  %4297 = vmatpush.bf16.msrb.mxu3 %v9854_v14  ;;  %v9454_v22 = vor.u32 %v12560_v47, %v9451_v44  ;;  %v9835_v16 = vld [vmem:[%s18228_s1 + $0x3b8] sm:$0xf0]  ;;  %4239 = vmatpush.bf16.msrb.mxu1 %v9598_v1 }
 0x237   : > { %v3772_v50 = vadd.f32 %v3771_v53, %v3743_v57  ;;  %v4771_v48 = vshrl.u32 %v4681_v20, 16  ;;  %v4591_v15 = vmul.f32 %v15761_v24, %v3857_v7  ;;  %v9710_v57 = vor.u32 %v12624_v13, %v9707_v36  ;;  %v12620_v41 = vld [vmem:[%s18228_s1 + $0x28c] sm:$0xf]  ;;  %v9819_v47 = vld [vmem:[%s18228_s1 + $0x398] sm:$0xf0] }
 0x238   : > { %v5123_v63 = vunpack.c.l.b16 %v4681_v20  ;;  %v5124_v59 = vunpack.c.h.b16 %v4681_v20  ;;  %v4774_v53 = vshll.u32 %v4681_v20, 16  ;;  %v9838_v27 = vor.u32 %v12656_v32, %v9835_v16  ;;  %v12556_v4 = vld [vmem:[%s18228_s1 + $0x8c] sm:$0xf]  ;;  %v9435_v20 = vld [vmem:[%s18228_s1 + $0x98] sm:$0xf0]  ;;  %4211 = vmatpush.bf16.msrb.mxu0 %v9454_v22 }
 0x239   : > { %v3801_v2 = vadd.f32 %v3800_v17, %v3772_v50  ;;  %v4773_v39 = vrot.slane %v4771_v48, 7  ;;  %v4632_v17 = vadd.f32 %v15768_v42, %v4591_v15  ;;  %v9691_v50 = vld [vmem:[%s18228_s1 + $0x298] sm:$0xf0]  ;;  %v12652_v7 = vld [vmem:[%s18228_s1 + $0x38c] sm:$0xf]  ;;  %4269 = vmatpush.bf16.msrb.mxu2 %v9710_v57  ;;  %v9438_v44 = vor.u32 %v12556_v4, %v9435_v20 }
 0x23a   : > { %v3829_v54 = vpop.f32.mrf.mxu2  ;;  %v16121_v37 = vpack.c.b16 %v5123_v63, %v5119_v18  ;;  %v16123_v52 = vpack.c.b16 %v5124_v59, %v5120_v60  ;;  %4298 = vmatpush.bf16.msrb.mxu3 %v9838_v27  ;;  %v9694_v15 = vor.u32 %v12620_v41, %v9691_v50  ;;  %v9822_v18 = vor.u32 %v12652_v7, %v9819_v47  ;;  %v18477_v22 = vld [vmem:[#allocation33_spill] sm:$0xff]  ;;  %v12588_v16 = vld [vmem:[%s18228_s1 + $0x18c] sm:$0xf]  ;;  %v18480_v59 = vld [vmem:[#allocation36_spill] sm:$0xff] }
 0x23b   : > { %v3858_v12 = vpop.f32.mrf.mxu3  ;;  %v4776_v21 = vor.u32 %v4774_v53, %v4773_v39  ;;  %v4787_v51 = vrot.slane %v4773_v39, 4  ;;  %v4664_v13 = vmax.f32 %v4632_v17, 0.0  ;;  %v3830_v14 = vadd.f32 %v3829_v54, %v3801_v2  ;;  %v9563_v25 = vld [vmem:[%s18228_s1 + $0x198] sm:$0xf0]  ;;  %v18479_v63 = vld [vmem:[#allocation35_spill] sm:$0xff]  ;;  %4240 = vmatpush.bf16.msrb.mxu1 %v9582_v62 }
 0x23c   : > { %18475 = vst [vmem:[#allocation52_spill] sm:$0xff] %v16121_v37  ;;  %v12616_v39 = vld [vmem:[%s18228_s1 + $0x26c] sm:$0xf]  ;;  %v9566_v53 = vor.u32 %v12588_v16, %v9563_v25  ;;  %4212 = vmatpush.bf16.msrb.mxu0 %v9438_v44  ;;  %v9803_v54 = vld [vmem:[%s18228_s1 + $0x378] sm:$0xf0] }
 0x23d   : > { %18476 = vst [vmem:[#allocation49_spill] sm:$0xff] %v16123_v52  ;;  %v4777_v60 = vsel %vm13728_vm14, %v4769_v40, %v4776_v21  ;;  %v4884_v32 = vsel %vm13590_vm7, %v4787_v51, %v4883_v0  ;;  %v16134_v2 = vpack.c.bf16 %v4664_v13, %v4663_v19  ;;  %v3859_v57 = vadd.f32 %v3858_v12, %v3830_v14  ;;  %v18478_v40 = vld [vmem:[#allocation34_spill] sm:$0xff]  ;;  %v12552_v17 = vld [vmem:[%s18228_s1 + $0x6c] sm:$0xf]  ;;  %v4889_v12 = vld [vmem:[#allocation2 + $0x90] sm:$0xff] }
 0x23e   : > { %v3870_v1 = vpop.f32.mrf.mxu0  ;;  %v3899_v36 = vpop.f32.mrf.mxu1  ;;  %4881 = vst [vmem:[#allocation2 + $0x70] sm:$0xff] %v4777_v60  ;;  %v4635_v0 = vadd.f32 %v15756_v55, %v4594_v26  ;;  %4270 = vmatpush.bf16.msrb.mxu2 %v9694_v15  ;;  %v9675_v55 = vld [vmem:[%s18228_s1 + $0x278] sm:$0xf0]  ;;  %4299 = vmatpush.bf16.msrb.mxu3 %v9822_v18  ;;  %v12648_v26 = vld [vmem:[%s18228_s1 + $0x36c] sm:$0xf] }
 0x23f   : > { %v3900_v48 = vadd.f32 %v3899_v36, %v3870_v1  ;;  %4885 = vst [vmem:[#allocation2 + $0x80] sm:$0x11] %v4884_v32  ;;  %v4790_v6 = vshrl.u32 %v16134_v2, 16  ;;  %v4793_v19 = vshll.u32 %v16134_v2, 16  ;;  %v4595_v35 = vmul.f32 %v15761_v24, %v3859_v57  ;;  %4159 = vmatmul.bf16.vlgmr.msra.gmra.mxu2 %v18479_v63  ;;  %v9419_v24 = vld [vmem:[%s18228_s1 + $0x78] sm:$0xf0]  ;;  %4241 = vmatpush.bf16.msrb.mxu1 %v9566_v53 }
 0x240   : > { %4188 = vmatmul.bf16.vlgmr.msra.gmra.mxu3 %v18480_v59  ;;  %v9678_v50 = vor.u32 %v12616_v39, %v9675_v55  ;;  %v9422_v58 = vor.u32 %v12552_v17, %v9419_v24  ;;  %v9806_v20 = vor.u32 %v12648_v26, %v9803_v54  ;;  %v4667_v7 = vmax.f32 %v4635_v0, 0.0  ;;  %v12584_v44 = vld [vmem:[%s18228_s1 + $0x16c] sm:$0xf]  ;;  %v9659_v32 = vld [vmem:[%s18228_s1 + $0x258] sm:$0xf0] }
 0x241   : > { %4101 = vmatmul.bf16.vlgmr.msra.gmra.mxu0 %v18477_v22  ;;  %4130 = vmatmul.bf16.vlgmr.msra.gmra.mxu1 %v18478_v40  ;;  %v16162_v27 = vrot.slane %v4790_v6, 7  ;;  %v4636_v41 = vadd.f32 %v15768_v42, %v4595_v35  ;;  %v12612_v18 = vld [vmem:[%s18228_s1 + $0x24c] sm:$0xf]  ;;  %v9403_v0 = vld [vmem:[%s18228_s1 + $0x58] sm:$0xf0]  ;;  %v5127_v53 = vunpack.c.l.b16 %v16134_v2  ;;  %v5128_v55 = vunpack.c.h.b16 %v16134_v2 }
 0x242   : > { %v3928_v62 = vpop.f32.mrf.mxu2  ;;  %4271 = vmatpush.bf16.msrb.mxu2 %v9678_v50  ;;  %4213 = vmatpush.bf16.msrb.mxu0 %v9422_v58  ;;  %v12548_v57 = vld [vmem:[%s18228_s1 + $0x4c] sm:$0xf]  ;;  %v9662_v25 = vor.u32 %v12612_v18, %v9659_v32  ;;  %v9787_v39 = vld [vmem:[%s18228_s1 + $0x358] sm:$0xf0]  ;;  %v4897_v58 = vld [vmem:[#allocation2 + $0xb0] sm:$0x11] }
 0x243   : > { %v3957_v4 = vpop.f32.mrf.mxu3  ;;  %v4795_v21 = vor.u32 %v4793_v19, %v16162_v27  ;;  %v4668_v42 = vmax.f32 %v4636_v41, 0.0  ;;  %v3929_v51 = vadd.f32 %v3928_v62, %v3900_v48  ;;  %4300 = vmatpush.bf16.msrb.mxu3 %v9806_v20  ;;  %v9547_v48 = vld [vmem:[%s18228_s1 + $0x178] sm:$0xf0]  ;;  %v12644_v6 = vld [vmem:[%s18228_s1 + $0x34c] sm:$0xf]  ;;  %v9406_v35 = vor.u32 %v12548_v57, %v9403_v0 }
 0x244   : > { %v9550_v60 = vor.u32 %v12584_v44, %v9547_v48  ;;  %v9790_v50 = vor.u32 %v12644_v6, %v9787_v39  ;;  %v18484_v44 = vld [vmem:[#allocation38_spill] sm:$0xff]  ;;  %v18485_v18 = vld [vmem:[#allocation39_spill] sm:$0xff]  ;;  %v9643_v57 = vld [vmem:[%s18228_s1 + $0x238] sm:$0xf0] }
 0x245   : > { %v4890_v36 = vsel %vm13745_vm15, %v4795_v21, %v4889_v12  ;;  %v4685_v47 = vpack.c.bf16 %v4668_v42, %v4667_v7  ;;  %v16174_v15 = vadd.f32 %v3957_v4, %v3929_v51  ;;  %v4803_v4 = vrot.slane %v16162_v27, 4  ;;  %v12580_v27 = vld [vmem:[%s18228_s1 + $0x14c] sm:$0xf]  ;;  %v9387_v0 = vld [vmem:[%s18228_s1 + $0x38] sm:$0xf0] }
 0x246   : > { %v3872_v13 = vpop.f32.mrf.mxu0  ;;  %v3901_v14 = vpop.f32.mrf.mxu1  ;;  %4891 = vst [vmem:[#allocation2 + $0x90] sm:$0xff] %v4890_v36  ;;  %4242 = vmatpush.bf16.msrb.mxu1 %v9550_v60  ;;  %4272 = vmatpush.bf16.msrb.mxu2 %v9662_v25  ;;  %v18486_v60 = vld [vmem:[#allocation40_spill] sm:$0xff]  ;;  %v12608_v32 = vld [vmem:[%s18228_s1 + $0x22c] sm:$0xf] }
 0x247   : > { %v3902_v1 = vadd.f32 %v3901_v14, %v3872_v13  ;;  %v4805_v16 = vshrl.u32 %v4685_v47, 16  ;;  %v5131_v19 = vunpack.c.l.b16 %v4685_v47  ;;  %v5132_v17 = vunpack.c.h.b16 %v4685_v47  ;;  %4214 = vmatpush.bf16.msrb.mxu0 %v9406_v35  ;;  %4301 = vmatpush.bf16.msrb.mxu3 %v9790_v50  ;;  %v12544_v25 = vld [vmem:[%s18228_s1 + $0x2c] sm:$0xf]  ;;  %v9771_v35 = vld [vmem:[%s18228_s1 + $0x338] sm:$0xf0] }
 0x248   : > { %v4808_v41 = vshll.u32 %v4685_v47, 16  ;;  %v18483_v47 = vld [vmem:[#allocation37_spill] sm:$0xff]  ;;  %v12640_v6 = vld [vmem:[%s18228_s1 + $0x32c] sm:$0xf] }
 0x249   : > { %v4807_v24 = vrot.slane %v4805_v16, 7  ;;  %v16202_v12 = vpack.c.b16 %v5131_v19, %v5127_v53  ;;  %v16204_v62 = vpack.c.b16 %v5132_v17, %v5128_v55  ;;  %v9646_v16 = vor.u32 %v12608_v32, %v9643_v57  ;;  %v12572_v32 = vld [vmem:[%s18228_s1 + $0x10c] sm:$0xf]  ;;  %v9499_v57 = vld [vmem:[%s18228_s1 + $0x118] sm:$0xf0] }
 0x24a   : > { %v3930_v26 = vpop.f32.mrf.mxu2  ;;  %v9390_v19 = vor.u32 %v12544_v25, %v9387_v0  ;;  %v9774_v55 = vor.u32 %v12640_v6, %v9771_v35  ;;  %v9502_v6 = vor.u32 %v12572_v32, %v9499_v57  ;;  %v10123_v32 = vld [vmem:[%s18228_s1 + $0x5f8] sm:$0xf0] }
 0x24b   : > { %v3959_v54 = vpop.f32.mrf.mxu3  ;;  %18481 = vst [vmem:[#allocation51_spill] sm:$0xff] %v16202_v12  ;;  %v4810_v20 = vor.u32 %v4808_v41, %v4807_v24  ;;  %v4821_v7 = vrot.slane %v4807_v24, 4  ;;  %v3931_v21 = vadd.f32 %v3930_v26, %v3902_v1  ;;  %v9531_v1 = vld [vmem:[%s18228_s1 + $0x158] sm:$0xf0]  ;;  %4273 = vmatpush.bf16.msrb.mxu2 %v9646_v16  ;;  %v12576_v26 = vld [vmem:[%s18228_s1 + $0x12c] sm:$0xf] }
 0x24c   : > { %18482 = vst [vmem:[#allocation53_spill] sm:$0xff] %v16204_v62  ;;  %v9534_v48 = vor.u32 %v12580_v27, %v9531_v1  ;;  %4215 = vmatpush.bf16.msrb.mxu0 %v9390_v19  ;;  %4302 = vmatpush.bf16.msrb.mxu3 %v9774_v55  ;;  %v18489_v55 = vld [vmem:[#allocation43_spill] sm:$0xff] }
 0x24d   : > { %v4811_v13 = vsel %vm13728_vm14, %v4803_v4, %v4810_v20  ;;  %v4898_v14 = vsel %vm13590_vm7, %v4821_v7, %v4897_v58  ;;  %v16211_v36 = vadd.f32 %v3959_v54, %v3931_v21  ;;  %v9515_v54 = vld [vmem:[%s18228_s1 + $0x138] sm:$0xf0]  ;;  %v12604_v4 = vld [vmem:[%s18228_s1 + $0x20c] sm:$0xf] }
 0x24e   : > { %v3875_v42 = vpop.f32.mrf.mxu0  ;;  %v3904_v2 = vpop.f32.mrf.mxu1  ;;  %4895 = vst [vmem:[#allocation2 + $0xa0] sm:$0xff] %v4811_v13  ;;  %4243 = vmatpush.bf16.msrb.mxu1 %v9534_v48  ;;  %v9518_v20 = vor.u32 %v12576_v26, %v9515_v54  ;;  %v9627_v7 = vld [vmem:[%s18228_s1 + $0x218] sm:$0xf0]  ;;  %v12540_v21 = vld [vmem:[%s18228_s1 + $0xc] sm:$0xf] }
 0x24f   : > { %v3905_v51 = vadd.f32 %v3904_v2, %v3875_v42  ;;  %4899 = vst [vmem:[#allocation2 + $0xb0] sm:$0x11] %v4898_v14  ;;  %4164 = vmatmul.bf16.gmra.mxu2 %v18485_v18  ;;  %v9371_v42 = vld [vmem:[%s18228_s1 + $0x18] sm:$0xf0]  ;;  %v9630_v2 = vor.u32 %v12604_v4, %v9627_v7  ;;  %v12636_v13 = vld [vmem:[%s18228_s1 + $0x30c] sm:$0xf] }
 0x250   : > { %4193 = vmatmul.bf16.gmra.mxu3 %v18486_v60  ;;  %v9755_v14 = vld [vmem:[%s18228_s1 + $0x318] sm:$0xf0]  ;;  %v12792_v4 = vld [vmem:[%s18228_s1 + $0x7ec] sm:$0xf] }
 0x251   : > { %4106 = vmatmul.bf16.gmra.mxu0 %v18483_v47  ;;  %4135 = vmatmul.bf16.gmra.mxu1 %v18484_v44  ;;  %v9758_v27 = vor.u32 %v12636_v13, %v9755_v14  ;;  %v9995_v54 = vld [vmem:[%s18228_s1 + $0x4f8] sm:$0xf0] }
 0x252   : > { %v3933_v39 = vpop.f32.mrf.mxu2  ;;  %4244 = vmatpush.bf16.msrb.mxu1 %v9518_v20  ;;  %4274 = vmatpush.bf16.msrb.mxu2 %v9630_v2  ;;  %v10379_v20 = vld [vmem:[%s18228_s1 + $0x7f8] sm:$0xf0] }
 0x253   : > { %v3962_v53 = vpop.f32.mrf.mxu3  ;;  %v3934_v17 = vadd.f32 %v3933_v39, %v3905_v51  ;;  %v9374_v51 = vor.u32 %v12540_v21, %v9371_v42  ;;  %4303 = vmatpush.bf16.msrb.mxu3 %v9758_v27  ;;  %v18487_v39 = vld [vmem:[#allocation41_spill] sm:$0xff]  ;;  %v10382_v21 = vor.u32 %v12792_v4, %v10379_v20 }
 0x255   : > { %v16241_v58 = vadd.f32 %v3962_v53, %v3934_v17  ;;  %4216 = vmatpush.bf16.msrb.mxu0 %v9374_v51  ;;  %v18488_v53 = vld [vmem:[#allocation42_spill] sm:$0xff]  ;;  %v18490_v17 = vld [vmem:[#allocation44_spill] sm:$0xff] }
 0x256   : > { %v3877_v24 = vpop.f32.mrf.mxu0  ;;  %v3906_v41 = vpop.f32.mrf.mxu1  ;;  %4245 = vmatpush.bf16.msrb.mxu1 %v9502_v6 }
 0x257   : > { %v3907_v50 = vadd.f32 %v3906_v41, %v3877_v24  ;;  %v12760_v24 = vld [vmem:[%s18228_s1 + $0x6ec] sm:$0xf]  ;;  %v10251_v41 = vld [vmem:[%s18228_s1 + $0x6f8] sm:$0xf0]  ;;  %4412 = vmatpush.bf16.msra.mxu3 %v10382_v21 }
 0x258   : > { %v10254_v26 = vor.u32 %v12760_v24, %v10251_v41  ;;  %v12788_v24 = vld [vmem:[%s18228_s1 + $0x7cc] sm:$0xf]  ;;  %v10363_v41 = vld [vmem:[%s18228_s1 + $0x7d8] sm:$0xf0] }
 0x25a   : > { %v3935_v1 = vpop.f32.mrf.mxu2  ;;  %4383 = vmatpush.bf16.msra.mxu2 %v10254_v26  ;;  %v10366_v26 = vor.u32 %v12788_v24, %v10363_v41  ;;  %v12784_v24 = vld [vmem:[%s18228_s1 + $0x7ac] sm:$0xf]  ;;  %v10347_v41 = vld [vmem:[%s18228_s1 + $0x7b8] sm:$0xf0] }
 0x25b   : > { %v3964_v48 = vpop.f32.mrf.mxu3  ;;  %v3936_v16 = vadd.f32 %v3935_v1, %v3907_v50  ;;  %v12696_v50 = vld [vmem:[%s18228_s1 + $0x4ec] sm:$0xf] }
 0x25c   : > { %v9998_v7 = vor.u32 %v12696_v50, %v9995_v54  ;;  %4413 = vmatpush.bf16.msra.mxu3 %v10366_v26  ;;  %v10350_v26 = vor.u32 %v12784_v24, %v10347_v41  ;;  %v9947_v24 = vld [vmem:[%s18228_s1 + $0x498] sm:$0xf0]  ;;  %v12780_v41 = vld [vmem:[%s18228_s1 + $0x78c] sm:$0xf] }
 0x25d   : > { %v16273_v35 = vadd.f32 %v3964_v48, %v3936_v16  ;;  %v12728_v48 = vld [vmem:[%s18228_s1 + $0x5ec] sm:$0xf] }
 0x25e   : > { %v3880_v25 = vpop.f32.mrf.mxu0  ;;  %v3909_v0 = vpop.f32.mrf.mxu1  ;;  %4325 = vmatpush.bf16.msra.mxu0 %v9998_v7  ;;  %v10126_v57 = vor.u32 %v12728_v48, %v10123_v32  ;;  %v12756_v16 = vld [vmem:[%s18228_s1 + $0x6cc] sm:$0xf]  ;;  %v18492_v48 = vld [vmem:[#allocation46_spill] sm:$0xff] }
 0x25f   : > { %v3910_v19 = vadd.f32 %v3909_v0, %v3880_v25  ;;  %4169 = vmatmul.bf16.gmra.mxu2 %v18489_v55  ;;  %v10235_v25 = vld [vmem:[%s18228_s1 + $0x6d8] sm:$0xf0]  ;;  %v12692_v0 = vld [vmem:[%s18228_s1 + $0x4cc] sm:$0xf] }
 0x260   : > { %4198 = vmatmul.bf16.gmra.mxu3 %v18490_v17  ;;  %v10238_v6 = vor.u32 %v12756_v16, %v10235_v25  ;;  %4354 = vmatpush.bf16.msra.mxu1 %v10126_v57  ;;  %v18493_v57 = vld [vmem:[#allocation47_spill] sm:$0xff]  ;;  %v10219_v25 = vld [vmem:[%s18228_s1 + $0x6b8] sm:$0xf0] }
 0x261   : > { %4111 = vmatmul.bf16.gmra.mxu0 %v18487_v39  ;;  %4140 = vmatmul.bf16.gmra.mxu1 %v18488_v53  ;;  %v12752_v16 = vld [vmem:[%s18228_s1 + $0x6ac] sm:$0xf] }
 0x262   : > { %v3938_v42 = vpop.f32.mrf.mxu2  ;;  %4384 = vmatpush.bf16.msra.mxu2 %v10238_v6  ;;  %v10222_v6 = vor.u32 %v12752_v16, %v10219_v25  ;;  %4414 = vmatpush.bf16.msra.mxu3 %v10350_v26  ;;  %v10091_v16 = vld [vmem:[%s18228_s1 + $0x5b8] sm:$0xf0] }
 0x263   : > { %v3967_v2 = vpop.f32.mrf.mxu3  ;;  %v3939_v51 = vadd.f32 %v3938_v42, %v3910_v19  ;;  %v9979_v19 = vld [vmem:[%s18228_s1 + $0x4d8] sm:$0xf0] }
 0x264   : > { %v9982_v50 = vor.u32 %v12692_v0, %v9979_v19  ;;  %v12688_v0 = vld [vmem:[%s18228_s1 + $0x4ac] sm:$0xf]  ;;  %v9963_v19 = vld [vmem:[%s18228_s1 + $0x4b8] sm:$0xf0] }
 0x265   : > { %v16297_v1 = vadd.f32 %v3967_v2, %v3939_v51  ;;  %v18491_v51 = vld [vmem:[#allocation45_spill] sm:$0xff] }
 0x266   : > { %v3882_v13 = vpop.f32.mrf.mxu0  ;;  %v3911_v14 = vpop.f32.mrf.mxu1  ;;  %4326 = vmatpush.bf16.msra.mxu0 %v9982_v50  ;;  %v9966_v50 = vor.u32 %v12688_v0, %v9963_v19  ;;  %4385 = vmatpush.bf16.msra.mxu2 %v10222_v6  ;;  %v10203_v0 = vld [vmem:[%s18228_s1 + $0x698] sm:$0xf0]  ;;  %v12684_v6 = vld [vmem:[%s18228_s1 + $0x48c] sm:$0xf] }
 0x267   : > { %v3912_v27 = vadd.f32 %v3911_v14, %v3882_v13  ;;  %v12724_v13 = vld [vmem:[%s18228_s1 + $0x5cc] sm:$0xf]  ;;  %v10107_v14 = vld [vmem:[%s18228_s1 + $0x5d8] sm:$0xf0]  ;;  %v9950_v26 = vor.u32 %v12684_v6, %v9947_v24  ;;  %v18496_v24 = vld [vmem:[#allocation10_spill] sm:$0xff] }
 0x268   : > { %v10110_v32 = vor.u32 %v12724_v13, %v10107_v14  ;;  %v10075_v6 = vld [vmem:[%s18228_s1 + $0x598] sm:$0xf0] }
 0x26a   : > { %v3940_v54 = vpop.f32.mrf.mxu2  ;;  %4355 = vmatpush.bf16.msra.mxu1 %v10110_v32  ;;  %4327 = vmatpush.bf16.msra.mxu0 %v9966_v50  ;;  %v12720_v32 = vld [vmem:[%s18228_s1 + $0x5ac] sm:$0xf]  ;;  %v10331_v50 = vld [vmem:[%s18228_s1 + $0x798] sm:$0xf0] }
 0x26b   : > { %v3969_v4 = vpop.f32.mrf.mxu3  ;;  %v3941_v20 = vadd.f32 %v3940_v54, %v3912_v27  ;;  %v18494_v27 = vld [vmem:[#allocation48_spill] sm:$0xff]  ;;  %v10094_v25 = vor.u32 %v12720_v32, %v10091_v16 }
 0x26d   : > { %v16323_v2 = vadd.f32 %v3969_v4, %v3941_v20 }
 0x26e   : > { %v3885_v7 = vpop.f32.mrf.mxu0  ;;  %v3914_v21 = vpop.f32.mrf.mxu1  ;;  %4356 = vmatpush.bf16.msra.mxu1 %v10094_v25  ;;  %4328 = vmatpush.bf16.msra.mxu0 %v9950_v26  ;;  %v12716_v25 = vld [vmem:[%s18228_s1 + $0x58c] sm:$0xf]  ;;  %v10187_v26 = vld [vmem:[%s18228_s1 + $0x678] sm:$0xf0] }
 0x26f   : > { %v3915_v42 = vadd.f32 %v3914_v21, %v3885_v7  ;;  %4174 = vmatmul.bf16.gmra.mxu2 %v18493_v57 }
 0x270   : > { %4203 = vmatmul.bf16.gmra.mxu3 %v18494_v27 }
 0x271   : > { %4116 = vmatmul.bf16.gmra.mxu0 %v18491_v51  ;;  %4145 = vmatmul.bf16.gmra.mxu1 %v18492_v48 }
 0x272   : > { %v3943_v54 = vpop.f32.mrf.mxu2 }
 0x273   : > { %v3972_v4 = vpop.f32.mrf.mxu3  ;;  %v3944_v20 = vadd.f32 %v3943_v54, %v3915_v42  ;;  %v12748_v42 = vld [vmem:[%s18228_s1 + $0x68c] sm:$0xf]  ;;  %v10334_v54 = vor.u32 %v12780_v41, %v10331_v50  ;;  %v18498_v50 = vld [vmem:[#allocation12_spill] sm:$0xff] }
 0x274   : > { %v10206_v19 = vor.u32 %v12748_v42, %v10203_v0  ;;  %v18495_v0 = vld [vmem:[#allocation9_spill] sm:$0xff]  ;;  %v18497_v41 = vld [vmem:[#allocation11_spill] sm:$0xff] }
 0x275   : > { %v16353_v14 = vadd.f32 %v3972_v4, %v3944_v20  ;;  %4415 = vmatpush.bf16.msra.mxu3 %v10334_v54  ;;  %v12680_v54 = vld [vmem:[%s18228_s1 + $0x46c] sm:$0xf] }
 0x276   : > { %v3887_v7 = vpop.f32.mrf.mxu0  ;;  %v3916_v21 = vpop.f32.mrf.mxu1  ;;  %4386 = vmatpush.bf16.msra.mxu2 %v10206_v19 }
 0x277   : > { %v3917_v13 = vadd.f32 %v3916_v21, %v3887_v7 }
 0x27a   : > { %v3945_v4 = vpop.f32.mrf.mxu2 }
 0x27b   : > { %v3974_v20 = vpop.f32.mrf.mxu3  ;;  %v3946_v7 = vadd.f32 %v3945_v4, %v3917_v13  ;;  %v10078_v13 = vor.u32 %v12716_v25, %v10075_v6 }
 0x27d   : > { %v16380_v42 = vadd.f32 %v3974_v20, %v3946_v7  ;;  %4357 = vmatpush.bf16.msra.mxu1 %v10078_v13  ;;  %v9931_v20 = vld [vmem:[%s18228_s1 + $0x478] sm:$0xf0]  ;;  %v12776_v7 = vld [vmem:[%s18228_s1 + $0x76c] sm:$0xf] }
 0x27e   : > { %v3986_v21 = vpop.f32.mrf.mxu0  ;;  %v4015_v32 = vpop.f32.mrf.mxu1 }
 0x27f   : > { %v3987_v16 = vadd.f32 %v3986_v21, %v16174_v15  ;;  %4275 = vmatmul.bf16.vlgmr.msrb.gmra.mxu2 %v18497_v41  ;;  %v12744_v15 = vld [vmem:[%s18228_s1 + $0x66c] sm:$0xf]  ;;  %v10315_v21 = vld [vmem:[%s18228_s1 + $0x778] sm:$0xf0] }
 0x280   : > { %4304 = vmatmul.bf16.vlgmr.msrb.gmra.mxu3 %v18498_v50  ;;  %v10190_v4 = vor.u32 %v12744_v15, %v10187_v26  ;;  %v12712_v15 = vld [vmem:[%s18228_s1 + $0x56c] sm:$0xf]  ;;  %v10059_v26 = vld [vmem:[%s18228_s1 + $0x578] sm:$0xf0] }
 0x281   : > { %4217 = vmatmul.bf16.vlgmr.msrb.gmra.mxu0 %v18495_v0  ;;  %v4016_v19 = vadd.f32 %v4015_v32, %v3987_v16  ;;  %4246 = vmatmul.bf16.vlgmr.msrb.gmra.mxu1 %v18496_v24  ;;  %v9934_v32 = vor.u32 %v12680_v54, %v9931_v20  ;;  %v10318_v16 = vor.u32 %v12776_v7, %v10315_v21  ;;  %v9915_v21 = vld [vmem:[%s18228_s1 + $0x458] sm:$0xf0] }
 0x282   : > { %v4044_v0 = vpop.f32.mrf.mxu2  ;;  %4387 = vmatpush.bf16.msra.mxu2 %v10190_v4  ;;  %v10062_v20 = vor.u32 %v12712_v15, %v10059_v26  ;;  %v12676_v4 = vld [vmem:[%s18228_s1 + $0x44c] sm:$0xf] }
 0x283   : > { %v4073_v25 = vpop.f32.mrf.mxu3  ;;  %v4045_v6 = vadd.f32 %v4044_v0, %v4016_v19  ;;  %4329 = vmatpush.bf16.msra.mxu0 %v9934_v32  ;;  %4416 = vmatpush.bf16.msra.mxu3 %v10318_v16  ;;  %v12740_v19 = vld [vmem:[%s18228_s1 + $0x64c] sm:$0xf]  ;;  %v10299_v16 = vld [vmem:[%s18228_s1 + $0x758] sm:$0xf0]  ;;  %v9918_v0 = vor.u32 %v12676_v4, %v9915_v21  ;;  %v18500_v21 = vld [vmem:[#allocation14_spill] sm:$0xff] }
 0x284   : > { %v12772_v32 = vld [vmem:[%s18228_s1 + $0x74c] sm:$0xf]  ;;  %4358 = vmatpush.bf16.msra.mxu1 %v10062_v20  ;;  %v10043_v4 = vld [vmem:[%s18228_s1 + $0x558] sm:$0xf0] }
 0x285   : > { %v16411_v50 = vadd.f32 %v4073_v25, %v4045_v6  ;;  %v10302_v25 = vor.u32 %v12772_v32, %v10299_v16  ;;  %v12708_v20 = vld [vmem:[%s18228_s1 + $0x54c] sm:$0xf]  ;;  %v18502_v16 = vld [vmem:[#allocation16_spill] sm:$0xff] }
 0x286   : > { %v3988_v24 = vpop.f32.mrf.mxu0  ;;  %v4017_v13 = vpop.f32.mrf.mxu1  ;;  %v18501_v32 = vld [vmem:[#allocation15_spill] sm:$0xff] }
 0x287   : > { %v3989_v41 = vadd.f32 %v3988_v24, %v16211_v36  ;;  %v10171_v36 = vld [vmem:[%s18228_s1 + $0x658] sm:$0xf0]  ;;  %4330 = vmatpush.bf16.msra.mxu0 %v9918_v0  ;;  %4417 = vmatpush.bf16.msra.mxu3 %v10302_v25  ;;  %v12672_v25 = vld [vmem:[%s18228_s1 + $0x42c] sm:$0xf] }
 0x288   : > { %v10174_v7 = vor.u32 %v12740_v19, %v10171_v36  ;;  %v18499_v36 = vld [vmem:[#allocation13_spill] sm:$0xff] }
 0x289   : > { %v4018_v54 = vadd.f32 %v4017_v13, %v3989_v41  ;;  %v10155_v0 = vld [vmem:[%s18228_s1 + $0x638] sm:$0xf0] }
 0x28a   : > { %4388 = vmatpush.bf16.msra.mxu2 %v10174_v7  ;;  %v4046_v6 = vpop.f32.mrf.mxu2 }
 0x28b   : > { %v4075_v24 = vpop.f32.mrf.mxu3  ;;  %v4047_v13 = vadd.f32 %v4046_v6, %v4018_v54  ;;  %v10046_v54 = vor.u32 %v12708_v20, %v10043_v4 }
 0x28d   : > { %v16438_v19 = vadd.f32 %v4075_v24, %v4047_v13  ;;  %4359 = vmatpush.bf16.msra.mxu1 %v10046_v54  ;;  %v9899_v24 = vld [vmem:[%s18228_s1 + $0x438] sm:$0xf0]  ;;  %v12768_v13 = vld [vmem:[%s18228_s1 + $0x72c] sm:$0xf] }
 0x28e   : > { %v3991_v41 = vpop.f32.mrf.mxu0  ;;  %v4020_v15 = vpop.f32.mrf.mxu1 }
 0x28f   : > { %v3992_v26 = vadd.f32 %v3991_v41, %v16241_v58  ;;  %4280 = vmatmul.bf16.gmra.mxu2 %v18501_v32  ;;  %v12736_v58 = vld [vmem:[%s18228_s1 + $0x62c] sm:$0xf]  ;;  %v10283_v41 = vld [vmem:[%s18228_s1 + $0x738] sm:$0xf0] }
 0x290   : > { %4309 = vmatmul.bf16.gmra.mxu3 %v18502_v16  ;;  %v10158_v6 = vor.u32 %v12736_v58, %v10155_v0  ;;  %v12704_v58 = vld [vmem:[%s18228_s1 + $0x52c] sm:$0xf]  ;;  %v10027_v0 = vld [vmem:[%s18228_s1 + $0x538] sm:$0xf0] }
 0x291   : > { %4222 = vmatmul.bf16.gmra.mxu0 %v18499_v36  ;;  %v4021_v7 = vadd.f32 %v4020_v15, %v3992_v26  ;;  %4251 = vmatmul.bf16.gmra.mxu1 %v18500_v21  ;;  %v9902_v15 = vor.u32 %v12672_v25, %v9899_v24  ;;  %v10286_v26 = vor.u32 %v12768_v13, %v10283_v41  ;;  %v9883_v41 = vld [vmem:[%s18228_s1 + $0x418] sm:$0xf0] }
 0x292   : > { %v4049_v36 = vpop.f32.mrf.mxu2  ;;  %4389 = vmatpush.bf16.msra.mxu2 %v10158_v6  ;;  %v10030_v24 = vor.u32 %v12704_v58, %v10027_v0  ;;  %v12668_v6 = vld [vmem:[%s18228_s1 + $0x40c] sm:$0xf] }
 0x293   : > { %v4078_v20 = vpop.f32.mrf.mxu3  ;;  %v4050_v4 = vadd.f32 %v4049_v36, %v4021_v7  ;;  %4331 = vmatpush.bf16.msra.mxu0 %v9902_v15  ;;  %4418 = vmatpush.bf16.msra.mxu3 %v10286_v26  ;;  %v12732_v7 = vld [vmem:[%s18228_s1 + $0x60c] sm:$0xf]  ;;  %v10267_v26 = vld [vmem:[%s18228_s1 + $0x718] sm:$0xf0]  ;;  %v9886_v36 = vor.u32 %v12668_v6, %v9883_v41 }
 0x294   : > { %v12764_v15 = vld [vmem:[%s18228_s1 + $0x70c] sm:$0xf]  ;;  %4360 = vmatpush.bf16.msra.mxu1 %v10030_v24 }
 0x295   : > { %v16469_v16 = vadd.f32 %v4078_v20, %v4050_v4  ;;  %v10270_v20 = vor.u32 %v12764_v15, %v10267_v26  ;;  %v18504_v15 = vld [vmem:[#allocation18_spill] sm:$0xff]  ;;  %v18505_v26 = vld [vmem:[#allocation19_spill] sm:$0xff] }
 0x296   : > { %v3993_v21 = vpop.f32.mrf.mxu0  ;;  %v4022_v54 = vpop.f32.mrf.mxu1 }
 0x297   : > { %v3994_v32 = vadd.f32 %v3993_v21, %v16273_v35  ;;  %v10139_v35 = vld [vmem:[%s18228_s1 + $0x618] sm:$0xf0]  ;;  %4332 = vmatpush.bf16.msra.mxu0 %v9886_v36  ;;  %4419 = vmatpush.bf16.msra.mxu3 %v10270_v20  ;;  %v18506_v36 = vld [vmem:[#allocation20_spill] sm:$0xff]  ;;  %v12824_v20 = vld [vmem:[%s18228_s1 + $0x8ec] sm:$0xf] }
 0x298   : > { %v10142_v13 = vor.u32 %v12732_v7, %v10139_v35 }
 0x299   : > { %v4023_v25 = vadd.f32 %v4022_v54, %v3994_v32  ;;  %v12700_v54 = vld [vmem:[%s18228_s1 + $0x50c] sm:$0xf]  ;;  %v10011_v32 = vld [vmem:[%s18228_s1 + $0x518] sm:$0xf0] }
 0x29a   : > { %4390 = vmatpush.bf16.msra.mxu2 %v10142_v13  ;;  %v4051_v4 = vpop.f32.mrf.mxu2  ;;  %v10014_v35 = vor.u32 %v12700_v54, %v10011_v32  ;;  %v18503_v13 = vld [vmem:[#allocation17_spill] sm:$0xff]  ;;  %v12920_v54 = vld [vmem:[%s18228_s1 + $0xbec] sm:$0xf] }
 0x29b   : > { %v4080_v21 = vpop.f32.mrf.mxu3  ;;  %v4052_v58 = vadd.f32 %v4051_v4, %v4023_v25  ;;  %v12888_v25 = vld [vmem:[%s18228_s1 + $0xaec] sm:$0xf]  ;;  %v10891_v32 = vld [vmem:[%s18228_s1 + $0xbf8] sm:$0xf0] }
 0x29c   : > { %4361 = vmatpush.bf16.msra.mxu1 %v10014_v35 }
 0x29d   : > { %v16502_v6 = vadd.f32 %v4080_v21, %v4052_v58  ;;  %v10507_v21 = vld [vmem:[%s18228_s1 + $0x8f8] sm:$0xf0] }
 0x29e   : > { %v3996_v0 = vpop.f32.mrf.mxu0  ;;  %v4025_v7 = vpop.f32.mrf.mxu1  ;;  %v10510_v58 = vor.u32 %v12824_v20, %v10507_v21  ;;  %v12856_v20 = vld [vmem:[%s18228_s1 + $0x9ec] sm:$0xf] }
 0x29f   : > { %v3997_v24 = vadd.f32 %v3996_v0, %v16297_v1  ;;  %4285 = vmatmul.bf16.gmra.mxu2 %v18505_v26  ;;  %v10763_v1 = vld [vmem:[%s18228_s1 + $0xaf8] sm:$0xf0]  ;;  %v10894_v0 = vor.u32 %v12920_v54, %v10891_v32  ;;  %v12820_v32 = vld [vmem:[%s18228_s1 + $0x8cc] sm:$0xf] }
 0x2a0   : > { %4314 = vmatmul.bf16.gmra.mxu3 %v18506_v36  ;;  %v10766_v4 = vor.u32 %v12888_v25, %v10763_v1  ;;  %4441 = vmatpush.bf16.msrb.mxu0 %v10510_v58  ;;  %v10747_v54 = vld [vmem:[%s18228_s1 + $0xad8] sm:$0xf0] }
 0x2a1   : > { %4227 = vmatmul.bf16.gmra.mxu0 %v18503_v13  ;;  %v4026_v41 = vadd.f32 %v4025_v7, %v3997_v24  ;;  %4256 = vmatmul.bf16.gmra.mxu1 %v18504_v15  ;;  %v10491_v58 = vld [vmem:[%s18228_s1 + $0x8d8] sm:$0xf0] }
 0x2a2   : > { %v4054_v7 = vpop.f32.mrf.mxu2  ;;  %4499 = vmatpush.bf16.msrb.mxu2 %v10766_v4  ;;  %4528 = vmatpush.bf16.msrb.mxu3 %v10894_v0 }
 0x2a3   : > { %v4083_v35 = vpop.f32.mrf.mxu3  ;;  %v4055_v24 = vadd.f32 %v4054_v7, %v4026_v41  ;;  %v10635_v41 = vld [vmem:[%s18228_s1 + $0x9f8] sm:$0xf0] }
 0x2a4   : > { %v10638_v21 = vor.u32 %v12856_v20, %v10635_v41  ;;  %v18507_v7 = vld [vmem:[#allocation21_spill] sm:$0xff] }
 0x2a5   : > { %v16527_v36 = vadd.f32 %v4083_v35, %v4055_v24  ;;  %v10494_v24 = vor.u32 %v12820_v32, %v10491_v58  ;;  %v10731_v58 = vld [vmem:[%s18228_s1 + $0xab8] sm:$0xf0] }
 0x2a6   : > { %v3998_v13 = vpop.f32.mrf.mxu0  ;;  %v4027_v15 = vpop.f32.mrf.mxu1  ;;  %4470 = vmatpush.bf16.msrb.mxu1 %v10638_v21  ;;  %v12880_v21 = vld [vmem:[%s18228_s1 + $0xaac] sm:$0xf] }
 0x2a7   : > { %v3999_v26 = vadd.f32 %v3998_v13, %v16323_v2  ;;  %v12884_v2 = vld [vmem:[%s18228_s1 + $0xacc] sm:$0xf]  ;;  %4442 = vmatpush.bf16.msrb.mxu0 %v10494_v24 }
 0x2a8   : > { %v10750_v35 = vor.u32 %v12884_v2, %v10747_v54 }
 0x2a9   : > { %v4028_v25 = vadd.f32 %v4027_v15, %v3999_v26  ;;  %v18508_v15 = vld [vmem:[#allocation22_spill] sm:$0xff] }
 0x2aa   : > { %v4056_v1 = vpop.f32.mrf.mxu2  ;;  %4500 = vmatpush.bf16.msrb.mxu2 %v10750_v35  ;;  %v10475_v35 = vld [vmem:[%s18228_s1 + $0x8b8] sm:$0xf0] }
 0x2ab   : > { %v4085_v62 = vpop.f32.mrf.mxu3  ;;  %v4057_v12 = vadd.f32 %v4056_v1, %v4028_v25  ;;  %v18509_v25 = vld [vmem:[#allocation23_spill] sm:$0xff] }
 0x2ad   : > { %v16548_v0 = vadd.f32 %v4085_v62, %v4057_v12  ;;  %v18510_v12 = vld [vmem:[#allocation24_spill] sm:$0xff] }
 0x2ae   : > { %v4001_v52 = vpop.f32.mrf.mxu0  ;;  %v4030_v37 = vpop.f32.mrf.mxu1 }
 0x2af   : > { %v4002_v4 = vadd.f32 %v4001_v52, %v16353_v14  ;;  %v12916_v52 = vld [vmem:[%s18228_s1 + $0xbcc] sm:$0xf]  ;;  %v10875_v14 = vld [vmem:[%s18228_s1 + $0xbd8] sm:$0xf0]  ;;  %4290 = vmatmul.bf16.gmra.mxu2 %v18509_v25 }
 0x2b0   : > { %v10878_v26 = vor.u32 %v12916_v52, %v10875_v14  ;;  %4319 = vmatmul.bf16.gmra.mxu3 %v18510_v12  ;;  %v10734_v52 = vor.u32 %v12880_v21, %v10731_v58  ;;  %v10459_v58 = vld [vmem:[%s18228_s1 + $0x898] sm:$0xf0] }
 0x2b1   : > { %4232 = vmatmul.bf16.gmra.mxu0 %v18507_v7  ;;  %v4031_v13 = vadd.f32 %v4030_v37, %v4002_v4  ;;  %4261 = vmatmul.bf16.gmra.mxu1 %v18508_v15  ;;  %v12852_v37 = vld [vmem:[%s18228_s1 + $0x9cc] sm:$0xf]  ;;  %v10619_v4 = vld [vmem:[%s18228_s1 + $0x9d8] sm:$0xf0] }
 0x2b2   : > { %4529 = vmatpush.bf16.msrb.mxu3 %v10878_v26  ;;  %v4059_v62 = vpop.f32.mrf.mxu2  ;;  %v10622_v32 = vor.u32 %v12852_v37, %v10619_v4  ;;  %v12816_v7 = vld [vmem:[%s18228_s1 + $0x8ac] sm:$0xf]  ;;  %4501 = vmatpush.bf16.msrb.mxu2 %v10734_v52  ;;  %v10603_v37 = vld [vmem:[%s18228_s1 + $0x9b8] sm:$0xf0] }
 0x2b3   : > { %v4088_v1 = vpop.f32.mrf.mxu3  ;;  %v4060_v20 = vadd.f32 %v4059_v62, %v4031_v13  ;;  %v10478_v14 = vor.u32 %v12816_v7, %v10475_v35  ;;  %v10859_v13 = vld [vmem:[%s18228_s1 + $0xbb8] sm:$0xf0] }
 0x2b4   : > { %4471 = vmatpush.bf16.msrb.mxu1 %v10622_v32  ;;  %v12812_v32 = vld [vmem:[%s18228_s1 + $0x88c] sm:$0xf] }
 0x2b5   : > { %v16579_v24 = vadd.f32 %v4088_v1, %v4060_v20  ;;  %4443 = vmatpush.bf16.msrb.mxu0 %v10478_v14  ;;  %v10462_v52 = vor.u32 %v12812_v32, %v10459_v58  ;;  %v10843_v14 = vld [vmem:[%s18228_s1 + $0xb98] sm:$0xf0]  ;;  %v12808_v32 = vld [vmem:[%s18228_s1 + $0x86c] sm:$0xf] }
 0x2b6   : > { %v4003_v41 = vpop.f32.mrf.mxu0  ;;  %v4032_v2 = vpop.f32.mrf.mxu1  ;;  %v10443_v58 = vld [vmem:[%s18228_s1 + $0x878] sm:$0xf0] }
 0x2b7   : > { %v4004_v54 = vadd.f32 %v4003_v41, %v16380_v42  ;;  %v12912_v42 = vld [vmem:[%s18228_s1 + $0xbac] sm:$0xf] }
 0x2b8   : > { %v10862_v26 = vor.u32 %v12912_v42, %v10859_v13  ;;  %v12848_v41 = vld [vmem:[%s18228_s1 + $0x9ac] sm:$0xf]  ;;  %v18511_v13 = vld [vmem:[#allocation25_spill] sm:$0xff] }
 0x2b9   : > { %v4033_v15 = vadd.f32 %v4032_v2, %v4004_v54  ;;  %v12876_v2 = vld [vmem:[%s18228_s1 + $0xa8c] sm:$0xf]  ;;  %v10606_v21 = vor.u32 %v12848_v41, %v10603_v37  ;;  %v10715_v54 = vld [vmem:[%s18228_s1 + $0xa98] sm:$0xf0]  ;;  %4444 = vmatpush.bf16.msrb.mxu0 %v10462_v52 }
 0x2ba   : > { %4530 = vmatpush.bf16.msrb.mxu3 %v10862_v26  ;;  %v4061_v25 = vpop.f32.mrf.mxu2  ;;  %v10718_v35 = vor.u32 %v12876_v2, %v10715_v54  ;;  %v18512_v26 = vld [vmem:[#allocation26_spill] sm:$0xff]  ;;  %v10587_v37 = vld [vmem:[%s18228_s1 + $0x998] sm:$0xf0]  ;;  %v12872_v2 = vld [vmem:[%s18228_s1 + $0xa6c] sm:$0xf] }
 0x2bb   : > { %v4090_v12 = vpop.f32.mrf.mxu3  ;;  %v4062_v62 = vadd.f32 %v4061_v25, %v4033_v15  ;;  %v18513_v25 = vld [vmem:[#allocation27_spill] sm:$0xff]  ;;  %4472 = vmatpush.bf16.msrb.mxu1 %v10606_v21  ;;  %v10699_v54 = vld [vmem:[%s18228_s1 + $0xa78] sm:$0xf0] }
 0x2bc   : > { %4502 = vmatpush.bf16.msrb.mxu2 %v10718_v35  ;;  %v10702_v52 = vor.u32 %v12872_v2, %v10699_v54  ;;  %v10683_v2 = vld [vmem:[%s18228_s1 + $0xa58] sm:$0xf0] }
 0x2bd   : > { %v16606_v7 = vadd.f32 %v4090_v12, %v4062_v62 }
 0x2be   : > { %v4102_v1 = vpop.f32.mrf.mxu0  ;;  %v4131_v20 = vpop.f32.mrf.mxu1 }
 0x2bf   : > { %v4103_v4 = vadd.f32 %v4102_v1, %v16411_v50  ;;  %v12908_v50 = vld [vmem:[%s18228_s1 + $0xb8c] sm:$0xf]  ;;  %4391 = vmatmul.bf16.vlgmr.msra.gmra.mxu2 %v18512_v26 }
 0x2c0   : > { %v10846_v15 = vor.u32 %v12908_v50, %v10843_v14  ;;  %4420 = vmatmul.bf16.vlgmr.msra.gmra.mxu3 %v18513_v25  ;;  %v10446_v50 = vor.u32 %v12808_v32, %v10443_v58  ;;  %v10827_v14 = vld [vmem:[%s18228_s1 + $0xb78] sm:$0xf0]  ;;  %4503 = vmatpush.bf16.msrb.mxu2 %v10702_v52  ;;  %v12900_v32 = vld [vmem:[%s18228_s1 + $0xb4c] sm:$0xf] }
 0x2c1   : > { %4333 = vmatmul.bf16.vlgmr.msra.gmra.mxu0 %v14179_v11  ;;  %v4132_v42 = vadd.f32 %v4131_v20, %v4103_v4  ;;  %4362 = vmatmul.bf16.vlgmr.msra.gmra.mxu1 %v18511_v13  ;;  %v12844_v20 = vld [vmem:[%s18228_s1 + $0x98c] sm:$0xf]  ;;  %v10811_v58 = vld [vmem:[%s18228_s1 + $0xb58] sm:$0xf0] }
 0x2c2   : > { %4531 = vmatpush.bf16.msrb.mxu3 %v10846_v15  ;;  %v4160_v11 = vpop.f32.mrf.mxu2  ;;  %v10590_v21 = vor.u32 %v12844_v20, %v10587_v37  ;;  %4445 = vmatpush.bf16.msrb.mxu0 %v10446_v50  ;;  %v12868_v37 = vld [vmem:[%s18228_s1 + $0xa4c] sm:$0xf] }
 0x2c3   : > { %v4189_v12 = vpop.f32.mrf.mxu3  ;;  %v4161_v62 = vadd.f32 %v4160_v11, %v4132_v42  ;;  %v10686_v54 = vor.u32 %v12868_v37, %v10683_v2 }
 0x2c4   : > { %4473 = vmatpush.bf16.msrb.mxu1 %v10590_v21 }
 0x2c5   : > { %v16637_v35 = vadd.f32 %v4189_v12, %v4161_v62  ;;  %v12840_v62 = vld [vmem:[%s18228_s1 + $0x96c] sm:$0xf]  ;;  %4504 = vmatpush.bf16.msrb.mxu2 %v10686_v54 }
 0x2c6   : > { %v4104_v1 = vpop.f32.mrf.mxu0  ;;  %v4133_v41 = vpop.f32.mrf.mxu1  ;;  %v12832_v54 = vld [vmem:[%s18228_s1 + $0x92c] sm:$0xf] }
 0x2c7   : > { %v4105_v4 = vadd.f32 %v4104_v1, %v16438_v19  ;;  %v12904_v19 = vld [vmem:[%s18228_s1 + $0xb6c] sm:$0xf]  ;;  %v10571_v1 = vld [vmem:[%s18228_s1 + $0x978] sm:$0xf0] }
 0x2c8   : > { %v10830_v13 = vor.u32 %v12904_v19, %v10827_v14  ;;  %v10574_v20 = vor.u32 %v12840_v62, %v10571_v1  ;;  %v10814_v19 = vor.u32 %v12900_v32, %v10811_v58  ;;  %v12800_v62 = vld [vmem:[%s18228_s1 + $0x82c] sm:$0xf]  ;;  %v10411_v1 = vld [vmem:[%s18228_s1 + $0x838] sm:$0xf0] }
 0x2c9   : > { %v4134_v42 = vadd.f32 %v4133_v41, %v4105_v4  ;;  %v12804_v4 = vld [vmem:[%s18228_s1 + $0x84c] sm:$0xf]  ;;  %v10414_v37 = vor.u32 %v12800_v62, %v10411_v1 }
 0x2ca   : > { %4532 = vmatpush.bf16.msrb.mxu3 %v10830_v13  ;;  %v4162_v15 = vpop.f32.mrf.mxu2  ;;  %4474 = vmatpush.bf16.msrb.mxu1 %v10574_v20 }
 0x2cb   : > { %v4191_v26 = vpop.f32.mrf.mxu3  ;;  %v4163_v25 = vadd.f32 %v4162_v15, %v4134_v42  ;;  %v12836_v42 = vld [vmem:[%s18228_s1 + $0x94c] sm:$0xf] }
 0x2cd   : > { %v16661_v21 = vadd.f32 %v4191_v26, %v4163_v25  ;;  %v10667_v25 = vld [vmem:[%s18228_s1 + $0xa38] sm:$0xf0] }
 0x2ce   : > { %v4107_v11 = vpop.f32.mrf.mxu0  ;;  %v4136_v12 = vpop.f32.mrf.mxu1  ;;  %4533 = vmatpush.bf16.msrb.mxu3 %v10814_v19  ;;  %v10651_v19 = vld [vmem:[%s18228_s1 + $0xa18] sm:$0xf0] }
 0x2cf   : > { %v4108_v41 = vadd.f32 %v4107_v11, %v16469_v16  ;;  %v10427_v16 = vld [vmem:[%s18228_s1 + $0x858] sm:$0xf0]  ;;  %4396 = vmatmul.bf16.gmra.mxu2 %v14263_v30 }
 0x2d0   : > { %v10430_v50 = vor.u32 %v12804_v4, %v10427_v16  ;;  %4425 = vmatmul.bf16.gmra.mxu3 %v14265_v31  ;;  %v12864_v31 = vld [vmem:[%s18228_s1 + $0xa2c] sm:$0xf]  ;;  %v10539_v16 = vld [vmem:[%s18228_s1 + $0x938] sm:$0xf0] }
 0x2d1   : > { %4338 = vmatmul.bf16.gmra.mxu0 %v14259_v28  ;;  %v4137_v52 = vadd.f32 %v4136_v12, %v4108_v41  ;;  %4367 = vmatmul.bf16.gmra.mxu1 %v14261_v29  ;;  %v10555_v29 = vld [vmem:[%s18228_s1 + $0x958] sm:$0xf0]  ;;  %v10670_v12 = vor.u32 %v12864_v31, %v10667_v25  ;;  %v12896_v41 = vld [vmem:[%s18228_s1 + $0xb2c] sm:$0xf]  ;;  %v10542_v32 = vor.u32 %v12832_v54, %v10539_v16 }
 0x2d2   : > { %4446 = vmatpush.bf16.msrb.mxu0 %v10430_v50  ;;  %v4165_v28 = vpop.f32.mrf.mxu2  ;;  %v10558_v30 = vor.u32 %v12836_v42, %v10555_v29  ;;  %v12860_v50 = vld [vmem:[%s18228_s1 + $0xa0c] sm:$0xf]  ;;  %v10779_v25 = vld [vmem:[%s18228_s1 + $0xb18] sm:$0xf0] }
 0x2d3   : > { %v4194_v14 = vpop.f32.mrf.mxu3  ;;  %v4166_v13 = vadd.f32 %v4165_v28, %v4137_v52  ;;  %4505 = vmatpush.bf16.msrb.mxu2 %v10670_v12  ;;  %v12796_v28 = vld [vmem:[%s18228_s1 + $0x80c] sm:$0xf]  ;;  %v10523_v12 = vld [vmem:[%s18228_s1 + $0x918] sm:$0xf0] }
 0x2d4   : > { %4475 = vmatpush.bf16.msrb.mxu1 %v10558_v30 }
 0x2d5   : > { %v16698_v20 = vadd.f32 %v4194_v14, %v4166_v13  ;;  %v10654_v13 = vor.u32 %v12860_v50, %v10651_v19 }
 0x2d6   : > { %v4109_v15 = vpop.f32.mrf.mxu0  ;;  %v4138_v26 = vpop.f32.mrf.mxu1  ;;  %4447 = vmatpush.bf16.msrb.mxu0 %v10414_v37 }
 0x2d7   : > { %v4110_v11 = vadd.f32 %v4109_v15, %v16502_v6  ;;  %v10795_v6 = vld [vmem:[%s18228_s1 + $0xb38] sm:$0xf0]  ;;  %4506 = vmatpush.bf16.msrb.mxu2 %v10654_v13 }
 0x2d8   : > { %v10798_v4 = vor.u32 %v12896_v41, %v10795_v6  ;;  %4476 = vmatpush.bf16.msrb.mxu1 %v10542_v32  ;;  %v10395_v15 = vld [vmem:[%s18228_s1 + $0x818] sm:$0xf0] }
 0x2d9   : > { %v4139_v2 = vadd.f32 %v4138_v26, %v4110_v11  ;;  %v12892_v26 = vld [vmem:[%s18228_s1 + $0xb0c] sm:$0xf]  ;;  %v10398_v31 = vor.u32 %v12796_v28, %v10395_v15 }
 0x2da   : > { %4534 = vmatpush.bf16.msrb.mxu3 %v10798_v4  ;;  %v4167_v58 = vpop.f32.mrf.mxu2  ;;  %v12828_v11 = vld [vmem:[%s18228_s1 + $0x90c] sm:$0xf]  ;;  %v10782_v1 = vor.u32 %v12892_v26, %v10779_v25 }
 0x2db   : > { %v4196_v52 = vpop.f32.mrf.mxu3  ;;  %v4168_v14 = vadd.f32 %v4167_v58, %v4139_v2  ;;  %4448 = vmatpush.bf16.msrb.mxu0 %v10398_v31 }
 0x2dd   : > { %v16734_v62 = vadd.f32 %v4196_v52, %v4168_v14 }
 0x2de   : > { %v4112_v42 = vpop.f32.mrf.mxu0  ;;  %v4141_v29 = vpop.f32.mrf.mxu1  ;;  %4535 = vmatpush.bf16.msrb.mxu3 %v10782_v1  ;;  %v11209_v1 = vld [vmem:[#allocation3 + $0x1e0] sm:$0xf] }
 0x2df   : > { %v4113_v30 = vadd.f32 %v4112_v42, %v16527_v36  ;;  %v10526_v36 = vor.u32 %v12828_v11, %v10523_v12  ;;  %4401 = vmatmul.bf16.gmra.mxu2 %v14341_v45 }
 0x2e0   : > { %4430 = vmatmul.bf16.gmra.mxu3 %v14343_v46 }
 0x2e1   : > { %4343 = vmatmul.bf16.gmra.mxu0 %v14335_v33  ;;  %v4142_v41 = vadd.f32 %v4141_v29, %v4113_v30  ;;  %4372 = vmatmul.bf16.gmra.mxu1 %v14337_v43 }
 0x2e2   : > { %4477 = vmatpush.bf16.msrb.mxu1 %v10526_v36  ;;  %v4170_v37 = vpop.f32.mrf.mxu2  ;;  %v13001_v36 = vld [vmem:[#allocation3 + $0x1ec] sm:$0xf0] }
 0x2e3   : > { %v4199_v6 = vpop.f32.mrf.mxu3  ;;  %v4171_v2 = vadd.f32 %v4170_v37, %v4142_v41  ;;  %v11210_v41 = vor.u32 %v13001_v36, %v11209_v1 }
 0x2e5   : > { %v16741_v16 = vadd.f32 %v4199_v6, %v4171_v2  ;;  %v11065_v2 = vld [vmem:[#allocation3 + $0xc0] sm:$0xf] }
 0x2e6   : > { %v4114_v4 = vpop.f32.mrf.mxu0  ;;  %v4143_v54 = vpop.f32.mrf.mxu1  ;;  %7564 = vmatpush.bf16.msra.mxu1 %v11210_v41 }
 0x2e7   : > { %v4115_v33 = vadd.f32 %v4114_v4, %v16548_v0  ;;  %v12965_v4 = vld [vmem:[#allocation3 + $0xcc] sm:$0xf0] }
 0x2e9   : > { %v4144_v32 = vadd.f32 %v4143_v54, %v4115_v33  ;;  %v11193_v54 = vld [vmem:[#allocation3 + $0x1c0] sm:$0xf] }
 0x2ea   : > { %v4172_v58 = vpop.f32.mrf.mxu2 }
 0x2eb   : > { %v4201_v52 = vpop.f32.mrf.mxu3  ;;  %v4173_v43 = vadd.f32 %v4172_v58, %v4144_v32  ;;  %v11066_v32 = vor.u32 %v12965_v4, %v11065_v2  ;;  %v12997_v58 = vld [vmem:[#allocation3 + $0x1cc] sm:$0xf0] }
 0x2ec   : > { %v12949_v2 = vld [vmem:[#allocation3 + $0x4c] sm:$0xf0] }
 0x2ed   : > { %v16744_v46 = vadd.f32 %v4201_v52, %v4173_v43 }
 0x2ee   : > { %v4117_v50 = vpop.f32.mrf.mxu0  ;;  %v4146_v19 = vpop.f32.mrf.mxu1 }
 0x2ef   : > { %v4118_v45 = vadd.f32 %v4117_v50, %v16579_v24  ;;  %4406 = vmatmul.bf16.gmra.mxu2 %v18472_v9  ;;  %v11081_v9 = vld [vmem:[#allocation3 + $0xe0] sm:$0xf]  ;;  %v12961_v50 = vld [vmem:[#allocation3 + $0xac] sm:$0xf0] }
 0x2f0   : > { %4435 = vmatmul.bf16.gmra.mxu3 %v18473_v3  ;;  %v12969_v3 = vld [vmem:[#allocation3 + $0xec] sm:$0xf0] }
 0x2f1   : > { %4348 = vmatmul.bf16.gmra.mxu0 %v18470_v10  ;;  %v4147_v28 = vadd.f32 %v4146_v19, %v4118_v45  ;;  %4377 = vmatmul.bf16.gmra.mxu1 %v18471_v8  ;;  %v11177_v19 = vld [vmem:[#allocation3 + $0x1a0] sm:$0xf] }
 0x2f2   : > { %v4175_v0 = vpop.f32.mrf.mxu2 }
 0x2f3   : > { %v4204_v14 = vpop.f32.mrf.mxu3  ;;  %v4176_v42 = vadd.f32 %v4175_v0, %v4147_v28  ;;  %v12993_v28 = vld [vmem:[#allocation3 + $0x1ac] sm:$0xf0] }
 0x2f4   : > { %v11178_v0 = vor.u32 %v12993_v28, %v11177_v19 }
 0x2f5   : > { %v16751_v26 = vadd.f32 %v4204_v14, %v4176_v42 }
 0x2f6   : > { %v4119_v29 = vpop.f32.mrf.mxu0  ;;  %v4148_v13 = vpop.f32.mrf.mxu1 }
 0x2f7   : > { %v4120_v15 = vadd.f32 %v4119_v29, %v16606_v7  ;;  %18514 = vst [vmem:[#allocation28_spill] sm:$0xff] %v16751_v26  ;;  %v11082_v7 = vor.u32 %v12969_v3, %v11081_v9  ;;  %v11033_v29 = vld [vmem:[#allocation3 + $0x80] sm:$0xf]  ;;  %v12953_v9 = vld [vmem:[#allocation3 + $0x6c] sm:$0xf0] }
 0x2f8   : > { %v11145_v3 = vld [vmem:[#allocation3 + $0x160] sm:$0xf] }
 0x2f9   : > { %v4149_v24 = vadd.f32 %v4148_v13, %v4120_v15  ;;  %7535 = vmatpush.bf16.msra.mxu0 %v11082_v7  ;;  %v12957_v13 = vld [vmem:[#allocation3 + $0x8c] sm:$0xf0]  ;;  %v11161_v15 = vld [vmem:[#allocation3 + $0x180] sm:$0xf] }
 0x2fa   : > { %v4177_v30 = vpop.f32.mrf.mxu2  ;;  %v12985_v7 = vld [vmem:[#allocation3 + $0x16c] sm:$0xf0] }
 0x2fb   : > { %v4206_v31 = vpop.f32.mrf.mxu3  ;;  %v4178_v10 = vadd.f32 %v4177_v30, %v4149_v24  ;;  %v11146_v36 = vor.u32 %v12985_v7, %v11145_v3 }
 0x2fd   : > { %v16753_v12 = vadd.f32 %v4206_v31, %v4178_v10  ;;  %7536 = vmatpush.bf16.msra.mxu0 %v11066_v32  ;;  %v11034_v31 = vor.u32 %v12957_v13, %v11033_v29  ;;  %v12989_v10 = vld [vmem:[#allocation3 + $0x18c] sm:$0xf0]  ;;  %v10985_v32 = vld [vmem:[#allocation3 + $0x20] sm:$0xf] }
 0x2fe   : > { %v4218_v25 = vpop.f32.mrf.mxu0  ;;  %v4247_v11 = vpop.f32.mrf.mxu1  ;;  %v12941_v29 = vld [vmem:[#allocation3 + $0xc] sm:$0xf0]  ;;  %v11097_v13 = vld [vmem:[#allocation3 + $0x100] sm:$0xf] }
 0x2ff   : > { %v4248_v8 = vadd.f32 %v4247_v11, %v4218_v25  ;;  %18515 = vst [vmem:[#allocation29_spill] sm:$0xff] %v16753_v12  ;;  %4507 = vmatmul.bf16.vlgmr.msrb.gmra.mxu2 %v18479_v63  ;;  %v11194_v63 = vor.u32 %v12997_v58, %v11193_v54  ;;  %v11162_v11 = vor.u32 %v12989_v10, %v11161_v15  ;;  %v12945_v58 = vld [vmem:[#allocation3 + $0x2c] sm:$0xf0] }
 0x300   : > { %4536 = vmatmul.bf16.vlgmr.msrb.gmra.mxu3 %v18480_v59  ;;  %v11049_v59 = vld [vmem:[#allocation3 + $0xa0] sm:$0xf]  ;;  %v13073_v12 = vld [vmem:[#allocation3 + $0x42c] sm:$0xf0] }
 0x301   : > { %4449 = vmatmul.bf16.vlgmr.msrb.gmra.mxu0 %v18477_v22  ;;  %4478 = vmatmul.bf16.vlgmr.msrb.gmra.mxu1 %v18478_v40  ;;  %v11050_v45 = vor.u32 %v12961_v50, %v11049_v59  ;;  %v10986_v59 = vor.u32 %v12945_v58, %v10985_v32  ;;  %v12977_v50 = vld [vmem:[#allocation3 + $0x12c] sm:$0xf0]  ;;  %v12923_v58 = vld [vmem:[#allocation2 + $0x4] sm:$0xf] }
 0x302   : > { %v4276_v37 = vpop.f32.mrf.mxu2  ;;  %7565 = vmatpush.bf16.msra.mxu1 %v11194_v63  ;;  %v11113_v63 = vld [vmem:[#allocation3 + $0x120] sm:$0xf] }
 0x303   : > { %v4305_v6 = vpop.f32.mrf.mxu3  ;;  %v4277_v22 = vadd.f32 %v4276_v37, %v4248_v8  ;;  %7537 = vmatpush.bf16.msra.mxu0 %v11050_v45  ;;  %v11017_v8 = vld [vmem:[#allocation3 + $0x60] sm:$0xf]  ;;  %v11114_v19 = vor.u32 %v12977_v50, %v11113_v63  ;;  %v13097_v50 = vld [vmem:[#allocation3 + $0x4ec] sm:$0xf0] }
 0x304   : > { %v11018_v1 = vor.u32 %v12953_v9, %v11017_v8 }
 0x305   : > { %v16761_v43 = vadd.f32 %v4305_v6, %v4277_v22  ;;  %v11001_v6 = vld [vmem:[#allocation3 + $0x40] sm:$0xf] }
 0x306   : > { %v4220_v33 = vpop.f32.mrf.mxu0  ;;  %v4249_v40 = vpop.f32.mrf.mxu1  ;;  %7566 = vmatpush.bf16.msra.mxu1 %v11178_v0  ;;  %v11002_v22 = vor.u32 %v12949_v2, %v11001_v6  ;;  %v10969_v0 = vld [vmem:[#allocation3] sm:$0xf] }
 0x307   : > { %v16759_v52 = vadd.f32 %v4249_v40, %v4220_v33  ;;  %7538 = vmatpush.bf16.msra.mxu0 %v11034_v31  ;;  %v12981_v33 = vld [vmem:[#allocation3 + $0x14c] sm:$0xf0] }
 0x308   : > { %v12973_v31 = vld [vmem:[#allocation3 + $0x10c] sm:$0xf0] }
 0x30a   : > { %v16763_v14 = vpop.f32.mrf.mxu2  ;;  %7567 = vmatpush.bf16.msra.mxu1 %v11162_v11 }
 0x30b   : > { %v16765_v42 = vpop.f32.mrf.mxu3  ;;  %7539 = vmatpush.bf16.msra.mxu0 %v11018_v1 }
 0x30e   : > { %v4223_v24 = vpop.f32.mrf.mxu0  ;;  %v4252_v30 = vpop.f32.mrf.mxu1  ;;  %7568 = vmatpush.bf16.msra.mxu1 %v11146_v36 }
 0x30f   : > { %v4253_v25 = vadd.f32 %v4252_v30, %v4223_v24  ;;  %4512 = vmatmul.bf16.gmra.mxu2 %v18485_v18  ;;  %7540 = vmatpush.bf16.msra.mxu0 %v11002_v22  ;;  %v10970_v30 = vor.u32 %v12941_v29, %v10969_v0  ;;  %v12925_v22 = vld [vmem:[#allocation2 + $0xc] sm:$0xf0] }
 0x310   : > { %4541 = vmatmul.bf16.gmra.mxu3 %v18486_v60  ;;  %v13129_v29 = vld [vmem:[#allocation3 + $0x5ec] sm:$0xf0] }
 0x311   : > { %4454 = vmatmul.bf16.gmra.mxu0 %v18483_v47  ;;  %4483 = vmatmul.bf16.gmra.mxu1 %v18484_v44  ;;  %v11129_v47 = vld [vmem:[#allocation3 + $0x140] sm:$0xf] }
 0x312   : > { %v4281_v41 = vpop.f32.mrf.mxu2  ;;  %v11130_v18 = vor.u32 %v12981_v33, %v11129_v47  ;;  %v10907_v33 = vld [vmem:[#allocation2 + $0x10] sm:$0xf0] }
 0x313   : > { %v4310_v37 = vpop.f32.mrf.mxu3  ;;  %v4282_v4 = vadd.f32 %v4281_v41, %v4253_v25  ;;  %7541 = vmatpush.bf16.msra.mxu0 %v10986_v59  ;;  %v11098_v25 = vor.u32 %v12973_v31, %v11097_v13  ;;  %v16809_v63 = vor.u32 %v12923_v58, %v10907_v33  ;;  %v11593_v59 = vld [vmem:[#allocation3 + $0x4e0] sm:$0xf] }
 0x314   : > { %7569 = vmatpush.bf16.msra.mxu1 %v11130_v18  ;;  %v11594_v0 = vor.u32 %v13097_v50, %v11593_v59 }
 0x315   : > { %v16773_v60 = vadd.f32 %v4310_v37, %v4282_v4  ;;  %18519 = vst [vmem:[#allocation33_spill] sm:$0xff] %v16809_v63 }
 0x316   : > { %v4225_v44 = vpop.f32.mrf.mxu0  ;;  %v4254_v54 = vpop.f32.mrf.mxu1 }
 0x317   : > { %v16771_v40 = vadd.f32 %v4254_v54, %v4225_v44  ;;  %7542 = vmatpush.bf16.msra.mxu0 %v10970_v30 }
 0x318   : > { %7570 = vmatpush.bf16.msra.mxu1 %v11114_v19  ;;  %v11721_v19 = vld [vmem:[#allocation3 + $0x5e0] sm:$0xf] }
 0x319   : > { %v11722_v13 = vor.u32 %v13129_v29, %v11721_v19 }
 0x31a   : > { %v16775_v45 = vpop.f32.mrf.mxu2 }
 0x31b   : > { %v16777_v28 = vpop.f32.mrf.mxu3  ;;  %7651 = vmatpush.bf16.msrb.mxu0 %v11594_v0  ;;  %v12927_v0 = vld [vmem:[#allocation2 + $0x34] sm:$0xf] }
 0x31c   : > { %7571 = vmatpush.bf16.msra.mxu1 %v11098_v25  ;;  %v11577_v25 = vld [vmem:[#allocation3 + $0x4c0] sm:$0xf] }
 0x31e   : > { %v4228_v15 = vpop.f32.mrf.mxu0  ;;  %v4257_v24 = vpop.f32.mrf.mxu1 }
 0x31f   : > { %v4258_v10 = vadd.f32 %v4257_v24, %v4228_v15  ;;  %4517 = vmatmul.bf16.gmra.mxu2 %v18489_v55 }
 0x320   : > { %4546 = vmatmul.bf16.gmra.mxu3 %v18490_v17  ;;  %7680 = vmatpush.bf16.msrb.mxu1 %v11722_v13 }
 0x321   : > { %4459 = vmatmul.bf16.gmra.mxu0 %v18487_v39  ;;  %4488 = vmatmul.bf16.gmra.mxu1 %v18488_v53 }
 0x322   : > { %v4286_v11 = vpop.f32.mrf.mxu2 }
 0x323   : > { %v4315_v8 = vpop.f32.mrf.mxu3  ;;  %v4287_v9 = vadd.f32 %v4286_v11, %v4258_v10  ;;  %v12929_v10 = vld [vmem:[#allocation2 + $0x3c] sm:$0xf0]  ;;  %v13093_v11 = vld [vmem:[#allocation3 + $0x4cc] sm:$0xf0] }
 0x325   : > { %v16785_v36 = vadd.f32 %v4315_v8, %v4287_v9  ;;  %v11705_v8 = vld [vmem:[#allocation3 + $0x5c0] sm:$0xf]  ;;  %v11578_v9 = vor.u32 %v13093_v11, %v11577_v25  ;;  %v13065_v11 = vld [vmem:[#allocation3 + $0x3ec] sm:$0xf0] }
 0x326   : > { %v4230_v3 = vpop.f32.mrf.mxu0  ;;  %v4259_v1 = vpop.f32.mrf.mxu1  ;;  %v11465_v25 = vld [vmem:[#allocation3 + $0x3e0] sm:$0xf] }
 0x327   : > { %v16783_v7 = vadd.f32 %v4259_v1, %v4230_v3  ;;  %v13125_v3 = vld [vmem:[#allocation3 + $0x5cc] sm:$0xf0]  ;;  %v11337_v1 = vld [vmem:[#allocation3 + $0x2e0] sm:$0xf]  ;;  %7652 = vmatpush.bf16.msrb.mxu0 %v11578_v9 }
 0x328   : > { %v11545_v9 = vld [vmem:[#allocation3 + $0x480] sm:$0xf] }
 0x32a   : > { %v16787_v41 = vpop.f32.mrf.mxu2 }
 0x32b   : > { %v16789_v39 = vpop.f32.mrf.mxu3 }
 0x32e   : > { %v4233_v53 = vpop.f32.mrf.mxu0  ;;  %v4262_v37 = vpop.f32.mrf.mxu1 }
 0x32f   : > { %v4263_v6 = vadd.f32 %v4262_v37, %v4233_v53  ;;  %4522 = vmatmul.bf16.gmra.mxu2 %v18493_v57  ;;  %v13033_v53 = vld [vmem:[#allocation3 + $0x2ec] sm:$0xf0]  ;;  %v11706_v37 = vor.u32 %v13125_v3, %v11705_v8  ;;  %v11466_v8 = vor.u32 %v13065_v11, %v11465_v25 }
 0x330   : > { %4551 = vmatmul.bf16.gmra.mxu3 %v18494_v27  ;;  %v13085_v3 = vld [vmem:[#allocation3 + $0x48c] sm:$0xf0] }
 0x331   : > { %4464 = vmatmul.bf16.gmra.mxu0 %v18491_v51  ;;  %4493 = vmatmul.bf16.gmra.mxu1 %v18492_v48  ;;  %v10905_v48 = vld [vmem:[#allocation2] sm:$0xf] }
 0x332   : > { %v4291_v55 = vpop.f32.mrf.mxu2  ;;  %v16807_v27 = vor.u32 %v12925_v22, %v10905_v48  ;;  %v10921_v48 = vld [vmem:[#allocation2 + $0x30] sm:$0xf]  ;;  %7681 = vmatpush.bf16.msrb.mxu1 %v11706_v37  ;;  %7622 = vmatpush.bf16.msra.mxu3 %v11466_v8  ;;  %v11449_v8 = vld [vmem:[#allocation3 + $0x3c0] sm:$0xf] }
 0x333   : > { %v4320_v17 = vpop.f32.mrf.mxu3  ;;  %v4292_v2 = vadd.f32 %v4291_v55, %v4263_v6  ;;  %v11338_v6 = vor.u32 %v13033_v53, %v11337_v1  ;;  %v11561_v55 = vld [vmem:[#allocation3 + $0x4a0] sm:$0xf]  ;;  %v16829_v19 = vor.u32 %v12929_v10, %v10921_v48  ;;  %v11546_v53 = vor.u32 %v13085_v3, %v11545_v9  ;;  %v13117_v37 = vld [vmem:[#allocation3 + $0x58c] sm:$0xf0] }
 0x334   : > { %18518 = vst [vmem:[#allocation50_spill] sm:$0xff] %v16807_v27  ;;  %v11673_v1 = vld [vmem:[#allocation3 + $0x580] sm:$0xf]  ;;  %v13113_v48 = vld [vmem:[#allocation3 + $0x56c] sm:$0xf0] }
 0x335   : > { %v16797_v54 = vadd.f32 %v4320_v17, %v4292_v2  ;;  %v13089_v17 = vld [vmem:[#allocation3 + $0x4ac] sm:$0xf0]  ;;  %v11689_v2 = vld [vmem:[#allocation3 + $0x5a0] sm:$0xf]  ;;  %7593 = vmatpush.bf16.msra.mxu2 %v11338_v6  ;;  %18520 = vst [vmem:[#allocation34_spill] sm:$0xff] %v16829_v19 }
 0x336   : > { %v4235_v47 = vpop.f32.mrf.mxu0  ;;  %v4264_v4 = vpop.f32.mrf.mxu1  ;;  %v11562_v58 = vor.u32 %v13089_v17, %v11561_v55  ;;  %v11321_v10 = vld [vmem:[#allocation3 + $0x2c0] sm:$0xf]  ;;  %v13029_v6 = vld [vmem:[#allocation3 + $0x2cc] sm:$0xf0]  ;;  %v11674_v55 = vor.u32 %v13117_v37, %v11673_v1 }
 0x337   : > { %v16795_v44 = vadd.f32 %v4264_v4, %v4235_v47  ;;  %v10923_v47 = vld [vmem:[#allocation2 + $0x40] sm:$0xf0]  ;;  %v13121_v4 = vld [vmem:[#allocation3 + $0x5ac] sm:$0xf0]  ;;  %v11322_v17 = vor.u32 %v13029_v6, %v11321_v10  ;;  %v11513_v37 = vld [vmem:[#allocation3 + $0x440] sm:$0xf] }
 0x338   : > { %v11690_v29 = vor.u32 %v13121_v4, %v11689_v2  ;;  %v16831_v13 = vor.u32 %v12927_v0, %v10923_v47  ;;  %7653 = vmatpush.bf16.msrb.mxu0 %v11562_v58  ;;  %v11529_v2 = vld [vmem:[#allocation3 + $0x460] sm:$0xf]  ;;  %v13081_v47 = vld [vmem:[#allocation3 + $0x46c] sm:$0xf0] }
 0x339   : > { %v11657_v4 = vld [vmem:[#allocation3 + $0x560] sm:$0xf]  ;;  %7594 = vmatpush.bf16.msra.mxu2 %v11322_v17  ;;  %v11530_v58 = vor.u32 %v13081_v47, %v11529_v2  ;;  %v13061_v9 = vld [vmem:[#allocation3 + $0x3cc] sm:$0xf0] }
 0x33a   : > { %v16799_v18 = vpop.f32.mrf.mxu2  ;;  %18521 = vst [vmem:[#allocation35_spill] sm:$0xff] %v16831_v13  ;;  %7682 = vmatpush.bf16.msrb.mxu1 %v11690_v29  ;;  %v11658_v11 = vor.u32 %v13113_v48, %v11657_v4  ;;  %v12933_v3 = vld [vmem:[#allocation2 + $0x6c] sm:$0xf0]  ;;  %v11450_v1 = vor.u32 %v13061_v9, %v11449_v8  ;;  %v11641_v6 = vld [vmem:[#allocation3 + $0x540] sm:$0xf] }
 0x33b   : > { %18516 = vst [vmem:[#allocation30_spill] sm:$0xff] %v16799_v18  ;;  %v16801_v51 = vpop.f32.mrf.mxu3  ;;  %v13077_v10 = vld [vmem:[#allocation3 + $0x44c] sm:$0xf0]  ;;  %v10939_v4 = vld [vmem:[#allocation2 + $0x70] sm:$0xf0] }
 0x33c   : > { %18517 = vst [vmem:[#allocation31_spill] sm:$0xff] %v16801_v51  ;;  %7654 = vmatpush.bf16.msrb.mxu0 %v11546_v53  ;;  %v11305_v53 = vld [vmem:[#allocation3 + $0x2a0] sm:$0xf]  ;;  %v13025_v17 = vld [vmem:[#allocation3 + $0x2ac] sm:$0xf0]  ;;  %7623 = vmatpush.bf16.msra.mxu3 %v11450_v1 }
 0x33d   : > { %v11306_v47 = vor.u32 %v13025_v17, %v11305_v53  ;;  %v13105_v48 = vld [vmem:[#allocation3 + $0x52c] sm:$0xf0]  ;;  %v10937_v8 = vld [vmem:[#allocation2 + $0x60] sm:$0xf] }
 0x33e   : > { %v16803_v32 = vpop.f32.mrf.mxu0  ;;  %v16805_v57 = vpop.f32.mrf.mxu1  ;;  %7683 = vmatpush.bf16.msrb.mxu1 %v11674_v55  ;;  %v11625_v55 = vld [vmem:[#allocation3 + $0x520] sm:$0xf]  ;;  %v16851_v1 = vor.u32 %v12933_v3, %v10937_v8  ;;  %v13057_v17 = vld [vmem:[#allocation3 + $0x3ac] sm:$0xf0] }
 0x33f   : > { %7595 = vmatpush.bf16.msra.mxu2 %v11306_v47  ;;  %v11433_v53 = vld [vmem:[#allocation3 + $0x3a0] sm:$0xf]  ;;  %v13101_v3 = vld [vmem:[#allocation3 + $0x50c] sm:$0xf0] }
 0x340   : > { %7655 = vmatpush.bf16.msrb.mxu0 %v11530_v58  ;;  %18522 = vst [vmem:[#allocation36_spill] sm:$0xff] %v16851_v1  ;;  %v11609_v47 = vld [vmem:[#allocation3 + $0x500] sm:$0xf]  ;;  %v13021_v18 = vld [vmem:[#allocation3 + $0x28c] sm:$0xf0] }
 0x341   : > { %7543 = vmatmul.bf16.vlgmr.msra.gmra.mxu0 %v16807_v27  ;;  %7572 = vmatmul.bf16.vlgmr.msra.gmra.mxu1 %v16809_v63  ;;  %v13109_v63 = vld [vmem:[#allocation3 + $0x54c] sm:$0xf0]  ;;  %v11497_v27 = vld [vmem:[#allocation3 + $0x420] sm:$0xf] }
 0x342   : > { %v16813_v15 = vpop.f32.mrf.mxu2  ;;  %7684 = vmatpush.bf16.msrb.mxu1 %v11658_v11  ;;  %v11642_v2 = vor.u32 %v13109_v63, %v11641_v6  ;;  %v11498_v11 = vor.u32 %v13073_v12, %v11497_v27  ;;  %v12931_v63 = vld [vmem:[#allocation2 + $0x64] sm:$0xf]  ;;  %v11481_v12 = vld [vmem:[#allocation3 + $0x400] sm:$0xf]  ;;  %v13069_v27 = vld [vmem:[#allocation3 + $0x40c] sm:$0xf0] }
 0x343   : > { %v16815_v24 = vpop.f32.mrf.mxu3  ;;  %v16853_v6 = vor.u32 %v12931_v63, %v10939_v4  ;;  %v11482_v26 = vor.u32 %v13069_v27, %v11481_v12  ;;  %v11289_v8 = vld [vmem:[#allocation3 + $0x280] sm:$0xf] }
 0x345   : > { %18523 = vst [vmem:[#allocation37_spill] sm:$0xff] %v16853_v6 }
 0x346   : > { %v16817_v30 = vpop.f32.mrf.mxu0  ;;  %v16819_v31 = vpop.f32.mrf.mxu1  ;;  %7685 = vmatpush.bf16.msrb.mxu1 %v11642_v2  ;;  %v11610_v2 = vor.u32 %v13101_v3, %v11609_v47 }
 0x34a   : > { %v16821_v22 = vpop.f32.mrf.mxu2 }
 0x34b   : > { %v16823_v33 = vpop.f32.mrf.mxu3 }
 0x34e   : > { %v16825_v59 = vpop.f32.mrf.mxu0  ;;  %v16827_v50 = vpop.f32.mrf.mxu1 }
 0x351   : > { %7548 = vmatmul.bf16.gmra.mxu0 %v16829_v19  ;;  %7577 = vmatmul.bf16.gmra.mxu1 %v16831_v13  ;;  %v11514_v19 = vor.u32 %v13077_v10, %v11513_v37  ;;  %v11626_v10 = vor.u32 %v13105_v48, %v11625_v55  ;;  %v11290_v55 = vor.u32 %v13021_v18, %v11289_v8 }
 0x352   : > { %v16835_v0 = vpop.f32.mrf.mxu2  ;;  %v4335_v8 = vadd.f32 %v16803_v32, %v16761_v43 }
 0x353   : > { %v16837_v13 = vpop.f32.mrf.mxu3  ;;  %7656 = vmatpush.bf16.msrb.mxu0 %v11514_v19  ;;  %v11434_v19 = vor.u32 %v13057_v17, %v11433_v53  ;;  %7686 = vmatpush.bf16.msrb.mxu1 %v11626_v10  ;;  %v12937_v53 = vld [vmem:[#allocation2 + $0x9c] sm:$0xf0]  ;;  %v10955_v10 = vld [vmem:[#allocation2 + $0xa0] sm:$0xf0] }
 0x354   : > { %7596 = vmatpush.bf16.msra.mxu2 %v11290_v55 }
 0x355   : > { %7624 = vmatpush.bf16.msra.mxu3 %v11434_v19  ;;  %v10953_v19 = vld [vmem:[#allocation2 + $0x90] sm:$0xf] }
 0x356   : > { %v16839_v25 = vpop.f32.mrf.mxu0  ;;  %v16841_v29 = vpop.f32.mrf.mxu1  ;;  %v16873_v47 = vor.u32 %v12937_v53, %v10953_v19  ;;  %v11417_v19 = vld [vmem:[#allocation3 + $0x380] sm:$0xf] }
 0x357   : > { %7657 = vmatpush.bf16.msrb.mxu0 %v11498_v11  ;;  %7687 = vmatpush.bf16.msrb.mxu1 %v11610_v2 }
 0x358   : > { %18525 = vst [vmem:[#allocation39_spill] sm:$0xff] %v16873_v47 }
 0x35a   : > { %v16843_v51 = vpop.f32.mrf.mxu2 }
 0x35b   : > { %v16845_v58 = vpop.f32.mrf.mxu3  ;;  %7658 = vmatpush.bf16.msrb.mxu0 %v11482_v26  ;;  %v12935_v26 = vld [vmem:[#allocation2 + $0x94] sm:$0xf] }
 0x35c   : > { %v16875_v3 = vor.u32 %v12935_v26, %v10955_v10  ;;  %v4364_v10 = vadd.f32 %v16805_v57, %v4335_v8  ;;  %v13053_v26 = vld [vmem:[#allocation3 + $0x38c] sm:$0xf0] }
 0x35d   : > { %v11418_v32 = vor.u32 %v13053_v26, %v11417_v19  ;;  %v13345_v26 = vld [vmem:[%s18230_s3 + $0x1] ss:$4 sm:$0xf] }
 0x35e   : > { %v16847_v9 = vpop.f32.mrf.mxu0  ;;  %v16849_v37 = vpop.f32.mrf.mxu1  ;;  %18526 = vst [vmem:[#allocation40_spill] sm:$0xff] %v16875_v3  ;;  %v4393_v43 = vadd.f32 %v16813_v15, %v4364_v10  ;;  %v13013_v10 = vld [vmem:[#allocation3 + $0x24c] sm:$0xf0] }
 0x35f   : > { %7625 = vmatpush.bf16.msra.mxu3 %v11418_v32 }
 0x360   : > { %v4422_v57 = vadd.f32 %v16815_v24, %v4393_v43  ;;  %v4340_v43 = vadd.f32 %v16825_v59, %v16773_v60  ;;  %v16924_v59 = vperm.slane %v13345_v26, 3 }
 0x361   : > { %7553 = vmatmul.bf16.gmra.mxu0 %v16851_v1  ;;  %7582 = vmatmul.bf16.gmra.mxu1 %v16853_v6  ;;  %v4279_v6 = vadd.f32 %v16763_v14, %v16759_v52 }
 0x362   : > { %v16857_v4 = vpop.f32.mrf.mxu2 }
 0x363   : > { %v16859_v48 = vpop.f32.mrf.mxu3 }
 0x366   : > { %v16861_v63 = vpop.f32.mrf.mxu0  ;;  %v16863_v11 = vpop.f32.mrf.mxu1 }
 0x36a   : > { %v16865_v17 = vpop.f32.mrf.mxu2 }
 0x36b   : > { %v16867_v12 = vpop.f32.mrf.mxu3 }
 0x36e   : > { %v16869_v27 = vpop.f32.mrf.mxu0  ;;  %v16871_v18 = vpop.f32.mrf.mxu1 }
 0x36f   : > { %18524 = vst [vmem:[#allocation38_spill] sm:$0xff] %v16871_v18 }
 0x371   : > { %7558 = vmatmul.bf16.gmra.mxu0 %v16873_v47  ;;  %7587 = vmatmul.bf16.gmra.mxu1 %v16875_v3  ;;  %v11273_v47 = vld [vmem:[#allocation3 + $0x260] sm:$0xf]  ;;  %v4308_v3 = vadd.f32 %v16765_v42, %v4279_v6 }
 0x372   : > { %v16881_v2 = vpop.f32.mrf.mxu2  ;;  %v13344_v42 = vld [vmem:[%s18230_s3] ss:$4 sm:$0xf] }
 0x373   : > { %18527 = vst [vmem:[#allocation41_spill] sm:$0xff] %v16881_v2  ;;  %v16883_v55 = vpop.f32.mrf.mxu3  ;;  %v13017_v2 = vld [vmem:[#allocation3 + $0x26c] sm:$0xf0]  ;;  %v16903_v15 = vperm.slane %v13344_v42, 2 }
 0x374   : > { %18528 = vst [vmem:[#allocation42_spill] sm:$0xff] %v16883_v55  ;;  %v11274_v18 = vor.u32 %v13017_v2, %v11273_v47  ;;  %v4337_v55 = vadd.f32 %v16817_v30, %v4308_v3  ;;  %v11401_v30 = vld [vmem:[#allocation3 + $0x360] sm:$0xf]  ;;  %v13049_v3 = vld [vmem:[#allocation3 + $0x36c] sm:$0xf0] }
 0x375   : > { %v11402_v24 = vor.u32 %v13049_v3, %v11401_v30  ;;  %v11257_v2 = vld [vmem:[#allocation3 + $0x240] sm:$0xf]  ;;  %v4568_v19 = vmul.f32 %v16903_v15, %v16637_v35  ;;  %v13045_v35 = vld [vmem:[#allocation3 + $0x34c] sm:$0xf0] }
 0x376   : > { %v16887_v1 = vpop.f32.mrf.mxu0  ;;  %v16889_v53 = vpop.f32.mrf.mxu1  ;;  %7597 = vmatpush.bf16.msra.mxu2 %v11274_v18  ;;  %v4366_v6 = vadd.f32 %v16819_v31, %v4337_v55  ;;  %v16914_v31 = vperm.slane %v13345_v26, 2  ;;  %v11258_v55 = vor.u32 %v13013_v10, %v11257_v2 }
 0x377   : > { %18529 = vst [vmem:[#allocation43_spill] sm:$0xff] %v16889_v53  ;;  %7626 = vmatpush.bf16.msra.mxu3 %v11402_v24  ;;  %v12105_v24 = vld [vmem:[#allocation3 + $0x8e0] sm:$0xf] }
 0x378   : > { %v4395_v18 = vadd.f32 %v16821_v22, %v4366_v6  ;;  %v4284_v22 = vadd.f32 %v16775_v45, %v16771_v40  ;;  %v11385_v6 = vld [vmem:[#allocation3 + $0x340] sm:$0xf]  ;;  %v4609_v60 = vadd.f32 %v16914_v31, %v4568_v19  ;;  %v4369_v40 = vadd.f32 %v16827_v50, %v4340_v43 }
 0x379   : > { %v11386_v10 = vor.u32 %v13045_v35, %v11385_v6 }
 0x37a   : > { %v16895_v52 = vpop.f32.mrf.mxu2  ;;  %7598 = vmatpush.bf16.msra.mxu2 %v11258_v55  ;;  %v4424_v30 = vadd.f32 %v16823_v33, %v4395_v18  ;;  %v13225_v55 = vld [vmem:[#allocation3 + $0x8ec] sm:$0xf0]  ;;  %v12233_v33 = vld [vmem:[#allocation3 + $0x9e0] sm:$0xf]  ;;  %v4398_v19 = vadd.f32 %v16835_v0, %v4369_v40  ;;  %v4572_v40 = vmul.f32 %v16903_v15, %v16661_v21 }
 0x37b   : > { %18530 = vst [vmem:[#allocation44_spill] sm:$0xff] %v16895_v52  ;;  %v16897_v14 = vpop.f32.mrf.mxu3  ;;  %7627 = vmatpush.bf16.msra.mxu3 %v11386_v10  ;;  %v11241_v18 = vld [vmem:[#allocation3 + $0x220] sm:$0xf]  ;;  %v12106_v6 = vor.u32 %v13225_v55, %v12105_v24  ;;  %v13257_v52 = vld [vmem:[#allocation3 + $0x9ec] sm:$0xf0] }
 0x37c   : > { %18531 = vst [vmem:[#allocation45_spill] sm:$0xff] %v16897_v14  ;;  %v13041_v14 = vld [vmem:[#allocation3 + $0x32c] sm:$0xf0]  ;;  %v12217_v0 = vld [vmem:[#allocation3 + $0x9c0] sm:$0xf] }
 0x37d   : > { %7767 = vmatpush.bf16.msra.mxu0 %v12106_v6  ;;  %v13221_v10 = vld [vmem:[#allocation3 + $0x8cc] sm:$0xf0] }
 0x37e   : > { %v4450_v8 = vpop.f32.mrf.mxu0  ;;  %v4479_v53 = vpop.f32.mrf.mxu1  ;;  %v13253_v21 = vld [vmem:[#allocation3 + $0x9cc] sm:$0xf0] }
 0x37f   : > { %v4451_v47 = vadd.f32 %v4450_v8, %v4422_v57 }
 0x381   : > { %7659 = vmatmul.bf16.vlgmr.msrb.gmra.mxu0 %v15934_v56  ;;  %7688 = vmatmul.bf16.vlgmr.msrb.gmra.mxu1 %v15936_v23  ;;  %v4480_v32 = vadd.f32 %v4479_v53, %v4451_v47  ;;  %v16921_v23 = vperm.slane %v13344_v42, 3  ;;  %v16926_v53 = vld [vmem:[#allocation2 + $0x10] sm:$0xff]  ;;  %v4313_v42 = vadd.f32 %v16777_v28, %v4284_v22 }
 0x382   : > { %v4508_v57 = vpop.f32.mrf.mxu2  ;;  %v4961_v50 = vrot.slane %v16926_v53, 5 }
 0x383   : > { %v4537_v8 = vpop.f32.mrf.mxu3  ;;  %v4509_v3 = vadd.f32 %v4508_v57, %v4480_v32  ;;  %v13009_v32 = vld [vmem:[#allocation3 + $0x22c] sm:$0xf0]  ;;  %v11369_v57 = vld [vmem:[#allocation3 + $0x320] sm:$0xf]  ;;  %v4342_v43 = vadd.f32 %v16839_v25, %v4313_v42 }
 0x384   : > { %v11242_v35 = vor.u32 %v13009_v32, %v11241_v18  ;;  %v11225_v25 = vld [vmem:[#allocation3 + $0x200] sm:$0xf] }
 0x385   : > { %v4538_v45 = vadd.f32 %v4537_v8, %v4509_v3  ;;  %v11370_v8 = vor.u32 %v13041_v14, %v11369_v57  ;;  %v12089_v3 = vld [vmem:[#allocation3 + $0x8c0] sm:$0xf]  ;;  %v13005_v14 = vld [vmem:[#allocation3 + $0x20c] sm:$0xf0]  ;;  %v4371_v6 = vadd.f32 %v16841_v29, %v4342_v43 }
 0x386   : > { %v4452_v56 = vpop.f32.mrf.mxu0  ;;  %v4481_v2 = vpop.f32.mrf.mxu1  ;;  %7599 = vmatpush.bf16.msra.mxu2 %v11242_v35  ;;  %v12090_v55 = vor.u32 %v13221_v10, %v12089_v3  ;;  %v11226_v32 = vor.u32 %v13005_v14, %v11225_v25  ;;  %v13037_v57 = vld [vmem:[#allocation3 + $0x30c] sm:$0xf0]  ;;  %v12218_v35 = vor.u32 %v13253_v21, %v12217_v0 }
 0x387   : > { %v4453_v47 = vadd.f32 %v4452_v56, %v4424_v30  ;;  %v4569_v26 = vmul.f32 %v16921_v23, %v4538_v45  ;;  %v4641_v56 = vmax.f32 %v4609_v60, 0.0  ;;  %v12234_v30 = vor.u32 %v13257_v52, %v12233_v33  ;;  %7628 = vmatpush.bf16.msra.mxu3 %v11370_v8  ;;  %v11353_v52 = vld [vmem:[#allocation3 + $0x300] sm:$0xf]  ;;  %v13245_v21 = vld [vmem:[#allocation3 + $0x98c] sm:$0xf0] }
 0x388   : > { %v4576_v45 = vmul.f32 %v16903_v15, %v16698_v20  ;;  %v4345_v20 = vadd.f32 %v16847_v9, %v16785_v36  ;;  %7768 = vmatpush.bf16.msra.mxu0 %v12090_v55  ;;  %v13249_v36 = vld [vmem:[#allocation3 + $0x9ac] sm:$0xf0]  ;;  %v4400_v9 = vadd.f32 %v16843_v51, %v4371_v6  ;;  %v16961_v51 = vrot.slane %v4961_v50, 4  ;;  %v12057_v55 = vld [vmem:[#allocation3 + $0x880] sm:$0xf] }
 0x389   : > { %v4610_v28 = vadd.f32 %v16924_v59, %v4569_v26  ;;  %v4482_v22 = vadd.f32 %v4481_v2, %v4453_v47  ;;  %7796 = vmatpush.bf16.msra.mxu1 %v12234_v30  ;;  %v4427_v2 = vadd.f32 %v16837_v13, %v4398_v19  ;;  %v11354_v26 = vor.u32 %v13037_v57, %v11353_v52  ;;  %v12073_v13 = vld [vmem:[#allocation3 + $0x8a0] sm:$0xf]  ;;  %v13217_v19 = vld [vmem:[#allocation3 + $0x8ac] sm:$0xf0] }
 0x38a   : > { %v4510_v24 = vpop.f32.mrf.mxu2  ;;  %7600 = vmatpush.bf16.msra.mxu2 %v11226_v32  ;;  %v12074_v29 = vor.u32 %v13217_v19, %v12073_v13  ;;  %v16952_v0 = vadd.f32 %v16914_v31, %v4576_v45  ;;  %v12185_v57 = vld [vmem:[#allocation3 + $0x980] sm:$0xf]  ;;  %v4429_v6 = vadd.f32 %v16845_v58, %v4400_v9 }
 0x38b   : > { %v4539_v60 = vpop.f32.mrf.mxu3  ;;  %v4642_v47 = vmax.f32 %v4610_v28, 0.0  ;;  %v4511_v33 = vadd.f32 %v4510_v24, %v4482_v22  ;;  %v12201_v28 = vld [vmem:[#allocation3 + $0x9a0] sm:$0xf]  ;;  %v4613_v22 = vadd.f32 %v16914_v31, %v4572_v40  ;;  %7629 = vmatpush.bf16.msra.mxu3 %v11354_v26  ;;  %v4289_v24 = vadd.f32 %v16787_v41, %v16783_v7 }
 0x38c   : > { %v12202_v10 = vor.u32 %v13249_v36, %v12201_v28  ;;  %v4374_v40 = vadd.f32 %v16849_v37, %v4345_v20  ;;  %7769 = vmatpush.bf16.msra.mxu0 %v12074_v29  ;;  %v4580_v7 = vmul.f32 %v16903_v15, %v16734_v62  ;;  %v4850_v37 = vld [vmem:[#allocation2 + $0x8] sm:$0xff]  ;;  %v12041_v29 = vld [vmem:[#allocation3 + $0x860] sm:$0xf]  ;;  %v13209_v36 = vld [vmem:[#allocation3 + $0x86c] sm:$0xf0] }
 0x38d   : > { %v16943_v8 = vpack.c.bf16 %v4642_v47, %v4641_v56  ;;  %v4540_v30 = vadd.f32 %v4539_v60, %v4511_v33  ;;  %7797 = vmatpush.bf16.msra.mxu1 %v12218_v35  ;;  %v16957_v60 = vld [vmem:[#allocation2 + $0x20] sm:$0x11]  ;;  %v4645_v47 = vmax.f32 %v4613_v22, 0.0  ;;  %v4318_v62 = vadd.f32 %v16789_v39, %v4289_v24 }
 0x38e   : > { %v4455_v42 = vpop.f32.mrf.mxu0  ;;  %v4484_v18 = vpop.f32.mrf.mxu1  ;;  %v4403_v41 = vadd.f32 %v16857_v4, %v4374_v40  ;;  %v12186_v4 = vor.u32 %v13245_v21, %v12185_v57  ;;  %v4968_v13 = vrot.slane %v16957_v60, 5  ;;  %v12169_v9 = vld [vmem:[#allocation3 + $0x960] sm:$0xf]  ;;  %v12042_v24 = vor.u32 %v13209_v36, %v12041_v29  ;;  %v13205_v57 = vld [vmem:[#allocation3 + $0x84c] sm:$0xf0] }
 0x38f   : > { %v4456_v3 = vadd.f32 %v4455_v42, %v4427_v2  ;;  %v4695_v56 = vshrl.u32 %v16943_v8, 16  ;;  %v4573_v43 = vmul.f32 %v16921_v23, %v4540_v30  ;;  %v4698_v14 = vshll.u32 %v16943_v8, 16  ;;  %v13213_v2 = vld [vmem:[#allocation3 + $0x88c] sm:$0xf0] }
 0x390   : > { %v12058_v32 = vor.u32 %v13213_v2, %v12057_v55  ;;  %v4347_v39 = vadd.f32 %v16861_v63, %v4318_v62  ;;  %v5105_v55 = vunpack.c.l.b16 %v16943_v8  ;;  %v4858_v2 = vld [vmem:[#allocation2 + $0x28] sm:$0x11] }
 0x391   : > { %7664 = vmatmul.bf16.gmra.mxu0 %v15993_v5  ;;  %7693 = vmatmul.bf16.gmra.mxu1 %v15998_v61  ;;  %v16963_v25 = vrot.slane %v4695_v56, 7  ;;  %v4614_v52 = vadd.f32 %v16924_v59, %v4573_v43  ;;  %v4485_v45 = vadd.f32 %v4484_v18, %v4456_v3  ;;  %v4649_v3 = vmax.f32 %v16952_v0, 0.0  ;;  %v13161_v0 = vld [vmem:[#allocation3 + $0x6ec] sm:$0xf0] }
 0x392   : > { %v4513_v33 = vpop.f32.mrf.mxu2  ;;  %7798 = vmatpush.bf16.msra.mxu1 %v12202_v10  ;;  %7770 = vmatpush.bf16.msra.mxu0 %v12058_v32  ;;  %v16978_v56 = vadd.f32 %v16914_v31, %v4580_v7  ;;  %v4432_v43 = vadd.f32 %v16859_v48, %v4403_v41  ;;  %v11849_v10 = vld [vmem:[#allocation3 + $0x6e0] sm:$0xf]  ;;  %v5106_v48 = vunpack.c.h.b16 %v16943_v8 }
 0x393   : > { %v4542_v42 = vpop.f32.mrf.mxu3  ;;  %v4700_v20 = vor.u32 %v4698_v14, %v16963_v25  ;;  %v4646_v26 = vmax.f32 %v4614_v52, 0.0  ;;  %v4514_v18 = vadd.f32 %v4513_v33, %v4485_v45  ;;  %v11850_v52 = vor.u32 %v13161_v0, %v11849_v10  ;;  %v13241_v45 = vld [vmem:[#allocation3 + $0x96c] sm:$0xf0]  ;;  %v12025_v32 = vld [vmem:[#allocation3 + $0x840] sm:$0xf] }
 0x394   : > { %v4710_v21 = vrot.slane %v16963_v25, 4  ;;  %v4376_v25 = vadd.f32 %v16863_v11, %v4347_v39  ;;  %v18535_v39 = vld [vmem:[#allocation49_spill] sm:$0xff] }
 0x395   : > { %v4851_v19 = vsel %vm13745_vm15, %v4700_v20, %v4850_v37  ;;  %v4674_v28 = vpack.c.bf16 %v4646_v26, %v4645_v47  ;;  %v4543_v58 = vadd.f32 %v4542_v42, %v4514_v18  ;;  %v12170_v47 = vor.u32 %v13241_v45, %v12169_v9  ;;  %7709 = vmatpush.bf16.msrb.mxu2 %v11850_v52  ;;  %v12153_v18 = vld [vmem:[#allocation3 + $0x940] sm:$0xf] }
 0x396   : > { %v4457_v35 = vpop.f32.mrf.mxu0  ;;  %v4486_v30 = vpop.f32.mrf.mxu1  ;;  %4852 = vst [vmem:[#allocation2 + $0x8] sm:$0xff] %v4851_v19  ;;  %7799 = vmatpush.bf16.msra.mxu1 %v12186_v4  ;;  %7771 = vmatpush.bf16.msra.mxu0 %v12042_v24  ;;  %v12026_v26 = vor.u32 %v13205_v57, %v12025_v32  ;;  %v12009_v52 = vld [vmem:[#allocation3 + $0x820] sm:$0xf]  ;;  %v4653_v45 = vmax.f32 %v16978_v56, 0.0  ;;  %v4405_v11 = vadd.f32 %v16865_v17, %v4376_v25 }
 0x397   : > { %v4458_v22 = vadd.f32 %v4457_v35, %v4429_v6  ;;  %v4712_v40 = vshrl.u32 %v4674_v28, 16  ;;  %v4577_v14 = vmul.f32 %v16921_v23, %v4543_v58  ;;  %v5109_v7 = vunpack.c.l.b16 %v4674_v28  ;;  %v13237_v35 = vld [vmem:[#allocation3 + $0x94c] sm:$0xf0]  ;;  %v11977_v56 = vld [vmem:[#allocation3 + $0x7e0] sm:$0xf] }
 0x398   : > { %v5110_v41 = vunpack.c.h.b16 %v4674_v28  ;;  %v4715_v37 = vshll.u32 %v4674_v28, 16  ;;  %v12154_v9 = vor.u32 %v13237_v35, %v12153_v18  ;;  %v18536_v17 = vld [vmem:[#allocation30_spill] sm:$0xff] }
 0x399   : > { %v4714_v63 = vrot.slane %v4712_v40, 7  ;;  %v4618_v33 = vadd.f32 %v16924_v59, %v4577_v14  ;;  %v4487_v42 = vadd.f32 %v4486_v30, %v4458_v22  ;;  %v16987_v62 = vpack.c.b16 %v5109_v7, %v5105_v55  ;;  %v18534_v14 = vld [vmem:[#allocation52_spill] sm:$0xff] }
 0x39a   : > { %v4515_v6 = vpop.f32.mrf.mxu2  ;;  %v16989_v4 = vpack.c.b16 %v5110_v41, %v5106_v48  ;;  %7800 = vmatpush.bf16.msra.mxu1 %v12170_v47  ;;  %v4584_v22 = vmul.f32 %v16903_v15, %v16741_v16  ;;  %7772 = vmatpush.bf16.msra.mxu0 %v12026_v26  ;;  %v4588_v16 = vmul.f32 %v16903_v15, %v16744_v46  ;;  %v13201_v55 = vld [vmem:[#allocation3 + $0x82c] sm:$0xf0]  ;;  %v11833_v41 = vld [vmem:[#allocation3 + $0x6c0] sm:$0xf] }
 0x39b   : > { %v4544_v20 = vpop.f32.mrf.mxu3  ;;  %18532 = vst [vmem:[#allocation46_spill] sm:$0xff] %v16987_v62  ;;  %v4717_v8 = vor.u32 %v4715_v37, %v4714_v63  ;;  %v4720_v19 = vrot.slane %v4714_v63, 4  ;;  %v4650_v28 = vmax.f32 %v4618_v33, 0.0  ;;  %v4516_v58 = vadd.f32 %v4515_v6, %v4487_v42  ;;  %v13193_v48 = vld [vmem:[#allocation3 + $0x7ec] sm:$0xf0]  ;;  %v4864_v33 = vld [vmem:[#allocation2 + $0x38] sm:$0xff] }
 0x39c   : > { %18533 = vst [vmem:[#allocation47_spill] sm:$0xff] %v16989_v4  ;;  %v12010_v7 = vor.u32 %v13201_v55, %v12009_v52  ;;  %v17012_v46 = vadd.f32 %v16914_v31, %v4584_v22  ;;  %v13157_v63 = vld [vmem:[#allocation3 + $0x6cc] sm:$0xf0]  ;;  %v11978_v32 = vor.u32 %v13193_v48, %v11977_v56  ;;  %v4434_v26 = vadd.f32 %v16867_v12, %v4405_v11 }
 0x39d   : > { %v4718_v10 = vsel %vm13728_vm14, %v4710_v21, %v4717_v8  ;;  %v4859_v0 = vsel %vm13590_vm7, %v4720_v19, %v4858_v2  ;;  %v16998_v24 = vpack.c.bf16 %v4650_v28, %v4649_v3  ;;  %v4545_v40 = vadd.f32 %v4544_v20, %v4516_v58  ;;  %v12137_v21 = vld [vmem:[#allocation3 + $0x920] sm:$0xf]  ;;  %v13233_v6 = vld [vmem:[#allocation3 + $0x92c] sm:$0xf0]  ;;  %v10913_v55 = vld [vmem:[#allocation2 + $0x8] sm:$0xf] }
 0x39e   : > { %v4460_v29 = vpop.f32.mrf.mxu0  ;;  %v4489_v30 = vpop.f32.mrf.mxu1  ;;  %4854 = vst [vmem:[#allocation2 + $0x18] sm:$0xff] %v4718_v10  ;;  %7801 = vmatpush.bf16.msra.mxu1 %v12154_v9  ;;  %v11834_v57 = vor.u32 %v13157_v63, %v11833_v41  ;;  %7773 = vmatpush.bf16.msra.mxu0 %v12010_v7  ;;  %v17020_v20 = vadd.f32 %v16914_v31, %v4588_v16  ;;  %v11993_v28 = vld [vmem:[#allocation3 + $0x800] sm:$0xf]  ;;  %v13197_v58 = vld [vmem:[#allocation3 + $0x80c] sm:$0xf0]  ;;  %v18540_v16 = vld [vmem:[#allocation41_spill] sm:$0xff] }
 0x39f   : > { %v4461_v36 = vadd.f32 %v4460_v29, %v4432_v43  ;;  %v4350_v43 = vadd.f32 %v16869_v27, %v16797_v54  ;;  %4860 = vst [vmem:[#allocation2 + $0x28] sm:$0x11] %v4859_v0  ;;  %v4729_v3 = vshrl.u32 %v16998_v24, 16  ;;  %v4732_v2 = vshll.u32 %v16998_v24, 16  ;;  %v12121_v29 = vld [vmem:[#allocation3 + $0x900] sm:$0xf]  ;;  %7738 = vmatpush.bf16.msrb.mxu3 %v11978_v32 }
 0x3a0   : > { %v4581_v47 = vmul.f32 %v16921_v23, %v4545_v40  ;;  %v4294_v54 = vadd.f32 %v18536_v17, %v16795_v44  ;;  %v18537_v44 = vld [vmem:[#allocation38_spill] sm:$0xff]  ;;  %v12138_v19 = vor.u32 %v13233_v6, %v12137_v21  ;;  %7710 = vmatpush.bf16.msrb.mxu2 %v11834_v57  ;;  %v13229_v12 = vld [vmem:[#allocation3 + $0x90c] sm:$0xf0]  ;;  %v18539_v40 = vld [vmem:[#allocation31_spill] sm:$0xff]  ;;  %v4657_v41 = vmax.f32 %v17012_v46, 0.0 }
 0x3a1   : > { %7669 = vmatmul.bf16.gmra.mxu0 %v18534_v14  ;;  %7698 = vmatmul.bf16.gmra.mxu1 %v18535_v39  ;;  %v4490_v27 = vadd.f32 %v4489_v30, %v4461_v36  ;;  %v17016_v37 = vrot.slane %v4729_v3, 7  ;;  %v4379_v18 = vadd.f32 %v18537_v44, %v4350_v43  ;;  %v18538_v30 = vld [vmem:[#allocation28_spill] sm:$0xff]  ;;  %v11994_v3 = vor.u32 %v13197_v58, %v11993_v28  ;;  %v12924_v17 = vld [vmem:[#allocation2 + $0xc] sm:$0xf]  ;;  %v11961_v32 = vld [vmem:[#allocation3 + $0x7c0] sm:$0xf] }
 0x3a2   : > { %v4622_v42 = vadd.f32 %v16924_v59, %v4581_v47  ;;  %v4518_v35 = vpop.f32.mrf.mxu2  ;;  %v17026_v22 = vmul.f32 %v16903_v15, %v18538_v30  ;;  %v4323_v52 = vadd.f32 %v18539_v40, %v4294_v54  ;;  %7802 = vmatpush.bf16.msra.mxu1 %v12138_v19  ;;  %v12122_v48 = vor.u32 %v13229_v12, %v12121_v29  ;;  %v13189_v57 = vld [vmem:[#allocation3 + $0x7cc] sm:$0xf0]  ;;  %v11817_v6 = vld [vmem:[#allocation3 + $0x6a0] sm:$0xf] }
 0x3a3   : > { %v4547_v8 = vpop.f32.mrf.mxu3  ;;  %v4734_v25 = vor.u32 %v4732_v2, %v17016_v37  ;;  %v4519_v9 = vadd.f32 %v4518_v35, %v4490_v27  ;;  %v4408_v11 = vadd.f32 %v18540_v16, %v4379_v18  ;;  %7774 = vmatpush.bf16.msra.mxu0 %v11994_v3  ;;  %v5113_v44 = vunpack.c.l.b16 %v16998_v24  ;;  %v4919_v29 = vld [vmem:[#allocation2] sm:$0xee] }
 0x3a4   : > { %v4654_v36 = vmax.f32 %v4622_v42, 0.0  ;;  %v4352_v63 = vadd.f32 %v16887_v1, %v4323_v52  ;;  %v5114_v18 = vunpack.c.h.b16 %v16998_v24  ;;  %v18543_v30 = vld [vmem:[#allocation42_spill] sm:$0xff]  ;;  %v17071_v60 = vadd.f32 %v16914_v31, %v17026_v22 }
 0x3a5   : > { %v4865_v47 = vsel %vm13745_vm15, %v4734_v25, %v4864_v33  ;;  %v4548_v2 = vadd.f32 %v4547_v8, %v4519_v9  ;;  %v12926_v7 = vld [vmem:[#allocation2 + $0x14] sm:$0xf0]  ;;  %v10915_v27 = vld [vmem:[#allocation2 + $0x18] sm:$0xf0]  ;;  %v11962_v33 = vor.u32 %v13189_v57, %v11961_v32  ;;  %v4437_v25 = vadd.f32 %v18543_v30, %v4408_v11  ;;  %v13181_v30 = vld [vmem:[#allocation3 + $0x78c] sm:$0xf0] }
 0x3a6   : > { %v4462_v10 = vpop.f32.mrf.mxu0  ;;  %v4491_v0 = vpop.f32.mrf.mxu1  ;;  %v4678_v56 = vpack.c.bf16 %v4654_v36, %v4653_v45  ;;  %4866 = vst [vmem:[#allocation2 + $0x38] sm:$0xff] %v4865_v47  ;;  %v17035_v54 = vor.u32 %v12926_v7, %v10913_v55  ;;  %v17037_v42 = vor.u32 %v12924_v17, %v10915_v27  ;;  %7803 = vmatpush.bf16.msra.mxu1 %v12122_v48  ;;  %v4744_v36 = vrot.slane %v17016_v37, 4  ;;  %v4872_v9 = vld [vmem:[#allocation2 + $0x58] sm:$0x11]  ;;  %v17051_v47 = vld [vmem:[#allocation2 + $0x40] sm:$0xff] }
 0x3a7   : > { %v4463_v43 = vadd.f32 %v4462_v10, %v4434_v26  ;;  %v4585_v45 = vmul.f32 %v16921_v23, %v4548_v2  ;;  %v13153_v26 = vld [vmem:[#allocation3 + $0x6ac] sm:$0xf0]  ;;  %7739 = vmatpush.bf16.msrb.mxu3 %v11962_v33  ;;  %v10895_v37 = vrot.slane %v4919_v29, 9  ;;  %v17059_v17 = vsel %vm14431_vm5, %v16961_v51, %v4968_v13  ;;  %v18550_v13 = vld [vmem:[#allocation53_spill] sm:$0xff]  ;;  %v11929_v29 = vld [vmem:[#allocation3 + $0x780] sm:$0xf] }
 0x3a8   : > { %18541 = vst [vmem:[#allocation48_spill] sm:$0xff] %v17035_v54  ;;  %v4746_v21 = vshrl.u32 %v4678_v56, 16  ;;  %7601 = vmatmul.bf16.vlgmr.msra.gmra.mxu2 %v17035_v54  ;;  %7630 = vmatmul.bf16.vlgmr.msra.gmra.mxu3 %v17037_v42  ;;  %v11818_v1 = vor.u32 %v13153_v26, %v11817_v6  ;;  %v5117_v46 = vunpack.c.l.b16 %v4678_v56  ;;  %v5118_v35 = vunpack.c.h.b16 %v4678_v56  ;;  %v12171_v7 = vld [vmem:[#allocation3 + $0x970] sm:$0xf0] }
 0x3a9   : > { %18542 = vst [vmem:[#allocation9_spill] sm:$0xff] %v17037_v42  ;;  %v4749_v19 = vshll.u32 %v4678_v56, 16  ;;  %v4626_v28 = vadd.f32 %v16924_v59, %v4585_v45  ;;  %v4492_v58 = vadd.f32 %v4491_v0, %v4463_v43  ;;  %v18546_v56 = vld [vmem:[#allocation43_spill] sm:$0xff]  ;;  %v18549_v45 = vld [vmem:[#allocation44_spill] sm:$0xff]  ;;  %v4975_v33 = vrot.slane %v17051_v47, 5 }
 0x3aa   : > { %v4748_v8 = vrot.slane %v4746_v21, 7  ;;  %v4520_v10 = vpop.f32.mrf.mxu2  ;;  %7711 = vmatpush.bf16.msrb.mxu2 %v11818_v1  ;;  %v17047_v40 = vpack.c.b16 %v5117_v46, %v5113_v44  ;;  %v17049_v24 = vpack.c.b16 %v5118_v35, %v5114_v18  ;;  %v4381_v11 = vadd.f32 %v18546_v56, %v4352_v63  ;;  %v18548_v21 = vld [vmem:[#allocation51_spill] sm:$0xff]  ;;  %v11945_v44 = vld [vmem:[#allocation3 + $0x7a0] sm:$0xf]  ;;  %v13185_v1 = vld [vmem:[#allocation3 + $0x7ac] sm:$0xf0] }
 0x3ab   : > { %v4549_v12 = vpop.f32.mrf.mxu3  ;;  %v4658_v55 = vmax.f32 %v4626_v28, 0.0  ;;  %v4521_v3 = vadd.f32 %v4520_v10, %v4492_v58  ;;  %v4661_v63 = vmax.f32 %v17020_v20, 0.0  ;;  %v17083_v20 = vsel %vm14431_vm5, %v10895_v37, %v4961_v50  ;;  %v11801_v18 = vld [vmem:[#allocation3 + $0x680] sm:$0xf]  ;;  %v13149_v35 = vld [vmem:[#allocation3 + $0x68c] sm:$0xf0] }
 0x3ac   : > { %18544 = vst [vmem:[#allocation10_spill] sm:$0xff] %v17047_v40  ;;  %v4751_v52 = vor.u32 %v4749_v19, %v4748_v8  ;;  %v4754_v16 = vrot.slane %v4748_v8, 4  ;;  %v4410_v51 = vadd.f32 %v18549_v45, %v4381_v11  ;;  %v5171_v46 = vunpack.c.l.b16 %v17059_v17  ;;  %v4878_v50 = vld [vmem:[#allocation2 + $0x68] sm:$0xff]  ;;  %v13177_v37 = vld [vmem:[#allocation3 + $0x76c] sm:$0xf0] }
 0x3ad   : > { %18545 = vst [vmem:[#allocation11_spill] sm:$0xff] %v17049_v24  ;;  %v17065_v32 = vpack.c.bf16 %v4658_v55, %v4657_v41  ;;  %v4550_v57 = vadd.f32 %v4549_v12, %v4521_v3  ;;  %v11946_v28 = vor.u32 %v13185_v1, %v11945_v44  ;;  %v11802_v58 = vor.u32 %v13149_v35, %v11801_v18  ;;  %v12928_v18 = vld [vmem:[#allocation2 + $0x3c] sm:$0xf]  ;;  %v11195_v47 = vld [vmem:[#allocation3 + $0x1d0] sm:$0xf0] }
 0x3ae   : > { %v4465_v0 = vpop.f32.mrf.mxu0  ;;  %v4494_v43 = vpop.f32.mrf.mxu1  ;;  %v4752_v27 = vsel %vm13728_vm14, %v4744_v36, %v4751_v52  ;;  %v4873_v48 = vsel %vm13590_vm7, %v4754_v16, %v4872_v9  ;;  %v4665_v53 = vmax.f32 %v17071_v60, 0.0  ;;  %v5167_v12 = vunpack.c.l.b16 %v17083_v20  ;;  %v11785_v52 = vld [vmem:[#allocation3 + $0x660] sm:$0xf]  ;;  %v13145_v16 = vld [vmem:[#allocation3 + $0x66c] sm:$0xf0] }
 0x3af   : > { %v4466_v2 = vadd.f32 %v4465_v0, %v4437_v25  ;;  %4868 = vst [vmem:[#allocation2 + $0x48] sm:$0xff] %v4752_v27  ;;  %v4763_v41 = vshrl.u32 %v17065_v32, 16  ;;  %v4766_v6 = vshll.u32 %v17065_v32, 16  ;;  %v4589_v26 = vmul.f32 %v16921_v23, %v4550_v57  ;;  %v18551_v25 = vld [vmem:[#allocation45_spill] sm:$0xff]  ;;  %7740 = vmatpush.bf16.msrb.mxu3 %v11946_v28  ;;  %7712 = vmatpush.bf16.msrb.mxu2 %v11802_v58 }
 0x3b0   : > { %4874 = vst [vmem:[#allocation2 + $0x58] sm:$0x11] %v4873_v48  ;;  %v4439_v36 = vadd.f32 %v18551_v25, %v4410_v51  ;;  %v11930_v11 = vor.u32 %v13181_v30, %v11929_v29  ;;  %v10929_v48 = vld [vmem:[#allocation2 + $0x38] sm:$0xf]  ;;  %v5168_v57 = vunpack.c.h.b16 %v17083_v20  ;;  %v5172_v45 = vunpack.c.h.b16 %v17059_v17  ;;  %v11897_v25 = vld [vmem:[#allocation3 + $0x740] sm:$0xf] }
 0x3b1   : > { %7674 = vmatmul.bf16.gmra.mxu0 %v18548_v21  ;;  %7703 = vmatmul.bf16.gmra.mxu1 %v18550_v13  ;;  %v4495_v22 = vadd.f32 %v4494_v43, %v4466_v2  ;;  %v17086_v8 = vrot.slane %v4763_v41, 7  ;;  %v4630_v19 = vadd.f32 %v16924_v59, %v4589_v26  ;;  %v11913_v2 = vld [vmem:[#allocation3 + $0x760] sm:$0xf]  ;;  %v11786_v51 = vor.u32 %v13145_v16, %v11785_v52  ;;  %v13141_v26 = vld [vmem:[#allocation3 + $0x64c] sm:$0xf0] }
 0x3b2   : > { %v4523_v9 = vpop.f32.mrf.mxu2  ;;  %v11769_v41 = vld [vmem:[#allocation3 + $0x640] sm:$0xf]  ;;  %v11914_v20 = vor.u32 %v13177_v37, %v11913_v2  ;;  %v5121_v17 = vunpack.c.l.b16 %v17065_v32  ;;  %v13137_v52 = vld [vmem:[#allocation3 + $0x62c] sm:$0xf0]  ;;  %v5122_v16 = vunpack.c.h.b16 %v17065_v32 }
 0x3b3   : > { %v4552_v10 = vpop.f32.mrf.mxu3  ;;  %v4768_v55 = vor.u32 %v4766_v6, %v17086_v8  ;;  %v4662_v3 = vmax.f32 %v4630_v19, 0.0  ;;  %v4524_v0 = vadd.f32 %v4523_v9, %v4495_v22  ;;  %v17097_v19 = vpack.c.b16 %v5171_v46, %v5167_v12  ;;  %7741 = vmatpush.bf16.msrb.mxu3 %v11930_v11  ;;  %7713 = vmatpush.bf16.msrb.mxu2 %v11786_v51  ;;  %v18555_v9 = vld [vmem:[#allocation29_spill] sm:$0xff]  ;;  %v11753_v12 = vld [vmem:[#allocation3 + $0x620] sm:$0xf]  ;;  %v4925_v11 = vld [vmem:[#allocation2 + $0x50] sm:$0x11] }
 0x3b4   : > { %v4596_v46 = vmul.f32 %v16903_v15, %v18555_v9  ;;  %v4778_v37 = vrot.slane %v17086_v8, 4  ;;  %v4886_v15 = vld [vmem:[#allocation2 + $0x88] sm:$0x11]  ;;  %v17118_v8 = vpack.c.b16 %v5172_v45, %v5168_v57  ;;  %v17133_v9 = vld [vmem:[#allocation2 + $0x70] sm:$0xff] }
 0x3b5   : > { %v4879_v6 = vsel %vm13745_vm15, %v4768_v55, %v4878_v50  ;;  %v4682_v44 = vpack.c.bf16 %v4662_v3, %v4661_v63  ;;  %v4553_v22 = vadd.f32 %v4552_v10, %v4524_v0  ;;  %18552 = vst [vmem:[#allocation12_spill] sm:$0xff] %v17097_v19  ;;  %v11770_v63 = vor.u32 %v13141_v26, %v11769_v41 }
 0x3b6   : > { %v4467_v43 = vpop.f32.mrf.mxu0  ;;  %v4496_v56 = vpop.f32.mrf.mxu1  ;;  %v12930_v1 = vld [vmem:[#allocation2 + $0x44] sm:$0xf0]  ;;  %v10931_v35 = vld [vmem:[#allocation2 + $0x48] sm:$0xf0]  ;;  %4880 = vst [vmem:[#allocation2 + $0x68] sm:$0xff] %v4879_v6  ;;  %v4637_v57 = vadd.f32 %v16914_v31, %v4596_v46 }
 0x3b7   : > { %v4468_v27 = vadd.f32 %v4467_v43, %v4439_v36  ;;  %v17099_v28 = vor.u32 %v12930_v1, %v10929_v48  ;;  %v17101_v58 = vor.u32 %v12928_v18, %v10931_v35  ;;  %v4780_v29 = vshrl.u32 %v4682_v44, 16  ;;  %v13173_v36 = vld [vmem:[#allocation3 + $0x74c] sm:$0xf0]  ;;  %7742 = vmatpush.bf16.msrb.mxu3 %v11914_v20  ;;  %7714 = vmatpush.bf16.msrb.mxu2 %v11770_v63  ;;  %v11083_v46 = vld [vmem:[#allocation3 + $0xf0] sm:$0xf0] }
 0x3b8   : > { %v4593_v30 = vmul.f32 %v16921_v23, %v4553_v22  ;;  %v5125_v50 = vunpack.c.l.b16 %v4682_v44  ;;  %v5126_v55 = vunpack.c.h.b16 %v4682_v44  ;;  %v4783_v0 = vshll.u32 %v4682_v44, 16  ;;  %v11881_v44 = vld [vmem:[#allocation3 + $0x720] sm:$0xf]  ;;  %v13169_v18 = vld [vmem:[#allocation3 + $0x72c] sm:$0xf0]  ;;  %18558 = vst [vmem:[#allocation17_spill] sm:$0xff] %v17118_v8 }
 0x3b9   : > { %18553 = vst [vmem:[#allocation13_spill] sm:$0xff] %v17099_v28  ;;  %v4497_v10 = vadd.f32 %v4496_v56, %v4468_v27  ;;  %7606 = vmatmul.bf16.gmra.mxu2 %v17099_v28  ;;  %7635 = vmatmul.bf16.gmra.mxu3 %v17101_v58  ;;  %v4782_v3 = vrot.slane %v4780_v29, 7  ;;  %v11898_v27 = vor.u32 %v13173_v36, %v11897_v25  ;;  %v4981_v29 = vrot.slane %v4975_v33, 4 }
 0x3ba   : > { %18554 = vst [vmem:[#allocation14_spill] sm:$0xff] %v17101_v58  ;;  %v4634_v43 = vadd.f32 %v16924_v59, %v4593_v30  ;;  %v17111_v2 = vpack.c.b16 %v5125_v50, %v5121_v17  ;;  %v4525_v56 = vpop.f32.mrf.mxu2  ;;  %v11754_v48 = vor.u32 %v13137_v52, %v11753_v12  ;;  %v17114_v51 = vpack.c.b16 %v5126_v55, %v5122_v16  ;;  %v4923_v50 = vld [vmem:[#allocation2 + $0x30] sm:$0xee]  ;;  %v12967_v55 = vld [vmem:[#allocation3 + $0xe4] sm:$0xf] }
 0x3bb   : > { %v4785_v41 = vor.u32 %v4783_v0, %v4782_v3  ;;  %v4788_v26 = vrot.slane %v4782_v3, 4  ;;  %v4526_v32 = vadd.f32 %v4525_v56, %v4497_v10  ;;  %v4554_v35 = vpop.f32.mrf.mxu3  ;;  %v4982_v30 = vrot.slane %v4925_v11, 5  ;;  %v11737_v10 = vld [vmem:[#allocation3 + $0x600] sm:$0xf]  ;;  %v13133_v12 = vld [vmem:[#allocation3 + $0x60c] sm:$0xf0]  ;;  %7743 = vmatpush.bf16.msrb.mxu3 %v11898_v27 }
 0x3bc   : > { %18556 = vst [vmem:[#allocation15_spill] sm:$0xff] %v17111_v2  ;;  %v4666_v6 = vmax.f32 %v4634_v43, 0.0  ;;  %v11882_v45 = vor.u32 %v13169_v18, %v11881_v44  ;;  %7715 = vmatpush.bf16.msrb.mxu2 %v11754_v48  ;;  %v11738_v16 = vor.u32 %v13133_v12, %v11737_v10  ;;  %v12999_v3 = vld [vmem:[#allocation3 + $0x1e4] sm:$0xf]  ;;  %v11211_v0 = vld [vmem:[#allocation3 + $0x1f0] sm:$0xf0] }
 0x3bd   : > { %18557 = vst [vmem:[#allocation16_spill] sm:$0xff] %v17114_v51  ;;  %v4786_v25 = vsel %vm13728_vm14, %v4778_v37, %v4785_v41  ;;  %v4887_v36 = vsel %vm13590_vm7, %v4788_v26, %v4886_v15  ;;  %v4555_v63 = vadd.f32 %v4554_v35, %v4526_v32  ;;  %v17140_v31 = vsel %vm14431_vm5, %v4981_v29, %v4982_v30  ;;  %v11865_v56 = vld [vmem:[#allocation3 + $0x700] sm:$0xf]  ;;  %v13165_v41 = vld [vmem:[#allocation3 + $0x70c] sm:$0xf0] }
 0x3be   : > { %v7544_v22 = vpop.f32.mrf.mxu0  ;;  %v7573_v1 = vpop.f32.mrf.mxu1  ;;  %v17128_v20 = vpack.c.bf16 %v4666_v6, %v4665_v53  ;;  %4882 = vst [vmem:[#allocation2 + $0x78] sm:$0xff] %v4786_v25  ;;  %v11086_v37 = vor.u32 %v12967_v55, %v11083_v46  ;;  %v11214_v15 = vor.u32 %v12999_v3, %v11211_v0  ;;  %v10897_v27 = vrot.slane %v4923_v50, 9  ;;  %v10945_v44 = vld [vmem:[#allocation2 + $0x68] sm:$0xf]  ;;  %v12932_v18 = vld [vmem:[#allocation2 + $0x6c] sm:$0xf] }
 0x3bf   : > { %v17116_v17 = vadd.f32 %v7573_v1, %v7544_v22  ;;  %4888 = vst [vmem:[#allocation2 + $0x88] sm:$0x11] %v4887_v36  ;;  %v4597_v53 = vmul.f32 %v16921_v23, %v4555_v63  ;;  %v4892_v23 = vld [vmem:[#allocation2 + $0x98] sm:$0xff]  ;;  %v4989_v48 = vrot.slane %v17133_v9, 5  ;;  %v4669_v26 = vmax.f32 %v4637_v57, 0.0  ;;  %7744 = vmatpush.bf16.msrb.mxu3 %v11882_v45 }
 0x3c0   : > { %v4797_v52 = vshrl.u32 %v17128_v20, 16  ;;  %v4800_v60 = vshll.u32 %v17128_v20, 16  ;;  %7716 = vmatpush.bf16.msrb.mxu2 %v11738_v16  ;;  %v11866_v35 = vor.u32 %v13165_v41, %v11865_v56  ;;  %v4976_v29 = vsel %vm14431_vm5, %v10897_v27, %v4975_v33  ;;  %7883 = vmatpush.bf16.msrb.mxu0 %v11086_v37  ;;  %v12963_v25 = vld [vmem:[#allocation3 + $0xc4] sm:$0xf]  ;;  %v11067_v36 = vld [vmem:[#allocation3 + $0xd0] sm:$0xf0] }
 0x3c1   : > { %7775 = vmatmul.bf16.vlgmr.msra.gmra.mxu0 %v17097_v19  ;;  %7804 = vmatmul.bf16.vlgmr.msra.gmra.mxu1 %v17118_v8  ;;  %v4638_v11 = vadd.f32 %v16924_v59, %v4597_v53  ;;  %v5179_v30 = vunpack.c.l.b16 %v17140_v31  ;;  %v12995_v63 = vld [vmem:[#allocation3 + $0x1c4] sm:$0xf]  ;;  %v5129_v50 = vunpack.c.l.b16 %v17128_v20  ;;  %v5175_v37 = vunpack.c.l.b16 %v4976_v29  ;;  %v11051_v27 = vld [vmem:[#allocation3 + $0xb0] sm:$0xf0]  ;;  %v12329_v9 = vld [vmem:[#allocation3 + $0xaa0] sm:$0xf] }
 0x3c2   : > { %v17142_v43 = vrot.slane %v4797_v52, 7  ;;  %7912 = vmatpush.bf16.msrb.mxu1 %v11214_v15  ;;  %v11070_v52 = vor.u32 %v12963_v25, %v11067_v36  ;;  %v11198_v55 = vor.u32 %v12995_v63, %v11195_v47  ;;  %v13289_v15 = vld [vmem:[#allocation3 + $0xaec] sm:$0xf0]  ;;  %v12959_v56 = vld [vmem:[#allocation3 + $0xa4] sm:$0xf] }
 0x3c3   : > { %v4670_v32 = vmax.f32 %v4638_v11, 0.0  ;;  %7745 = vmatpush.bf16.msrb.mxu3 %v11866_v35  ;;  %v4900_v11 = vld [vmem:[#allocation2 + $0xb8] sm:$0x11]  ;;  %v12489_v35 = vld [vmem:[#allocation3 + $0xbe0] sm:$0xf] }
 0x3c4   : > { %v4802_v6 = vor.u32 %v4800_v60, %v17142_v43  ;;  %v5130_v60 = vunpack.c.h.b16 %v17128_v20  ;;  %v4812_v33 = vrot.slane %v17142_v43, 4  ;;  %v5180_v20 = vunpack.c.h.b16 %v17140_v31  ;;  %v12361_v43 = vld [vmem:[#allocation3 + $0xae0] sm:$0xf]  ;;  %7884 = vmatpush.bf16.msrb.mxu0 %v11070_v52  ;;  %v13321_v31 = vld [vmem:[#allocation3 + $0xbec] sm:$0xf0] }
 0x3c5   : > { %v4686_v45 = vpack.c.bf16 %v4670_v32, %v4669_v26  ;;  %v12934_v10 = vld [vmem:[#allocation2 + $0x74] sm:$0xf0]  ;;  %v10947_v12 = vld [vmem:[#allocation2 + $0x78] sm:$0xf0]  ;;  %v12991_v26 = vld [vmem:[#allocation3 + $0x1a4] sm:$0xf] }
 0x3c6   : > { %v7546_v22 = vpop.f32.mrf.mxu0  ;;  %v7575_v1 = vpop.f32.mrf.mxu1  ;;  %v4893_v57 = vsel %vm13745_vm15, %v4802_v6, %v4892_v23  ;;  %v17159_v53 = vor.u32 %v12934_v10, %v10945_v44  ;;  %v17161_v16 = vor.u32 %v12932_v18, %v10947_v12  ;;  %7913 = vmatpush.bf16.msrb.mxu1 %v11198_v55  ;;  %v12362_v23 = vor.u32 %v13289_v15, %v12361_v43  ;;  %v11179_v18 = vld [vmem:[#allocation3 + $0x1b0] sm:$0xf0]  ;;  %v12955_v52 = vld [vmem:[#allocation3 + $0x84] sm:$0xf] }
 0x3c7   : > { %v17147_v59 = vadd.f32 %v7575_v1, %v7546_v22  ;;  %4894 = vst [vmem:[#allocation2 + $0x98] sm:$0xff] %v4893_v57  ;;  %v4814_v46 = vshrl.u32 %v4686_v45, 16  ;;  %v4817_v3 = vshll.u32 %v4686_v45, 16  ;;  %v5133_v38 = vunpack.c.l.b16 %v4686_v45  ;;  %v11035_v47 = vld [vmem:[#allocation3 + $0x90] sm:$0xf0] }
 0x3c8   : > { %18559 = vst [vmem:[#allocation18_spill] sm:$0xff] %v17159_v53  ;;  %v5134_v0 = vunpack.c.h.b16 %v4686_v45  ;;  %v17170_v22 = vpack.c.b16 %v5179_v30, %v5175_v37  ;;  %v5176_v1 = vunpack.c.h.b16 %v4976_v29  ;;  %v11054_v44 = vor.u32 %v12959_v56, %v11051_v27  ;;  %7825 = vmatpush.bf16.msra.mxu2 %v12362_v23  ;;  %v12987_v30 = vld [vmem:[#allocation3 + $0x184] sm:$0xf]  ;;  %v11147_v15 = vld [vmem:[#allocation3 + $0x170] sm:$0xf0] }
 0x3c9   : > { %18560 = vst [vmem:[#allocation19_spill] sm:$0xff] %v17161_v16  ;;  %7611 = vmatmul.bf16.gmra.mxu2 %v17159_v53  ;;  %7640 = vmatmul.bf16.gmra.mxu3 %v17161_v16  ;;  %v4816_v41 = vrot.slane %v4814_v46, 7  ;;  %v17166_v6 = vpack.c.b16 %v5133_v38, %v5129_v50  ;;  %v11182_v45 = vor.u32 %v12991_v26, %v11179_v18  ;;  %v4929_v55 = vld [vmem:[#allocation2 + $0x80] sm:$0x11]  ;;  %v11163_v46 = vld [vmem:[#allocation3 + $0x190] sm:$0xf0] }
 0x3ca   : > { %v17168_v32 = vpack.c.b16 %v5134_v0, %v5130_v60  ;;  %18563 = vst [vmem:[#allocation22_spill] sm:$0xff] %v17170_v22  ;;  %v12490_v10 = vor.u32 %v13321_v31, %v12489_v35  ;;  %v17174_v50 = vpack.c.b16 %v5180_v20, %v5176_v1  ;;  %v4995_v38 = vrot.slane %v4989_v48, 4  ;;  %7885 = vmatpush.bf16.msrb.mxu0 %v11054_v44  ;;  %v11019_v20 = vld [vmem:[#allocation3 + $0x70] sm:$0xf0]  ;;  %v12983_v43 = vld [vmem:[#allocation3 + $0x164] sm:$0xf] }
 0x3cb   : > { %18561 = vst [vmem:[#allocation20_spill] sm:$0xff] %v17166_v6  ;;  %v4819_v25 = vor.u32 %v4817_v3, %v4816_v41  ;;  %v4822_v36 = vrot.slane %v4816_v41, 4  ;;  %7914 = vmatpush.bf16.msrb.mxu1 %v11182_v45  ;;  %v4927_v3 = vld [vmem:[#allocation2 + $0x60] sm:$0xee]  ;;  %v11038_v0 = vor.u32 %v12955_v52, %v11035_v47  ;;  %v11166_v37 = vor.u32 %v12987_v30, %v11163_v46  ;;  %v13317_v23 = vld [vmem:[#allocation3 + $0xbcc] sm:$0xf0] }
 0x3cc   : > { %18562 = vst [vmem:[#allocation21_spill] sm:$0xff] %v17168_v32  ;;  %7854 = vmatpush.bf16.msra.mxu3 %v12490_v10  ;;  %v12473_v56 = vld [vmem:[#allocation3 + $0xbc0] sm:$0xf]  ;;  %v11150_v41 = vor.u32 %v12983_v43, %v11147_v15  ;;  %v4996_v27 = vrot.slane %v4929_v55, 5  ;;  %v11003_v45 = vld [vmem:[#allocation3 + $0x50] sm:$0xf0] }
 0x3cd   : > { %18564 = vst [vmem:[#allocation23_spill] sm:$0xff] %v17174_v50  ;;  %v4820_v29 = vsel %vm13728_vm14, %v4812_v33, %v4819_v25  ;;  %v4901_v60 = vsel %vm13590_vm7, %v4822_v36, %v4900_v11  ;;  %v13285_v33 = vld [vmem:[#allocation3 + $0xacc] sm:$0xf0]  ;;  %v12951_v11 = vld [vmem:[#allocation3 + $0x64] sm:$0xf]  ;;  %v12474_v1 = vor.u32 %v13317_v23, %v12473_v56  ;;  %v10899_v25 = vrot.slane %v4927_v3, 9 }
 0x3ce   : > { %v7549_v63 = vpop.f32.mrf.mxu0  ;;  %v7578_v57 = vpop.f32.mrf.mxu1  ;;  %4896 = vst [vmem:[#allocation2 + $0xa8] sm:$0xff] %v4820_v29  ;;  %v12346_v49 = vor.u32 %v13285_v33, %v12345_v34  ;;  %7886 = vmatpush.bf16.msrb.mxu0 %v11038_v0  ;;  %v11022_v26 = vor.u32 %v12951_v11, %v11019_v20  ;;  %v10961_v35 = vld [vmem:[#allocation2 + $0x98] sm:$0xf]  ;;  %v12936_v31 = vld [vmem:[#allocation2 + $0x9c] sm:$0xf]  ;;  %v4917_v0 = vld [vmem:[#allocation2 + $0xa0] sm:$0xff] }
 0x3cf   : > { %v17172_v12 = vadd.f32 %v7578_v57, %v7549_v63  ;;  %4902 = vst [vmem:[#allocation2 + $0xb8] sm:$0x11] %v4901_v60  ;;  %7915 = vmatpush.bf16.msrb.mxu1 %v11166_v37  ;;  %v4997_v63 = vsel %vm14431_vm5, %v4995_v38, %v4996_v27  ;;  %v12947_v57 = vld [vmem:[#allocation3 + $0x44] sm:$0xf]  ;;  %v4990_v30 = vsel %vm14431_vm5, %v10899_v25, %v4989_v48  ;;  %v11131_v29 = vld [vmem:[#allocation3 + $0x150] sm:$0xf0] }
 0x3d0   : > { %7826 = vmatpush.bf16.msra.mxu2 %v12346_v49  ;;  %7855 = vmatpush.bf16.msra.mxu3 %v12474_v1  ;;  %v12979_v10 = vld [vmem:[#allocation3 + $0x144] sm:$0xf]  ;;  %v11006_v46 = vor.u32 %v12947_v57, %v11003_v45  ;;  %v5187_v38 = vunpack.c.l.b16 %v4997_v63  ;;  %v5188_v37 = vunpack.c.h.b16 %v4997_v63  ;;  %v13281_v34 = vld [vmem:[#allocation3 + $0xaac] sm:$0xf0]  ;;  %v5183_v48 = vunpack.c.l.b16 %v4990_v30  ;;  %v10987_v11 = vld [vmem:[#allocation3 + $0x30] sm:$0xf0] }
 0x3d1   : > { %7780 = vmatmul.bf16.gmra.mxu0 %v17170_v22  ;;  %7809 = vmatmul.bf16.gmra.mxu1 %v17174_v50  ;;  %v11134_v3 = vor.u32 %v12979_v10, %v11131_v29  ;;  %v12943_v33 = vld [vmem:[#allocation3 + $0x24] sm:$0xf]  ;;  %v12330_v49 = vor.u32 %v13281_v34, %v12329_v9  ;;  %v11115_v43 = vld [vmem:[#allocation3 + $0x130] sm:$0xf0]  ;;  %v5184_v15 = vunpack.c.h.b16 %v4990_v30  ;;  %v12457_v23 = vld [vmem:[#allocation3 + $0xba0] sm:$0xf] }
 0x3d2   : > { %7887 = vmatpush.bf16.msrb.mxu0 %v11022_v26  ;;  %v12975_v20 = vld [vmem:[#allocation3 + $0x124] sm:$0xf]  ;;  %v10990_v56 = vor.u32 %v12943_v33, %v10987_v11  ;;  %v13313_v27 = vld [vmem:[#allocation3 + $0xbac] sm:$0xf0]  ;;  %v5003_v45 = vrot.slane %v4917_v0, 5 }
 0x3d3   : > { %7916 = vmatpush.bf16.msrb.mxu1 %v11150_v41  ;;  %v11118_v41 = vor.u32 %v12975_v20, %v11115_v43  ;;  %v12971_v25 = vld [vmem:[#allocation3 + $0x104] sm:$0xf]  ;;  %v17202_v57 = vpack.c.b16 %v5188_v37, %v5184_v15  ;;  %v11099_v10 = vld [vmem:[#allocation3 + $0x110] sm:$0xf0]  ;;  %v12313_v30 = vld [vmem:[#allocation3 + $0xa80] sm:$0xf] }
 0x3d4   : > { %7827 = vmatpush.bf16.msra.mxu2 %v12330_v49  ;;  %v13277_v29 = vld [vmem:[#allocation3 + $0xa8c] sm:$0xf0]  ;;  %v5009_v34 = vrot.slane %v5003_v45, 4 }
 0x3d5   : > { %v12938_v52 = vld [vmem:[#allocation2 + $0xa4] sm:$0xf0]  ;;  %v10963_v47 = vld [vmem:[#allocation2 + $0xa8] sm:$0xf0]  ;;  %18568 = vst [vmem:[#allocation27_spill] sm:$0xff] %v17202_v57 }
 0x3d6   : > { %v7551_v44 = vpop.f32.mrf.mxu0  ;;  %v7580_v18 = vpop.f32.mrf.mxu1  ;;  %v17192_v60 = vor.u32 %v12938_v52, %v10961_v35  ;;  %v17194_v55 = vor.u32 %v12936_v31, %v10963_v47  ;;  %7888 = vmatpush.bf16.msrb.mxu0 %v11006_v46  ;;  %v12939_v35 = vld [vmem:[#allocation3 + $0x4] sm:$0xf]  ;;  %v10971_v31 = vld [vmem:[#allocation3 + $0x10] sm:$0xf0]  ;;  %v11102_v52 = vor.u32 %v12971_v25, %v11099_v10  ;;  %v12441_v46 = vld [vmem:[#allocation3 + $0xb80] sm:$0xf] }
 0x3d7   : > { %v17184_v36 = vadd.f32 %v7580_v18, %v7551_v44  ;;  %7917 = vmatpush.bf16.msrb.mxu1 %v11134_v3  ;;  %v17198_v44 = vpack.c.b16 %v5187_v38, %v5183_v48  ;;  %v12458_v18 = vor.u32 %v13313_v27, %v12457_v23  ;;  %v10974_v47 = vor.u32 %v12939_v35, %v10971_v31  ;;  %v4933_v3 = vld [vmem:[#allocation2 + $0xb0] sm:$0x11]  ;;  %v4931_v33 = vld [vmem:[#allocation2 + $0x90] sm:$0xee]  ;;  %v12297_v23 = vld [vmem:[#allocation3 + $0xa60] sm:$0xf] }
 0x3d8   : > { %18565 = vst [vmem:[#allocation24_spill] sm:$0xff] %v17192_v60  ;;  %v12314_v38 = vor.u32 %v13277_v29, %v12313_v30  ;;  %v13309_v9 = vld [vmem:[#allocation3 + $0xb8c] sm:$0xf0]  ;;  %v5010_v0 = vrot.slane %v4933_v3, 5  ;;  %v10901_v20 = vrot.slane %v4931_v33, 9 }
 0x3d9   : > { %18566 = vst [vmem:[#allocation25_spill] sm:$0xff] %v17194_v55  ;;  %7616 = vmatmul.bf16.gmra.mxu2 %v17192_v60  ;;  %7645 = vmatmul.bf16.gmra.mxu3 %v17194_v55  ;;  %v12442_v37 = vor.u32 %v13309_v9, %v12441_v46  ;;  %v13273_v27 = vld [vmem:[#allocation3 + $0xa6c] sm:$0xf0]  ;;  %v12281_v29 = vld [vmem:[#allocation3 + $0xa40] sm:$0xf] }
 0x3da   : > { %18567 = vst [vmem:[#allocation26_spill] sm:$0xff] %v17198_v44  ;;  %7889 = vmatpush.bf16.msrb.mxu0 %v10990_v56  ;;  %7856 = vmatpush.bf16.msra.mxu3 %v12458_v18  ;;  %v5011_v43 = vsel %vm14431_vm5, %v5009_v34, %v5010_v0  ;;  %v5004_v15 = vsel %vm14431_vm5, %v10901_v20, %v5003_v45  ;;  %v13305_v35 = vld [vmem:[#allocation3 + $0xb6c] sm:$0xf0]  ;;  %v12409_v3 = vld [vmem:[#allocation3 + $0xb40] sm:$0xf] }
 0x3db   : > { %7918 = vmatpush.bf16.msrb.mxu1 %v11118_v41  ;;  %7828 = vmatpush.bf16.msra.mxu2 %v12314_v38  ;;  %v5195_v56 = vunpack.c.l.b16 %v5011_v43  ;;  %v5196_v41 = vunpack.c.h.b16 %v5011_v43  ;;  %v12298_v18 = vor.u32 %v13273_v27, %v12297_v23  ;;  %v5192_v31 = vunpack.c.h.b16 %v5004_v15  ;;  %v13269_v46 = vld [vmem:[#allocation3 + $0xa4c] sm:$0xf0]  ;;  %v12393_v20 = vld [vmem:[#allocation3 + $0xb20] sm:$0xf] }
 0x3dc   : > { %v12282_v38 = vor.u32 %v13269_v46, %v12281_v29  ;;  %v13301_v9 = vld [vmem:[#allocation3 + $0xb4c] sm:$0xf0]  ;;  %v18571_v27 = vld [vmem:[#allocation50_spill] sm:$0xff] }
 0x3dd   : > { %v17218_v30 = vpack.c.b16 %v5196_v41, %v5192_v31  ;;  %v12410_v34 = vor.u32 %v13301_v9, %v12409_v3  ;;  %v12377_v3 = vld [vmem:[#allocation3 + $0xb00] sm:$0xf] }
 0x3de   : > { %v7554_v26 = vpop.f32.mrf.mxu0  ;;  %v7583_v1 = vpop.f32.mrf.mxu1  ;;  %7890 = vmatpush.bf16.msrb.mxu0 %v10974_v47  ;;  %7857 = vmatpush.bf16.msra.mxu3 %v12442_v37 }
 0x3df   : > { %v17200_v63 = vadd.f32 %v7583_v1, %v7554_v26  ;;  %7919 = vmatpush.bf16.msrb.mxu1 %v11102_v52  ;;  %v12425_v26 = vld [vmem:[#allocation3 + $0xb60] sm:$0xf]  ;;  %v5191_v1 = vunpack.c.l.b16 %v5004_v15  ;;  %7829 = vmatpush.bf16.msra.mxu2 %v12298_v18  ;;  %18570 = vst [vmem:[#allocation38_spill] sm:$0xff] %v17218_v30  ;;  %v13297_v15 = vld [vmem:[#allocation3 + $0xb2c] sm:$0xf0] }
 0x3e0   : > { %v12426_v25 = vor.u32 %v13305_v35, %v12425_v26  ;;  %v18572_v26 = vld [vmem:[#allocation33_spill] sm:$0xff]  ;;  %v13261_v18 = vld [vmem:[#allocation3 + $0xa0c] sm:$0xf0]  ;;  %v13095_v35 = vld [vmem:[#allocation3 + $0x4e4] sm:$0xf] }
 0x3e1   : > { %7785 = vmatmul.bf16.gmra.mxu0 %v17198_v44  ;;  %7814 = vmatmul.bf16.gmra.mxu1 %v17202_v57  ;;  %v17214_v47 = vpack.c.b16 %v5195_v56, %v5191_v1  ;;  %v12394_v56 = vor.u32 %v13297_v15, %v12393_v20  ;;  %v12249_v1 = vld [vmem:[#allocation3 + $0xa00] sm:$0xf] }
 0x3e2   : > { %7858 = vmatpush.bf16.msra.mxu3 %v12426_v25  ;;  %v12250_v31 = vor.u32 %v13261_v18, %v12249_v1  ;;  %v11595_v25 = vld [vmem:[#allocation3 + $0x4f0] sm:$0xf0]  ;;  %v13087_v18 = vld [vmem:[#allocation3 + $0x4a4] sm:$0xf] }
 0x3e3   : > { %18569 = vst [vmem:[#allocation30_spill] sm:$0xff] %v17214_v47  ;;  %7830 = vmatpush.bf16.msra.mxu2 %v12282_v38  ;;  %v11598_v29 = vor.u32 %v13095_v35, %v11595_v25  ;;  %v13293_v38 = vld [vmem:[#allocation3 + $0xb0c] sm:$0xf0]  ;;  %v11339_v1 = vld [vmem:[#allocation3 + $0x2f0] sm:$0xf0] }
 0x3e4   : > { %v12378_v9 = vor.u32 %v13293_v38, %v12377_v3  ;;  %v13119_v25 = vld [vmem:[#allocation3 + $0x5a4] sm:$0xf]  ;;  %v11467_v3 = vld [vmem:[#allocation3 + $0x3f0] sm:$0xf0] }
 0x3e5   : > { %7999 = vmatpush.bf16.msra.mxu0 %v11598_v29 }
 0x3e6   : > { %v7556_v48 = vpop.f32.mrf.mxu0  ;;  %v7585_v49 = vpop.f32.mrf.mxu1  ;;  %7859 = vmatpush.bf16.msra.mxu3 %v12410_v34 }
 0x3e7   : > { %v17206_v11 = vadd.f32 %v7585_v49, %v7556_v48  ;;  %v12265_v48 = vld [vmem:[#allocation3 + $0xa20] sm:$0xf]  ;;  %v13265_v49 = vld [vmem:[#allocation3 + $0xa2c] sm:$0xf0] }
 0x3e8   : > { %v12266_v43 = vor.u32 %v13265_v49, %v12265_v48  ;;  %v11579_v48 = vld [vmem:[#allocation3 + $0x4d0] sm:$0xf0]  ;;  %v13123_v49 = vld [vmem:[#allocation3 + $0x5c4] sm:$0xf] }
 0x3e9   : > { %7717 = vmatmul.bf16.vlgmr.msrb.gmra.mxu2 %v16987_v62  ;;  %7746 = vmatmul.bf16.vlgmr.msrb.gmra.mxu3 %v16989_v4 }
 0x3ea   : > { %7831 = vmatpush.bf16.msra.mxu2 %v12266_v43  ;;  %7860 = vmatpush.bf16.msra.mxu3 %v12394_v56  ;;  %v11707_v43 = vld [vmem:[#allocation3 + $0x5d0] sm:$0xf0]  ;;  %v13031_v56 = vld [vmem:[#allocation3 + $0x2e4] sm:$0xf] }
 0x3eb   : > { %v11710_v15 = vor.u32 %v13123_v49, %v11707_v43  ;;  %v11342_v35 = vor.u32 %v13031_v56, %v11339_v1  ;;  %v18573_v49 = vld [vmem:[#allocation34_spill] sm:$0xff]  ;;  %v11547_v56 = vld [vmem:[#allocation3 + $0x490] sm:$0xf0] }
 0x3ec   : > { %v13115_v1 = vld [vmem:[#allocation3 + $0x584] sm:$0xf] }
 0x3ed   : > { %v13059_v43 = vld [vmem:[#allocation3 + $0x3c4] sm:$0xf] }
 0x3ee   : > { %v7559_v10 = vpop.f32.mrf.mxu0  ;;  %v7588_v52 = vpop.f32.mrf.mxu1  ;;  %7832 = vmatpush.bf16.msra.mxu2 %v12250_v31  ;;  %7861 = vmatpush.bf16.msra.mxu3 %v12378_v9  ;;  %v11563_v31 = vld [vmem:[#allocation3 + $0x4b0] sm:$0xf0] }
 0x3ef   : > { %v17216_v45 = vadd.f32 %v7588_v52, %v7559_v10  ;;  %v13127_v10 = vld [vmem:[#allocation3 + $0x5e4] sm:$0xf]  ;;  %v11723_v52 = vld [vmem:[#allocation3 + $0x5f0] sm:$0xf0] }
 0x3f0   : > { %v11726_v46 = vor.u32 %v13127_v10, %v11723_v52  ;;  %v11691_v10 = vld [vmem:[#allocation3 + $0x5b0] sm:$0xf0]  ;;  %v11566_v52 = vor.u32 %v13087_v18, %v11563_v31 }
 0x3f1   : > { %7790 = vmatmul.bf16.gmra.mxu0 %v17214_v47  ;;  %7819 = vmatmul.bf16.gmra.mxu1 %v17218_v30  ;;  %v11694_v29 = vor.u32 %v13119_v25, %v11691_v10  ;;  %v11675_v31 = vld [vmem:[#allocation3 + $0x590] sm:$0xf0]  ;;  %v13027_v25 = vld [vmem:[#allocation3 + $0x2c4] sm:$0xf] }
 0x3f2   : > { %8028 = vmatpush.bf16.msra.mxu1 %v11726_v46  ;;  %v13063_v46 = vld [vmem:[#allocation3 + $0x3e4] sm:$0xf]  ;;  %7941 = vmatpush.bf16.msrb.mxu2 %v11342_v35  ;;  %v11323_v10 = vld [vmem:[#allocation3 + $0x2d0] sm:$0xf0]  ;;  %v11678_v35 = vor.u32 %v13115_v1, %v11675_v31 }
 0x3f6   : > { %v7561_v37 = vpop.f32.mrf.mxu0  ;;  %v7590_v33 = vpop.f32.mrf.mxu1  ;;  %8029 = vmatpush.bf16.msra.mxu1 %v11710_v15  ;;  %v13083_v15 = vld [vmem:[#allocation3 + $0x484] sm:$0xf] }
 0x3f7   : > { %v17222_v0 = vadd.f32 %v7590_v33, %v7561_v37  ;;  %v13091_v33 = vld [vmem:[#allocation3 + $0x4c4] sm:$0xf]  ;;  %v11550_v18 = vor.u32 %v13083_v15, %v11547_v56 }
 0x3f8   : > { %v11582_v20 = vor.u32 %v13091_v33, %v11579_v48  ;;  %v11470_v33 = vor.u32 %v13063_v46, %v11467_v3  ;;  %v17242_v48 = vld [vmem:[#allocation2 + $0x18] sm:$0xff]  ;;  %v11326_v46 = vor.u32 %v13027_v25, %v11323_v10  ;;  %v13079_v3 = vld [vmem:[#allocation3 + $0x464] sm:$0xf]  ;;  %v4922_v25 = vld [vmem:[#allocation2 + $0x28] sm:$0x11] }
 0x3f9   : > { %7722 = vmatmul.bf16.gmra.mxu2 %v17047_v40  ;;  %7751 = vmatmul.bf16.gmra.mxu3 %v17049_v24  ;;  %v18575_v1 = vrot.slane %v17242_v48, 5  ;;  %v13075_v10 = vld [vmem:[#allocation3 + $0x444] sm:$0xf]  ;;  %v11435_v24 = vld [vmem:[#allocation3 + $0x3b0] sm:$0xf0]  ;;  %v18578_v30 = vrot.slane %v17242_v48, 5 }
 0x3fa   : > { %8000 = vmatpush.bf16.msra.mxu0 %v11582_v20  ;;  %8030 = vmatpush.bf16.msra.mxu1 %v11694_v29  ;;  %v18574_v20 = vld [vmem:[#allocation35_spill] sm:$0xff] }
 0x3fb   : > { %7970 = vmatpush.bf16.msrb.mxu3 %v11470_v33  ;;  %7942 = vmatpush.bf16.msrb.mxu2 %v11326_v46  ;;  %v4970_v31 = vrot.slane %v18575_v1, 4  ;;  %v11307_v46 = vld [vmem:[#allocation3 + $0x2b0] sm:$0xf0]  ;;  %v4920_v40 = vld [vmem:[#allocation2 + $0x8] sm:$0xee] }
 0x3fe   : > { %v17226_v41 = vpop.f32.mrf.mxu0  ;;  %v17228_v23 = vpop.f32.mrf.mxu1  ;;  %8001 = vmatpush.bf16.msra.mxu0 %v11566_v52  ;;  %v13111_v52 = vld [vmem:[#allocation3 + $0x564] sm:$0xf]  ;;  %8031 = vmatpush.bf16.msra.mxu1 %v11678_v35 }
 0x3ff   : > { %v13023_v35 = vld [vmem:[#allocation3 + $0x2a4] sm:$0xf] }
 0x401   : > { %7891 = vmatmul.bf16.vlgmr.msrb.gmra.mxu0 %v18571_v27  ;;  %7920 = vmatmul.bf16.vlgmr.msrb.gmra.mxu1 %v18572_v26  ;;  %v11643_v26 = vld [vmem:[#allocation3 + $0x550] sm:$0xf0]  ;;  %v13055_v27 = vld [vmem:[#allocation3 + $0x3a4] sm:$0xf] }
 0x402   : > { %8002 = vmatpush.bf16.msra.mxu0 %v11550_v18  ;;  %v11515_v18 = vld [vmem:[#allocation3 + $0x450] sm:$0xf0] }
 0x406   : > { %v17232_v34 = vpop.f32.mrf.mxu0  ;;  %v17234_v37 = vpop.f32.mrf.mxu1 }
 0x409   : > { %7727 = vmatmul.bf16.gmra.mxu2 %v17111_v2  ;;  %7756 = vmatmul.bf16.gmra.mxu3 %v17114_v51  ;;  %v11531_v51 = vld [vmem:[#allocation3 + $0x470] sm:$0xf0] }
 0x40a   : > { %v11534_v33 = vor.u32 %v13079_v3, %v11531_v51  ;;  %v11451_v2 = vld [vmem:[#allocation3 + $0x3d0] sm:$0xf0]  ;;  %v13107_v51 = vld [vmem:[#allocation3 + $0x544] sm:$0xf]  ;;  %v11518_v3 = vor.u32 %v13075_v10, %v11515_v18  ;;  %v4971_v18 = vrot.slane %v4922_v25, 5 }
 0x40b   : > { %v11454_v15 = vor.u32 %v13059_v43, %v11451_v2  ;;  %v11646_v2 = vor.u32 %v13107_v51, %v11643_v26  ;;  %v13071_v43 = vld [vmem:[#allocation3 + $0x424] sm:$0xf]  ;;  %v18576_v10 = vld [vmem:[#allocation36_spill] sm:$0xff]  ;;  %v18577_v51 = vld [vmem:[#allocation37_spill] sm:$0xff] }
 0x40c   : > { %8003 = vmatpush.bf16.msra.mxu0 %v11534_v33  ;;  %v11611_v25 = vld [vmem:[#allocation3 + $0x510] sm:$0xf0] }
 0x40d   : > { %7971 = vmatpush.bf16.msrb.mxu3 %v11454_v15  ;;  %v13103_v15 = vld [vmem:[#allocation3 + $0x524] sm:$0xf] }
 0x40e   : > { %v17238_v38 = vpop.f32.mrf.mxu0  ;;  %v17240_v9 = vpop.f32.mrf.mxu1 }
 0x410   : > { %8004 = vmatpush.bf16.msra.mxu0 %v11518_v3  ;;  %v13067_v3 = vld [vmem:[#allocation3 + $0x404] sm:$0xf] }
 0x411   : > { %7896 = vmatmul.bf16.gmra.mxu0 %v18573_v49  ;;  %7925 = vmatmul.bf16.gmra.mxu1 %v18574_v20  ;;  %v11659_v20 = vld [vmem:[#allocation3 + $0x570] sm:$0xf0] }
 0x412   : > { %v11662_v56 = vor.u32 %v13111_v52, %v11659_v20  ;;  %v11310_v20 = vor.u32 %v13023_v35, %v11307_v46  ;;  %v11499_v52 = vld [vmem:[#allocation3 + $0x430] sm:$0xf0]  ;;  %v10896_v35 = vrot.slane %v4920_v40, 9  ;;  %v4972_v46 = vsel %vm14431_vm5, %v4970_v31, %v4971_v18 }
 0x413   : > { %v11419_v31 = vld [vmem:[#allocation3 + $0x390] sm:$0xf0] }
 0x414   : > { %8032 = vmatpush.bf16.msra.mxu1 %v11662_v56  ;;  %7943 = vmatpush.bf16.msrb.mxu2 %v11310_v20  ;;  %v11438_v56 = vor.u32 %v13055_v27, %v11435_v24  ;;  %v4966_v24 = vsel %vm14431_vm5, %v10896_v35, %v18578_v30  ;;  %v5173_v20 = vunpack.c.l.b16 %v4972_v46  ;;  %v4910_v30 = vld [vmem:[#allocation2 + $0x48] sm:$0xff] }
 0x415   : > { %v5170_v47 = vunpack.c.h.b16 %v4966_v24 }
 0x416   : > { %v17247_v29 = vpop.f32.mrf.mxu0  ;;  %v17249_v49 = vpop.f32.mrf.mxu1  ;;  %7972 = vmatpush.bf16.msrb.mxu3 %v11438_v56 }
 0x418   : > { %8033 = vmatpush.bf16.msra.mxu1 %v11646_v2  ;;  %v11291_v2 = vld [vmem:[#allocation3 + $0x290] sm:$0xf0] }
 0x419   : > { %7732 = vmatmul.bf16.gmra.mxu2 %v17166_v6  ;;  %7761 = vmatmul.bf16.gmra.mxu3 %v17168_v32  ;;  %v11502_v32 = vor.u32 %v13071_v43, %v11499_v52  ;;  %v11627_v6 = vld [vmem:[#allocation3 + $0x530] sm:$0xf0]  ;;  %v13099_v52 = vld [vmem:[#allocation3 + $0x504] sm:$0xf] }
 0x41a   : > { %v11630_v26 = vor.u32 %v13103_v15, %v11627_v6  ;;  %v11483_v43 = vld [vmem:[#allocation3 + $0x410] sm:$0xf0]  ;;  %v13019_v6 = vld [vmem:[#allocation3 + $0x284] sm:$0xf]  ;;  %v5174_v15 = vunpack.c.h.b16 %v4972_v46  ;;  %v11614_v40 = vor.u32 %v13099_v52, %v11611_v25  ;;  %v4979_v46 = vrot.slane %v4910_v30, 5 }
 0x41b   : > { %8005 = vmatpush.bf16.msra.mxu0 %v11502_v32  ;;  %v11486_v27 = vor.u32 %v13067_v3, %v11483_v43  ;;  %v11294_v56 = vor.u32 %v13019_v6, %v11291_v2  ;;  %v13015_v3 = vld [vmem:[#allocation3 + $0x264] sm:$0xf]  ;;  %v11275_v43 = vld [vmem:[#allocation3 + $0x270] sm:$0xf0]  ;;  %v4926_v25 = vld [vmem:[#allocation2 + $0x58] sm:$0x11] }
 0x41c   : > { %8034 = vmatpush.bf16.msra.mxu1 %v11630_v26  ;;  %v17273_v35 = vpack.c.b16 %v5174_v15, %v5170_v47  ;;  %v13047_v52 = vld [vmem:[#allocation3 + $0x364] sm:$0xf]  ;;  %v4924_v15 = vld [vmem:[#allocation2 + $0x38] sm:$0xee]  ;;  %v18582_v30 = vld [vmem:[#allocation40_spill] sm:$0xff] }
 0x41d   : > { %7944 = vmatpush.bf16.msrb.mxu2 %v11294_v56  ;;  %v18581_v56 = vld [vmem:[#allocation39_spill] sm:$0xff] }
 0x41e   : > { %v17255_v1 = vpop.f32.mrf.mxu0  ;;  %v17257_v33 = vpop.f32.mrf.mxu1  ;;  %18580 = vst [vmem:[#allocation31_spill] sm:$0xff] %v17273_v35 }
 0x41f   : > { %8006 = vmatpush.bf16.msra.mxu0 %v11486_v27  ;;  %v11278_v27 = vor.u32 %v13015_v3, %v11275_v43  ;;  %v10898_v3 = vrot.slane %v4924_v15, 9 }
 0x420   : > { %8035 = vmatpush.bf16.msra.mxu1 %v11614_v40  ;;  %v4984_v40 = vrot.slane %v4979_v46, 4 }
 0x421   : > { %7901 = vmatmul.bf16.gmra.mxu0 %v18576_v10  ;;  %7930 = vmatmul.bf16.gmra.mxu1 %v18577_v51  ;;  %v13051_v51 = vld [vmem:[#allocation3 + $0x384] sm:$0xf]  ;;  %v5169_v10 = vunpack.c.l.b16 %v4966_v24 }
 0x422   : > { %v11422_v48 = vor.u32 %v13051_v51, %v11419_v31  ;;  %v11403_v51 = vld [vmem:[#allocation3 + $0x370] sm:$0xf0]  ;;  %7945 = vmatpush.bf16.msrb.mxu2 %v11278_v27  ;;  %v4985_v31 = vrot.slane %v4926_v25, 5  ;;  %v13011_v27 = vld [vmem:[#allocation3 + $0x244] sm:$0xf] }
 0x423   : > { %v17271_v26 = vpack.c.b16 %v5173_v20, %v5169_v10  ;;  %v11406_v24 = vor.u32 %v13047_v52, %v11403_v51  ;;  %v13043_v51 = vld [vmem:[#allocation3 + $0x344] sm:$0xf] }
 0x424   : > { %7973 = vmatpush.bf16.msrb.mxu3 %v11422_v48  ;;  %v4986_v43 = vsel %vm14431_vm5, %v4984_v40, %v4985_v31 }
 0x425   : > { %18579 = vst [vmem:[#allocation28_spill] sm:$0xff] %v17271_v26 }
 0x426   : > { %v17267_v32 = vpop.f32.mrf.mxu0  ;;  %v17269_v18 = vpop.f32.mrf.mxu1 }
 0x428   : > { %7974 = vmatpush.bf16.msrb.mxu3 %v11406_v24  ;;  %v11387_v24 = vld [vmem:[#allocation3 + $0x350] sm:$0xf0] }
 0x429   : > { %7833 = vmatmul.bf16.vlgmr.msra.gmra.mxu2 %v17271_v26  ;;  %7862 = vmatmul.bf16.vlgmr.msra.gmra.mxu3 %v17273_v35  ;;  %v5181_v26 = vunpack.c.l.b16 %v4986_v43  ;;  %v11390_v25 = vor.u32 %v13043_v51, %v11387_v24  ;;  %v4930_v51 = vld [vmem:[#allocation2 + $0x88] sm:$0x11] }
 0x42b   : > { %v7602_v6 = vpop.f32.mrf.mxu2  ;;  %v7631_v2 = vpop.f32.mrf.mxu3 }
 0x42c   : > { %v7603_v10 = vadd.f32 %v7602_v6, %v17116_v17  ;;  %v11259_v17 = vld [vmem:[#allocation3 + $0x250] sm:$0xf0]  ;;  %v4980_v6 = vsel %vm14431_vm5, %v10898_v3, %v4979_v46  ;;  %7975 = vmatpush.bf16.msrb.mxu3 %v11390_v25 }
 0x42d   : > { %v11262_v35 = vor.u32 %v13011_v27, %v11259_v17  ;;  %v5178_v46 = vunpack.c.h.b16 %v4980_v6  ;;  %v13039_v17 = vld [vmem:[#allocation3 + $0x324] sm:$0xf] }
 0x42e   : > { %v17278_v47 = vpop.f32.mrf.mxu0  ;;  %v17280_v20 = vpop.f32.mrf.mxu1  ;;  %v7632_v48 = vadd.f32 %v7631_v2, %v7603_v10 }
 0x42f   : > { %7946 = vmatpush.bf16.msrb.mxu2 %v11262_v35  ;;  %v11243_v35 = vld [vmem:[#allocation3 + $0x230] sm:$0xf0] }
 0x430   : > { %v7661_v52 = vadd.f32 %v17226_v41, %v7632_v48  ;;  %v5177_v48 = vunpack.c.l.b16 %v4980_v6 }
 0x431   : > { %7906 = vmatmul.bf16.gmra.mxu0 %v18581_v56  ;;  %7935 = vmatmul.bf16.gmra.mxu1 %v18582_v30  ;;  %v5182_v56 = vunpack.c.h.b16 %v4986_v43  ;;  %v4914_v30 = vld [vmem:[#allocation2 + $0x78] sm:$0xff] }
 0x432   : > { %v17290_v2 = vadd.f32 %v17228_v23, %v7661_v52  ;;  %v17297_v27 = vpack.c.b16 %v5181_v26, %v5177_v48  ;;  %v4993_v23 = vrot.slane %v4914_v30, 5  ;;  %v4928_v48 = vld [vmem:[#allocation2 + $0x68] sm:$0xee] }
 0x433   : > { %v7604_v10 = vpop.f32.mrf.mxu2  ;;  %v7633_v15 = vpop.f32.mrf.mxu3  ;;  %v17299_v43 = vpack.c.b16 %v5182_v56, %v5178_v46  ;;  %v4999_v46 = vrot.slane %v4930_v51, 5 }
 0x434   : > { %v7605_v41 = vadd.f32 %v7604_v10, %v17147_v59  ;;  %18583 = vst [vmem:[#allocation41_spill] sm:$0xff] %v17297_v27  ;;  %v13007_v59 = vld [vmem:[#allocation3 + $0x224] sm:$0xf]  ;;  %v11371_v10 = vld [vmem:[#allocation3 + $0x330] sm:$0xf0]  ;;  %v4998_v6 = vrot.slane %v4993_v23, 4 }
 0x435   : > { %18584 = vst [vmem:[#allocation42_spill] sm:$0xff] %v17299_v43  ;;  %v11246_v24 = vor.u32 %v13007_v59, %v11243_v35  ;;  %v11374_v25 = vor.u32 %v13039_v17, %v11371_v10  ;;  %v18586_v35 = vld [vmem:[#allocation54_spill] sm:$0xff]  ;;  %v17316_v17 = vld [vmem:[#allocation2 + $0xa8] sm:$0xff]  ;;  %v11227_v10 = vld [vmem:[#allocation3 + $0x210] sm:$0xf0] }
 0x436   : > { %v17293_v40 = vpop.f32.mrf.mxu0  ;;  %v17295_v31 = vpop.f32.mrf.mxu1  ;;  %v7634_v3 = vadd.f32 %v7633_v15, %v7605_v41  ;;  %v5007_v62 = vrot.slane %v17316_v17, 5 }
 0x437   : > { %7947 = vmatpush.bf16.msrb.mxu2 %v11246_v24  ;;  %7976 = vmatpush.bf16.msrb.mxu3 %v11374_v25  ;;  %v13003_v24 = vld [vmem:[#allocation3 + $0x204] sm:$0xf] }
 0x438   : > { %v7663_v52 = vadd.f32 %v17232_v34, %v7634_v3  ;;  %v18585_v3 = vld [vmem:[#allocation8_spill] sm:$0xff]  ;;  %v5012_v17 = vrot.slane %v5007_v62, 4 }
 0x439   : > { %7838 = vmatmul.bf16.gmra.mxu2 %v17297_v27  ;;  %7867 = vmatmul.bf16.gmra.mxu3 %v17299_v43  ;;  %v11230_v43 = vor.u32 %v13003_v24, %v11227_v10 }
 0x43a   : > { %v17305_v26 = vadd.f32 %v17234_v37, %v7663_v52  ;;  %v5000_v37 = vsel %vm14431_vm5, %v4998_v6, %v4999_v46  ;;  %v10900_v52 = vrot.slane %v4928_v48, 9  ;;  %v13035_v6 = vld [vmem:[#allocation3 + $0x304] sm:$0xf]  ;;  %v11355_v48 = vld [vmem:[#allocation3 + $0x310] sm:$0xf0] }
 0x43b   : > { %v5189_v25 = vunpack.c.l.b16 %v5000_v37  ;;  %7948 = vmatpush.bf16.msrb.mxu2 %v11230_v43  ;;  %v11358_v57 = vor.u32 %v13035_v6, %v11355_v48  ;;  %v13215_v48 = vld [vmem:[#allocation3 + $0x8a4] sm:$0xf] }
 0x43c   : > { %v7607_v56 = vpop.f32.mrf.mxu2  ;;  %v7636_v15 = vpop.f32.mrf.mxu3  ;;  %v4994_v51 = vsel %vm14431_vm5, %v10900_v52, %v4993_v23 }
 0x43d   : > { %v7608_v34 = vadd.f32 %v7607_v56, %v17172_v12  ;;  %v13223_v56 = vld [vmem:[#allocation3 + $0x8e4] sm:$0xf]  ;;  %7977 = vmatpush.bf16.msrb.mxu3 %v11358_v57  ;;  %v11851_v57 = vld [vmem:[#allocation3 + $0x6f0] sm:$0xf0] }
 0x43e   : > { %v17308_v30 = vpop.f32.mrf.mxu0  ;;  %v17310_v41 = vpop.f32.mrf.mxu1 }
 0x43f   : > { %v7637_v59 = vadd.f32 %v7636_v15, %v7608_v34  ;;  %v13255_v15 = vld [vmem:[#allocation3 + $0x9e4] sm:$0xf]  ;;  %v12235_v34 = vld [vmem:[#allocation3 + $0x9f0] sm:$0xf0] }
 0x440   : > { %v12238_v4 = vor.u32 %v13255_v15, %v12235_v34  ;;  %v12091_v15 = vld [vmem:[#allocation3 + $0x8d0] sm:$0xf0]  ;;  %v13251_v34 = vld [vmem:[#allocation3 + $0x9c4] sm:$0xf] }
 0x441   : > { %8007 = vmatmul.bf16.vlgmr.msra.gmra.mxu0 %v18585_v3  ;;  %8036 = vmatmul.bf16.vlgmr.msra.gmra.mxu1 %v18586_v35  ;;  %v7666_v12 = vadd.f32 %v17238_v38, %v7637_v59  ;;  %v12107_v3 = vld [vmem:[#allocation3 + $0x8f0] sm:$0xf0]  ;;  %v5190_v35 = vunpack.c.h.b16 %v5000_v37  ;;  %v5185_v37 = vunpack.c.l.b16 %v4994_v51 }
 0x442   : > { %v12110_v27 = vor.u32 %v13223_v56, %v12107_v3  ;;  %v5186_v3 = vunpack.c.h.b16 %v4994_v51  ;;  %8144 = vmatpush.bf16.msrb.mxu1 %v12238_v4  ;;  %v4934_v56 = vld [vmem:[#allocation2 + $0xb8] sm:$0x11]  ;;  %v13159_v4 = vld [vmem:[#allocation3 + $0x6e4] sm:$0xf] }
 0x443   : > { %v17322_v46 = vadd.f32 %v17240_v9, %v7666_v12  ;;  %v17330_v9 = vpack.c.b16 %v5189_v25, %v5185_v37  ;;  %v11854_v25 = vor.u32 %v13159_v4, %v11851_v57 }
 0x444   : > { %v7609_v38 = vpop.f32.mrf.mxu2  ;;  %v7638_v59 = vpop.f32.mrf.mxu3  ;;  %8115 = vmatpush.bf16.msrb.mxu0 %v12110_v27  ;;  %v17332_v12 = vpack.c.b16 %v5190_v35, %v5186_v3  ;;  %v12219_v27 = vld [vmem:[#allocation3 + $0x9d0] sm:$0xf0] }
 0x445   : > { %v7610_v23 = vadd.f32 %v7609_v38, %v17184_v36  ;;  %18587 = vst [vmem:[#allocation43_spill] sm:$0xff] %v17330_v9  ;;  %v13219_v36 = vld [vmem:[#allocation3 + $0x8c4] sm:$0xf]  ;;  %v12222_v6 = vor.u32 %v13251_v34, %v12219_v27  ;;  %v12075_v35 = vld [vmem:[#allocation3 + $0x8b0] sm:$0xf0]  ;;  %v5013_v27 = vrot.slane %v4934_v56, 5  ;;  %8057 = vmatpush.bf16.msra.mxu2 %v11854_v25 }
 0x446   : > { %v17326_v52 = vpop.f32.mrf.mxu0  ;;  %v17328_v24 = vpop.f32.mrf.mxu1  ;;  %18588 = vst [vmem:[#allocation32_spill] sm:$0xff] %v17332_v12  ;;  %v12094_v51 = vor.u32 %v13219_v36, %v12091_v15  ;;  %v13247_v38 = vld [vmem:[#allocation3 + $0x9a4] sm:$0xf]  ;;  %v12078_v37 = vor.u32 %v13215_v48, %v12075_v35  ;;  %v12203_v3 = vld [vmem:[#allocation3 + $0x9b0] sm:$0xf0] }
 0x447   : > { %v7639_v10 = vadd.f32 %v7638_v59, %v7610_v23  ;;  %v4932_v34 = vld [vmem:[#allocation2 + $0x98] sm:$0xee]  ;;  %8145 = vmatpush.bf16.msrb.mxu1 %v12222_v6  ;;  %v12206_v4 = vor.u32 %v13247_v38, %v12203_v3  ;;  %v13211_v48 = vld [vmem:[#allocation3 + $0x884] sm:$0xf]  ;;  %v12059_v56 = vld [vmem:[#allocation3 + $0x890] sm:$0xf0] }
 0x448   : > { %8116 = vmatpush.bf16.msrb.mxu0 %v12094_v51  ;;  %v5014_v51 = vsel %vm14431_vm5, %v5012_v17, %v5013_v27  ;;  %v13243_v6 = vld [vmem:[#allocation3 + $0x984] sm:$0xf]  ;;  %v12062_v35 = vor.u32 %v13211_v48, %v12059_v56  ;;  %v12187_v38 = vld [vmem:[#allocation3 + $0x990] sm:$0xf0] }
 0x449   : > { %v7668_v43 = vadd.f32 %v17247_v29, %v7639_v10  ;;  %7843 = vmatmul.bf16.gmra.mxu2 %v17330_v9  ;;  %7872 = vmatmul.bf16.gmra.mxu3 %v17332_v12  ;;  %v13191_v10 = vld [vmem:[#allocation3 + $0x7e4] sm:$0xf]  ;;  %v11979_v12 = vld [vmem:[#allocation3 + $0x7f0] sm:$0xf0]  ;;  %v5197_v25 = vunpack.c.l.b16 %v5014_v51  ;;  %v5198_v3 = vunpack.c.h.b16 %v5014_v51 }
 0x44b   : > { %v17338_v59 = vadd.f32 %v17249_v49, %v7668_v43  ;;  %v11982_v49 = vor.u32 %v13191_v10, %v11979_v12  ;;  %8146 = vmatpush.bf16.msrb.mxu1 %v12206_v4  ;;  %v12190_v10 = vor.u32 %v13243_v6, %v12187_v38 }
 0x44c   : > { %v7612_v29 = vpop.f32.mrf.mxu2  ;;  %v7641_v23 = vpop.f32.mrf.mxu3  ;;  %8117 = vmatpush.bf16.msrb.mxu0 %v12078_v37  ;;  %v13239_v37 = vld [vmem:[#allocation3 + $0x964] sm:$0xf] }
 0x44d   : > { %v7613_v36 = vadd.f32 %v7612_v29, %v17200_v63  ;;  %8086 = vmatpush.bf16.msra.mxu3 %v11982_v49  ;;  %v10902_v63 = vrot.slane %v4932_v34, 9  ;;  %v13155_v29 = vld [vmem:[#allocation3 + $0x6c4] sm:$0xf]  ;;  %v12043_v34 = vld [vmem:[#allocation3 + $0x870] sm:$0xf0] }
 0x44e   : > { %v17341_v15 = vpop.f32.mrf.mxu0  ;;  %v17343_v9 = vpop.f32.mrf.mxu1 }
 0x44f   : > { %v7642_v43 = vadd.f32 %v7641_v23, %v7613_v36  ;;  %v5008_v12 = vsel %vm14431_vm5, %v10902_v63, %v5007_v62  ;;  %v11835_v23 = vld [vmem:[#allocation3 + $0x6d0] sm:$0xf0]  ;;  %v13207_v36 = vld [vmem:[#allocation3 + $0x864] sm:$0xf]  ;;  %8147 = vmatpush.bf16.msrb.mxu1 %v12190_v10 }
 0x450   : > { %v11838_v17 = vor.u32 %v13155_v29, %v11835_v23  ;;  %8118 = vmatpush.bf16.msrb.mxu0 %v12062_v35  ;;  %v12046_v49 = vor.u32 %v13207_v36, %v12043_v34  ;;  %v13187_v62 = vld [vmem:[#allocation3 + $0x7c4] sm:$0xf]  ;;  %v5193_v56 = vunpack.c.l.b16 %v5008_v12  ;;  %v5194_v6 = vunpack.c.h.b16 %v5008_v12  ;;  %v12027_v36 = vld [vmem:[#allocation3 + $0x850] sm:$0xf0] }
 0x451   : > { %8012 = vmatmul.bf16.gmra.mxu0 %v15993_v5  ;;  %8041 = vmatmul.bf16.gmra.mxu1 %v15998_v61  ;;  %v7671_v57 = vadd.f32 %v17255_v1, %v7642_v43  ;;  %v11963_v43 = vld [vmem:[#allocation3 + $0x7d0] sm:$0xf0]  ;;  %v13235_v12 = vld [vmem:[#allocation3 + $0x944] sm:$0xf] }
 0x452   : > { %8058 = vmatpush.bf16.msra.mxu2 %v11838_v17  ;;  %v11966_v38 = vor.u32 %v13187_v62, %v11963_v43  ;;  %v17360_v29 = vpack.c.b16 %v5197_v25, %v5193_v56  ;;  %v17362_v35 = vpack.c.b16 %v5198_v3, %v5194_v6  ;;  %v12155_v17 = vld [vmem:[#allocation3 + $0x950] sm:$0xf0]  ;;  %v13151_v34 = vld [vmem:[#allocation3 + $0x6a4] sm:$0xf] }
 0x453   : > { %v17353_v1 = vadd.f32 %v17257_v33, %v7671_v57  ;;  %v12174_v33 = vor.u32 %v13239_v37, %v12171_v7  ;;  %v11819_v37 = vld [vmem:[#allocation3 + $0x6b0] sm:$0xf0]  ;;  %v12158_v25 = vor.u32 %v13235_v12, %v12155_v17  ;;  %v13199_v3 = vld [vmem:[#allocation3 + $0x824] sm:$0xf] }
 0x454   : > { %v7614_v27 = vpop.f32.mrf.mxu2  ;;  %v7643_v4 = vpop.f32.mrf.mxu3  ;;  %18589 = vst [vmem:[#allocation44_spill] sm:$0xff] %v17360_v29  ;;  %8087 = vmatpush.bf16.msra.mxu3 %v11966_v38  ;;  %8119 = vmatpush.bf16.msrb.mxu0 %v12046_v49  ;;  %v13231_v7 = vld [vmem:[#allocation3 + $0x924] sm:$0xf]  ;;  %v11947_v6 = vld [vmem:[#allocation3 + $0x7b0] sm:$0xf0] }
 0x455   : > { %v7615_v63 = vadd.f32 %v7614_v27, %v17206_v11  ;;  %18590 = vst [vmem:[#allocation45_spill] sm:$0xff] %v17362_v35  ;;  %v13203_v11 = vld [vmem:[#allocation3 + $0x844] sm:$0xf]  ;;  %8148 = vmatpush.bf16.msrb.mxu1 %v12174_v33  ;;  %v11822_v27 = vor.u32 %v13151_v34, %v11819_v37  ;;  %v12123_v34 = vld [vmem:[#allocation3 + $0x910] sm:$0xf0] }
 0x456   : > { %v17356_v48 = vpop.f32.mrf.mxu0  ;;  %v17358_v51 = vpop.f32.mrf.mxu1  ;;  %v12030_v10 = vor.u32 %v13203_v11, %v12027_v36  ;;  %v13183_v56 = vld [vmem:[#allocation3 + $0x7a4] sm:$0xf] }
 0x457   : > { %v7644_v57 = vadd.f32 %v7643_v4, %v7615_v63  ;;  %v12011_v4 = vld [vmem:[#allocation3 + $0x830] sm:$0xf0]  ;;  %8059 = vmatpush.bf16.msra.mxu2 %v11822_v27  ;;  %v11950_v11 = vor.u32 %v13183_v56, %v11947_v6  ;;  %v13195_v12 = vld [vmem:[#allocation3 + $0x804] sm:$0xf] }
 0x458   : > { %8120 = vmatpush.bf16.msrb.mxu0 %v12030_v10  ;;  %v12014_v43 = vor.u32 %v13199_v3, %v12011_v4  ;;  %v12139_v63 = vld [vmem:[#allocation3 + $0x930] sm:$0xf0]  ;;  %v13147_v37 = vld [vmem:[#allocation3 + $0x684] sm:$0xf] }
 0x459   : > { %v7673_v23 = vadd.f32 %v17267_v32, %v7644_v57  ;;  %7848 = vmatmul.bf16.gmra.mxu2 %v17360_v29  ;;  %7877 = vmatmul.bf16.gmra.mxu3 %v17362_v35  ;;  %v11995_v10 = vld [vmem:[#allocation3 + $0x810] sm:$0xf0] }
 0x45a   : > { %8149 = vmatpush.bf16.msrb.mxu1 %v12158_v25  ;;  %8088 = vmatpush.bf16.msra.mxu3 %v11950_v11  ;;  %v11998_v17 = vor.u32 %v13195_v12, %v11995_v10  ;;  %v11803_v27 = vld [vmem:[#allocation3 + $0x690] sm:$0xf0] }
 0x45b   : > { %v17368_v49 = vadd.f32 %v17269_v18, %v7673_v23  ;;  %v12142_v18 = vor.u32 %v13231_v7, %v12139_v63  ;;  %v11806_v4 = vor.u32 %v13147_v37, %v11803_v27  ;;  %v11931_v25 = vld [vmem:[#allocation3 + $0x790] sm:$0xf0] }
 0x45c   : > { %v7617_v32 = vpop.f32.mrf.mxu2  ;;  %v7646_v62 = vpop.f32.mrf.mxu3  ;;  %8121 = vmatpush.bf16.msrb.mxu0 %v12014_v43  ;;  %v11915_v12 = vld [vmem:[#allocation3 + $0x770] sm:$0xf0] }
 0x45d   : > { %v7618_v38 = vadd.f32 %v7617_v32, %v17216_v45  ;;  %v13227_v45 = vld [vmem:[#allocation3 + $0x904] sm:$0xf]  ;;  %8060 = vmatpush.bf16.msra.mxu2 %v11806_v4 }
 0x45e   : > { %v17371_v33 = vpop.f32.mrf.mxu0  ;;  %v17373_v57 = vpop.f32.mrf.mxu1  ;;  %8150 = vmatpush.bf16.msrb.mxu1 %v12142_v18  ;;  %v12126_v3 = vor.u32 %v13227_v45, %v12123_v34  ;;  %v13179_v32 = vld [vmem:[#allocation3 + $0x784] sm:$0xf]  ;;  %v11787_v18 = vld [vmem:[#allocation3 + $0x670] sm:$0xf0] }
 0x45f   : > { %v7647_v23 = vadd.f32 %v7646_v62, %v7618_v38  ;;  %v11934_v43 = vor.u32 %v13179_v32, %v11931_v25  ;;  %v13139_v4 = vld [vmem:[#allocation3 + $0x644] sm:$0xf] }
 0x460   : > { %8122 = vmatpush.bf16.msrb.mxu0 %v11998_v17  ;;  %v13171_v32 = vld [vmem:[#allocation3 + $0x744] sm:$0xf] }
 0x461   : > { %8017 = vmatmul.bf16.gmra.mxu0 %v18534_v14  ;;  %8046 = vmatmul.bf16.gmra.mxu1 %v18535_v39  ;;  %v7676_v36 = vadd.f32 %v17278_v47, %v7647_v23  ;;  %v13175_v23 = vld [vmem:[#allocation3 + $0x764] sm:$0xf] }
 0x462   : > { %8151 = vmatpush.bf16.msrb.mxu1 %v12126_v3  ;;  %8089 = vmatpush.bf16.msra.mxu3 %v11934_v43 }
 0x463   : > { %v17379_v7 = vadd.f32 %v17280_v20, %v7676_v36  ;;  %v13143_v20 = vld [vmem:[#allocation3 + $0x664] sm:$0xf] }
 0x464   : > { %v7619_v62 = vpop.f32.mrf.mxu2  ;;  %v7648_v63 = vpop.f32.mrf.mxu3  ;;  %v11790_v36 = vor.u32 %v13143_v20, %v11787_v18 }
 0x465   : > { %v7620_v47 = vadd.f32 %v7619_v62, %v17222_v0  ;;  %v11918_v0 = vor.u32 %v13175_v23, %v11915_v12  ;;  %v11899_v62 = vld [vmem:[#allocation3 + $0x750] sm:$0xf0]  ;;  %v13135_v23 = vld [vmem:[#allocation3 + $0x624] sm:$0xf] }
 0x466   : > { %v17382_v56 = vpop.f32.mrf.mxu0  ;;  %v17384_v6 = vpop.f32.mrf.mxu1  ;;  %8061 = vmatpush.bf16.msra.mxu2 %v11790_v36  ;;  %v13167_v36 = vld [vmem:[#allocation3 + $0x724] sm:$0xf] }
 0x467   : > { %v7649_v38 = vadd.f32 %v7648_v63, %v7620_v47  ;;  %8090 = vmatpush.bf16.msra.mxu3 %v11918_v0  ;;  %v11902_v63 = vor.u32 %v13171_v32, %v11899_v62  ;;  %v11883_v0 = vld [vmem:[#allocation3 + $0x730] sm:$0xf0]  ;;  %v11089_v62 = vld [vmem:[#allocation3 + $0xe8] sm:$0xf] }
 0x469   : > { %v7678_v11 = vadd.f32 %v17293_v40, %v7649_v38  ;;  %7949 = vmatmul.bf16.vlgmr.msrb.gmra.mxu2 %v17035_v54  ;;  %7978 = vmatmul.bf16.vlgmr.msrb.gmra.mxu3 %v17037_v42 }
 0x46b   : > { %v17390_v10 = vadd.f32 %v17295_v31, %v7678_v11  ;;  %v11771_v31 = vld [vmem:[#allocation3 + $0x650] sm:$0xf0]  ;;  %8091 = vmatpush.bf16.msra.mxu3 %v11902_v63 }
 0x46c   : > { %v7718_v45 = vpop.f32.mrf.mxu2  ;;  %v7747_v17 = vpop.f32.mrf.mxu3  ;;  %v11774_v25 = vor.u32 %v13139_v4, %v11771_v31 }
 0x46d   : > { %v7719_v34 = vadd.f32 %v7718_v45, %v17290_v2  ;;  %v11886_v45 = vor.u32 %v13167_v36, %v11883_v0 }
 0x46e   : > { %v17393_v37 = vpop.f32.mrf.mxu0  ;;  %v17395_v40 = vpop.f32.mrf.mxu1  ;;  %8062 = vmatpush.bf16.msra.mxu2 %v11774_v25  ;;  %v13131_v25 = vld [vmem:[#allocation3 + $0x604] sm:$0xf] }
 0x46f   : > { %v7748_v27 = vadd.f32 %v7747_v17, %v7719_v34  ;;  %8092 = vmatpush.bf16.msra.mxu3 %v11886_v45 }
 0x471   : > { %8022 = vmatmul.bf16.gmra.mxu0 %v18548_v21  ;;  %8051 = vmatmul.bf16.gmra.mxu1 %v18550_v13  ;;  %v7777_v3 = vadd.f32 %v17308_v30, %v7748_v27 }
 0x473   : > { %v17401_v2 = vadd.f32 %v17310_v41, %v7777_v3  ;;  %v11755_v41 = vld [vmem:[#allocation3 + $0x630] sm:$0xf0] }
 0x474   : > { %v7720_v43 = vpop.f32.mrf.mxu2  ;;  %v7749_v47 = vpop.f32.mrf.mxu3  ;;  %v11758_v12 = vor.u32 %v13135_v23, %v11755_v41  ;;  %v11867_v23 = vld [vmem:[#allocation3 + $0x710] sm:$0xf0] }
 0x475   : > { %v7721_v38 = vadd.f32 %v7720_v43, %v17305_v26  ;;  %v12970_v43 = vld [vmem:[#allocation3 + $0xf4] sm:$0xf0] }
 0x476   : > { %v17404_v11 = vpop.f32.mrf.mxu0  ;;  %v17406_v20 = vpop.f32.mrf.mxu1  ;;  %8063 = vmatpush.bf16.msra.mxu2 %v11758_v12 }
 0x477   : > { %v7750_v30 = vadd.f32 %v7749_v47, %v7721_v38  ;;  %v11217_v47 = vld [vmem:[#allocation3 + $0x1e8] sm:$0xf]  ;;  %v13002_v38 = vld [vmem:[#allocation3 + $0x1f4] sm:$0xf0] }
 0x479   : > { %v7779_v18 = vadd.f32 %v17326_v52, %v7750_v30  ;;  %7954 = vmatmul.bf16.gmra.mxu2 %v17099_v28  ;;  %7983 = vmatmul.bf16.gmra.mxu3 %v17101_v58  ;;  %v11218_v30 = vor.u32 %v13002_v38, %v11217_v47  ;;  %v12962_v47 = vld [vmem:[#allocation3 + $0xb4] sm:$0xf0]  ;;  %v11185_v38 = vld [vmem:[#allocation3 + $0x1a8] sm:$0xf] }
 0x47b   : > { %v17412_v26 = vadd.f32 %v17328_v24, %v7779_v18  ;;  %v11739_v24 = vld [vmem:[#allocation3 + $0x610] sm:$0xf0]  ;;  %v13163_v18 = vld [vmem:[#allocation3 + $0x704] sm:$0xf]  ;;  %8260 = vmatpush.bf16.msra.mxu1 %v11218_v30 }
 0x47c   : > { %v7723_v17 = vpop.f32.mrf.mxu2  ;;  %v7752_v34 = vpop.f32.mrf.mxu3  ;;  %v11742_v63 = vor.u32 %v13131_v25, %v11739_v24  ;;  %v11870_v0 = vor.u32 %v13163_v18, %v11867_v23  ;;  %v12998_v25 = vld [vmem:[#allocation3 + $0x1d4] sm:$0xf0]  ;;  %v12363_v24 = vld [vmem:[#allocation3 + $0xaf0] sm:$0xf0] }
 0x47d   : > { %v7724_v27 = vadd.f32 %v7723_v17, %v17322_v46  ;;  %v11090_v46 = vor.u32 %v12970_v43, %v11089_v62  ;;  %v11057_v43 = vld [vmem:[#allocation3 + $0xa8] sm:$0xf]  ;;  %v12994_v23 = vld [vmem:[#allocation3 + $0x1b4] sm:$0xf0] }
 0x47e   : > { %v7892_v3 = vpop.f32.mrf.mxu0  ;;  %v7921_v52 = vpop.f32.mrf.mxu1  ;;  %8064 = vmatpush.bf16.msra.mxu2 %v11742_v63  ;;  %8093 = vmatpush.bf16.msra.mxu3 %v11870_v0  ;;  %v11058_v18 = vor.u32 %v12962_v47, %v11057_v43  ;;  %v12958_v43 = vld [vmem:[#allocation3 + $0x94] sm:$0xf0]  ;;  %v11169_v47 = vld [vmem:[#allocation3 + $0x188] sm:$0xf] }
 0x47f   : > { %v17415_v4 = vadd.f32 %v7921_v52, %v7892_v3  ;;  %v7753_v31 = vadd.f32 %v7752_v34, %v7724_v27  ;;  %8231 = vmatpush.bf16.msra.mxu0 %v11090_v46  ;;  %v12966_v52 = vld [vmem:[#allocation3 + $0xd4] sm:$0xf0] }
 0x481   : > { %8123 = vmatmul.bf16.vlgmr.msrb.gmra.mxu0 %v17097_v19  ;;  %8152 = vmatmul.bf16.vlgmr.msrb.gmra.mxu1 %v17118_v8  ;;  %v7782_v32 = vadd.f32 %v17341_v15, %v7753_v31  ;;  %v11201_v31 = vld [vmem:[#allocation3 + $0x1c8] sm:$0xf] }
 0x482   : > { %v11202_v62 = vor.u32 %v12998_v25, %v11201_v31 }
 0x483   : > { %v17421_v41 = vadd.f32 %v17343_v9, %v7782_v32  ;;  %v11073_v9 = vld [vmem:[#allocation3 + $0xc8] sm:$0xf] }
 0x484   : > { %v7725_v36 = vpop.f32.mrf.mxu2  ;;  %v7754_v12 = vpop.f32.mrf.mxu3  ;;  %v11074_v32 = vor.u32 %v12966_v52, %v11073_v9  ;;  %8261 = vmatpush.bf16.msra.mxu1 %v11202_v62 }
 0x485   : > { %v7726_v15 = vadd.f32 %v7725_v36, %v17338_v59  ;;  %v13287_v59 = vld [vmem:[#allocation3 + $0xae4] sm:$0xf] }
 0x486   : > { %v7894_v45 = vpop.f32.mrf.mxu0  ;;  %v7923_v17 = vpop.f32.mrf.mxu1  ;;  %v12366_v63 = vor.u32 %v13287_v59, %v12363_v24  ;;  %8232 = vmatpush.bf16.msra.mxu0 %v11074_v32  ;;  %v13319_v36 = vld [vmem:[#allocation3 + $0xbe4] sm:$0xf] }
 0x487   : > { %v17424_v34 = vadd.f32 %v7923_v17, %v7894_v45  ;;  %v7755_v27 = vadd.f32 %v7754_v12, %v7726_v15  ;;  %v12491_v12 = vld [vmem:[#allocation3 + $0xbf0] sm:$0xf0]  ;;  %v11186_v17 = vor.u32 %v12994_v23, %v11185_v38  ;;  %v11025_v23 = vld [vmem:[#allocation3 + $0x68] sm:$0xf] }
 0x488   : > { %8173 = vmatpush.bf16.msrb.mxu2 %v12366_v63  ;;  %v11041_v63 = vld [vmem:[#allocation3 + $0x88] sm:$0xf] }
 0x489   : > { %v7784_v3 = vadd.f32 %v17356_v48, %v7755_v27  ;;  %7959 = vmatmul.bf16.gmra.mxu2 %v17159_v53  ;;  %7988 = vmatmul.bf16.gmra.mxu3 %v17161_v16  ;;  %v12494_v27 = vor.u32 %v13319_v36, %v12491_v12  ;;  %v11042_v38 = vor.u32 %v12958_v43, %v11041_v63  ;;  %v12954_v36 = vld [vmem:[#allocation3 + $0x74] sm:$0xf0]  ;;  %v11153_v12 = vld [vmem:[#allocation3 + $0x168] sm:$0xf] }
 0x48a   : > { %8233 = vmatpush.bf16.msra.mxu0 %v11058_v18  ;;  %8262 = vmatpush.bf16.msra.mxu1 %v11186_v17  ;;  %v11026_v17 = vor.u32 %v12954_v36, %v11025_v23  ;;  %v18591_v63 = vld [vmem:[#allocation27_spill] sm:$0xff]  ;;  %v12946_v23 = vld [vmem:[#allocation3 + $0x34] sm:$0xf0] }
 0x48b   : > { %v17430_v46 = vadd.f32 %v17358_v51, %v7784_v3  ;;  %8202 = vmatpush.bf16.msrb.mxu3 %v12494_v27  ;;  %v11009_v43 = vld [vmem:[#allocation3 + $0x48] sm:$0xf] }
 0x48c   : > { %v7728_v48 = vpop.f32.mrf.mxu2  ;;  %v7757_v30 = vpop.f32.mrf.mxu3  ;;  %v11121_v36 = vld [vmem:[#allocation3 + $0x128] sm:$0xf] }
 0x48d   : > { %v7729_v0 = vadd.f32 %v7728_v48, %v17353_v1  ;;  %v12990_v48 = vld [vmem:[#allocation3 + $0x194] sm:$0xf0] }
 0x48e   : > { %v7897_v15 = vpop.f32.mrf.mxu0  ;;  %v7926_v45 = vpop.f32.mrf.mxu1  ;;  %8234 = vmatpush.bf16.msra.mxu0 %v11042_v38 }
 0x48f   : > { %v17433_v9 = vadd.f32 %v7926_v45, %v7897_v15  ;;  %v7758_v51 = vadd.f32 %v7757_v30, %v7729_v0  ;;  %v13283_v30 = vld [vmem:[#allocation3 + $0xac4] sm:$0xf]  ;;  %v12986_v0 = vld [vmem:[#allocation3 + $0x174] sm:$0xf0]  ;;  %v12475_v45 = vld [vmem:[#allocation3 + $0xbd0] sm:$0xf0] }
 0x490   : > { %v13315_v15 = vld [vmem:[#allocation3 + $0xbc4] sm:$0xf] }
 0x491   : > { %8128 = vmatmul.bf16.gmra.mxu0 %v17170_v22  ;;  %8157 = vmatmul.bf16.gmra.mxu1 %v17174_v50  ;;  %v7787_v3 = vadd.f32 %v17371_v33, %v7758_v51  ;;  %v12347_v33 = vld [vmem:[#allocation3 + $0xad0] sm:$0xf0]  ;;  %v12478_v27 = vor.u32 %v13315_v15, %v12475_v45 }
 0x492   : > { %8235 = vmatpush.bf16.msra.mxu0 %v11026_v17  ;;  %v12459_v15 = vld [vmem:[#allocation3 + $0xbb0] sm:$0xf0] }
 0x493   : > { %v17439_v1 = vadd.f32 %v17373_v57, %v7787_v3  ;;  %v11170_v57 = vor.u32 %v12990_v48, %v11169_v47  ;;  %8203 = vmatpush.bf16.msrb.mxu3 %v12478_v27  ;;  %v12950_v47 = vld [vmem:[#allocation3 + $0x54] sm:$0xf0] }
 0x494   : > { %v7730_v52 = vpop.f32.mrf.mxu2  ;;  %v7759_v31 = vpop.f32.mrf.mxu3  ;;  %v11010_v38 = vor.u32 %v12950_v47, %v11009_v43  ;;  %v12982_v48 = vld [vmem:[#allocation3 + $0x154] sm:$0xf0]  ;;  %v10977_v43 = vld [vmem:[#allocation3 + $0x8] sm:$0xf] }
 0x495   : > { %v7731_v32 = vadd.f32 %v7730_v52, %v17368_v49  ;;  %v12350_v49 = vor.u32 %v13283_v30, %v12347_v33  ;;  %8263 = vmatpush.bf16.msra.mxu1 %v11170_v57  ;;  %v11154_v52 = vor.u32 %v12986_v0, %v11153_v12  ;;  %v13279_v30 = vld [vmem:[#allocation3 + $0xaa4] sm:$0xf]  ;;  %v12331_v33 = vld [vmem:[#allocation3 + $0xab0] sm:$0xf0]  ;;  %v12978_v12 = vld [vmem:[#allocation3 + $0x134] sm:$0xf0] }
 0x496   : > { %v7899_v25 = vpop.f32.mrf.mxu0  ;;  %v7928_v59 = vpop.f32.mrf.mxu1  ;;  %v12334_v57 = vor.u32 %v13279_v30, %v12331_v33  ;;  %v13311_v0 = vld [vmem:[#allocation3 + $0xba4] sm:$0xf]  ;;  %8236 = vmatpush.bf16.msra.mxu0 %v11010_v38  ;;  %v12942_v47 = vld [vmem:[#allocation3 + $0x14] sm:$0xf0]  ;;  %v12315_v30 = vld [vmem:[#allocation3 + $0xa90] sm:$0xf0] }
 0x497   : > { %v17442_v24 = vadd.f32 %v7928_v59, %v7899_v25  ;;  %v7760_v62 = vadd.f32 %v7759_v31, %v7731_v32  ;;  %8174 = vmatpush.bf16.msrb.mxu2 %v12350_v49  ;;  %v10993_v49 = vld [vmem:[#allocation3 + $0x28] sm:$0xf]  ;;  %v12462_v17 = vor.u32 %v13311_v0, %v12459_v15  ;;  %v10978_v38 = vor.u32 %v12942_v47, %v10977_v43  ;;  %v12427_v43 = vld [vmem:[#allocation3 + $0xb70] sm:$0xf0] }
 0x498   : > { %v10994_v45 = vor.u32 %v12946_v23, %v10993_v49  ;;  %v13307_v49 = vld [vmem:[#allocation3 + $0xb84] sm:$0xf]  ;;  %v12443_v23 = vld [vmem:[#allocation3 + $0xb90] sm:$0xf0] }
 0x499   : > { %v7789_v18 = vadd.f32 %v17382_v56, %v7760_v62  ;;  %7964 = vmatmul.bf16.gmra.mxu2 %v17192_v60  ;;  %7993 = vmatmul.bf16.gmra.mxu3 %v17194_v55 }
 0x49a   : > { %8264 = vmatpush.bf16.msra.mxu1 %v11154_v52  ;;  %v11122_v52 = vor.u32 %v12978_v12, %v11121_v36  ;;  %8204 = vmatpush.bf16.msrb.mxu3 %v12462_v17  ;;  %v12446_v36 = vor.u32 %v13307_v49, %v12443_v23  ;;  %v13299_v23 = vld [vmem:[#allocation3 + $0xb44] sm:$0xf] }
 0x49b   : > { %v17448_v51 = vadd.f32 %v17384_v6, %v7789_v18  ;;  %v11137_v6 = vld [vmem:[#allocation3 + $0x148] sm:$0xf]  ;;  %8175 = vmatpush.bf16.msrb.mxu2 %v12334_v57  ;;  %8237 = vmatpush.bf16.msra.mxu0 %v10994_v45 }
 0x49c   : > { %v7733_v56 = vpop.f32.mrf.mxu2  ;;  %v7762_v3 = vpop.f32.mrf.mxu3  ;;  %v11138_v18 = vor.u32 %v12982_v48, %v11137_v6  ;;  %v11105_v6 = vld [vmem:[#allocation3 + $0x108] sm:$0xf]  ;;  %v13275_v48 = vld [vmem:[#allocation3 + $0xa84] sm:$0xf] }
 0x49d   : > { %v7734_v31 = vadd.f32 %v7733_v56, %v17379_v7  ;;  %v12318_v57 = vor.u32 %v13275_v48, %v12315_v30 }
 0x49e   : > { %v7902_v32 = vpop.f32.mrf.mxu0  ;;  %v7931_v25 = vpop.f32.mrf.mxu1  ;;  %8265 = vmatpush.bf16.msra.mxu1 %v11138_v18  ;;  %8205 = vmatpush.bf16.msrb.mxu3 %v12446_v36  ;;  %v12411_v36 = vld [vmem:[#allocation3 + $0xb50] sm:$0xf0] }
 0x49f   : > { %v17451_v59 = vadd.f32 %v7931_v25, %v7902_v32  ;;  %v7763_v62 = vadd.f32 %v7762_v3, %v7734_v31  ;;  %8238 = vmatpush.bf16.msra.mxu0 %v10978_v38  ;;  %8176 = vmatpush.bf16.msrb.mxu2 %v12318_v57  ;;  %v12283_v57 = vld [vmem:[#allocation3 + $0xa50] sm:$0xf0] }
 0x4a1   : > { %8133 = vmatmul.bf16.gmra.mxu0 %v17198_v44  ;;  %8162 = vmatmul.bf16.gmra.mxu1 %v18591_v63  ;;  %v7792_v7 = vadd.f32 %v17393_v37, %v7763_v62 }
 0x4a2   : > { %8266 = vmatpush.bf16.msra.mxu1 %v11122_v52 }
 0x4a3   : > { %v17457_v27 = vadd.f32 %v17395_v40, %v7792_v7  ;;  %v12974_v40 = vld [vmem:[#allocation3 + $0x114] sm:$0xf0]  ;;  %v18592_v7 = vld [vmem:[#allocation46_spill] sm:$0xff] }
 0x4a4   : > { %v7735_v56 = vpop.f32.mrf.mxu2  ;;  %v7764_v3 = vpop.f32.mrf.mxu3  ;;  %v11106_v18 = vor.u32 %v12974_v40, %v11105_v6 }
 0x4a5   : > { %v7736_v37 = vadd.f32 %v7735_v56, %v17390_v10  ;;  %v18593_v10 = vld [vmem:[#allocation47_spill] sm:$0xff] }
 0x4a6   : > { %v7904_v31 = vpop.f32.mrf.mxu0  ;;  %v7933_v32 = vpop.f32.mrf.mxu1  ;;  %8267 = vmatpush.bf16.msra.mxu1 %v11106_v18  ;;  %v13267_v18 = vld [vmem:[#allocation3 + $0xa44] sm:$0xf] }
 0x4a7   : > { %v17460_v25 = vadd.f32 %v7933_v32, %v7904_v31  ;;  %v7765_v62 = vadd.f32 %v7764_v3, %v7736_v37  ;;  %v18594_v3 = vld [vmem:[#allocation30_spill] sm:$0xff]  ;;  %v12299_v32 = vld [vmem:[#allocation3 + $0xa70] sm:$0xf0]  ;;  %v12286_v49 = vor.u32 %v13267_v18, %v12283_v57 }
 0x4a8   : > { %v18596_v37 = vld [vmem:[#allocation38_spill] sm:$0xff] }
 0x4a9   : > { %v7794_v33 = vadd.f32 %v17404_v11, %v7765_v62  ;;  %8065 = vmatmul.bf16.vlgmr.msra.gmra.mxu2 %v18592_v7  ;;  %8094 = vmatmul.bf16.vlgmr.msra.gmra.mxu3 %v18593_v10  ;;  %v13271_v31 = vld [vmem:[#allocation3 + $0xa64] sm:$0xf]  ;;  %v11665_v10 = vld [vmem:[#allocation3 + $0x568] sm:$0xf]  ;;  %v13114_v7 = vld [vmem:[#allocation3 + $0x574] sm:$0xf0] }
 0x4aa   : > { %v12302_v62 = vor.u32 %v13271_v31, %v12299_v32 }
 0x4ab   : > { %v17466_v12 = vadd.f32 %v17406_v20, %v7794_v33  ;;  %v13303_v20 = vld [vmem:[#allocation3 + $0xb64] sm:$0xf] }
 0x4ac   : > { %v7834_v0 = vpop.f32.mrf.mxu2  ;;  %v7863_v15 = vpop.f32.mrf.mxu3  ;;  %v12430_v47 = vor.u32 %v13303_v20, %v12427_v43  ;;  %8177 = vmatpush.bf16.msrb.mxu2 %v12302_v62  ;;  %v18600_v20 = vld [vmem:[#allocation50_spill] sm:$0xff]  ;;  %v18602_v43 = vld [vmem:[#allocation33_spill] sm:$0xff] }
 0x4ad   : > { %v7835_v11 = vadd.f32 %v7834_v0, %v17401_v2  ;;  %v18598_v0 = vld [vmem:[#allocation10_spill] sm:$0xff] }
 0x4ae   : > { %v7907_v45 = vpop.f32.mrf.mxu0  ;;  %v7936_v17 = vpop.f32.mrf.mxu1  ;;  %8206 = vmatpush.bf16.msrb.mxu3 %v12430_v47  ;;  %v13263_v47 = vld [vmem:[#allocation3 + $0xa24] sm:$0xf] }
 0x4af   : > { %v17469_v56 = vadd.f32 %v7936_v17, %v7907_v45  ;;  %v17472_v52 = vadd.f32 %v7863_v15, %v7835_v11  ;;  %v18599_v15 = vld [vmem:[#allocation11_spill] sm:$0xff]  ;;  %v12414_v11 = vor.u32 %v13299_v23, %v12411_v36 }
 0x4b0   : > { %8178 = vmatpush.bf16.msrb.mxu2 %v12286_v49 }
 0x4b1   : > { %8138 = vmatmul.bf16.gmra.mxu0 %v18594_v3  ;;  %18595 = vst [vmem:[#allocation29_spill] sm:$0xff] %v17472_v52  ;;  %8167 = vmatmul.bf16.gmra.mxu1 %v18596_v37  ;;  %v11681_v37 = vld [vmem:[#allocation3 + $0x588] sm:$0xf] }
 0x4b2   : > { %8207 = vmatpush.bf16.msrb.mxu3 %v12414_v11  ;;  %v13259_v11 = vld [vmem:[#allocation3 + $0xa04] sm:$0xf] }
 0x4b4   : > { %v7836_v6 = vpop.f32.mrf.mxu2  ;;  %v7865_v2 = vpop.f32.mrf.mxu3 }
 0x4b5   : > { %v7837_v38 = vadd.f32 %v7836_v6, %v17412_v26  ;;  %v12267_v6 = vld [vmem:[#allocation3 + $0xa30] sm:$0xf0] }
 0x4b6   : > { %v7909_v40 = vpop.f32.mrf.mxu0  ;;  %v7938_v48 = vpop.f32.mrf.mxu1 }
 0x4b7   : > { %v17476_v30 = vadd.f32 %v7938_v48, %v7909_v40  ;;  %v17478_v33 = vadd.f32 %v7865_v2, %v7837_v38  ;;  %v12270_v2 = vor.u32 %v13263_v47, %v12267_v6  ;;  %v13295_v38 = vld [vmem:[#allocation3 + $0xb24] sm:$0xf]  ;;  %v12395_v40 = vld [vmem:[#allocation3 + $0xb30] sm:$0xf0]  ;;  %v13098_v47 = vld [vmem:[#allocation3 + $0x4f4] sm:$0xf0] }
 0x4b8   : > { %v12398_v48 = vor.u32 %v13295_v38, %v12395_v40  ;;  %v11729_v6 = vld [vmem:[#allocation3 + $0x5e8] sm:$0xf]  ;;  %v13130_v40 = vld [vmem:[#allocation3 + $0x5f4] sm:$0xf0] }
 0x4b9   : > { %18597 = vst [vmem:[#allocation55_spill] sm:$0xff] %v17478_v33  ;;  %8070 = vmatmul.bf16.gmra.mxu2 %v18598_v0  ;;  %8099 = vmatmul.bf16.gmra.mxu3 %v18599_v15  ;;  %v11697_v15 = vld [vmem:[#allocation3 + $0x5a8] sm:$0xf]  ;;  %v13122_v0 = vld [vmem:[#allocation3 + $0x5b4] sm:$0xf0] }
 0x4ba   : > { %8179 = vmatpush.bf16.msrb.mxu2 %v12270_v2  ;;  %8208 = vmatpush.bf16.msrb.mxu3 %v12398_v48  ;;  %v18605_v2 = vld [vmem:[#allocation16_spill] sm:$0xff]  ;;  %v13291_v48 = vld [vmem:[#allocation3 + $0xb04] sm:$0xf] }
 0x4bc   : > { %v7839_v45 = vpop.f32.mrf.mxu2  ;;  %v7868_v26 = vpop.f32.mrf.mxu3 }
 0x4bd   : > { %v7840_v17 = vadd.f32 %v7839_v45, %v17421_v41  ;;  %v12251_v45 = vld [vmem:[#allocation3 + $0xa10] sm:$0xf0] }
 0x4be   : > { %v17483_v31 = vpop.f32.mrf.mxu0  ;;  %v17485_v32 = vpop.f32.mrf.mxu1 }
 0x4bf   : > { %v17488_v62 = vadd.f32 %v7868_v26, %v7840_v17  ;;  %v12254_v26 = vor.u32 %v13259_v11, %v12251_v45  ;;  %v11601_v17 = vld [vmem:[#allocation3 + $0x4e8] sm:$0xf] }
 0x4c0   : > { %v11602_v38 = vor.u32 %v13098_v47, %v11601_v17  ;;  %v18608_v47 = vld [vmem:[#allocation35_spill] sm:$0xff] }
 0x4c1   : > { %8239 = vmatmul.bf16.vlgmr.msra.gmra.mxu0 %v18600_v20  ;;  %18601 = vst [vmem:[#allocation56_spill] sm:$0xff] %v17488_v62  ;;  %8268 = vmatmul.bf16.vlgmr.msra.gmra.mxu1 %v18602_v43  ;;  %v18604_v43 = vld [vmem:[#allocation15_spill] sm:$0xff] }
 0x4c2   : > { %8180 = vmatpush.bf16.msrb.mxu2 %v12254_v26  ;;  %8347 = vmatpush.bf16.msrb.mxu0 %v11602_v38  ;;  %v11585_v26 = vld [vmem:[#allocation3 + $0x4c8] sm:$0xf] }
 0x4c3   : > { %v11713_v38 = vld [vmem:[#allocation3 + $0x5c8] sm:$0xf] }
 0x4c4   : > { %v7841_v18 = vpop.f32.mrf.mxu2  ;;  %v7870_v41 = vpop.f32.mrf.mxu3 }
 0x4c5   : > { %v7842_v57 = vadd.f32 %v7841_v18, %v17430_v46  ;;  %v12379_v46 = vld [vmem:[#allocation3 + $0xb10] sm:$0xf0]  ;;  %v11730_v18 = vor.u32 %v13130_v40, %v11729_v6  ;;  %v13094_v6 = vld [vmem:[#allocation3 + $0x4d4] sm:$0xf0] }
 0x4c6   : > { %v17492_v49 = vpop.f32.mrf.mxu0  ;;  %v17494_v23 = vpop.f32.mrf.mxu1  ;;  %v12382_v20 = vor.u32 %v13291_v48, %v12379_v46  ;;  %v11586_v40 = vor.u32 %v13094_v6, %v11585_v26  ;;  %v13126_v48 = vld [vmem:[#allocation3 + $0x5d4] sm:$0xf0]  ;;  %v11345_v46 = vld [vmem:[#allocation3 + $0x2e8] sm:$0xf] }
 0x4c7   : > { %v17496_v36 = vadd.f32 %v7870_v41, %v7842_v57  ;;  %8376 = vmatpush.bf16.msrb.mxu1 %v11730_v18  ;;  %v11714_v18 = vor.u32 %v13126_v48, %v11713_v38  ;;  %v13118_v38 = vld [vmem:[#allocation3 + $0x594] sm:$0xf0]  ;;  %v11329_v48 = vld [vmem:[#allocation3 + $0x2c8] sm:$0xf] }
 0x4c8   : > { %8209 = vmatpush.bf16.msrb.mxu3 %v12382_v20  ;;  %v13034_v20 = vld [vmem:[#allocation3 + $0x2f4] sm:$0xf0]  ;;  %8348 = vmatpush.bf16.msrb.mxu0 %v11586_v40 }
 0x4c9   : > { %18603 = vst [vmem:[#allocation57_spill] sm:$0xff] %v17496_v36  ;;  %8075 = vmatmul.bf16.gmra.mxu2 %v18604_v43  ;;  %8104 = vmatmul.bf16.gmra.mxu3 %v18605_v2  ;;  %v18606_v43 = vld [vmem:[#allocation34_spill] sm:$0xff]  ;;  %v11569_v2 = vld [vmem:[#allocation3 + $0x4a8] sm:$0xf] }
 0x4cb   : > { %8377 = vmatpush.bf16.msrb.mxu1 %v11714_v18  ;;  %v11457_v18 = vld [vmem:[#allocation3 + $0x3c8] sm:$0xf] }
 0x4cc   : > { %v7844_v41 = vpop.f32.mrf.mxu2  ;;  %v7873_v57 = vpop.f32.mrf.mxu3 }
 0x4cd   : > { %v7845_v11 = vadd.f32 %v7844_v41, %v17439_v1  ;;  %v13090_v1 = vld [vmem:[#allocation3 + $0x4b4] sm:$0xf0]  ;;  %v11346_v41 = vor.u32 %v13034_v20, %v11345_v46 }
 0x4ce   : > { %v17501_v45 = vpop.f32.mrf.mxu0  ;;  %v17503_v36 = vpop.f32.mrf.mxu1  ;;  %v11570_v62 = vor.u32 %v13090_v1, %v11569_v2  ;;  %v13030_v46 = vld [vmem:[#allocation3 + $0x2d4] sm:$0xf0]  ;;  %v11682_v1 = vor.u32 %v13118_v38, %v11681_v37 }
 0x4cf   : > { %v17506_v17 = vadd.f32 %v7873_v57, %v7845_v11  ;;  %v11698_v57 = vor.u32 %v13122_v0, %v11697_v15  ;;  %v13066_v11 = vld [vmem:[#allocation3 + $0x3f4] sm:$0xf0]  ;;  %8289 = vmatpush.bf16.msra.mxu2 %v11346_v41  ;;  %v11330_v15 = vor.u32 %v13030_v46, %v11329_v48  ;;  %v11537_v41 = vld [vmem:[#allocation3 + $0x468] sm:$0xf] }
 0x4d0   : > { %8349 = vmatpush.bf16.msrb.mxu0 %v11570_v62  ;;  %v11313_v62 = vld [vmem:[#allocation3 + $0x2a8] sm:$0xf]  ;;  %v13078_v38 = vld [vmem:[#allocation3 + $0x454] sm:$0xf0] }
 0x4d1   : > { %8244 = vmatmul.bf16.gmra.mxu0 %v18606_v43  ;;  %18607 = vst [vmem:[#allocation58_spill] sm:$0xff] %v17506_v17  ;;  %8273 = vmatmul.bf16.gmra.mxu1 %v18608_v47  ;;  %v11473_v43 = vld [vmem:[#allocation3 + $0x3e8] sm:$0xf]  ;;  %v13086_v17 = vld [vmem:[#allocation3 + $0x494] sm:$0xf0] }
 0x4d2   : > { %v11553_v47 = vld [vmem:[#allocation3 + $0x488] sm:$0xf]  ;;  %v11474_v6 = vor.u32 %v13066_v11, %v11473_v43  ;;  %8378 = vmatpush.bf16.msrb.mxu1 %v11698_v57  ;;  %v13062_v43 = vld [vmem:[#allocation3 + $0x3d4] sm:$0xf0] }
 0x4d3   : > { %v11554_v0 = vor.u32 %v13086_v17, %v11553_v47  ;;  %8290 = vmatpush.bf16.msra.mxu2 %v11330_v15  ;;  %v13082_v11 = vld [vmem:[#allocation3 + $0x474] sm:$0xf0]  ;;  %v11458_v52 = vor.u32 %v13062_v43, %v11457_v18  ;;  %v11521_v47 = vld [vmem:[#allocation3 + $0x448] sm:$0xf] }
 0x4d4   : > { %v7846_v33 = vpop.f32.mrf.mxu2  ;;  %v7875_v26 = vpop.f32.mrf.mxu3  ;;  %8318 = vmatpush.bf16.msra.mxu3 %v11474_v6  ;;  %v13026_v17 = vld [vmem:[#allocation3 + $0x2b4] sm:$0xf0]  ;;  %v11666_v6 = vor.u32 %v13114_v7, %v11665_v10  ;;  %v11441_v48 = vld [vmem:[#allocation3 + $0x3a8] sm:$0xf]  ;;  %v11522_v7 = vor.u32 %v13078_v38, %v11521_v47 }
 0x4d5   : > { %v7847_v3 = vadd.f32 %v7846_v33, %v17448_v51  ;;  %v18610_v51 = vld [vmem:[#allocation20_spill] sm:$0xff]  ;;  %v18611_v33 = vld [vmem:[#allocation21_spill] sm:$0xff]  ;;  %8350 = vmatpush.bf16.msrb.mxu0 %v11554_v0  ;;  %v11314_v57 = vor.u32 %v13026_v17, %v11313_v62  ;;  %v11649_v0 = vld [vmem:[#allocation3 + $0x548] sm:$0xf] }
 0x4d6   : > { %v17510_v40 = vpop.f32.mrf.mxu0  ;;  %v17512_v2 = vpop.f32.mrf.mxu1  ;;  %8379 = vmatpush.bf16.msrb.mxu1 %v11682_v1  ;;  %v13058_v46 = vld [vmem:[#allocation3 + $0x3b4] sm:$0xf0]  ;;  %v18612_v1 = vld [vmem:[#allocation36_spill] sm:$0xff]  ;;  %v11505_v62 = vld [vmem:[#allocation3 + $0x428] sm:$0xf] }
 0x4d7   : > { %v17514_v20 = vadd.f32 %v7875_v26, %v7847_v3  ;;  %v11538_v3 = vor.u32 %v13082_v11, %v11537_v41  ;;  %8291 = vmatpush.bf16.msra.mxu2 %v11314_v57  ;;  %v18614_v11 = vld [vmem:[#allocation37_spill] sm:$0xff]  ;;  %v11633_v17 = vld [vmem:[#allocation3 + $0x528] sm:$0xf] }
 0x4d8   : > { %8319 = vmatpush.bf16.msra.mxu3 %v11458_v52  ;;  %v13110_v52 = vld [vmem:[#allocation3 + $0x554] sm:$0xf0] }
 0x4d9   : > { %18609 = vst [vmem:[#allocation59_spill] sm:$0xff] %v17514_v20  ;;  %8080 = vmatmul.bf16.gmra.mxu2 %v18610_v51  ;;  %8109 = vmatmul.bf16.gmra.mxu3 %v18611_v33  ;;  %v11442_v33 = vor.u32 %v13058_v46, %v11441_v48  ;;  %v11650_v10 = vor.u32 %v13110_v52, %v11649_v0  ;;  %v11297_v51 = vld [vmem:[#allocation3 + $0x288] sm:$0xf]  ;;  %v13022_v20 = vld [vmem:[#allocation3 + $0x294] sm:$0xf0] }
 0x4da   : > { %8351 = vmatpush.bf16.msrb.mxu0 %v11538_v3  ;;  %8380 = vmatpush.bf16.msrb.mxu1 %v11666_v6  ;;  %v11298_v48 = vor.u32 %v13022_v20, %v11297_v51  ;;  %v11425_v46 = vld [vmem:[#allocation3 + $0x388] sm:$0xf]  ;;  %v13070_v47 = vld [vmem:[#allocation3 + $0x414] sm:$0xf0] }
 0x4db   : > { %v11489_v3 = vld [vmem:[#allocation3 + $0x408] sm:$0xf] }
 0x4dc   : > { %v7849_v37 = vpop.f32.mrf.mxu2  ;;  %v7878_v26 = vpop.f32.mrf.mxu3  ;;  %8320 = vmatpush.bf16.msra.mxu3 %v11442_v33  ;;  %v11617_v52 = vld [vmem:[#allocation3 + $0x508] sm:$0xf]  ;;  %8292 = vmatpush.bf16.msra.mxu2 %v11298_v48  ;;  %v11490_v51 = vor.u32 %v13070_v47, %v11489_v3  ;;  %v18618_v47 = vld [vmem:[#allocation40_spill] sm:$0xff] }
 0x4dd   : > { %v7850_v15 = vadd.f32 %v7849_v37, %v17457_v27  ;;  %v13074_v27 = vld [vmem:[#allocation3 + $0x434] sm:$0xf0] }
 0x4de   : > { %v17519_v18 = vpop.f32.mrf.mxu0  ;;  %v17521_v43 = vpop.f32.mrf.mxu1  ;;  %v13106_v37 = vld [vmem:[#allocation3 + $0x534] sm:$0xf0]  ;;  %8352 = vmatpush.bf16.msrb.mxu0 %v11522_v7  ;;  %v11506_v57 = vor.u32 %v13074_v27, %v11505_v62  ;;  %8381 = vmatpush.bf16.msrb.mxu1 %v11650_v10  ;;  %v18615_v10 = vld [vmem:[#allocation28_spill] sm:$0xff]  ;;  %v18616_v62 = vld [vmem:[#allocation31_spill] sm:$0xff] }
 0x4df   : > { %v17524_v41 = vadd.f32 %v7878_v26, %v7850_v15  ;;  %v11409_v27 = vld [vmem:[#allocation3 + $0x368] sm:$0xf] }
 0x4e1   : > { %8249 = vmatmul.bf16.gmra.mxu0 %v18612_v1  ;;  %18613 = vst [vmem:[#allocation60_spill] sm:$0xff] %v17524_v41  ;;  %8278 = vmatmul.bf16.gmra.mxu1 %v18614_v11  ;;  %v13054_v1 = vld [vmem:[#allocation3 + $0x394] sm:$0xf0]  ;;  %v11634_v11 = vor.u32 %v13106_v37, %v11633_v17 }
 0x4e2   : > { %v11426_v6 = vor.u32 %v13054_v1, %v11425_v46  ;;  %v13102_v41 = vld [vmem:[#allocation3 + $0x514] sm:$0xf0]  ;;  %8353 = vmatpush.bf16.msrb.mxu0 %v11506_v57  ;;  %v11281_v1 = vld [vmem:[#allocation3 + $0x268] sm:$0xf] }
 0x4e3   : > { %8382 = vmatpush.bf16.msrb.mxu1 %v11634_v11  ;;  %v11618_v7 = vor.u32 %v13102_v41, %v11617_v52  ;;  %v13050_v37 = vld [vmem:[#allocation3 + $0x374] sm:$0xf0]  ;;  %v18617_v11 = vld [vmem:[#allocation39_spill] sm:$0xff] }
 0x4e4   : > { %v7851_v26 = vpop.f32.mrf.mxu2  ;;  %v7880_v15 = vpop.f32.mrf.mxu3  ;;  %8321 = vmatpush.bf16.msra.mxu3 %v11426_v6  ;;  %v11410_v46 = vor.u32 %v13050_v37, %v11409_v27  ;;  %v13014_v52 = vld [vmem:[#allocation3 + $0x254] sm:$0xf0] }
 0x4e5   : > { %v7852_v38 = vadd.f32 %v7851_v26, %v17466_v12  ;;  %v13018_v12 = vld [vmem:[#allocation3 + $0x274] sm:$0xf0] }
 0x4e6   : > { %v17528_v0 = vpop.f32.mrf.mxu0  ;;  %v17530_v33 = vpop.f32.mrf.mxu1  ;;  %v11282_v17 = vor.u32 %v13018_v12, %v11281_v1  ;;  %8354 = vmatpush.bf16.msrb.mxu0 %v11490_v51  ;;  %v11393_v51 = vld [vmem:[#allocation3 + $0x348] sm:$0xf] }
 0x4e7   : > { %v17532_v20 = vadd.f32 %v7880_v15, %v7852_v38  ;;  %8383 = vmatpush.bf16.msrb.mxu1 %v11618_v7  ;;  %v11265_v38 = vld [vmem:[#allocation3 + $0x248] sm:$0xf]  ;;  %v13046_v7 = vld [vmem:[#allocation3 + $0x354] sm:$0xf0] }
 0x4e8   : > { %8293 = vmatpush.bf16.msra.mxu2 %v11282_v17  ;;  %8322 = vmatpush.bf16.msra.mxu3 %v11410_v46  ;;  %v11266_v1 = vor.u32 %v13014_v52, %v11265_v38  ;;  %v11394_v12 = vor.u32 %v13046_v7, %v11393_v51  ;;  %v11249_v38 = vld [vmem:[#allocation3 + $0x228] sm:$0xf]  ;;  %v13042_v51 = vld [vmem:[#allocation3 + $0x334] sm:$0xf0] }
 0x4e9   : > { %8181 = vmatmul.bf16.vlgmr.msrb.gmra.mxu2 %v18615_v10  ;;  %8210 = vmatmul.bf16.vlgmr.msrb.gmra.mxu3 %v18616_v62  ;;  %v12081_v62 = vld [vmem:[#allocation3 + $0x8a8] sm:$0xf] }
 0x4ec   : > { %v7950_v26 = vpop.f32.mrf.mxu2  ;;  %v7979_v48 = vpop.f32.mrf.mxu3  ;;  %8294 = vmatpush.bf16.msra.mxu2 %v11266_v1  ;;  %8323 = vmatpush.bf16.msra.mxu3 %v11394_v12 }
 0x4ed   : > { %v7951_v57 = vadd.f32 %v7950_v26, %v17415_v4 }
 0x4ee   : > { %v17537_v15 = vpop.f32.mrf.mxu0  ;;  %v17539_v41 = vpop.f32.mrf.mxu1 }
 0x4ef   : > { %v7980_v3 = vadd.f32 %v7979_v48, %v7951_v57  ;;  %v18619_v57 = vld [vmem:[#allocation41_spill] sm:$0xff] }
 0x4f1   : > { %8254 = vmatmul.bf16.gmra.mxu0 %v18617_v11  ;;  %8283 = vmatmul.bf16.gmra.mxu1 %v18618_v47  ;;  %v8009_v6 = vadd.f32 %v17483_v31, %v7980_v3  ;;  %v18620_v3 = vld [vmem:[#allocation42_spill] sm:$0xff]  ;;  %v11361_v47 = vld [vmem:[#allocation3 + $0x308] sm:$0xf]  ;;  %v13038_v11 = vld [vmem:[#allocation3 + $0x314] sm:$0xf0] }
 0x4f3   : > { %v17545_v4 = vadd.f32 %v17485_v32, %v8009_v6  ;;  %v13010_v32 = vld [vmem:[#allocation3 + $0x234] sm:$0xf0]  ;;  %v11377_v6 = vld [vmem:[#allocation3 + $0x328] sm:$0xf] }
 0x4f4   : > { %v7952_v27 = vpop.f32.mrf.mxu2  ;;  %v7981_v17 = vpop.f32.mrf.mxu3  ;;  %v11250_v52 = vor.u32 %v13010_v32, %v11249_v38  ;;  %v11378_v1 = vor.u32 %v13042_v51, %v11377_v6  ;;  %v11233_v32 = vld [vmem:[#allocation3 + $0x208] sm:$0xf]  ;;  %v13226_v51 = vld [vmem:[#allocation3 + $0x8f4] sm:$0xf0] }
 0x4f5   : > { %v7953_v37 = vadd.f32 %v7952_v27, %v17424_v34 }
 0x4f6   : > { %v17548_v46 = vpop.f32.mrf.mxu0  ;;  %v17550_v26 = vpop.f32.mrf.mxu1  ;;  %8295 = vmatpush.bf16.msra.mxu2 %v11250_v52  ;;  %8324 = vmatpush.bf16.msra.mxu3 %v11378_v1  ;;  %v12241_v52 = vld [vmem:[#allocation3 + $0x9e8] sm:$0xf] }
 0x4f7   : > { %v7982_v31 = vadd.f32 %v7981_v17, %v7953_v37  ;;  %v18621_v37 = vld [vmem:[#allocation8_spill] sm:$0xff] }
 0x4f9   : > { %v8011_v48 = vadd.f32 %v17492_v49, %v7982_v31  ;;  %8186 = vmatmul.bf16.gmra.mxu2 %v18619_v57  ;;  %8215 = vmatmul.bf16.gmra.mxu3 %v18620_v3  ;;  %v18622_v3 = vld [vmem:[#allocation54_spill] sm:$0xff]  ;;  %v13258_v57 = vld [vmem:[#allocation3 + $0x9f4] sm:$0xf0] }
 0x4fb   : > { %v17556_v34 = vadd.f32 %v17494_v23, %v8011_v48  ;;  %v13006_v23 = vld [vmem:[#allocation3 + $0x214] sm:$0xf0]  ;;  %v12113_v48 = vld [vmem:[#allocation3 + $0x8e8] sm:$0xf] }
 0x4fc   : > { %v7955_v7 = vpop.f32.mrf.mxu2  ;;  %v7984_v27 = vpop.f32.mrf.mxu3  ;;  %v11234_v6 = vor.u32 %v13006_v23, %v11233_v32  ;;  %v18623_v23 = vld [vmem:[#allocation43_spill] sm:$0xff] }
 0x4fd   : > { %v7956_v12 = vadd.f32 %v7955_v7, %v17433_v9  ;;  %v12114_v9 = vor.u32 %v13226_v51, %v12113_v48  ;;  %v12242_v7 = vor.u32 %v13258_v57, %v12241_v52  ;;  %v13222_v48 = vld [vmem:[#allocation3 + $0x8d4] sm:$0xf0] }
 0x4fe   : > { %v17559_v17 = vpop.f32.mrf.mxu0  ;;  %v17561_v49 = vpop.f32.mrf.mxu1  ;;  %8296 = vmatpush.bf16.msra.mxu2 %v11234_v6  ;;  %v12225_v6 = vld [vmem:[#allocation3 + $0x9c8] sm:$0xf] }
 0x4ff   : > { %v7985_v31 = vadd.f32 %v7984_v27, %v7956_v12  ;;  %v11362_v12 = vor.u32 %v13038_v11, %v11361_v47  ;;  %8463 = vmatpush.bf16.msra.mxu0 %v12114_v9  ;;  %8492 = vmatpush.bf16.msra.mxu1 %v12242_v7  ;;  %v13254_v47 = vld [vmem:[#allocation3 + $0x9d4] sm:$0xf0]  ;;  %v12209_v7 = vld [vmem:[#allocation3 + $0x9a8] sm:$0xf] }
 0x500   : > { %v12226_v51 = vor.u32 %v13254_v47, %v12225_v6  ;;  %v13218_v9 = vld [vmem:[#allocation3 + $0x8b4] sm:$0xf0] }
 0x501   : > { %8355 = vmatmul.bf16.vlgmr.msrb.gmra.mxu0 %v18621_v37  ;;  %8384 = vmatmul.bf16.vlgmr.msrb.gmra.mxu1 %v18622_v3  ;;  %v8014_v38 = vadd.f32 %v17501_v45, %v7985_v31 }
 0x502   : > { %8325 = vmatpush.bf16.msra.mxu3 %v11362_v12 }
 0x503   : > { %v17567_v1 = vadd.f32 %v17503_v36, %v8014_v38  ;;  %v18624_v36 = vld [vmem:[#allocation32_spill] sm:$0xff]  ;;  %v12097_v38 = vld [vmem:[#allocation3 + $0x8c8] sm:$0xf]  ;;  %8493 = vmatpush.bf16.msra.mxu1 %v12226_v51  ;;  %v13158_v51 = vld [vmem:[#allocation3 + $0x6d4] sm:$0xf0] }
 0x504   : > { %v7957_v37 = vpop.f32.mrf.mxu2  ;;  %v7986_v27 = vpop.f32.mrf.mxu3  ;;  %v12098_v11 = vor.u32 %v13222_v48, %v12097_v38 }
 0x505   : > { %v7958_v45 = vadd.f32 %v7957_v37, %v17442_v24  ;;  %v11857_v24 = vld [vmem:[#allocation3 + $0x6e8] sm:$0xf]  ;;  %v13162_v37 = vld [vmem:[#allocation3 + $0x6f4] sm:$0xf0] }
 0x506   : > { %v17570_v31 = vpop.f32.mrf.mxu0  ;;  %v17572_v3 = vpop.f32.mrf.mxu1  ;;  %v11858_v52 = vor.u32 %v13162_v37, %v11857_v24  ;;  %8464 = vmatpush.bf16.msra.mxu0 %v12098_v11  ;;  %v12193_v11 = vld [vmem:[#allocation3 + $0x988] sm:$0xf]  ;;  %v13246_v37 = vld [vmem:[#allocation3 + $0x994] sm:$0xf0] }
 0x507   : > { %v7987_v32 = vadd.f32 %v7986_v27, %v7958_v45  ;;  %v12082_v45 = vor.u32 %v13218_v9, %v12081_v62  ;;  %v11841_v9 = vld [vmem:[#allocation3 + $0x6c8] sm:$0xf] }
 0x508   : > { %8405 = vmatpush.bf16.msrb.mxu2 %v11858_v52  ;;  %v12194_v52 = vor.u32 %v13246_v37, %v12193_v11 }
 0x509   : > { %v8016_v57 = vadd.f32 %v17510_v40, %v7987_v32  ;;  %8191 = vmatmul.bf16.gmra.mxu2 %v18623_v23  ;;  %8220 = vmatmul.bf16.gmra.mxu3 %v18624_v36  ;;  %v13250_v32 = vld [vmem:[#allocation3 + $0x9b4] sm:$0xf0]  ;;  %v11985_v36 = vld [vmem:[#allocation3 + $0x7e8] sm:$0xf] }
 0x50a   : > { %v13194_v23 = vld [vmem:[#allocation3 + $0x7f4] sm:$0xf0]  ;;  %v12210_v6 = vor.u32 %v13250_v32, %v12209_v7  ;;  %8465 = vmatpush.bf16.msra.mxu0 %v12082_v45  ;;  %v11842_v7 = vor.u32 %v13158_v51, %v11841_v9 }
 0x50b   : > { %v17578_v27 = vadd.f32 %v17512_v2, %v8016_v57  ;;  %v11986_v47 = vor.u32 %v13194_v23, %v11985_v36  ;;  %v12065_v57 = vld [vmem:[#allocation3 + $0x888] sm:$0xf]  ;;  %v13210_v36 = vld [vmem:[#allocation3 + $0x874] sm:$0xf0] }
 0x50c   : > { %v7960_v40 = vpop.f32.mrf.mxu2  ;;  %v7989_v12 = vpop.f32.mrf.mxu3  ;;  %8494 = vmatpush.bf16.msra.mxu1 %v12210_v6  ;;  %v12049_v23 = vld [vmem:[#allocation3 + $0x868] sm:$0xf]  ;;  %8406 = vmatpush.bf16.msrb.mxu2 %v11842_v7 }
 0x50d   : > { %v7961_v38 = vadd.f32 %v7960_v40, %v17451_v59  ;;  %8434 = vmatpush.bf16.msrb.mxu3 %v11986_v47  ;;  %v13214_v59 = vld [vmem:[#allocation3 + $0x894] sm:$0xf0]  ;;  %v12177_v40 = vld [vmem:[#allocation3 + $0x968] sm:$0xf] }
 0x50e   : > { %v17581_v48 = vpop.f32.mrf.mxu0  ;;  %v17583_v10 = vpop.f32.mrf.mxu1  ;;  %v12066_v24 = vor.u32 %v13214_v59, %v12065_v57  ;;  %v11969_v6 = vld [vmem:[#allocation3 + $0x7c8] sm:$0xf]  ;;  %v13190_v47 = vld [vmem:[#allocation3 + $0x7d4] sm:$0xf0] }
 0x50f   : > { %v7990_v2 = vadd.f32 %v7989_v12, %v7961_v38  ;;  %v13242_v38 = vld [vmem:[#allocation3 + $0x974] sm:$0xf0]  ;;  %v11970_v11 = vor.u32 %v13190_v47, %v11969_v6 }
 0x510   : > { %8466 = vmatpush.bf16.msra.mxu0 %v12066_v24  ;;  %8495 = vmatpush.bf16.msra.mxu1 %v12194_v52  ;;  %v12178_v37 = vor.u32 %v13242_v38, %v12177_v40  ;;  %v13206_v24 = vld [vmem:[#allocation3 + $0x854] sm:$0xf0]  ;;  %v12017_v40 = vld [vmem:[#allocation3 + $0x828] sm:$0xf] }
 0x511   : > { %8360 = vmatmul.bf16.gmra.mxu0 %v15993_v5  ;;  %8389 = vmatmul.bf16.gmra.mxu1 %v15998_v61  ;;  %v8019_v62 = vadd.f32 %v17519_v18, %v7990_v2  ;;  %v12050_v18 = vor.u32 %v13210_v36, %v12049_v23  ;;  %v13238_v23 = vld [vmem:[#allocation3 + $0x954] sm:$0xf0]  ;;  %v11825_v36 = vld [vmem:[#allocation3 + $0x6a8] sm:$0xf] }
 0x512   : > { %8435 = vmatpush.bf16.msrb.mxu3 %v11970_v11  ;;  %v13154_v52 = vld [vmem:[#allocation3 + $0x6b4] sm:$0xf0]  ;;  %v12145_v38 = vld [vmem:[#allocation3 + $0x928] sm:$0xf] }
 0x513   : > { %v17589_v12 = vadd.f32 %v17521_v43, %v8019_v62  ;;  %v12033_v62 = vld [vmem:[#allocation3 + $0x848] sm:$0xf]  ;;  %v13318_v61 = vld [vmem:[#allocation3 + $0xbd4] sm:$0xf0] }
 0x514   : > { %v7962_v32 = vpop.f32.mrf.mxu2  ;;  %v7991_v45 = vpop.f32.mrf.mxu3  ;;  %8467 = vmatpush.bf16.msra.mxu0 %v12050_v18  ;;  %8496 = vmatpush.bf16.msra.mxu1 %v12178_v37  ;;  %v12034_v51 = vor.u32 %v13206_v24, %v12033_v62  ;;  %v11953_v11 = vld [vmem:[#allocation3 + $0x7a8] sm:$0xf] }
 0x515   : > { %v7963_v2 = vadd.f32 %v7962_v32, %v17460_v25  ;;  %v12161_v25 = vld [vmem:[#allocation3 + $0x948] sm:$0xf]  ;;  %v11826_v32 = vor.u32 %v13154_v52, %v11825_v36  ;;  %v13198_v36 = vld [vmem:[#allocation3 + $0x814] sm:$0xf0] }
 0x516   : > { %v17592_v57 = vpop.f32.mrf.mxu0  ;;  %v17594_v59 = vpop.f32.mrf.mxu1  ;;  %v12162_v7 = vor.u32 %v13238_v23, %v12161_v25  ;;  %v12001_v23 = vld [vmem:[#allocation3 + $0x808] sm:$0xf] }
 0x517   : > { %v7992_v9 = vadd.f32 %v7991_v45, %v7963_v2  ;;  %v13202_v45 = vld [vmem:[#allocation3 + $0x834] sm:$0xf0]  ;;  %8407 = vmatpush.bf16.msrb.mxu2 %v11826_v32  ;;  %v12002_v52 = vor.u32 %v13198_v36, %v12001_v23  ;;  %v11921_v23 = vld [vmem:[#allocation3 + $0x768] sm:$0xf] }
 0x518   : > { %8468 = vmatpush.bf16.msra.mxu0 %v12034_v51  ;;  %v12018_v47 = vor.u32 %v13202_v45, %v12017_v40  ;;  %v13234_v2 = vld [vmem:[#allocation3 + $0x934] sm:$0xf0]  ;;  %8497 = vmatpush.bf16.msra.mxu1 %v12162_v7  ;;  %v11809_v45 = vld [vmem:[#allocation3 + $0x688] sm:$0xf] }
 0x519   : > { %v8021_v43 = vadd.f32 %v17528_v0, %v7992_v9  ;;  %8196 = vmatmul.bf16.gmra.mxu2 %v17360_v29  ;;  %8225 = vmatmul.bf16.gmra.mxu3 %v17362_v35  ;;  %v13186_v9 = vld [vmem:[#allocation3 + $0x7b4] sm:$0xf0]  ;;  %v12481_v29 = vld [vmem:[#allocation3 + $0xbc8] sm:$0xf] }
 0x51a   : > { %v11954_v25 = vor.u32 %v13186_v9, %v11953_v11  ;;  %v13230_v40 = vld [vmem:[#allocation3 + $0x914] sm:$0xf0]  ;;  %v11937_v9 = vld [vmem:[#allocation3 + $0x788] sm:$0xf]  ;;  %v12482_v5 = vor.u32 %v13318_v61, %v12481_v29  ;;  %v11139_v61 = vld [vmem:[#allocation3 + $0x158] sm:$0xf0] }
 0x51b   : > { %v17600_v18 = vadd.f32 %v17530_v33, %v8021_v43  ;;  %v12146_v33 = vor.u32 %v13234_v2, %v12145_v38  ;;  %v13150_v32 = vld [vmem:[#allocation3 + $0x694] sm:$0xf0]  ;;  %v12337_v29 = vld [vmem:[#allocation3 + $0xaa8] sm:$0xf] }
 0x51c   : > { %v7965_v0 = vpop.f32.mrf.mxu2  ;;  %v7994_v6 = vpop.f32.mrf.mxu3  ;;  %8436 = vmatpush.bf16.msrb.mxu3 %v11954_v25  ;;  %8469 = vmatpush.bf16.msra.mxu0 %v12018_v47  ;;  %v11810_v11 = vor.u32 %v13150_v32, %v11809_v45  ;;  %v13182_v7 = vld [vmem:[#allocation3 + $0x794] sm:$0xf0] }
 0x51d   : > { %v7966_v37 = vadd.f32 %v7965_v0, %v17469_v56  ;;  %v12129_v56 = vld [vmem:[#allocation3 + $0x908] sm:$0xf]  ;;  %8498 = vmatpush.bf16.msra.mxu1 %v12146_v33  ;;  %v11938_v47 = vor.u32 %v13182_v7, %v11937_v9 }
 0x51e   : > { %v17603_v62 = vpop.f32.mrf.mxu0  ;;  %v17605_v24 = vpop.f32.mrf.mxu1  ;;  %v12130_v0 = vor.u32 %v13230_v40, %v12129_v56  ;;  %8408 = vmatpush.bf16.msrb.mxu2 %v11810_v11  ;;  %v13178_v56 = vld [vmem:[#allocation3 + $0x774] sm:$0xf0]  ;;  %v11905_v9 = vld [vmem:[#allocation3 + $0x748] sm:$0xf] }
 0x51f   : > { %v7995_v43 = vadd.f32 %v7994_v6, %v7966_v37  ;;  %v13142_v11 = vld [vmem:[#allocation3 + $0x654] sm:$0xf0] }
 0x520   : > { %8470 = vmatpush.bf16.msra.mxu0 %v12002_v52  ;;  %8437 = vmatpush.bf16.msrb.mxu3 %v11938_v47 }
 0x521   : > { %8365 = vmatmul.bf16.gmra.mxu0 %v18534_v14  ;;  %8394 = vmatmul.bf16.gmra.mxu1 %v18535_v39  ;;  %v8024_v51 = vadd.f32 %v17537_v15, %v7995_v43  ;;  %v11059_v39 = vld [vmem:[#allocation3 + $0xb8] sm:$0xf0] }
 0x522   : > { %8499 = vmatpush.bf16.msra.mxu1 %v12130_v0  ;;  %v11777_v0 = vld [vmem:[#allocation3 + $0x648] sm:$0xf] }
 0x523   : > { %v17611_v38 = vadd.f32 %v17539_v41, %v8024_v51  ;;  %v11793_v41 = vld [vmem:[#allocation3 + $0x668] sm:$0xf]  ;;  %v13146_v51 = vld [vmem:[#allocation3 + $0x674] sm:$0xf0]  ;;  %v11778_v7 = vor.u32 %v13142_v11, %v11777_v0 }
 0x524   : > { %v7967_v6 = vpop.f32.mrf.mxu2  ;;  %v7996_v2 = vpop.f32.mrf.mxu3  ;;  %v11794_v36 = vor.u32 %v13146_v51, %v11793_v41  ;;  %v13138_v41 = vld [vmem:[#allocation3 + $0x634] sm:$0xf0]  ;;  %v11889_v51 = vld [vmem:[#allocation3 + $0x728] sm:$0xf] }
 0x525   : > { %v7968_v15 = vadd.f32 %v7967_v6, %v17476_v30  ;;  %v11922_v30 = vor.u32 %v13178_v56, %v11921_v23 }
 0x526   : > { %v17614_v37 = vpop.f32.mrf.mxu0  ;;  %v17616_v25 = vpop.f32.mrf.mxu1  ;;  %8409 = vmatpush.bf16.msrb.mxu2 %v11794_v36  ;;  %v13170_v36 = vld [vmem:[#allocation3 + $0x734] sm:$0xf0] }
 0x527   : > { %v7997_v33 = vadd.f32 %v7996_v2, %v7968_v15  ;;  %8438 = vmatpush.bf16.msrb.mxu3 %v11922_v30  ;;  %v11890_v56 = vor.u32 %v13170_v36, %v11889_v51  ;;  %v13000_v51 = vld [vmem:[#allocation3 + $0x1ec] sm:$0xf]  ;;  %v11219_v36 = vld [vmem:[#allocation3 + $0x1f8] sm:$0xf0] }
 0x529   : > { %v8026_v43 = vadd.f32 %v17548_v46, %v7997_v33  ;;  %8297 = vmatmul.bf16.vlgmr.msra.gmra.mxu2 %v17035_v54  ;;  %8326 = vmatmul.bf16.vlgmr.msra.gmra.mxu3 %v17037_v42  ;;  %v13290_v54 = vld [vmem:[#allocation3 + $0xaf4] sm:$0xf0] }
 0x52a   : > { %8410 = vmatpush.bf16.msrb.mxu2 %v11778_v7 }
 0x52b   : > { %v17622_v52 = vadd.f32 %v17550_v26, %v8026_v43  ;;  %v13174_v26 = vld [vmem:[#allocation3 + $0x754] sm:$0xf0]  ;;  %v11761_v43 = vld [vmem:[#allocation3 + $0x628] sm:$0xf] }
 0x52c   : > { %v17624_v40 = vpop.f32.mrf.mxu2  ;;  %v17626_v45 = vpop.f32.mrf.mxu3  ;;  %v11906_v6 = vor.u32 %v13174_v26, %v11905_v9  ;;  %v11762_v23 = vor.u32 %v13138_v41, %v11761_v43  ;;  %v11745_v26 = vld [vmem:[#allocation3 + $0x608] sm:$0xf]  ;;  %v11091_v41 = vld [vmem:[#allocation3 + $0xf8] sm:$0xf0] }
 0x52e   : > { %v17628_v32 = vpop.f32.mrf.mxu0  ;;  %v17630_v46 = vpop.f32.mrf.mxu1  ;;  %8439 = vmatpush.bf16.msrb.mxu3 %v11906_v6  ;;  %8411 = vmatpush.bf16.msrb.mxu2 %v11762_v23  ;;  %v13134_v6 = vld [vmem:[#allocation3 + $0x614] sm:$0xf0] }
 0x52f   : > { %v11746_v43 = vor.u32 %v13134_v6, %v11745_v26  ;;  %v13166_v23 = vld [vmem:[#allocation3 + $0x714] sm:$0xf0]  ;;  %v11075_v26 = vld [vmem:[#allocation3 + $0xd8] sm:$0xf0]  ;;  %v12996_v6 = vld [vmem:[#allocation3 + $0x1cc] sm:$0xf] }
 0x531   : > { %8370 = vmatmul.bf16.gmra.mxu0 %v18548_v21  ;;  %8399 = vmatmul.bf16.gmra.mxu1 %v18550_v13  ;;  %v11222_v13 = vor.u32 %v13000_v51, %v11219_v36  ;;  %v11873_v21 = vld [vmem:[#allocation3 + $0x708] sm:$0xf]  ;;  %v11203_v51 = vld [vmem:[#allocation3 + $0x1d8] sm:$0xf0] }
 0x532   : > { %8440 = vmatpush.bf16.msrb.mxu3 %v11890_v56  ;;  %8412 = vmatpush.bf16.msrb.mxu2 %v11746_v43  ;;  %v12369_v36 = vld [vmem:[#allocation3 + $0xae8] sm:$0xf]  ;;  %v11206_v43 = vor.u32 %v12996_v6, %v11203_v51 }
 0x533   : > { %8608 = vmatpush.bf16.msrb.mxu1 %v11222_v13 }
 0x534   : > { %v17634_v2 = vpop.f32.mrf.mxu2  ;;  %v17636_v47 = vpop.f32.mrf.mxu3 }
 0x536   : > { %v17638_v15 = vpop.f32.mrf.mxu0  ;;  %v17640_v33 = vpop.f32.mrf.mxu1 }
 0x537   : > { %8609 = vmatpush.bf16.msrb.mxu1 %v11206_v43  ;;  %v11171_v43 = vld [vmem:[#allocation3 + $0x198] sm:$0xf0] }
 0x539   : > { %8302 = vmatmul.bf16.gmra.mxu2 %v17099_v28  ;;  %8331 = vmatmul.bf16.gmra.mxu3 %v17101_v58  ;;  %v12968_v58 = vld [vmem:[#allocation3 + $0xec] sm:$0xf] }
 0x53a   : > { %v11094_v28 = vor.u32 %v12968_v58, %v11091_v41  ;;  %v12964_v58 = vld [vmem:[#allocation3 + $0xcc] sm:$0xf] }
 0x53b   : > { %v11078_v41 = vor.u32 %v12964_v58, %v11075_v26 }
 0x53c   : > { %v17644_v30 = vpop.f32.mrf.mxu2  ;;  %v17646_v0 = vpop.f32.mrf.mxu3  ;;  %8579 = vmatpush.bf16.msrb.mxu0 %v11094_v28  ;;  %v12992_v28 = vld [vmem:[#allocation3 + $0x1ac] sm:$0xf] }
 0x53e   : > { %v8240_v11 = vpop.f32.mrf.mxu0  ;;  %v8269_v9 = vpop.f32.mrf.mxu1 }
 0x53f   : > { %v17648_v7 = vadd.f32 %v8269_v9, %v8240_v11  ;;  %v11874_v11 = vor.u32 %v13166_v23, %v11873_v21  ;;  %v12370_v21 = vor.u32 %v13290_v54, %v12369_v36  ;;  %v12960_v23 = vld [vmem:[#allocation3 + $0xac] sm:$0xf] }
 0x540   : > { %8580 = vmatpush.bf16.msrb.mxu0 %v11078_v41 }
 0x541   : > { %8471 = vmatmul.bf16.vlgmr.msra.gmra.mxu0 %v17097_v19  ;;  %8500 = vmatmul.bf16.vlgmr.msra.gmra.mxu1 %v17118_v8 }
 0x542   : > { %8441 = vmatpush.bf16.msrb.mxu3 %v11874_v11  ;;  %v11062_v11 = vor.u32 %v12960_v23, %v11059_v39  ;;  %8521 = vmatpush.bf16.msra.mxu2 %v12370_v21  ;;  %v12353_v21 = vld [vmem:[#allocation3 + $0xac8] sm:$0xf]  ;;  %v13286_v23 = vld [vmem:[#allocation3 + $0xad4] sm:$0xf0] }
 0x544   : > { %v17652_v42 = vpop.f32.mrf.mxu2  ;;  %v17654_v56 = vpop.f32.mrf.mxu3  ;;  %8581 = vmatpush.bf16.msrb.mxu0 %v11062_v11 }
 0x546   : > { %v8242_v9 = vpop.f32.mrf.mxu0  ;;  %v8271_v19 = vpop.f32.mrf.mxu1 }
 0x547   : > { %v17656_v8 = vadd.f32 %v8271_v19, %v8242_v9  ;;  %v11187_v9 = vld [vmem:[#allocation3 + $0x1b8] sm:$0xf0] }
 0x548   : > { %v11190_v58 = vor.u32 %v12992_v28, %v11187_v9 }
 0x549   : > { %8307 = vmatmul.bf16.gmra.mxu2 %v17159_v53  ;;  %8336 = vmatmul.bf16.gmra.mxu3 %v17161_v16  ;;  %v12497_v16 = vld [vmem:[#allocation3 + $0xbe8] sm:$0xf]  ;;  %v13322_v53 = vld [vmem:[#allocation3 + $0xbf4] sm:$0xf0] }
 0x54a   : > { %v12498_v26 = vor.u32 %v13322_v53, %v12497_v16  ;;  %8610 = vmatpush.bf16.msrb.mxu1 %v11190_v58  ;;  %v11043_v53 = vld [vmem:[#allocation3 + $0x98] sm:$0xf0]  ;;  %v12988_v16 = vld [vmem:[#allocation3 + $0x18c] sm:$0xf]  ;;  %v12354_v58 = vor.u32 %v13286_v23, %v12353_v21  ;;  %v13282_v23 = vld [vmem:[#allocation3 + $0xab4] sm:$0xf0] }
 0x54b   : > { %v11174_v9 = vor.u32 %v12988_v16, %v11171_v43  ;;  %v8067_v16 = vadd.f32 %v17624_v40, %v17545_v4  ;;  %v12980_v43 = vld [vmem:[#allocation3 + $0x14c] sm:$0xf] }
 0x54c   : > { %v17660_v13 = vpop.f32.mrf.mxu2  ;;  %v17662_v19 = vpop.f32.mrf.mxu3  ;;  %8550 = vmatpush.bf16.msra.mxu3 %v12498_v26  ;;  %v12952_v26 = vld [vmem:[#allocation3 + $0x6c] sm:$0xf]  ;;  %8522 = vmatpush.bf16.msra.mxu2 %v12354_v58 }
 0x54d   : > { %v8096_v21 = vadd.f32 %v17626_v45, %v8067_v16  ;;  %v12944_v58 = vld [vmem:[#allocation3 + $0x2c] sm:$0xf]  ;;  %v13314_v45 = vld [vmem:[#allocation3 + $0xbb4] sm:$0xf0] }
 0x54e   : > { %v8245_v14 = vpop.f32.mrf.mxu0  ;;  %v8274_v35 = vpop.f32.mrf.mxu1  ;;  %8611 = vmatpush.bf16.msrb.mxu1 %v11174_v9  ;;  %v12338_v9 = vor.u32 %v13282_v23, %v12337_v29  ;;  %v9222_v16 = vld [vmem:[%s18230_s3 + $0x3] ss:$4 sm:$0xf] }
 0x54f   : > { %v17664_v6 = vadd.f32 %v8274_v35, %v8245_v14  ;;  %v12956_v14 = vld [vmem:[#allocation3 + $0x8c] sm:$0xf]  ;;  %v8125_v29 = vadd.f32 %v17559_v17, %v8096_v21  ;;  %v17704_v23 = vperm.slane %v9222_v16, 0 }
 0x550   : > { %v11046_v35 = vor.u32 %v12956_v14, %v11043_v53  ;;  %8551 = vmatpush.bf16.msra.mxu3 %v12482_v5  ;;  %v11142_v5 = vor.u32 %v12980_v43, %v11139_v61  ;;  %8523 = vmatpush.bf16.msra.mxu2 %v12338_v9  ;;  %v12321_v9 = vld [vmem:[#allocation3 + $0xa88] sm:$0xf] }
 0x551   : > { %18625 = vst [vmem:[#allocation61_spill] sm:$0xff] %v17664_v6  ;;  %8476 = vmatmul.bf16.gmra.mxu0 %v17170_v22  ;;  %8505 = vmatmul.bf16.gmra.mxu1 %v17174_v50  ;;  %v11155_v22 = vld [vmem:[#allocation3 + $0x178] sm:$0xf0]  ;;  %v8154_v21 = vadd.f32 %v17561_v49, %v8125_v29  ;;  %v13346_v49 = vld [vmem:[%s13626_s30] sm:$0xff] }
 0x552   : > { %8582 = vmatpush.bf16.msrb.mxu0 %v11046_v35  ;;  %v9221_v35 = vld [vmem:[%s18230_s3 + $0x2] ss:$4 sm:$0xf]  ;;  %v9009_v29 = vunpack.c.l.bf16 %v13346_v49 }
 0x554   : > { %v17668_v54 = vpop.f32.mrf.mxu2  ;;  %v17670_v39 = vpop.f32.mrf.mxu3 }
 0x556   : > { %v8247_v41 = vpop.f32.mrf.mxu0  ;;  %v8276_v51 = vpop.f32.mrf.mxu1 }
 0x557   : > { %v17672_v36 = vadd.f32 %v8276_v51, %v8247_v41  ;;  %v11027_v41 = vld [vmem:[#allocation3 + $0x78] sm:$0xf0]  ;;  %v12984_v51 = vld [vmem:[#allocation3 + $0x16c] sm:$0xf] }
 0x558   : > { %v11158_v53 = vor.u32 %v12984_v51, %v11155_v22 }
 0x559   : > { %18626 = vst [vmem:[#allocation62_spill] sm:$0xff] %v17672_v36  ;;  %8312 = vmatmul.bf16.gmra.mxu2 %v17192_v60  ;;  %8341 = vmatmul.bf16.gmra.mxu3 %v17194_v55  ;;  %v11030_v55 = vor.u32 %v12952_v26, %v11027_v41  ;;  %v10995_v26 = vld [vmem:[#allocation3 + $0x38] sm:$0xf0]  ;;  %v12976_v41 = vld [vmem:[#allocation3 + $0x12c] sm:$0xf] }
 0x55a   : > { %8612 = vmatpush.bf16.msrb.mxu1 %v11158_v53  ;;  %v10998_v53 = vor.u32 %v12944_v58, %v10995_v26  ;;  %v18629_v58 = vld [vmem:[#allocation46_spill] sm:$0xff]  ;;  %v18630_v26 = vld [vmem:[#allocation47_spill] sm:$0xff] }
 0x55b   : > { %8583 = vmatpush.bf16.msrb.mxu0 %v11030_v55 }
 0x55c   : > { %v17676_v28 = vpop.f32.mrf.mxu2  ;;  %v17678_v11 = vpop.f32.mrf.mxu3 }
 0x55e   : > { %v8250_v50 = vpop.f32.mrf.mxu0  ;;  %v8279_v60 = vpop.f32.mrf.mxu1  ;;  %8613 = vmatpush.bf16.msrb.mxu1 %v11142_v5  ;;  %v12940_v5 = vld [vmem:[#allocation3 + $0xc] sm:$0xf] }
 0x55f   : > { %v17680_v14 = vadd.f32 %v8279_v60, %v8250_v50  ;;  %v12948_v50 = vld [vmem:[#allocation3 + $0x4c] sm:$0xf]  ;;  %v11011_v60 = vld [vmem:[#allocation3 + $0x58] sm:$0xf0] }
 0x560   : > { %v11014_v22 = vor.u32 %v12948_v50, %v11011_v60  ;;  %v17697_v50 = vperm.slane %v9221_v35, 0 }
 0x561   : > { %18627 = vst [vmem:[#allocation63_spill] sm:$0xff] %v17680_v14  ;;  %8481 = vmatmul.bf16.gmra.mxu0 %v17198_v44  ;;  %8510 = vmatmul.bf16.gmra.mxu1 %v18591_v63  ;;  %v11123_v63 = vld [vmem:[#allocation3 + $0x138] sm:$0xf0]  ;;  %v12465_v44 = vld [vmem:[#allocation3 + $0xba8] sm:$0xf] }
 0x562   : > { %8584 = vmatpush.bf16.msrb.mxu0 %v11014_v22  ;;  %v11126_v43 = vor.u32 %v12976_v41, %v11123_v63  ;;  %v12466_v61 = vor.u32 %v13314_v45, %v12465_v44  ;;  %v8069_v22 = vadd.f32 %v17634_v2, %v17556_v34  ;;  %v18631_v14 = vld [vmem:[#allocation29_spill] sm:$0xff]  ;;  %v12972_v44 = vld [vmem:[#allocation3 + $0x10c] sm:$0xf] }
 0x563   : > { %v10979_v63 = vld [vmem:[#allocation3 + $0x18] sm:$0xf0]  ;;  %v13278_v41 = vld [vmem:[#allocation3 + $0xa94] sm:$0xf0] }
 0x564   : > { %v17690_v4 = vpop.f32.mrf.mxu2  ;;  %v17692_v40 = vpop.f32.mrf.mxu3  ;;  %8552 = vmatpush.bf16.msra.mxu3 %v12466_v61  ;;  %8614 = vmatpush.bf16.msrb.mxu1 %v11126_v43  ;;  %v8098_v17 = vadd.f32 %v17636_v47, %v8069_v22  ;;  %v10982_v34 = vor.u32 %v12940_v5, %v10979_v63  ;;  %v11107_v2 = vld [vmem:[#allocation3 + $0x118] sm:$0xf0]  ;;  %v17712_v43 = vperm.slane %v9221_v35, 1  ;;  %v18632_v5 = vld [vmem:[#allocation30_spill] sm:$0xff]  ;;  %v17722_v35 = vperm.slane %v9222_v16, 1 }
 0x565   : > { %v11110_v61 = vor.u32 %v12972_v44, %v11107_v2  ;;  %v8072_v44 = vadd.f32 %v17644_v30, %v17567_v1  ;;  %v18633_v2 = vld [vmem:[#allocation38_spill] sm:$0xff]  ;;  %v12305_v30 = vld [vmem:[#allocation3 + $0xa68] sm:$0xf]  ;;  %v13274_v16 = vld [vmem:[#allocation3 + $0xa74] sm:$0xf0] }
 0x566   : > { %v8252_v55 = vpop.f32.mrf.mxu0  ;;  %v8281_v51 = vpop.f32.mrf.mxu1  ;;  %8585 = vmatpush.bf16.msrb.mxu0 %v10998_v53  ;;  %v8127_v63 = vadd.f32 %v17570_v31, %v8098_v17 }
 0x567   : > { %v17699_v60 = vadd.f32 %v8281_v51, %v8252_v55  ;;  %v8936_v55 = vmul.f32 %v17697_v50, %v18631_v14  ;;  %v13310_v14 = vld [vmem:[#allocation3 + $0xb94] sm:$0xf0]  ;;  %v8101_v31 = vadd.f32 %v17646_v0, %v8072_v44 }
 0x568   : > { %8615 = vmatpush.bf16.msrb.mxu1 %v11110_v61  ;;  %v8156_v1 = vadd.f32 %v17572_v3, %v8127_v63  ;;  %v8074_v63 = vadd.f32 %v17652_v42, %v17578_v27  ;;  %v18637_v42 = vld [vmem:[#allocation56_spill] sm:$0xff] }
 0x569   : > { %18628 = vst [vmem:[#allocation64_spill] sm:$0xff] %v17699_v60  ;;  %8413 = vmatmul.bf16.vlgmr.msrb.gmra.mxu2 %v18629_v58  ;;  %8442 = vmatmul.bf16.vlgmr.msrb.gmra.mxu3 %v18630_v26  ;;  %v12322_v26 = vor.u32 %v13278_v41, %v12321_v9  ;;  %v12449_v58 = vld [vmem:[#allocation3 + $0xb88] sm:$0xf]  ;;  %v8977_v47 = vadd.f32 %v17704_v23, %v8936_v55 }
 0x56a   : > { %v12450_v6 = vor.u32 %v13310_v14, %v12449_v58  ;;  %8586 = vmatpush.bf16.msrb.mxu0 %v10982_v34  ;;  %v18634_v55 = vld [vmem:[#allocation55_spill] sm:$0xff]  ;;  %v8130_v3 = vadd.f32 %v17581_v48, %v8101_v31  ;;  %v8944_v27 = vmul.f32 %v17697_v50, %v18637_v42 }
 0x56b   : > { %8524 = vmatpush.bf16.msra.mxu2 %v12322_v26  ;;  %v8940_v9 = vmul.f32 %v17697_v50, %v18634_v55  ;;  %v12433_v41 = vld [vmem:[#allocation3 + $0xb68] sm:$0xf] }
 0x56c   : > { %v8182_v51 = vpop.f32.mrf.mxu2  ;;  %v8211_v45 = vpop.f32.mrf.mxu3  ;;  %8553 = vmatpush.bf16.msra.mxu3 %v12450_v6  ;;  %v12306_v6 = vor.u32 %v13274_v16, %v12305_v30  ;;  %v18636_v48 = vld [vmem:[#allocation11_spill] sm:$0xff]  ;;  %v8159_v16 = vadd.f32 %v17583_v10, %v8130_v3  ;;  %v18638_v3 = vld [vmem:[#allocation50_spill] sm:$0xff] }
 0x56d   : > { %v8183_v53 = vadd.f32 %v8182_v51, %v8154_v21  ;;  %v13306_v51 = vld [vmem:[#allocation3 + $0xb74] sm:$0xf0]  ;;  %v8981_v0 = vadd.f32 %v17704_v23, %v8940_v9 }
 0x56e   : > { %v8255_v60 = vpop.f32.mrf.mxu0  ;;  %v8284_v36 = vpop.f32.mrf.mxu1 }
 0x56f   : > { %v17716_v22 = vadd.f32 %v8284_v36, %v8255_v60  ;;  %v8212_v21 = vadd.f32 %v8211_v45, %v8183_v53  ;;  %v9010_v36 = vunpack.c.h.bf16 %v13346_v49  ;;  %v9041_v60 = vadd.f32 %v9009_v29, %v8977_v47  ;;  %v13347_v29 = vld [vmem:[%s13626_s30 + $0x10] sm:$0xff]  ;;  %8525 = vmatpush.bf16.msra.mxu2 %v12306_v6 }
 0x570   : > { %v12434_v47 = vor.u32 %v13306_v51, %v12433_v41  ;;  %v9013_v44 = vunpack.c.l.bf16 %v13347_v29  ;;  %v9014_v9 = vunpack.c.h.bf16 %v13347_v29  ;;  %v12289_v41 = vld [vmem:[#allocation3 + $0xa48] sm:$0xf]  ;;  %v8985_v29 = vadd.f32 %v17704_v23, %v8944_v27 }
 0x571   : > { %8486 = vmatmul.bf16.gmra.mxu0 %v18632_v5  ;;  %8515 = vmatmul.bf16.gmra.mxu1 %v18633_v2  ;;  %v8937_v58 = vmul.f32 %v17712_v43, %v8212_v21  ;;  %v9073_v49 = vmax.f32 %v9041_v60, 0.0 }
 0x572   : > { %8554 = vmatpush.bf16.msra.mxu3 %v12434_v47  ;;  %v9045_v31 = vadd.f32 %v9013_v44, %v8981_v0  ;;  %v13348_v44 = vld [vmem:[%s13626_s30 + $0x20] sm:$0xff] }
 0x573   : > { %v8978_v17 = vadd.f32 %v17722_v35, %v8937_v58  ;;  %v9017_v10 = vunpack.c.l.bf16 %v13348_v44  ;;  %v9018_v42 = vunpack.c.h.bf16 %v13348_v44  ;;  %v13349_v44 = vld [vmem:[%s13626_s30 + $0x30] sm:$0xff] }
 0x574   : > { %v8184_v34 = vpop.f32.mrf.mxu2  ;;  %v8213_v26 = vpop.f32.mrf.mxu3  ;;  %v9077_v0 = vmax.f32 %v9045_v31, 0.0 }
 0x575   : > { %v9042_v45 = vadd.f32 %v9010_v36, %v8978_v17  ;;  %v8185_v61 = vadd.f32 %v8184_v34, %v8156_v1  ;;  %v18635_v17 = vld [vmem:[#allocation10_spill] sm:$0xff]  ;;  %v8103_v1 = vadd.f32 %v17654_v56, %v8074_v63  ;;  %v13270_v34 = vld [vmem:[#allocation3 + $0xa54] sm:$0xf0]  ;;  %v9049_v27 = vadd.f32 %v9017_v10, %v8985_v29 }
 0x576   : > { %v8257_v14 = vpop.f32.mrf.mxu0  ;;  %v8286_v53 = vpop.f32.mrf.mxu1 }
 0x577   : > { %v17733_v21 = vadd.f32 %v8286_v53, %v8257_v14  ;;  %v9074_v58 = vmax.f32 %v9042_v45, 0.0  ;;  %v8214_v36 = vadd.f32 %v8213_v26, %v8185_v61  ;;  %v12417_v26 = vld [vmem:[#allocation3 + $0xb48] sm:$0xf]  ;;  %v12290_v45 = vor.u32 %v13270_v34, %v12289_v41  ;;  %v13302_v61 = vld [vmem:[#allocation3 + $0xb54] sm:$0xf0] }
 0x578   : > { %v12418_v56 = vor.u32 %v13302_v61, %v12417_v26  ;;  %v8132_v63 = vadd.f32 %v17592_v57, %v8103_v1  ;;  %v13266_v1 = vld [vmem:[#allocation3 + $0xa34] sm:$0xf0] }
 0x579   : > { %v9105_v60 = vpack.c.bf16 %v9074_v58, %v9073_v49  ;;  %v8941_v55 = vmul.f32 %v17712_v43, %v8214_v36  ;;  %8418 = vmatmul.bf16.gmra.mxu2 %v18635_v17  ;;  %8447 = vmatmul.bf16.gmra.mxu3 %v18636_v48  ;;  %v8077_v58 = vadd.f32 %v17660_v13, %v17589_v12  ;;  %v12273_v13 = vld [vmem:[#allocation3 + $0xa28] sm:$0xf] }
 0x57a   : > { %8526 = vmatpush.bf16.msra.mxu2 %v12290_v45  ;;  %8555 = vmatpush.bf16.msra.mxu3 %v12418_v56  ;;  %v8161_v12 = vadd.f32 %v17594_v59, %v8132_v63  ;;  %v13298_v45 = vld [vmem:[#allocation3 + $0xb34] sm:$0xf0]  ;;  %v9021_v59 = vunpack.c.l.bf16 %v13349_v44 }
 0x57b   : > { %9121 = vst [vmem:[%s17743_s5] sm:$0xff] %v9105_v60  ;;  %v8982_v30 = vadd.f32 %v17722_v35, %v8941_v55  ;;  %v18639_v55 = vld [vmem:[#allocation33_spill] sm:$0xff]  ;;  %v8106_v41 = vadd.f32 %v17662_v19, %v8077_v58 }
 0x57c   : > { %v8187_v6 = vpop.f32.mrf.mxu2  ;;  %v8216_v51 = vpop.f32.mrf.mxu3 }
 0x57d   : > { %v9046_v14 = vadd.f32 %v9014_v9, %v8982_v30  ;;  %v8188_v53 = vadd.f32 %v8187_v6, %v8159_v16  ;;  %v18640_v30 = vld [vmem:[#allocation57_spill] sm:$0xff]  ;;  %v12274_v6 = vor.u32 %v13266_v1, %v12273_v13  ;;  %v8135_v10 = vadd.f32 %v17603_v62, %v8106_v41  ;;  %v13096_v1 = vld [vmem:[#allocation3 + $0x4ec] sm:$0xf] }
 0x57e   : > { %v17754_v47 = vpop.f32.mrf.mxu0  ;;  %v17756_v49 = vpop.f32.mrf.mxu1  ;;  %v8948_v16 = vmul.f32 %v17697_v50, %v18640_v30  ;;  %v13262_v41 = vld [vmem:[#allocation3 + $0xa14] sm:$0xf0] }
 0x57f   : > { %v9078_v36 = vmax.f32 %v9046_v14, 0.0  ;;  %v8217_v60 = vadd.f32 %v8216_v51, %v8188_v53  ;;  %v12401_v51 = vld [vmem:[#allocation3 + $0xb28] sm:$0xf]  ;;  %8527 = vmatpush.bf16.msra.mxu2 %v12274_v6  ;;  %v13350_v6 = vld [vmem:[%s13626_s30 + $0x40] sm:$0xff] }
 0x580   : > { %v12402_v19 = vor.u32 %v13298_v45, %v12401_v51  ;;  %v8989_v29 = vadd.f32 %v17704_v23, %v8948_v16  ;;  %v12257_v16 = vld [vmem:[#allocation3 + $0xa08] sm:$0xf]  ;;  %v9025_v51 = vunpack.c.l.bf16 %v13350_v6 }
 0x581   : > { %8587 = vmatmul.bf16.vlgmr.msrb.gmra.mxu0 %v18638_v3  ;;  %8616 = vmatmul.bf16.vlgmr.msrb.gmra.mxu1 %v18639_v55  ;;  %v9107_v9 = vpack.c.bf16 %v9078_v36, %v9077_v0  ;;  %v8945_v31 = vmul.f32 %v17712_v43, %v8217_v60  ;;  %v9081_v0 = vmax.f32 %v9049_v27, 0.0  ;;  %v8079_v3 = vadd.f32 %v17668_v54, %v17600_v18  ;;  %v18643_v27 = vld [vmem:[#allocation58_spill] sm:$0xff] }
 0x582   : > { %8556 = vmatpush.bf16.msra.mxu3 %v12402_v19  ;;  %v9022_v55 = vunpack.c.h.bf16 %v13349_v44  ;;  %v8952_v30 = vmul.f32 %v17697_v50, %v18643_v27  ;;  %v8164_v54 = vadd.f32 %v17605_v24, %v8135_v10  ;;  %v12258_v13 = vor.u32 %v13262_v41, %v12257_v16  ;;  %v13294_v24 = vld [vmem:[#allocation3 + $0xb14] sm:$0xf0]  ;;  %v18644_v10 = vld [vmem:[#allocation34_spill] sm:$0xff]  ;;  %v18645_v27 = vld [vmem:[#allocation35_spill] sm:$0xff] }
 0x583   : > { %9123 = vst [vmem:[%s17743_s5 + $0x10] sm:$0xff] %v9107_v9  ;;  %v8986_v57 = vadd.f32 %v17722_v35, %v8945_v31  ;;  %v18641_v9 = vld [vmem:[#allocation15_spill] sm:$0xff]  ;;  %v18642_v31 = vld [vmem:[#allocation16_spill] sm:$0xff]  ;;  %v8108_v62 = vadd.f32 %v17670_v39, %v8079_v3  ;;  %v9026_v16 = vunpack.c.h.bf16 %v13350_v6  ;;  %v11587_v41 = vld [vmem:[#allocation3 + $0x4d8] sm:$0xf0] }
 0x584   : > { %v8189_v34 = vpop.f32.mrf.mxu2  ;;  %v8218_v26 = vpop.f32.mrf.mxu3  ;;  %8528 = vmatpush.bf16.msra.mxu2 %v12258_v13 }
 0x585   : > { %v9050_v61 = vadd.f32 %v9018_v42, %v8986_v57  ;;  %v8190_v14 = vadd.f32 %v8189_v34, %v8161_v12  ;;  %v9053_v42 = vadd.f32 %v9021_v59, %v8989_v29  ;;  %v11603_v34 = vld [vmem:[#allocation3 + $0x4f8] sm:$0xf0]  ;;  %v12385_v29 = vld [vmem:[#allocation3 + $0xb08] sm:$0xf]  ;;  %v8993_v59 = vadd.f32 %v17704_v23, %v8952_v30 }
 0x586   : > { %v17772_v53 = vpop.f32.mrf.mxu0  ;;  %v17774_v56 = vpop.f32.mrf.mxu1  ;;  %v11606_v19 = vor.u32 %v13096_v1, %v11603_v34  ;;  %v11715_v1 = vld [vmem:[#allocation3 + $0x5d8] sm:$0xf0]  ;;  %v13032_v34 = vld [vmem:[#allocation3 + $0x2ec] sm:$0xf] }
 0x587   : > { %v9082_v63 = vmax.f32 %v9050_v61, 0.0  ;;  %v8219_v58 = vadd.f32 %v8218_v26, %v8190_v14  ;;  %v13128_v26 = vld [vmem:[#allocation3 + $0x5ec] sm:$0xf]  ;;  %v9085_v44 = vmax.f32 %v9053_v42, 0.0 }
 0x588   : > { %8695 = vmatpush.bf16.msra.mxu0 %v11606_v19 }
 0x589   : > { %v9109_v36 = vpack.c.bf16 %v9082_v63, %v9081_v0  ;;  %v8949_v60 = vmul.f32 %v17712_v43, %v8219_v58  ;;  %8423 = vmatmul.bf16.gmra.mxu2 %v18641_v9  ;;  %8452 = vmatmul.bf16.gmra.mxu3 %v18642_v31  ;;  %v11731_v0 = vld [vmem:[#allocation3 + $0x5f8] sm:$0xf0]  ;;  %v12386_v63 = vor.u32 %v13294_v24, %v12385_v29  ;;  %v13088_v29 = vld [vmem:[#allocation3 + $0x4ac] sm:$0xf] }
 0x58a   : > { %v11734_v3 = vor.u32 %v13128_v26, %v11731_v0  ;;  %v8137_v58 = vadd.f32 %v17614_v37, %v8108_v62  ;;  %v9057_v37 = vadd.f32 %v9025_v51, %v8993_v59  ;;  %v13092_v62 = vld [vmem:[#allocation3 + $0x4cc] sm:$0xf]  ;;  %v11347_v0 = vld [vmem:[#allocation3 + $0x2f8] sm:$0xf0] }
 0x58b   : > { %9125 = vst [vmem:[%s17743_s5 + $0x20] sm:$0xff] %v9109_v36  ;;  %v8990_v18 = vadd.f32 %v17722_v35, %v8949_v60  ;;  %v8082_v36 = vadd.f32 %v17676_v28, %v17611_v38  ;;  %8557 = vmatpush.bf16.msra.mxu3 %v12386_v63  ;;  %v13124_v38 = vld [vmem:[#allocation3 + $0x5cc] sm:$0xf]  ;;  %v11590_v13 = vor.u32 %v13092_v62, %v11587_v41  ;;  %v11699_v63 = vld [vmem:[#allocation3 + $0x5b8] sm:$0xf0] }
 0x58c   : > { %v8192_v57 = vpop.f32.mrf.mxu2  ;;  %v8221_v12 = vpop.f32.mrf.mxu3  ;;  %8724 = vmatpush.bf16.msra.mxu1 %v11734_v3  ;;  %v11718_v19 = vor.u32 %v13124_v38, %v11715_v1  ;;  %v13120_v3 = vld [vmem:[#allocation3 + $0x5ac] sm:$0xf]  ;;  %v11683_v38 = vld [vmem:[#allocation3 + $0x598] sm:$0xf0] }
 0x58d   : > { %v9054_v45 = vadd.f32 %v9022_v55, %v8990_v18  ;;  %v8193_v61 = vadd.f32 %v8192_v57, %v8164_v54  ;;  %v18646_v18 = vld [vmem:[#allocation59_spill] sm:$0xff]  ;;  %v8111_v28 = vadd.f32 %v17678_v11, %v8082_v36  ;;  %v11571_v11 = vld [vmem:[#allocation3 + $0x4b8] sm:$0xf0]  ;;  %8696 = vmatpush.bf16.msra.mxu0 %v11590_v13  ;;  %v9089_v36 = vmax.f32 %v9057_v37, 0.0 }
 0x58e   : > { %v17791_v14 = vpop.f32.mrf.mxu0  ;;  %v17793_v39 = vpop.f32.mrf.mxu1  ;;  %v8956_v42 = vmul.f32 %v17697_v50, %v18646_v18  ;;  %v11475_v18 = vld [vmem:[#allocation3 + $0x3f8] sm:$0xf0]  ;;  %v13116_v41 = vld [vmem:[#allocation3 + $0x58c] sm:$0xf] }
 0x58f   : > { %v9086_v60 = vmax.f32 %v9054_v45, 0.0  ;;  %v8222_v55 = vadd.f32 %v8221_v12, %v8193_v61  ;;  %v8166_v12 = vadd.f32 %v17616_v25, %v8137_v58  ;;  %v17810_v45 = vld [vmem:[%s13626_s30 + $0x50] sm:$0xff]  ;;  %v13064_v58 = vld [vmem:[#allocation3 + $0x3ec] sm:$0xf]  ;;  %v11331_v37 = vld [vmem:[#allocation3 + $0x2d8] sm:$0xf0] }
 0x590   : > { %v8997_v26 = vadd.f32 %v17704_v23, %v8956_v42  ;;  %v9029_v6 = vunpack.c.l.bf16 %v17810_v45  ;;  %8725 = vmatpush.bf16.msra.mxu1 %v11718_v19  ;;  %v13084_v42 = vld [vmem:[#allocation3 + $0x48c] sm:$0xf]  ;;  %v11478_v62 = vor.u32 %v13064_v58, %v11475_v18 }
 0x591   : > { %8592 = vmatmul.bf16.gmra.mxu0 %v18644_v10  ;;  %8621 = vmatmul.bf16.gmra.mxu1 %v18645_v27  ;;  %v9111_v30 = vpack.c.bf16 %v9086_v60, %v9085_v44  ;;  %v8953_v54 = vmul.f32 %v17712_v43, %v8222_v55  ;;  %v11350_v10 = vor.u32 %v13032_v34, %v11347_v0  ;;  %v13028_v13 = vld [vmem:[#allocation3 + $0x2cc] sm:$0xf]  ;;  %v18647_v34 = vld [vmem:[#allocation20_spill] sm:$0xff] }
 0x592   : > { %v8084_v60 = vadd.f32 %v17690_v4, %v17622_v52  ;;  %v11574_v55 = vor.u32 %v13088_v29, %v11571_v11  ;;  %v11702_v27 = vor.u32 %v13120_v3, %v11699_v63  ;;  %v9030_v4 = vunpack.c.h.bf16 %v17810_v45  ;;  %v13060_v0 = vld [vmem:[#allocation3 + $0x3cc] sm:$0xf]  ;;  %v11459_v29 = vld [vmem:[#allocation3 + $0x3d8] sm:$0xf0]  ;;  %8666 = vmatpush.bf16.msrb.mxu3 %v11478_v62 }
 0x593   : > { %9127 = vst [vmem:[%s17743_s5 + $0x30] sm:$0xff] %v9111_v30  ;;  %v8994_v57 = vadd.f32 %v17722_v35, %v8953_v54  ;;  %v8140_v30 = vadd.f32 %v17628_v32, %v8111_v28  ;;  %8637 = vmatpush.bf16.msrb.mxu2 %v11350_v10  ;;  %v11334_v32 = vor.u32 %v13028_v13, %v11331_v37  ;;  %v18649_v28 = vld [vmem:[#allocation60_spill] sm:$0xff]  ;;  %v11667_v10 = vld [vmem:[#allocation3 + $0x578] sm:$0xf0] }
 0x594   : > { %v8194_v51 = vpop.f32.mrf.mxu2  ;;  %v8223_v61 = vpop.f32.mrf.mxu3  ;;  %v8113_v19 = vadd.f32 %v17692_v40, %v8084_v60  ;;  %8697 = vmatpush.bf16.msra.mxu0 %v11574_v55  ;;  %8726 = vmatpush.bf16.msra.mxu1 %v11702_v27  ;;  %v11539_v40 = vld [vmem:[#allocation3 + $0x478] sm:$0xf0]  ;;  %v11462_v58 = vor.u32 %v13060_v0, %v11459_v29 }
 0x595   : > { %v9058_v24 = vadd.f32 %v9026_v16, %v8994_v57  ;;  %v8195_v44 = vadd.f32 %v8194_v51, %v8166_v12  ;;  %v9061_v57 = vadd.f32 %v9029_v6, %v8997_v26  ;;  %v11555_v12 = vld [vmem:[#allocation3 + $0x498] sm:$0xf0]  ;;  %v11686_v26 = vor.u32 %v13116_v41, %v11683_v38  ;;  %v13080_v6 = vld [vmem:[#allocation3 + $0x46c] sm:$0xf]  ;;  %v18650_v41 = vld [vmem:[#allocation36_spill] sm:$0xff] }
 0x596   : > { %v17813_v59 = vpop.f32.mrf.mxu0  ;;  %v17815_v25 = vpop.f32.mrf.mxu1  ;;  %v18648_v51 = vld [vmem:[#allocation21_spill] sm:$0xff]  ;;  %v8169_v45 = vadd.f32 %v17630_v46, %v8140_v30  ;;  %v8142_v62 = vadd.f32 %v17638_v15, %v8113_v19  ;;  %8667 = vmatpush.bf16.msrb.mxu3 %v11462_v58 }
 0x597   : > { %v9090_v54 = vmax.f32 %v9058_v24, 0.0  ;;  %v8224_v16 = vadd.f32 %v8223_v61, %v8195_v44  ;;  %v8960_v61 = vmul.f32 %v17697_v50, %v18649_v28  ;;  %v11558_v24 = vor.u32 %v13084_v42, %v11555_v12  ;;  %8638 = vmatpush.bf16.msrb.mxu2 %v11334_v32  ;;  %v13112_v44 = vld [vmem:[#allocation3 + $0x56c] sm:$0xf]  ;;  %v11315_v60 = vld [vmem:[#allocation3 + $0x2b8] sm:$0xf0]  ;;  %v13352_v42 = vld [vmem:[%s13626_s30 + $0x60] sm:$0xff] }
 0x598   : > { %v9033_v30 = vunpack.c.l.bf16 %v13352_v42  ;;  %8727 = vmatpush.bf16.msra.mxu1 %v11686_v26  ;;  %v11670_v38 = vor.u32 %v13112_v44, %v11667_v10  ;;  %v13056_v12 = vld [vmem:[#allocation3 + $0x3ac] sm:$0xf]  ;;  %v11443_v13 = vld [vmem:[#allocation3 + $0x3b8] sm:$0xf0]  ;;  %v9093_v37 = vmax.f32 %v9061_v57, 0.0  ;;  %v11542_v32 = vor.u32 %v13080_v6, %v11539_v40 }
 0x599   : > { %v9113_v1 = vpack.c.bf16 %v9090_v54, %v9089_v36  ;;  %v8957_v52 = vmul.f32 %v17712_v43, %v8224_v16  ;;  %8428 = vmatmul.bf16.gmra.mxu2 %v18647_v34  ;;  %8457 = vmatmul.bf16.gmra.mxu3 %v18648_v51  ;;  %v13024_v36 = vld [vmem:[#allocation3 + $0x2ac] sm:$0xf]  ;;  %v9001_v46 = vadd.f32 %v17704_v23, %v8960_v61  ;;  %v11651_v0 = vld [vmem:[#allocation3 + $0x558] sm:$0xf0] }
 0x59a   : > { %v11318_v16 = vor.u32 %v13024_v36, %v11315_v60  ;;  %8698 = vmatpush.bf16.msra.mxu0 %v11558_v24  ;;  %v13108_v28 = vld [vmem:[#allocation3 + $0x54c] sm:$0xf]  ;;  %v11523_v29 = vld [vmem:[#allocation3 + $0x458] sm:$0xf0]  ;;  %v11446_v15 = vor.u32 %v13056_v12, %v11443_v13  ;;  %v8964_v44 = vmul.f32 %v17697_v50, %v17532_v20  ;;  %v8171_v24 = vadd.f32 %v17640_v33, %v8142_v62 }
 0x59b   : > { %9129 = vst [vmem:[%s17743_s5 + $0x40] sm:$0xff] %v9113_v1  ;;  %v8998_v11 = vadd.f32 %v17722_v35, %v8957_v52  ;;  %v13076_v61 = vld [vmem:[#allocation3 + $0x44c] sm:$0xf]  ;;  %v9065_v57 = vadd.f32 %v9033_v30, %v9001_v46  ;;  %v11654_v6 = vor.u32 %v13108_v28, %v11651_v0  ;;  %v11635_v10 = vld [vmem:[#allocation3 + $0x538] sm:$0xf0] }
 0x59c   : > { %v8197_v3 = vpop.f32.mrf.mxu2  ;;  %v8226_v63 = vpop.f32.mrf.mxu3  ;;  %8639 = vmatpush.bf16.msrb.mxu2 %v11318_v16  ;;  %8728 = vmatpush.bf16.msra.mxu1 %v11670_v38  ;;  %v11526_v58 = vor.u32 %v13076_v61, %v11523_v29  ;;  %v13052_v60 = vld [vmem:[#allocation3 + $0x38c] sm:$0xf]  ;;  %v11507_v20 = vld [vmem:[#allocation3 + $0x438] sm:$0xf0]  ;;  %v13353_v38 = vld [vmem:[%s13626_s30 + $0x70] sm:$0xff] }
 0x59d   : > { %v9062_v55 = vadd.f32 %v9030_v4, %v8998_v11  ;;  %v8198_v27 = vadd.f32 %v8197_v3, %v8169_v45  ;;  %v18651_v4 = vld [vmem:[#allocation37_spill] sm:$0xff]  ;;  %v9034_v11 = vunpack.c.h.bf16 %v13352_v42  ;;  %v13104_v45 = vld [vmem:[#allocation3 + $0x52c] sm:$0xf]  ;;  %8668 = vmatpush.bf16.msrb.mxu3 %v11446_v15  ;;  %v9037_v12 = vunpack.c.l.bf16 %v13353_v38 }
 0x59e   : > { %v17830_v18 = vpop.f32.mrf.mxu0  ;;  %v17832_v54 = vpop.f32.mrf.mxu1  ;;  %v13020_v3 = vld [vmem:[#allocation3 + $0x28c] sm:$0xf]  ;;  %8699 = vmatpush.bf16.msra.mxu0 %v11542_v32  ;;  %v11638_v13 = vor.u32 %v13104_v45, %v11635_v10  ;;  %v11619_v28 = vld [vmem:[#allocation3 + $0x518] sm:$0xf0] }
 0x59f   : > { %v9094_v1 = vmax.f32 %v9062_v55, 0.0  ;;  %v8227_v52 = vadd.f32 %v8226_v63, %v8198_v27  ;;  %v11299_v63 = vld [vmem:[#allocation3 + $0x298] sm:$0xf0]  ;;  %v13072_v46 = vld [vmem:[#allocation3 + $0x42c] sm:$0xf] }
 0x5a0   : > { %v11302_v36 = vor.u32 %v13020_v3, %v11299_v63  ;;  %v11427_v55 = vld [vmem:[#allocation3 + $0x398] sm:$0xf0]  ;;  %8729 = vmatpush.bf16.msra.mxu1 %v11654_v6  ;;  %v13100_v32 = vld [vmem:[#allocation3 + $0x50c] sm:$0xf] }
 0x5a1   : > { %8597 = vmatmul.bf16.gmra.mxu0 %v18650_v41  ;;  %8626 = vmatmul.bf16.gmra.mxu1 %v18651_v4  ;;  %v9115_v19 = vpack.c.bf16 %v9094_v1, %v9093_v37  ;;  %v8961_v26 = vmul.f32 %v17712_v43, %v8227_v52  ;;  %v11430_v33 = vor.u32 %v13052_v60, %v11427_v55  ;;  %v9097_v37 = vmax.f32 %v9065_v57, 0.0  ;;  %v13068_v0 = vld [vmem:[#allocation3 + $0x40c] sm:$0xf]  ;;  %v11491_v61 = vld [vmem:[#allocation3 + $0x418] sm:$0xf0] }
 0x5a2   : > { %8640 = vmatpush.bf16.msrb.mxu2 %v11302_v36  ;;  %v9005_v41 = vadd.f32 %v17704_v23, %v8964_v44  ;;  %8700 = vmatpush.bf16.msra.mxu0 %v11526_v58  ;;  %v11510_v4 = vor.u32 %v13072_v46, %v11507_v20  ;;  %v18652_v23 = vld [vmem:[#allocation28_spill] sm:$0xff]  ;;  %v11283_v45 = vld [vmem:[#allocation3 + $0x278] sm:$0xf0]  ;;  %v13048_v57 = vld [vmem:[#allocation3 + $0x36c] sm:$0xf]  ;;  %v11494_v63 = vor.u32 %v13068_v0, %v11491_v61 }
 0x5a3   : > { %9131 = vst [vmem:[%s17743_s5 + $0x50] sm:$0xff] %v9115_v19  ;;  %v9002_v40 = vadd.f32 %v17722_v35, %v8961_v26  ;;  %8669 = vmatpush.bf16.msrb.mxu3 %v11430_v33  ;;  %v9038_v19 = vunpack.c.h.bf16 %v13353_v38  ;;  %v18653_v26 = vld [vmem:[#allocation31_spill] sm:$0xff]  ;;  %v11411_v10 = vld [vmem:[#allocation3 + $0x378] sm:$0xf0]  ;;  %v18655_v33 = vld [vmem:[#allocation40_spill] sm:$0xff] }
 0x5a4   : > { %v8199_v27 = vpop.f32.mrf.mxu2  ;;  %v8228_v16 = vpop.f32.mrf.mxu3  ;;  %v9069_v44 = vadd.f32 %v9037_v12, %v9005_v41  ;;  %8730 = vmatpush.bf16.msra.mxu1 %v11638_v13  ;;  %v13012_v41 = vld [vmem:[#allocation3 + $0x24c] sm:$0xf]  ;;  %v11395_v13 = vld [vmem:[#allocation3 + $0x358] sm:$0xf0] }
 0x5a5   : > { %v9066_v50 = vadd.f32 %v9034_v11, %v9002_v40  ;;  %v8200_v42 = vadd.f32 %v8199_v27, %v8171_v24  ;;  %v13016_v11 = vld [vmem:[#allocation3 + $0x26c] sm:$0xf]  ;;  %v11622_v24 = vor.u32 %v13100_v32, %v11619_v28  ;;  %v11414_v40 = vor.u32 %v13048_v57, %v11411_v10  ;;  %v11379_v57 = vld [vmem:[#allocation3 + $0x338] sm:$0xf0] }
 0x5a6   : > { %v17845_v30 = vpop.f32.mrf.mxu0  ;;  %v17847_v62 = vpop.f32.mrf.mxu1  ;;  %v11286_v6 = vor.u32 %v13016_v11, %v11283_v45  ;;  %8701 = vmatpush.bf16.msra.mxu0 %v11510_v4  ;;  %v9101_v46 = vmax.f32 %v9069_v44, 0.0  ;;  %v13044_v38 = vld [vmem:[#allocation3 + $0x34c] sm:$0xf]  ;;  %v18658_v10 = vld [vmem:[#allocation61_spill] sm:$0xff] }
 0x5a7   : > { %v9098_v1 = vmax.f32 %v9066_v50, 0.0  ;;  %v8229_v52 = vadd.f32 %v8228_v16, %v8200_v42  ;;  %8670 = vmatpush.bf16.msrb.mxu3 %v11414_v40  ;;  %v18654_v16 = vld [vmem:[#allocation39_spill] sm:$0xff]  ;;  %v18659_v40 = vld [vmem:[#allocation8_spill] sm:$0xff] }
 0x5a8   : > { %8641 = vmatpush.bf16.msrb.mxu2 %v11286_v6  ;;  %8731 = vmatpush.bf16.msra.mxu1 %v11622_v24  ;;  %v13040_v11 = vld [vmem:[#allocation3 + $0x32c] sm:$0xf] }
 0x5a9   : > { %v9117_v29 = vpack.c.bf16 %v9098_v1, %v9097_v37  ;;  %v8965_v15 = vmul.f32 %v17712_v43, %v8229_v52  ;;  %8529 = vmatmul.bf16.vlgmr.msra.gmra.mxu2 %v18652_v23  ;;  %8558 = vmatmul.bf16.vlgmr.msra.gmra.mxu3 %v18653_v26  ;;  %v11398_v37 = vor.u32 %v13044_v38, %v11395_v13 }
 0x5aa   : > { %8702 = vmatpush.bf16.msra.mxu0 %v11494_v63  ;;  %v11382_v44 = vor.u32 %v13040_v11, %v11379_v57  ;;  %v12099_v11 = vld [vmem:[#allocation3 + $0x8d8] sm:$0xf0] }
 0x5ab   : > { %9133 = vst [vmem:[%s17743_s5 + $0x60] sm:$0xff] %v9117_v29  ;;  %v9006_v3 = vadd.f32 %v17722_v35, %v8965_v15  ;;  %8671 = vmatpush.bf16.msrb.mxu3 %v11398_v37  ;;  %v18656_v29 = vld [vmem:[#allocation41_spill] sm:$0xff]  ;;  %v18657_v15 = vld [vmem:[#allocation42_spill] sm:$0xff] }
 0x5ac   : > { %v8298_v43 = vpop.f32.mrf.mxu2  ;;  %v8327_v58 = vpop.f32.mrf.mxu3 }
 0x5ad   : > { %v9070_v36 = vadd.f32 %v9038_v19, %v9006_v3  ;;  %v8299_v60 = vadd.f32 %v8298_v43, %v17648_v7  ;;  %v11267_v7 = vld [vmem:[#allocation3 + $0x258] sm:$0xf0]  ;;  %v13008_v19 = vld [vmem:[#allocation3 + $0x22c] sm:$0xf] }
 0x5ae   : > { %v17857_v55 = vpop.f32.mrf.mxu0  ;;  %v17859_v27 = vpop.f32.mrf.mxu1  ;;  %v11270_v12 = vor.u32 %v13012_v41, %v11267_v7  ;;  %v13036_v41 = vld [vmem:[#allocation3 + $0x30c] sm:$0xf]  ;;  %v11363_v7 = vld [vmem:[#allocation3 + $0x318] sm:$0xf0] }
 0x5af   : > { %v9102_v35 = vmax.f32 %v9070_v36, 0.0  ;;  %v8328_v20 = vadd.f32 %v8327_v58, %v8299_v60  ;;  %8672 = vmatpush.bf16.msrb.mxu3 %v11382_v44  ;;  %v18660_v58 = vld [vmem:[#allocation54_spill] sm:$0xff]  ;;  %v13004_v60 = vld [vmem:[#allocation3 + $0x20c] sm:$0xf]  ;;  %v11366_v37 = vor.u32 %v13036_v41, %v11363_v7  ;;  %v12227_v44 = vld [vmem:[#allocation3 + $0x9d8] sm:$0xf0] }
 0x5b0   : > { %8642 = vmatpush.bf16.msrb.mxu2 %v11270_v12 }
 0x5b1   : > { %8602 = vmatmul.bf16.gmra.mxu0 %v18654_v16  ;;  %8631 = vmatmul.bf16.gmra.mxu1 %v18655_v33  ;;  %v9119_v50 = vpack.c.bf16 %v9102_v35, %v9101_v46  ;;  %v8357_v42 = vadd.f32 %v17754_v47, %v8328_v20  ;;  %v13224_v16 = vld [vmem:[#allocation3 + $0x8ec] sm:$0xf]  ;;  %v12115_v35 = vld [vmem:[#allocation3 + $0x8f8] sm:$0xf0] }
 0x5b2   : > { %v13256_v20 = vld [vmem:[#allocation3 + $0x9ec] sm:$0xf]  ;;  %v12243_v33 = vld [vmem:[#allocation3 + $0x9f8] sm:$0xf0] }
 0x5b3   : > { %9135 = vst [vmem:[%s17743_s5 + $0x70] sm:$0xff] %v9119_v50  ;;  %v17866_v1 = vadd.f32 %v17756_v49, %v8357_v42  ;;  %v11251_v49 = vld [vmem:[#allocation3 + $0x238] sm:$0xf0]  ;;  %v12118_v50 = vor.u32 %v13224_v16, %v12115_v35  ;;  %v12246_v42 = vor.u32 %v13256_v20, %v12243_v33  ;;  %8673 = vmatpush.bf16.msrb.mxu3 %v11366_v37  ;;  %v18664_v20 = vld [vmem:[#allocation63_spill] sm:$0xff] }
 0x5b4   : > { %v8300_v52 = vpop.f32.mrf.mxu2  ;;  %v8329_v4 = vpop.f32.mrf.mxu3  ;;  %v11254_v45 = vor.u32 %v13008_v19, %v11251_v49  ;;  %v18662_v19 = vld [vmem:[#allocation43_spill] sm:$0xff]  ;;  %v12211_v16 = vld [vmem:[#allocation3 + $0x9b8] sm:$0xf0] }
 0x5b5   : > { %v8301_v32 = vadd.f32 %v8300_v52, %v17656_v8  ;;  %v18661_v52 = vld [vmem:[#allocation62_spill] sm:$0xff]  ;;  %8811 = vmatpush.bf16.msrb.mxu0 %v12118_v50  ;;  %8840 = vmatpush.bf16.msrb.mxu1 %v12246_v42  ;;  %v13220_v49 = vld [vmem:[#allocation3 + $0x8cc] sm:$0xf]  ;;  %v11987_v35 = vld [vmem:[#allocation3 + $0x7f8] sm:$0xf0] }
 0x5b6   : > { %v17869_v28 = vpop.f32.mrf.mxu0  ;;  %v17871_v0 = vpop.f32.mrf.mxu1  ;;  %8643 = vmatpush.bf16.msrb.mxu2 %v11254_v45  ;;  %v13252_v45 = vld [vmem:[#allocation3 + $0x9cc] sm:$0xf]  ;;  %v12102_v57 = vor.u32 %v13220_v49, %v12099_v11  ;;  %v12195_v49 = vld [vmem:[#allocation3 + $0x998] sm:$0xf0] }
 0x5b7   : > { %v8330_v47 = vadd.f32 %v8329_v4, %v8301_v32  ;;  %v13156_v11 = vld [vmem:[#allocation3 + $0x6cc] sm:$0xf] }
 0x5b9   : > { %v8359_v61 = vadd.f32 %v17772_v53, %v8330_v47  ;;  %8534 = vmatmul.bf16.gmra.mxu2 %v18656_v29  ;;  %8563 = vmatmul.bf16.gmra.mxu3 %v18657_v15 }
 0x5ba   : > { %8812 = vmatpush.bf16.msrb.mxu0 %v12102_v57 }
 0x5bb   : > { %v17877_v8 = vadd.f32 %v17774_v56, %v8359_v61  ;;  %v11235_v56 = vld [vmem:[#allocation3 + $0x218] sm:$0xf0] }
 0x5bc   : > { %v8303_v24 = vpop.f32.mrf.mxu2  ;;  %v8332_v6 = vpop.f32.mrf.mxu3  ;;  %v11238_v46 = vor.u32 %v13004_v60, %v11235_v56 }
 0x5bd   : > { %v8304_v3 = vadd.f32 %v8303_v24, %v18658_v10  ;;  %v13160_v24 = vld [vmem:[#allocation3 + $0x6ec] sm:$0xf]  ;;  %v12230_v10 = vor.u32 %v13252_v45, %v12227_v44  ;;  %v11843_v45 = vld [vmem:[#allocation3 + $0x6d8] sm:$0xf0] }
 0x5be   : > { %v17880_v63 = vpop.f32.mrf.mxu0  ;;  %v17882_v53 = vpop.f32.mrf.mxu1  ;;  %8644 = vmatpush.bf16.msrb.mxu2 %v11238_v46  ;;  %v13192_v46 = vld [vmem:[#allocation3 + $0x7ec] sm:$0xf]  ;;  %v11846_v44 = vor.u32 %v13156_v11, %v11843_v45 }
 0x5bf   : > { %v8333_v43 = vadd.f32 %v8332_v6, %v8304_v3  ;;  %v11859_v6 = vld [vmem:[#allocation3 + $0x6f8] sm:$0xf0]  ;;  %8841 = vmatpush.bf16.msrb.mxu1 %v12230_v10  ;;  %v11990_v7 = vor.u32 %v13192_v46, %v11987_v35  ;;  %v13240_v10 = vld [vmem:[#allocation3 + $0x96c] sm:$0xf] }
 0x5c0   : > { %v11862_v3 = vor.u32 %v13160_v24, %v11859_v6  ;;  %v13208_v24 = vld [vmem:[#allocation3 + $0x86c] sm:$0xf]  ;;  %v12051_v6 = vld [vmem:[#allocation3 + $0x878] sm:$0xf0] }
 0x5c1   : > { %8703 = vmatmul.bf16.vlgmr.msra.gmra.mxu0 %v18659_v40  ;;  %8732 = vmatmul.bf16.vlgmr.msra.gmra.mxu1 %v18660_v58  ;;  %v8362_v36 = vadd.f32 %v17791_v14, %v8333_v43  ;;  %v13216_v40 = vld [vmem:[#allocation3 + $0x8ac] sm:$0xf]  ;;  %v12083_v43 = vld [vmem:[#allocation3 + $0x8b8] sm:$0xf0] }
 0x5c2   : > { %v13248_v58 = vld [vmem:[#allocation3 + $0x9ac] sm:$0xf]  ;;  %v12086_v56 = vor.u32 %v13216_v40, %v12083_v43  ;;  %8753 = vmatpush.bf16.msra.mxu2 %v11862_v3  ;;  %8782 = vmatpush.bf16.msra.mxu3 %v11990_v7  ;;  %v18668_v7 = vld [vmem:[#allocation44_spill] sm:$0xff] }
 0x5c3   : > { %v17888_v38 = vadd.f32 %v17793_v39, %v8362_v36  ;;  %v18663_v39 = vld [vmem:[#allocation32_spill] sm:$0xff]  ;;  %v12214_v41 = vor.u32 %v13248_v58, %v12211_v16  ;;  %v12179_v58 = vld [vmem:[#allocation3 + $0x978] sm:$0xf0]  ;;  %v13200_v45 = vld [vmem:[#allocation3 + $0x82c] sm:$0xf] }
 0x5c4   : > { %v8305_v12 = vpop.f32.mrf.mxu2  ;;  %v8334_v13 = vpop.f32.mrf.mxu3  ;;  %8813 = vmatpush.bf16.msrb.mxu0 %v12086_v56  ;;  %v18667_v56 = vld [vmem:[#allocation64_spill] sm:$0xff] }
 0x5c5   : > { %v8306_v14 = vadd.f32 %v8305_v12, %v18661_v52  ;;  %v18665_v12 = vld [vmem:[#allocation7_spill] sm:$0xff]  ;;  %8842 = vmatpush.bf16.msrb.mxu1 %v12214_v41 }
 0x5c6   : > { %v17891_v4 = vpop.f32.mrf.mxu0  ;;  %v17893_v32 = vpop.f32.mrf.mxu1  ;;  %v13212_v52 = vld [vmem:[#allocation3 + $0x88c] sm:$0xf]  ;;  %8754 = vmatpush.bf16.msra.mxu2 %v11846_v44 }
 0x5c7   : > { %v8335_v47 = vadd.f32 %v8334_v13, %v8306_v14  ;;  %v18666_v13 = vld [vmem:[#allocation6_spill] sm:$0xff]  ;;  %v12067_v14 = vld [vmem:[#allocation3 + $0x898] sm:$0xf0]  ;;  %v13232_v44 = vld [vmem:[#allocation3 + $0x92c] sm:$0xf] }
 0x5c9   : > { %v8364_v61 = vadd.f32 %v17813_v59, %v8335_v47  ;;  %8539 = vmatmul.bf16.gmra.mxu2 %v18662_v19  ;;  %8568 = vmatmul.bf16.gmra.mxu3 %v18663_v39  ;;  %v13244_v47 = vld [vmem:[#allocation3 + $0x98c] sm:$0xf] }
 0x5ca   : > { %v12198_v57 = vor.u32 %v13244_v47, %v12195_v49  ;;  %v13152_v47 = vld [vmem:[#allocation3 + $0x6ac] sm:$0xf] }
 0x5cb   : > { %v17899_v36 = vadd.f32 %v17815_v25, %v8364_v61  ;;  %v12070_v61 = vor.u32 %v13212_v52, %v12067_v14  ;;  %v12163_v14 = vld [vmem:[#allocation3 + $0x958] sm:$0xf0] }
 0x5cc   : > { %v8308_v59 = vpop.f32.mrf.mxu2  ;;  %v8337_v60 = vpop.f32.mrf.mxu3  ;;  %8843 = vmatpush.bf16.msrb.mxu1 %v12198_v57  ;;  %v12019_v57 = vld [vmem:[#allocation3 + $0x838] sm:$0xf0] }
 0x5cd   : > { %v8309_v33 = vadd.f32 %v8308_v59, %v18664_v20  ;;  %8814 = vmatpush.bf16.msrb.mxu0 %v12070_v61  ;;  %v13188_v59 = vld [vmem:[#allocation3 + $0x7cc] sm:$0xf]  ;;  %v11827_v61 = vld [vmem:[#allocation3 + $0x6b8] sm:$0xf0] }
 0x5ce   : > { %v17902_v50 = vpop.f32.mrf.mxu0  ;;  %v17904_v42 = vpop.f32.mrf.mxu1  ;;  %v11830_v11 = vor.u32 %v13152_v47, %v11827_v61 }
 0x5cf   : > { %v8338_v25 = vadd.f32 %v8337_v60, %v8309_v33  ;;  %v11971_v60 = vld [vmem:[#allocation3 + $0x7d8] sm:$0xf0]  ;;  %v12182_v33 = vor.u32 %v13240_v10, %v12179_v58  ;;  %v12022_v10 = vor.u32 %v13200_v45, %v12019_v57 }
 0x5d0   : > { %v11974_v20 = vor.u32 %v13188_v59, %v11971_v60  ;;  %8755 = vmatpush.bf16.msra.mxu2 %v11830_v11  ;;  %v13180_v11 = vld [vmem:[#allocation3 + $0x78c] sm:$0xf] }
 0x5d1   : > { %8708 = vmatmul.bf16.gmra.mxu0 %v18665_v12  ;;  %8737 = vmatmul.bf16.gmra.mxu1 %v18666_v13  ;;  %v8367_v37 = vadd.f32 %v17830_v18, %v8338_v25  ;;  %v12054_v18 = vor.u32 %v13208_v24, %v12051_v6  ;;  %v18669_v12 = vld [vmem:[#allocation45_spill] sm:$0xff]  ;;  %v13204_v25 = vld [vmem:[#allocation3 + $0x84c] sm:$0xf] }
 0x5d2   : > { %8783 = vmatpush.bf16.msra.mxu3 %v11974_v20  ;;  %v12035_v13 = vld [vmem:[#allocation3 + $0x858] sm:$0xf0]  ;;  %8844 = vmatpush.bf16.msrb.mxu1 %v12182_v33 }
 0x5d3   : > { %v17910_v3 = vadd.f32 %v17832_v54, %v8367_v37  ;;  %8815 = vmatpush.bf16.msrb.mxu0 %v12054_v18  ;;  %v13236_v37 = vld [vmem:[#allocation3 + $0x94c] sm:$0xf]  ;;  %v12038_v52 = vor.u32 %v13204_v25, %v12035_v13  ;;  %v11955_v18 = vld [vmem:[#allocation3 + $0x7b8] sm:$0xf0] }
 0x5d4   : > { %v8310_v40 = vpop.f32.mrf.mxu2  ;;  %v8339_v43 = vpop.f32.mrf.mxu3  ;;  %v12166_v49 = vor.u32 %v13236_v37, %v12163_v14  ;;  %v18671_v33 = vld [vmem:[#allocation49_spill] sm:$0xff] }
 0x5d5   : > { %v8311_v16 = vadd.f32 %v8310_v40, %v18667_v56  ;;  %v12147_v40 = vld [vmem:[#allocation3 + $0x938] sm:$0xf0] }
 0x5d6   : > { %v17913_v46 = vpop.f32.mrf.mxu0  ;;  %v17915_v35 = vpop.f32.mrf.mxu1  ;;  %8845 = vmatpush.bf16.msrb.mxu1 %v12166_v49  ;;  %v12003_v25 = vld [vmem:[#allocation3 + $0x818] sm:$0xf0] }
 0x5d7   : > { %v8340_v41 = vadd.f32 %v8339_v43, %v8311_v16  ;;  %8816 = vmatpush.bf16.msrb.mxu0 %v12038_v52  ;;  %v13184_v43 = vld [vmem:[#allocation3 + $0x7ac] sm:$0xf]  ;;  %v18670_v16 = vld [vmem:[#allocation52_spill] sm:$0xff]  ;;  %v12131_v37 = vld [vmem:[#allocation3 + $0x918] sm:$0xf0] }
 0x5d8   : > { %v11958_v56 = vor.u32 %v13184_v43, %v11955_v18  ;;  %v13148_v52 = vld [vmem:[#allocation3 + $0x68c] sm:$0xf]  ;;  %v11811_v14 = vld [vmem:[#allocation3 + $0x698] sm:$0xf0]  ;;  %v18672_v18 = vld [vmem:[#allocation48_spill] sm:$0xff] }
 0x5d9   : > { %v8369_v54 = vadd.f32 %v17845_v30, %v8340_v41  ;;  %8544 = vmatmul.bf16.gmra.mxu2 %v18668_v7  ;;  %8573 = vmatmul.bf16.gmra.mxu3 %v18669_v12  ;;  %v11814_v61 = vor.u32 %v13148_v52, %v11811_v14  ;;  %v11939_v49 = vld [vmem:[#allocation3 + $0x798] sm:$0xf0] }
 0x5da   : > { %8784 = vmatpush.bf16.msra.mxu3 %v11958_v56  ;;  %v11795_v56 = vld [vmem:[#allocation3 + $0x678] sm:$0xf0] }
 0x5db   : > { %v17921_v24 = vadd.f32 %v17847_v62, %v8369_v54  ;;  %v12150_v62 = vor.u32 %v13232_v44, %v12147_v40  ;;  %8817 = vmatpush.bf16.msrb.mxu0 %v12022_v10  ;;  %v13196_v54 = vld [vmem:[#allocation3 + $0x80c] sm:$0xf]  ;;  %8756 = vmatpush.bf16.msra.mxu2 %v11814_v61  ;;  %v18675_v52 = vld [vmem:[#allocation53_spill] sm:$0xff] }
 0x5dc   : > { %v8313_v30 = vpop.f32.mrf.mxu2  ;;  %v8342_v6 = vpop.f32.mrf.mxu3  ;;  %v12006_v13 = vor.u32 %v13196_v54, %v12003_v25  ;;  %v13172_v61 = vld [vmem:[#allocation3 + $0x74c] sm:$0xf] }
 0x5dd   : > { %v8314_v58 = vadd.f32 %v8313_v30, %v17716_v22  ;;  %v13228_v22 = vld [vmem:[#allocation3 + $0x90c] sm:$0xf]  ;;  %8846 = vmatpush.bf16.msrb.mxu1 %v12150_v62  ;;  %v11942_v30 = vor.u32 %v13180_v11, %v11939_v49  ;;  %v11907_v49 = vld [vmem:[#allocation3 + $0x758] sm:$0xf0] }
 0x5de   : > { %v17924_v59 = vpop.f32.mrf.mxu0  ;;  %v17926_v60 = vpop.f32.mrf.mxu1  ;;  %v12134_v47 = vor.u32 %v13228_v22, %v12131_v37 }
 0x5df   : > { %v8343_v20 = vadd.f32 %v8342_v6, %v8314_v58  ;;  %8818 = vmatpush.bf16.msrb.mxu0 %v12006_v13  ;;  %8785 = vmatpush.bf16.msra.mxu3 %v11942_v30  ;;  %v13144_v58 = vld [vmem:[#allocation3 + $0x66c] sm:$0xf] }
 0x5e0   : > { %v11798_v62 = vor.u32 %v13144_v58, %v11795_v56  ;;  %v18674_v13 = vld [vmem:[#allocation51_spill] sm:$0xff]  ;;  %v18677_v58 = vld [vmem:[#allocation14_spill] sm:$0xff] }
 0x5e1   : > { %8713 = vmatmul.bf16.gmra.mxu0 %v18670_v16  ;;  %8742 = vmatmul.bf16.gmra.mxu1 %v18671_v33  ;;  %v8372_v41 = vadd.f32 %v17857_v55, %v8343_v20  ;;  %v13176_v16 = vld [vmem:[#allocation3 + $0x76c] sm:$0xf]  ;;  %v11923_v20 = vld [vmem:[#allocation3 + $0x778] sm:$0xf0] }
 0x5e2   : > { %8847 = vmatpush.bf16.msrb.mxu1 %v12134_v47  ;;  %8757 = vmatpush.bf16.msra.mxu2 %v11798_v62  ;;  %v13140_v47 = vld [vmem:[#allocation3 + $0x64c] sm:$0xf] }
 0x5e3   : > { %v17932_v45 = vadd.f32 %v17859_v27, %v8372_v41  ;;  %v18673_v27 = vld [vmem:[#allocation9_spill] sm:$0xff]  ;;  %v13136_v56 = vld [vmem:[#allocation3 + $0x62c] sm:$0xf] }
 0x5e4   : > { %v8315_v57 = vpop.f32.mrf.mxu2  ;;  %v8344_v44 = vpop.f32.mrf.mxu3 }
 0x5e5   : > { %v8316_v55 = vadd.f32 %v8315_v57, %v17733_v21  ;;  %v11926_v21 = vor.u32 %v13176_v16, %v11923_v20  ;;  %v11910_v57 = vor.u32 %v13172_v61, %v11907_v49  ;;  %v13168_v16 = vld [vmem:[#allocation3 + $0x72c] sm:$0xf]  ;;  %v11891_v20 = vld [vmem:[#allocation3 + $0x738] sm:$0xf0] }
 0x5e6   : > { %v17935_v6 = vpop.f32.mrf.mxu0  ;;  %v17937_v10 = vpop.f32.mrf.mxu1  ;;  %v13132_v61 = vld [vmem:[#allocation3 + $0x60c] sm:$0xf] }
 0x5e7   : > { %v8345_v40 = vadd.f32 %v8344_v44, %v8316_v55  ;;  %8786 = vmatpush.bf16.msra.mxu3 %v11926_v21  ;;  %v11894_v21 = vor.u32 %v13168_v16, %v11891_v20  ;;  %v18681_v16 = vld [vmem:[#allocation19_spill] sm:$0xff] }
 0x5e8   : > { %v13320_v20 = vld [vmem:[#allocation3 + $0xbec] sm:$0xf] }
 0x5e9   : > { %v8374_v43 = vadd.f32 %v17869_v28, %v8345_v40  ;;  %8645 = vmatmul.bf16.vlgmr.msrb.gmra.mxu2 %v18672_v18  ;;  %8674 = vmatmul.bf16.vlgmr.msrb.gmra.mxu3 %v18673_v27  ;;  %v18676_v27 = vld [vmem:[#allocation13_spill] sm:$0xff] }
 0x5eb   : > { %v17943_v33 = vadd.f32 %v17871_v0, %v8374_v43  ;;  %v11779_v0 = vld [vmem:[#allocation3 + $0x658] sm:$0xf0]  ;;  %8787 = vmatpush.bf16.msra.mxu3 %v11910_v57 }
 0x5ec   : > { %v8414_v41 = vpop.f32.mrf.mxu2  ;;  %v8443_v54 = vpop.f32.mrf.mxu3  ;;  %v11782_v11 = vor.u32 %v13140_v47, %v11779_v0  ;;  %v18679_v47 = vld [vmem:[#allocation17_spill] sm:$0xff] }
 0x5ed   : > { %v8415_v25 = vadd.f32 %v8414_v41, %v17866_v1  ;;  %v11875_v57 = vld [vmem:[#allocation3 + $0x718] sm:$0xf0] }
 0x5ee   : > { %v17946_v22 = vpop.f32.mrf.mxu0  ;;  %v17948_v28 = vpop.f32.mrf.mxu1  ;;  %8758 = vmatpush.bf16.msra.mxu2 %v11782_v11  ;;  %v13164_v11 = vld [vmem:[#allocation3 + $0x70c] sm:$0xf] }
 0x5ef   : > { %v8444_v37 = vadd.f32 %v8443_v54, %v8415_v25  ;;  %8788 = vmatpush.bf16.msra.mxu3 %v11894_v21 }
 0x5f1   : > { %8718 = vmatmul.bf16.gmra.mxu0 %v18674_v13  ;;  %8747 = vmatmul.bf16.gmra.mxu1 %v18675_v52  ;;  %v8473_v14 = vadd.f32 %v17880_v63, %v8444_v37  ;;  %v18678_v52 = vld [vmem:[#allocation12_spill] sm:$0xff] }
 0x5f3   : > { %v17954_v1 = vadd.f32 %v17882_v53, %v8473_v14  ;;  %v11763_v53 = vld [vmem:[#allocation3 + $0x638] sm:$0xf0] }
 0x5f4   : > { %v8416_v44 = vpop.f32.mrf.mxu2  ;;  %v8445_v30 = vpop.f32.mrf.mxu3  ;;  %v11766_v62 = vor.u32 %v13136_v56, %v11763_v53  ;;  %v18680_v53 = vld [vmem:[#allocation18_spill] sm:$0xff] }
 0x5f5   : > { %v8417_v55 = vadd.f32 %v8416_v44, %v17877_v8  ;;  %v11878_v44 = vor.u32 %v13164_v11, %v11875_v57 }
 0x5f6   : > { %v17957_v40 = vpop.f32.mrf.mxu0  ;;  %v17959_v43 = vpop.f32.mrf.mxu1  ;;  %8759 = vmatpush.bf16.msra.mxu2 %v11766_v62  ;;  %v13288_v62 = vld [vmem:[#allocation3 + $0xaec] sm:$0xf] }
 0x5f7   : > { %v8446_v63 = vadd.f32 %v8445_v30, %v8417_v55  ;;  %8789 = vmatpush.bf16.msra.mxu3 %v11878_v44 }
 0x5f9   : > { %v8475_v18 = vadd.f32 %v17891_v4, %v8446_v63  ;;  %8650 = vmatmul.bf16.gmra.mxu2 %v18676_v27  ;;  %8679 = vmatmul.bf16.gmra.mxu3 %v18677_v58 }
 0x5fb   : > { %v17965_v8 = vadd.f32 %v17893_v32, %v8475_v18  ;;  %v11747_v32 = vld [vmem:[#allocation3 + $0x618] sm:$0xf0] }
 0x5fc   : > { %v8419_v41 = vpop.f32.mrf.mxu2  ;;  %v8448_v54 = vpop.f32.mrf.mxu3  ;;  %v11750_v49 = vor.u32 %v13132_v61, %v11747_v32  ;;  %v18683_v61 = vld [vmem:[#allocation23_spill] sm:$0xff] }
 0x5fd   : > { %v8420_v25 = vadd.f32 %v8419_v41, %v17888_v38  ;;  %v12499_v41 = vld [vmem:[#allocation3 + $0xbf8] sm:$0xf0] }
 0x5fe   : > { %v8588_v13 = vpop.f32.mrf.mxu0  ;;  %v8617_v4 = vpop.f32.mrf.mxu1  ;;  %8760 = vmatpush.bf16.msra.mxu2 %v11750_v49 }
 0x5ff   : > { %v17968_v37 = vadd.f32 %v8617_v4, %v8588_v13  ;;  %v8449_v14 = vadd.f32 %v8448_v54, %v8420_v25  ;;  %v12502_v54 = vor.u32 %v13320_v20, %v12499_v41 }
 0x601   : > { %8819 = vmatmul.bf16.vlgmr.msrb.gmra.mxu0 %v18678_v52  ;;  %8848 = vmatmul.bf16.vlgmr.msrb.gmra.mxu1 %v18679_v47  ;;  %v8478_v0 = vadd.f32 %v17902_v50, %v8449_v14  ;;  %v18682_v47 = vld [vmem:[#allocation22_spill] sm:$0xff] }
 0x602   : > { %8898 = vmatpush.bf16.msrb.mxu3 %v12502_v54 }
 0x603   : > { %v17974_v38 = vadd.f32 %v17904_v42, %v8478_v0  ;;  %v12371_v42 = vld [vmem:[#allocation3 + $0xaf8] sm:$0xf0] }
 0x604   : > { %v8421_v30 = vpop.f32.mrf.mxu2  ;;  %v8450_v55 = vpop.f32.mrf.mxu3  ;;  %v12374_v21 = vor.u32 %v13288_v62, %v12371_v42 }
 0x605   : > { %v8422_v63 = vadd.f32 %v8421_v30, %v17899_v36 }
 0x606   : > { %v8590_v18 = vpop.f32.mrf.mxu0  ;;  %v8619_v27 = vpop.f32.mrf.mxu1  ;;  %8869 = vmatpush.bf16.msrb.mxu2 %v12374_v21 }
 0x607   : > { %v17977_v58 = vadd.f32 %v8619_v27, %v8590_v18  ;;  %v8451_v50 = vadd.f32 %v8450_v55, %v8422_v63  ;;  %v13284_v63 = vld [vmem:[#allocation3 + $0xacc] sm:$0xf]  ;;  %v12355_v18 = vld [vmem:[#allocation3 + $0xad8] sm:$0xf0] }
 0x608   : > { %v13316_v27 = vld [vmem:[#allocation3 + $0xbcc] sm:$0xf] }
 0x609   : > { %v8480_v56 = vadd.f32 %v17913_v46, %v8451_v50  ;;  %8655 = vmatmul.bf16.gmra.mxu2 %v18680_v53  ;;  %8684 = vmatmul.bf16.gmra.mxu3 %v18681_v16  ;;  %v12358_v50 = vor.u32 %v13284_v63, %v12355_v18  ;;  %v13276_v63 = vld [vmem:[#allocation3 + $0xa8c] sm:$0xf]  ;;  %v12323_v18 = vld [vmem:[#allocation3 + $0xa98] sm:$0xf0] }
 0x60b   : > { %v17983_v36 = vadd.f32 %v17915_v35, %v8480_v56  ;;  %v12483_v56 = vld [vmem:[#allocation3 + $0xbd8] sm:$0xf0]  ;;  %8870 = vmatpush.bf16.msrb.mxu2 %v12358_v50  ;;  %v12326_v50 = vor.u32 %v13276_v63, %v12323_v18  ;;  %v13264_v18 = vld [vmem:[#allocation3 + $0xa2c] sm:$0xf] }
 0x60c   : > { %v8424_v25 = vpop.f32.mrf.mxu2  ;;  %v8453_v13 = vpop.f32.mrf.mxu3  ;;  %v12486_v16 = vor.u32 %v13316_v27, %v12483_v56  ;;  %v13308_v27 = vld [vmem:[#allocation3 + $0xb8c] sm:$0xf] }
 0x60d   : > { %v8425_v4 = vadd.f32 %v8424_v25, %v17910_v3  ;;  %v18686_v25 = vld [vmem:[#allocation26_spill] sm:$0xff] }
 0x60e   : > { %v8593_v52 = vpop.f32.mrf.mxu0  ;;  %v8622_v46 = vpop.f32.mrf.mxu1  ;;  %8899 = vmatpush.bf16.msrb.mxu3 %v12486_v16 }
 0x60f   : > { %v17986_v14 = vadd.f32 %v8622_v46, %v8593_v52  ;;  %v8454_v0 = vadd.f32 %v8453_v13, %v8425_v4  ;;  %v18687_v13 = vld [vmem:[#allocation27_spill] sm:$0xff]  ;;  %v12339_v52 = vld [vmem:[#allocation3 + $0xab8] sm:$0xf0] }
 0x610   : > { %v13280_v4 = vld [vmem:[#allocation3 + $0xaac] sm:$0xf] }
 0x611   : > { %8824 = vmatmul.bf16.gmra.mxu0 %v18682_v47  ;;  %8853 = vmatmul.bf16.gmra.mxu1 %v18683_v61  ;;  %v8483_v32 = vadd.f32 %v17924_v59, %v8454_v0  ;;  %v18684_v59 = vld [vmem:[#allocation24_spill] sm:$0xff]  ;;  %v13312_v46 = vld [vmem:[#allocation3 + $0xbac] sm:$0xf]  ;;  %v12342_v47 = vor.u32 %v13280_v4, %v12339_v52  ;;  %v12467_v0 = vld [vmem:[#allocation3 + $0xbb8] sm:$0xf0] }
 0x612   : > { %v12470_v61 = vor.u32 %v13312_v46, %v12467_v0 }
 0x613   : > { %v17992_v35 = vadd.f32 %v17926_v60, %v8483_v32  ;;  %v18685_v60 = vld [vmem:[#allocation25_spill] sm:$0xff]  ;;  %8871 = vmatpush.bf16.msrb.mxu2 %v12342_v47 }
 0x614   : > { %v8426_v11 = vpop.f32.mrf.mxu2  ;;  %v8455_v49 = vpop.f32.mrf.mxu3  ;;  %8900 = vmatpush.bf16.msrb.mxu3 %v12470_v61  ;;  %v13268_v61 = vld [vmem:[#allocation3 + $0xa4c] sm:$0xf] }
 0x615   : > { %v8427_v57 = vadd.f32 %v8426_v11, %v17921_v24 }
 0x616   : > { %v8595_v3 = vpop.f32.mrf.mxu0  ;;  %v8624_v44 = vpop.f32.mrf.mxu1 }
 0x617   : > { %v17995_v30 = vadd.f32 %v8624_v44, %v8595_v3  ;;  %v8456_v55 = vadd.f32 %v8455_v49, %v8427_v57  ;;  %8872 = vmatpush.bf16.msrb.mxu2 %v12326_v50 }
 0x619   : > { %v8485_v53 = vadd.f32 %v17935_v6, %v8456_v55  ;;  %8660 = vmatmul.bf16.gmra.mxu2 %v18684_v59  ;;  %8689 = vmatmul.bf16.gmra.mxu3 %v18685_v60 }
 0x61b   : > { %v18001_v24 = vadd.f32 %v17937_v10, %v8485_v53  ;;  %v18688_v53 = vld [vmem:[#allocation46_spill] sm:$0xff] }
 0x61c   : > { %v8429_v62 = vpop.f32.mrf.mxu2  ;;  %v8458_v42 = vpop.f32.mrf.mxu3 }
 0x61d   : > { %v8430_v20 = vadd.f32 %v8429_v62, %v17932_v45 }
 0x61e   : > { %v8598_v21 = vpop.f32.mrf.mxu0  ;;  %v8627_v41 = vpop.f32.mrf.mxu1 }
 0x61f   : > { %v18004_v54 = vadd.f32 %v8627_v41, %v8598_v21  ;;  %v8459_v6 = vadd.f32 %v8458_v42, %v8430_v20  ;;  %v13272_v41 = vld [vmem:[#allocation3 + $0xa6c] sm:$0xf] }
 0x621   : > { %8829 = vmatmul.bf16.gmra.mxu0 %v18686_v25  ;;  %8858 = vmatmul.bf16.gmra.mxu1 %v18687_v13  ;;  %v8488_v10 = vadd.f32 %v17946_v22, %v8459_v6  ;;  %v12451_v22 = vld [vmem:[#allocation3 + $0xb98] sm:$0xf0]  ;;  %v13304_v6 = vld [vmem:[#allocation3 + $0xb6c] sm:$0xf] }
 0x622   : > { %v12454_v59 = vor.u32 %v13308_v27, %v12451_v22  ;;  %v12307_v25 = vld [vmem:[#allocation3 + $0xa78] sm:$0xf0]  ;;  %v13296_v22 = vld [vmem:[#allocation3 + $0xb2c] sm:$0xf] }
 0x623   : > { %v18010_v45 = vadd.f32 %v17948_v28, %v8488_v10  ;;  %v18689_v28 = vld [vmem:[#allocation47_spill] sm:$0xff]  ;;  %v12310_v13 = vor.u32 %v13272_v41, %v12307_v25  ;;  %v12275_v27 = vld [vmem:[#allocation3 + $0xa38] sm:$0xf0] }
 0x624   : > { %v8431_v32 = vpop.f32.mrf.mxu2  ;;  %v8460_v11 = vpop.f32.mrf.mxu3  ;;  %8901 = vmatpush.bf16.msrb.mxu3 %v12454_v59  ;;  %v12278_v50 = vor.u32 %v13264_v18, %v12275_v27 }
 0x625   : > { %v8432_v49 = vadd.f32 %v8431_v32, %v17943_v33  ;;  %8873 = vmatpush.bf16.msrb.mxu2 %v12310_v13 }
 0x626   : > { %v8600_v57 = vpop.f32.mrf.mxu0  ;;  %v8629_v3 = vpop.f32.mrf.mxu1 }
 0x627   : > { %v18013_v44 = vadd.f32 %v8629_v3, %v8600_v57  ;;  %v8461_v55 = vadd.f32 %v8460_v11, %v8432_v49  ;;  %v13300_v11 = vld [vmem:[#allocation3 + $0xb4c] sm:$0xf]  ;;  %v12419_v49 = vld [vmem:[#allocation3 + $0xb58] sm:$0xf0] }
 0x628   : > { %v12422_v57 = vor.u32 %v13300_v11, %v12419_v49 }
 0x629   : > { %v8490_v56 = vadd.f32 %v17957_v40, %v8461_v55  ;;  %8761 = vmatmul.bf16.vlgmr.msra.gmra.mxu2 %v18688_v53  ;;  %8790 = vmatmul.bf16.vlgmr.msra.gmra.mxu3 %v18689_v28 }
 0x62b   : > { %v18019_v33 = vadd.f32 %v17959_v43, %v8490_v56  ;;  %v12435_v43 = vld [vmem:[#allocation3 + $0xb78] sm:$0xf0] }
 0x62c   : > { %v8530_v60 = vpop.f32.mrf.mxu2  ;;  %v8559_v16 = vpop.f32.mrf.mxu3  ;;  %v12438_v4 = vor.u32 %v13304_v6, %v12435_v43  ;;  %v12403_v56 = vld [vmem:[#allocation3 + $0xb38] sm:$0xf0] }
 0x62d   : > { %v8531_v62 = vadd.f32 %v8530_v60, %v17954_v1  ;;  %v12406_v53 = vor.u32 %v13296_v22, %v12403_v56  ;;  %v13260_v60 = vld [vmem:[#allocation3 + $0xa0c] sm:$0xf] }
 0x62e   : > { %v8603_v42 = vpop.f32.mrf.mxu0  ;;  %v8632_v20 = vpop.f32.mrf.mxu1  ;;  %8902 = vmatpush.bf16.msrb.mxu3 %v12438_v4 }
 0x62f   : > { %v18022_v21 = vadd.f32 %v8632_v20, %v8603_v42  ;;  %v18025_v40 = vadd.f32 %v8559_v16, %v8531_v62  ;;  %v12259_v16 = vld [vmem:[#allocation3 + $0xa18] sm:$0xf0] }
 0x630   : > { %v12262_v62 = vor.u32 %v13260_v60, %v12259_v16  ;;  %v12387_v42 = vld [vmem:[#allocation3 + $0xb18] sm:$0xf0] }
 0x631   : > { %8834 = vmatmul.bf16.gmra.mxu0 %v18632_v5  ;;  %8863 = vmatmul.bf16.gmra.mxu1 %v18633_v2  ;;  %v12291_v2 = vld [vmem:[#allocation3 + $0xa58] sm:$0xf0] }
 0x632   : > { %v12294_v32 = vor.u32 %v13268_v61, %v12291_v2  ;;  %8903 = vmatpush.bf16.msrb.mxu3 %v12422_v57 }
 0x634   : > { %v8532_v52 = vpop.f32.mrf.mxu2  ;;  %v8561_v1 = vpop.f32.mrf.mxu3  ;;  %8874 = vmatpush.bf16.msrb.mxu2 %v12294_v32 }
 0x635   : > { %v8533_v46 = vadd.f32 %v8532_v52, %v17965_v8 }
 0x636   : > { %v8605_v47 = vpop.f32.mrf.mxu0  ;;  %v8634_v0 = vpop.f32.mrf.mxu1  ;;  %8904 = vmatpush.bf16.msrb.mxu3 %v12406_v53 }
 0x637   : > { %v18029_v10 = vadd.f32 %v8634_v0, %v8605_v47  ;;  %v18031_v5 = vadd.f32 %v8561_v1, %v8533_v46 }
 0x638   : > { %8875 = vmatpush.bf16.msrb.mxu2 %v12278_v50 }
 0x639   : > { %8766 = vmatmul.bf16.gmra.mxu2 %v18635_v17  ;;  %8795 = vmatmul.bf16.gmra.mxu3 %v18636_v48 }
 0x63c   : > { %v8535_v3 = vpop.f32.mrf.mxu2  ;;  %v8564_v8 = vpop.f32.mrf.mxu3  ;;  %8876 = vmatpush.bf16.msrb.mxu2 %v12262_v62 }
 0x63d   : > { %v8536_v55 = vadd.f32 %v8535_v3, %v17974_v38  ;;  %v13292_v38 = vld [vmem:[#allocation3 + $0xb0c] sm:$0xf] }
 0x63e   : > { %v12390_v20 = vor.u32 %v13292_v38, %v12387_v42 }
 0x63f   : > { %v18036_v63 = vadd.f32 %v8564_v8, %v8536_v55  ;;  %v8704_v55 = vpop.f32.mrf.mxu0 }
 0x640   : > { %8905 = vmatpush.bf16.msrb.mxu3 %v12390_v20 }
 0x644   : > { %v8537_v17 = vpop.f32.mrf.mxu2  ;;  %v8566_v28 = vpop.f32.mrf.mxu3 }
 0x645   : > { %v8538_v48 = vadd.f32 %v8537_v17, %v17983_v36 }
 0x647   : > { %v18039_v59 = vadd.f32 %v8566_v28, %v8538_v48 }
 0x649   : > { %8771 = vmatmul.bf16.gmra.mxu2 %v18641_v9  ;;  %8800 = vmatmul.bf16.gmra.mxu3 %v18642_v31 }
 0x64c   : > { %v8540_v41 = vpop.f32.mrf.mxu2  ;;  %v8569_v25 = vpop.f32.mrf.mxu3 }
 0x64d   : > { %v8541_v6 = vadd.f32 %v8540_v41, %v17992_v35 }
 0x64f   : > { %v18044_v13 = vadd.f32 %v8569_v25, %v8541_v6 }
 0x654   : > { %v8542_v36 = vpop.f32.mrf.mxu2  ;;  %v8571_v43 = vpop.f32.mrf.mxu3 }
 0x655   : > { %v8543_v4 = vadd.f32 %v8542_v36, %v18001_v24 }
 0x657   : > { %v18047_v52 = vadd.f32 %v8571_v43, %v8543_v4 }
 0x659   : > { %8776 = vmatmul.bf16.gmra.mxu2 %v18647_v34  ;;  %8805 = vmatmul.bf16.gmra.mxu3 %v18648_v51 }
 0x65c   : > { %v8545_v9 = vpop.f32.mrf.mxu2  ;;  %v8574_v31 = vpop.f32.mrf.mxu3 }
 0x65d   : > { %v8546_v1 = vadd.f32 %v8545_v9, %v18010_v45 }
 0x65f   : > { %v18052_v46 = vadd.f32 %v8574_v31, %v8546_v1 }
 0x664   : > { %v8547_v47 = vpop.f32.mrf.mxu2  ;;  %v8576_v35 = vpop.f32.mrf.mxu3 }
 0x665   : > { %v8548_v0 = vadd.f32 %v8547_v47, %v18019_v33 }
 0x667   : > { %v18055_v61 = vadd.f32 %v8576_v35, %v8548_v0 }
 0x669   : > { %8877 = vmatmul.bf16.vlgmr.msrb.gmra.mxu2 %v18652_v23  ;;  %8906 = vmatmul.bf16.vlgmr.msrb.gmra.mxu3 %v18653_v26 }
 0x66c   : > { %v8646_v24 = vpop.f32.mrf.mxu2  ;;  %v8675_v34 = vpop.f32.mrf.mxu3 }
 0x66d   : > { %v8647_v51 = vadd.f32 %v8646_v24, %v17968_v37 }
 0x66f   : > { %v18060_v2 = vadd.f32 %v8675_v34, %v8647_v51 }
 0x674   : > { %v8648_v32 = vpop.f32.mrf.mxu2  ;;  %v8677_v45 = vpop.f32.mrf.mxu3 }
 0x675   : > { %v8649_v11 = vadd.f32 %v8648_v32, %v17977_v58 }
 0x677   : > { %v18063_v49 = vadd.f32 %v8677_v45, %v8649_v11  ;;  %v8705_v11 = vadd.f32 %v8704_v55, %v18060_v2  ;;  %v13354_v2 = vld [vmem:[%s18230_s3 + $0x2] ss:$4 sm:$0xf] }
 0x678   : > { %v18132_v55 = vperm.slane %v13354_v2, 2 }
 0x679   : > { %8882 = vmatmul.bf16.gmra.mxu2 %v18656_v29  ;;  %8911 = vmatmul.bf16.gmra.mxu3 %v18657_v15  ;;  %v8733_v29 = vpop.f32.mrf.mxu1 }
 0x67c   : > { %v8651_v33 = vpop.f32.mrf.mxu2  ;;  %v8680_v23 = vpop.f32.mrf.mxu3 }
 0x67d   : > { %v8652_v26 = vadd.f32 %v8651_v33, %v17986_v14  ;;  %v8706_v14 = vpop.f32.mrf.mxu0 }
 0x67f   : > { %v18068_v57 = vadd.f32 %v8680_v23, %v8652_v26 }
 0x681   : > { %v8735_v53 = vpop.f32.mrf.mxu1 }
 0x684   : > { %v8653_v3 = vpop.f32.mrf.mxu2  ;;  %v8682_v37 = vpop.f32.mrf.mxu3 }
 0x685   : > { %v8654_v8 = vadd.f32 %v8653_v3, %v17995_v30  ;;  %v8734_v3 = vadd.f32 %v8733_v29, %v8705_v11 }
 0x687   : > { %v18071_v18 = vadd.f32 %v8682_v37, %v8654_v8  ;;  %v8707_v8 = vadd.f32 %v8706_v14, %v18063_v49  ;;  %v8938_v49 = vmul.f32 %v18132_v55, %v18025_v40  ;;  %v13355_v14 = vld [vmem:[%s18230_s3 + $0x3] ss:$4 sm:$0xf] }
 0x689   : > { %8887 = vmatmul.bf16.gmra.mxu2 %v18662_v19  ;;  %8916 = vmatmul.bf16.gmra.mxu3 %v18663_v39  ;;  %v8709_v19 = vpop.f32.mrf.mxu0 }
 0x68c   : > { %v8656_v58 = vpop.f32.mrf.mxu2  ;;  %v8685_v15 = vpop.f32.mrf.mxu3 }
 0x68d   : > { %v8657_v27 = vadd.f32 %v8656_v58, %v18004_v54  ;;  %v8738_v54 = vpop.f32.mrf.mxu1 }
 0x68f   : > { %v18076_v50 = vadd.f32 %v8685_v15, %v8657_v27 }
 0x691   : > { %v8711_v38 = vpop.f32.mrf.mxu0 }
 0x694   : > { %v8658_v22 = vpop.f32.mrf.mxu2  ;;  %v8687_v56 = vpop.f32.mrf.mxu3 }
 0x695   : > { %v8659_v30 = vadd.f32 %v8658_v22, %v18013_v44  ;;  %v18089_v20 = vpop.f32.mrf.mxu1 }
 0x697   : > { %v18079_v17 = vadd.f32 %v8687_v56, %v8659_v30  ;;  %v8736_v30 = vadd.f32 %v8735_v53, %v8707_v8 }
 0x699   : > { %8892 = vmatmul.bf16.gmra.mxu2 %v18668_v7  ;;  %8921 = vmatmul.bf16.gmra.mxu3 %v18669_v12  ;;  %v18091_v12 = vpop.f32.mrf.mxu0 }
 0x69c   : > { %v8661_v39 = vpop.f32.mrf.mxu2  ;;  %v8690_v28 = vpop.f32.mrf.mxu3 }
 0x69d   : > { %v8662_v48 = vadd.f32 %v8661_v39, %v18022_v21  ;;  %v18093_v25 = vpop.f32.mrf.mxu1 }
 0x69f   : > { %v18084_v60 = vadd.f32 %v8690_v28, %v8662_v48  ;;  %v8710_v28 = vadd.f32 %v8709_v19, %v18068_v57  ;;  %v18140_v48 = vperm.slane %v13355_v14, 2  ;;  %v13356_v19 = vld [vmem:[%s13626_s30 + $0x8] sm:$0xff] }
 0x6a1   : > { %v18095_v36 = vpop.f32.mrf.mxu0  ;;  %v8979_v57 = vadd.f32 %v18140_v48, %v8938_v49 }
 0x6a4   : > { %v8663_v16 = vpop.f32.mrf.mxu2  ;;  %v8692_v62 = vpop.f32.mrf.mxu3 }
 0x6a5   : > { %v8664_v42 = vadd.f32 %v8663_v16, %v18029_v10  ;;  %v18097_v9 = vpop.f32.mrf.mxu1 }
 0x6a7   : > { %v18087_v44 = vadd.f32 %v8692_v62, %v8664_v42 }
 0x6a9   : > { %v18099_v31 = vpop.f32.mrf.mxu0 }
 0x6ac   : > { %v8762_v7 = vpop.f32.mrf.mxu2  ;;  %v8791_v41 = vpop.f32.mrf.mxu3 }
 0x6ad   : > { %v18105_v47 = vpop.f32.mrf.mxu1  ;;  %v8763_v37 = vadd.f32 %v8762_v7, %v8734_v3 }
 0x6af   : > { %v8792_v15 = vadd.f32 %v8791_v41, %v8763_v37  ;;  %v8739_v41 = vadd.f32 %v8738_v54, %v8710_v28 }
 0x6b1   : > { %v18111_v24 = vpop.f32.mrf.mxu0 }
 0x6b4   : > { %v8764_v6 = vpop.f32.mrf.mxu2  ;;  %v8793_v21 = vpop.f32.mrf.mxu3 }
 0x6b5   : > { %v18113_v34 = vpop.f32.mrf.mxu1  ;;  %v8765_v29 = vadd.f32 %v8764_v6, %v8736_v30  ;;  %v9011_v6 = vunpack.c.l.bf16 %v13356_v19  ;;  %v8712_v30 = vadd.f32 %v8711_v38, %v18071_v18 }
 0x6b7   : > { %v8794_v16 = vadd.f32 %v8793_v21, %v8765_v29  ;;  %v9043_v54 = vadd.f32 %v9011_v6, %v8979_v57 }
 0x6b9   : > { %v8820_v45 = vpop.f32.mrf.mxu0  ;;  %v9075_v18 = vmax.f32 %v9043_v54, 0.0 }
 0x6ba   : > { %v8821_v39 = vadd.f32 %v8820_v45, %v8792_v15  ;;  %v18142_v45 = vperm.slane %v13354_v2, 3  ;;  %v18146_v15 = vperm.slane %v13355_v14, 3  ;;  %v8942_v2 = vmul.f32 %v18132_v55, %v18031_v5 }
 0x6bb   : > { %v8741_v14 = vadd.f32 %v18089_v20, %v8712_v30 }
 0x6bc   : > { %v8767_v43 = vpop.f32.mrf.mxu2  ;;  %v8796_v4 = vpop.f32.mrf.mxu3  ;;  %v8983_v38 = vadd.f32 %v18140_v48, %v8942_v2 }
 0x6bd   : > { %v8849_v33 = vpop.f32.mrf.mxu1  ;;  %v8768_v37 = vadd.f32 %v8767_v43, %v8739_v41 }
 0x6be   : > { %v8850_v62 = vadd.f32 %v8849_v33, %v8821_v39  ;;  %v9012_v33 = vunpack.c.h.bf16 %v13356_v19 }
 0x6bf   : > { %v8797_v39 = vadd.f32 %v8796_v4, %v8768_v37  ;;  %v8946_v37 = vmul.f32 %v18132_v55, %v18036_v63 }
 0x6c1   : > { %v8822_v58 = vpop.f32.mrf.mxu0  ;;  %v8987_v2 = vadd.f32 %v18140_v48, %v8946_v37 }
 0x6c2   : > { %v8823_v3 = vadd.f32 %v8822_v58, %v8794_v16 }
 0x6c4   : > { %v18101_v10 = vpop.f32.mrf.mxu2  ;;  %v18103_v1 = vpop.f32.mrf.mxu3 }
 0x6c5   : > { %v8851_v56 = vpop.f32.mrf.mxu1  ;;  %v8770_v5 = vadd.f32 %v18101_v10, %v8741_v14 }
 0x6c6   : > { %v8852_v28 = vadd.f32 %v8851_v56, %v8823_v3  ;;  %v8715_v56 = vadd.f32 %v18091_v12, %v18076_v50 }
 0x6c8   : > { %v8744_v50 = vadd.f32 %v18093_v25, %v8715_v56  ;;  %v13359_v56 = vld [vmem:[%s13626_s30 + $0x38] sm:$0xff] }
 0x6c9   : > { %v8825_v53 = vpop.f32.mrf.mxu0 }
 0x6ca   : > { %v8826_v41 = vadd.f32 %v8825_v53, %v8797_v39  ;;  %v13358_v39 = vld [vmem:[%s13626_s30 + $0x28] sm:$0xff] }
 0x6cc   : > { %v18107_v35 = vpop.f32.mrf.mxu2  ;;  %v18109_v0 = vpop.f32.mrf.mxu3 }
 0x6cd   : > { %v8854_v40 = vpop.f32.mrf.mxu1 }
 0x6ce   : > { %v8855_v53 = vadd.f32 %v8854_v40, %v8826_v41  ;;  %v8717_v40 = vadd.f32 %v18095_v36, %v18079_v17 }
 0x6d0   : > { %v8746_v17 = vadd.f32 %v18097_v9, %v8717_v40 }
 0x6d1   : > { %v8827_v43 = vpop.f32.mrf.mxu0 }
 0x6d4   : > { %v18115_v51 = vpop.f32.mrf.mxu2  ;;  %v18117_v32 = vpop.f32.mrf.mxu3 }
 0x6d5   : > { %v8856_v57 = vpop.f32.mrf.mxu1 }
 0x6dc   : > { %v18120_v23 = vpop.f32.mrf.mxu2  ;;  %v18122_v26 = vpop.f32.mrf.mxu3 }
 0x6e4   : > { %v18125_v27 = vpop.f32.mrf.mxu2  ;;  %v18127_v22 = vpop.f32.mrf.mxu3 }
 0x6ec   : > { %v8878_v42 = vpop.f32.mrf.mxu2  ;;  %v8907_v7 = vpop.f32.mrf.mxu3 }
 0x6ed   : > { %v8879_v11 = vadd.f32 %v8878_v42, %v8850_v62  ;;  %v13357_v42 = vld [vmem:[%s13626_s30 + $0x18] sm:$0xff] }
 0x6ee   : > { %v9016_v6 = vunpack.c.h.bf16 %v13357_v42 }
 0x6ef   : > { %v8908_v8 = vadd.f32 %v8907_v7, %v8879_v11  ;;  %v9015_v7 = vunpack.c.l.bf16 %v13357_v42 }
 0x6f1   : > { %v8939_v21 = vmul.f32 %v18142_v45, %v8908_v8  ;;  %v9047_v3 = vadd.f32 %v9015_v7, %v8983_v38  ;;  %v8799_v8 = vadd.f32 %v18103_v1, %v8770_v5  ;;  %v8773_v1 = vadd.f32 %v18107_v35, %v8744_v50  ;;  %v8859_v38 = vpop.f32.mrf.mxu1 }
 0x6f3   : > { %v8980_v29 = vadd.f32 %v18146_v15, %v8939_v21  ;;  %v9079_v54 = vmax.f32 %v9047_v3, 0.0  ;;  %v8828_v63 = vadd.f32 %v8827_v43, %v8799_v8  ;;  %v8802_v42 = vadd.f32 %v18109_v0, %v8773_v1 }
 0x6f4   : > { %v8880_v49 = vpop.f32.mrf.mxu2  ;;  %v8909_v58 = vpop.f32.mrf.mxu3  ;;  %v9024_v8 = vunpack.c.h.bf16 %v13359_v56 }
 0x6f5   : > { %v9044_v16 = vadd.f32 %v9012_v33, %v8980_v29  ;;  %v8881_v62 = vadd.f32 %v8880_v49, %v8852_v28  ;;  %v9019_v29 = vunpack.c.l.bf16 %v13358_v39  ;;  %v8830_v28 = vpop.f32.mrf.mxu0  ;;  %v8857_v43 = vadd.f32 %v8856_v57, %v8828_v63 }
 0x6f6   : > { %v8720_v57 = vadd.f32 %v18099_v31, %v18084_v60 }
 0x6f7   : > { %v9076_v4 = vmax.f32 %v9044_v16, 0.0  ;;  %v8910_v11 = vadd.f32 %v8909_v58, %v8881_v62  ;;  %v9020_v16 = vunpack.c.h.bf16 %v13358_v39  ;;  %v9051_v62 = vadd.f32 %v9019_v29, %v8987_v2  ;;  %v13360_v39 = vld [vmem:[%s13626_s30 + $0x48] sm:$0xff] }
 0x6f8   : > { %v8749_v60 = vadd.f32 %v18105_v47, %v8720_v57  ;;  %v9027_v29 = vunpack.c.l.bf16 %v13360_v39  ;;  %v9028_v40 = vunpack.c.h.bf16 %v13360_v39 }
 0x6f9   : > { %v9106_v19 = vpack.c.bf16 %v9076_v4, %v9075_v18  ;;  %v8943_v20 = vmul.f32 %v18142_v45, %v8910_v11  ;;  %v8950_v18 = vmul.f32 %v18132_v55, %v18039_v59  ;;  %v9083_v4 = vmax.f32 %v9051_v62, 0.0 }
 0x6fa   : > { %v8831_v59 = vadd.f32 %v8830_v28, %v8802_v42  ;;  %v8861_v28 = vpop.f32.mrf.mxu1 }
 0x6fb   : > { %9122 = vst [vmem:[%s17743_s5 + $0x8] sm:$0xff] %v9106_v19  ;;  %v8984_v10 = vadd.f32 %v18146_v15, %v8943_v20  ;;  %v8991_v11 = vadd.f32 %v18140_v48, %v8950_v18  ;;  %v9023_v19 = vunpack.c.l.bf16 %v13359_v56  ;;  %v8775_v20 = vadd.f32 %v18115_v51, %v8746_v17 }
 0x6fc   : > { %v8883_v30 = vpop.f32.mrf.mxu2  ;;  %v8912_v21 = vpop.f32.mrf.mxu3 }
 0x6fd   : > { %v9048_v12 = vadd.f32 %v9016_v6, %v8984_v10  ;;  %v8884_v33 = vadd.f32 %v8883_v30, %v8855_v53  ;;  %v8832_v3 = vpop.f32.mrf.mxu0  ;;  %v9055_v10 = vadd.f32 %v9023_v19, %v8991_v11  ;;  %v8954_v53 = vmul.f32 %v18132_v55, %v18044_v13 }
 0x6fe   : > { %v8804_v30 = vadd.f32 %v18117_v32, %v8775_v20  ;;  %v8778_v32 = vadd.f32 %v18120_v23, %v8749_v60 }
 0x6ff   : > { %v9080_v49 = vmax.f32 %v9048_v12, 0.0  ;;  %v8913_v58 = vadd.f32 %v8912_v21, %v8884_v33  ;;  %v8860_v21 = vadd.f32 %v8859_v38, %v8831_v59  ;;  %v8995_v2 = vadd.f32 %v18140_v48, %v8954_v53 }
 0x700   : > { %v8833_v13 = vadd.f32 %v8832_v3, %v8804_v30  ;;  %v8807_v62 = vadd.f32 %v18122_v26, %v8778_v32  ;;  %v8962_v59 = vmul.f32 %v18132_v55, %v18052_v46 }
 0x701   : > { %v9108_v14 = vpack.c.bf16 %v9080_v49, %v9079_v54  ;;  %v8947_v25 = vmul.f32 %v18142_v45, %v8913_v58  ;;  %v9087_v54 = vmax.f32 %v9055_v10, 0.0  ;;  %v8722_v49 = vadd.f32 %v18111_v24, %v18087_v44 }
 0x702   : > { %v8862_v18 = vadd.f32 %v8861_v28, %v8833_v13  ;;  %v9003_v30 = vadd.f32 %v18140_v48, %v8962_v59  ;;  %v13363_v13 = vld [vmem:[%s13626_s30 + $0x78] sm:$0xff] }
 0x703   : > { %9124 = vst [vmem:[%s17743_s5 + $0x18] sm:$0xff] %v9108_v14  ;;  %v8988_v35 = vadd.f32 %v18146_v15, %v8947_v25  ;;  %v9059_v14 = vadd.f32 %v9027_v29, %v8995_v2  ;;  %v8958_v25 = vmul.f32 %v18132_v55, %v18047_v52  ;;  %v8751_v44 = vadd.f32 %v18113_v34, %v8722_v49 }
 0x704   : > { %v8885_v7 = vpop.f32.mrf.mxu2  ;;  %v8914_v41 = vpop.f32.mrf.mxu3  ;;  %v9039_v32 = vunpack.c.l.bf16 %v13363_v13 }
 0x705   : > { %v9052_v36 = vadd.f32 %v9020_v16, %v8988_v35  ;;  %v8886_v5 = vadd.f32 %v8885_v7, %v8857_v43  ;;  %v8835_v16 = vpop.f32.mrf.mxu0  ;;  %v9091_v43 = vmax.f32 %v9059_v14, 0.0  ;;  %v8999_v7 = vadd.f32 %v18140_v48, %v8958_v25 }
 0x706   : > { %v8836_v52 = vadd.f32 %v8835_v16, %v8807_v62 }
 0x707   : > { %v9084_v0 = vmax.f32 %v9052_v36, 0.0  ;;  %v8915_v6 = vadd.f32 %v8914_v41, %v8886_v5  ;;  %v13361_v41 = vld [vmem:[%s13626_s30 + $0x58] sm:$0xff]  ;;  %v8780_v36 = vadd.f32 %v18125_v27, %v8751_v44 }
 0x708   : > { %v9031_v17 = vunpack.c.l.bf16 %v13361_v41  ;;  %v9032_v19 = vunpack.c.h.bf16 %v13361_v41 }
 0x709   : > { %v9110_v37 = vpack.c.bf16 %v9084_v0, %v9083_v4  ;;  %v8951_v9 = vmul.f32 %v18142_v45, %v8915_v6  ;;  %v8864_v4 = vpop.f32.mrf.mxu1  ;;  %v8809_v20 = vadd.f32 %v18127_v22, %v8780_v36 }
 0x70a   : > { %v9063_v34 = vadd.f32 %v9031_v17, %v8999_v7  ;;  %v8865_v6 = vadd.f32 %v8864_v4, %v8836_v52 }
 0x70b   : > { %9126 = vst [vmem:[%s17743_s5 + $0x28] sm:$0xff] %v9110_v37  ;;  %v8992_v51 = vadd.f32 %v18146_v15, %v8951_v9 }
 0x70c   : > { %v8888_v50 = vpop.f32.mrf.mxu2  ;;  %v8917_v12 = vpop.f32.mrf.mxu3  ;;  %v9095_v9 = vmax.f32 %v9063_v34, 0.0 }
 0x70d   : > { %v9056_v31 = vadd.f32 %v9024_v8, %v8992_v51  ;;  %v8889_v33 = vadd.f32 %v8888_v50, %v8860_v21  ;;  %v13362_v8 = vld [vmem:[%s13626_s30 + $0x68] sm:$0xff]  ;;  %v8837_v53 = vpop.f32.mrf.mxu0 }
 0x70e   : > { %v9035_v10 = vunpack.c.l.bf16 %v13362_v8  ;;  %v8838_v51 = vadd.f32 %v8837_v53, %v8809_v20 }
 0x70f   : > { %v9088_v63 = vmax.f32 %v9056_v31, 0.0  ;;  %v8918_v1 = vadd.f32 %v8917_v12, %v8889_v33  ;;  %v9036_v12 = vunpack.c.h.bf16 %v13362_v8  ;;  %v8966_v33 = vmul.f32 %v18132_v55, %v18055_v61 }
 0x710   : > { %v9067_v31 = vadd.f32 %v9035_v10, %v9003_v30  ;;  %v9040_v55 = vunpack.c.h.bf16 %v13363_v13 }
 0x711   : > { %v9112_v58 = vpack.c.bf16 %v9088_v63, %v9087_v54  ;;  %v8955_v47 = vmul.f32 %v18142_v45, %v8918_v1  ;;  %v8866_v60 = vpop.f32.mrf.mxu1  ;;  %v9007_v49 = vadd.f32 %v18140_v48, %v8966_v33 }
 0x712   : > { %v8867_v2 = vadd.f32 %v8866_v60, %v8838_v51  ;;  %v9099_v1 = vmax.f32 %v9067_v31, 0.0 }
 0x713   : > { %9128 = vst [vmem:[%s17743_s5 + $0x38] sm:$0xff] %v9112_v58  ;;  %v8996_v23 = vadd.f32 %v18146_v15, %v8955_v47  ;;  %v9071_v14 = vadd.f32 %v9039_v32, %v9007_v49 }
 0x714   : > { %v8890_v38 = vpop.f32.mrf.mxu2  ;;  %v8919_v42 = vpop.f32.mrf.mxu3 }
 0x715   : > { %v9060_v24 = vadd.f32 %v9028_v40, %v8996_v23  ;;  %v8891_v35 = vadd.f32 %v8890_v38, %v8862_v18  ;;  %v9103_v62 = vmax.f32 %v9071_v14, 0.0 }
 0x717   : > { %v9092_v26 = vmax.f32 %v9060_v24, 0.0  ;;  %v8920_v5 = vadd.f32 %v8919_v42, %v8891_v35 }
 0x719   : > { %v9114_v11 = vpack.c.bf16 %v9092_v26, %v9091_v43  ;;  %v8959_v56 = vmul.f32 %v18142_v45, %v8920_v5 }
 0x71b   : > { %9130 = vst [vmem:[%s17743_s5 + $0x48] sm:$0xff] %v9114_v11  ;;  %v9000_v0 = vadd.f32 %v18146_v15, %v8959_v56 }
 0x71c   : > { %v8893_v57 = vpop.f32.mrf.mxu2  ;;  %v8922_v27 = vpop.f32.mrf.mxu3 }
 0x71d   : > { %v9064_v3 = vadd.f32 %v9032_v19, %v9000_v0  ;;  %v8894_v37 = vadd.f32 %v8893_v57, %v8865_v6 }
 0x71f   : > { %v9096_v46 = vmax.f32 %v9064_v3, 0.0  ;;  %v8923_v21 = vadd.f32 %v8922_v27, %v8894_v37 }
 0x721   : > { %v9116_v22 = vpack.c.bf16 %v9096_v46, %v9095_v9  ;;  %v8963_v50 = vmul.f32 %v18142_v45, %v8923_v21 }
 0x723   : > { %9132 = vst [vmem:[%s17743_s5 + $0x58] sm:$0xff] %v9116_v22  ;;  %v9004_v54 = vadd.f32 %v18146_v15, %v8963_v50 }
 0x724   : > { %v8895_v39 = vpop.f32.mrf.mxu2  ;;  %v8924_v63 = vpop.f32.mrf.mxu3 }
 0x725   : > { %v9068_v29 = vadd.f32 %v9036_v12, %v9004_v54  ;;  %v8896_v28 = vadd.f32 %v8895_v39, %v8867_v2 }
 0x727   : > { %v9100_v58 = vmax.f32 %v9068_v29, 0.0  ;;  %v8925_v47 = vadd.f32 %v8924_v63, %v8896_v28 }
 0x729   : > { %v9118_v40 = vpack.c.bf16 %v9100_v58, %v9099_v1  ;;  %v8967_v61 = vmul.f32 %v18142_v45, %v8925_v47 }
 0x72b   : > { %9134 = vst [vmem:[%s17743_s5 + $0x68] sm:$0xff] %v9118_v40  ;;  %v9008_v25 = vadd.f32 %v18146_v15, %v8967_v61 }
 0x72d   : > { %v9072_v16 = vadd.f32 %v9040_v55, %v9008_v25 }
 0x72f   : > { %v9104_v23 = vmax.f32 %v9072_v16, 0.0 }
 0x731   : > { %v9120_v18 = vpack.c.bf16 %v9104_v23, %v9103_v62 }
 0x733   : > { %9136 = vst [vmem:[%s17743_s5 + $0x78] sm:$0xff] %v9120_v18 }
 0x734 PF: > { %s15_s15 = sadd.s32 1, %s13404_s15  }
 0x735   : > { %p12_p7 = scmp.ge.s32.totalorder %s15_s15, 4  }
 0x737   :  { %14 = sbr.rel (!%p12_p7) target bundleno = 1 (0x1), region = 74 }
 0x73c   :  { %9161 = vsyncpa [#allocation4], 1 }
 0x73d   :  { %9163 = vsyncpa [#allocation4 + $0x1], 1 }

</bundles_post_ra>
